<compile_context>
chip_gen: v7x
topology: tpu7x:2x2x1
jax: 0.10.0
libtpu: 0.0.40
codegen_flags: <defaults>
</compile_context>

<pallas_src>
import functools

import jax
import jax.numpy as jnp
from jax import lax
from jax.experimental import pallas as pl
from jax.experimental.pallas import tpu as pltpu


# ------------------------------------------------------------------ kernel


def _lstm_pooler_kernel(xf_ref, xb_ref, wif_ref, wib_ref, whh_ref, bf_ref, bb_ref,
                        out_ref, gxf_s, gxb_s, h_s, c_s, s_s, m_s,
                        *, seq_len, fuse):
    """Grid = (batch_tiles, time_chunks); time axis is sequential ("arbitrary").

    xf_ref : (TC, Bt, Hp)  time-major forward chunk t of x            (compute dtype)
    xb_ref : (TC, Bt, Hp)  time-major chunk NC-1-t of x (fwd-ordered) (compute dtype)
    wif/wib: (Hp, 4Hp)     input->gate weights, gate order (i, f, o, g)
    whh    : (2Hp, 8Hp)    block-diag [[W_hh_fwd, 0], [0, W_hh_bwd]]
    bf/bb  : (1, 4Hp)      combined biases (b_ih + b_hh), f32
    out    : (Bt, 4Hp)     [mean_f | mean_b | max_f | max_b]  (written on last chunk)
    gx*_s  : (TC, Bt, 4Hp) f32 scratch: per-chunk input projections, time-major
    h/c/s/m: (Bt, 2Hp)     f32 carries across time chunks, layout [fwd | bwd]
    """
    TC, Bt, Hp = xf_ref.shape
    f32 = jnp.float32
    cdt = wif_ref.dtype                       # matmul compute dtype (bf16 or f32)
    t = pl.program_id(1)

    @pl.when(t == 0)
    def _init():
        h_s[...] = jnp.zeros_like(h_s)
        c_s[...] = jnp.zeros_like(c_s)
        s_s[...] = jnp.zeros_like(s_s)
        m_s[...] = jnp.full(m_s.shape, -jnp.inf, m_s.dtype)

    # ---- hoisted input projections: one (TC*Bt, Hp) @ (Hp, 4Hp) MXU matmul per
    # direction per chunk (bias folded in), written time-major so every per-step
    # gate slab below is a dense (Bt, 4Hp) load off the serial path.
    xf2 = xf_ref[...].reshape(TC * Bt, Hp)
    gxf_s[...] = (jnp.dot(xf2, wif_ref[...], preferred_element_type=f32)
                  + bf_ref[...]).reshape(TC, Bt, 4 * Hp)
    xb2 = xb_ref[...].reshape(TC * Bt, Hp)
    gxb_s[...] = (jnp.dot(xb2, wib_ref[...], preferred_element_type=f32)
                  + bb_ref[...]).reshape(TC, Bt, 4 * Hp)

    def cell(gates, c):
        # gate order (i, f, o, g): the three sigmoids are one contiguous tanh slab.
        sig = 0.5 * jnp.tanh(0.5 * gates[:, :3 * Hp]) + 0.5
        g = jnp.tanh(gates[:, 3 * Hp:])
        c_new = sig[:, Hp:2 * Hp] * c + sig[:, :Hp] * g
        h_new = sig[:, 2 * Hp:] * jnp.tanh(c_new)
        return h_new, c_new

    def step(j, carry):
        h, c_f, c_b = carry                   # only h / c are register-carried
        hc = h.astype(cdt)
        if fuse:
            # one block-diagonal recurrent matmul (K = 2Hp fills a 256-deep MXU pass)
            rec = jnp.dot(hc, whh_ref[...], preferred_element_type=f32)
            rec_f, rec_b = rec[:, :4 * Hp], rec[:, 4 * Hp:]
        else:
            rec_f = jnp.dot(hc[:, :Hp], whh_ref[:Hp, :4 * Hp],
                            preferred_element_type=f32)
            rec_b = jnp.dot(hc[:, Hp:], whh_ref[Hp:, 4 * Hp:],
                            preferred_element_type=f32)
        h_f, c_f = cell(gxf_s[j] + rec_f, c_f)
        h_b, c_b = cell(gxb_s[TC - 1 - j] + rec_b, c_b)
        h_new = jnp.concatenate([h_f, h_b], axis=-1)        # lane-aligned concat
        # pooling accumulators stay in VMEM (in-place update) to bound live vregs.
        s_s[...] = s_s[...] + h_new
        m_s[...] = jnp.maximum(m_s[...], h_new)
        return h_new, c_f, c_b

    h0 = h_s[...]
    c0f = c_s[:, :Hp]
    c0b = c_s[:, Hp:]
    if TC <= 16:
        carry = (h0, c0f, c0b)
        for j in range(TC):                   # static unroll; all slices static
            carry = step(j, carry)
        h, c_f, c_b = carry
    else:
        h, c_f, c_b = lax.fori_loop(0, TC, step, (h0, c0f, c0b), unroll=8)

    # write carries back for the next time chunk
    h_s[...] = h
    c_s[:, :Hp] = c_f
    c_s[:, Hp:] = c_b

    @pl.when(t == pl.num_programs(1) - 1)
    def _finalize():
        out_ref[:, :2 * Hp] = s_s[...] * (1.0 / seq_len)    # [mean_f | mean_b]
        out_ref[:, 2 * Hp:] = m_s[...]                      # [max_f  | max_b ]


# ------------------------------------------------------------------ wrapper


def _device_kind():
    try:
        return jax.devices()[0].device_kind.lower()
    except Exception:
        return ""


def _round_up(n, m):
    return ((n + m - 1) // m) * m


def _pick_time_chunk(t_len, cap=16):
    if t_len <= cap:
        return t_len
    best = 1
    for d in range(2, cap + 1):
        if t_len % d == 0:
            best = d
    return best


def _pick_batch_tile(b, kind):
    cap = 128 if ("v5" in kind or "v4" in kind or "v3" in kind or "v2" in kind) else 256
    if "v7" in kind and b >= 16:
        cap = min(cap, max(8, b // 2))        # keep >= 2 batch tiles for megacore
    if b <= cap:
        return b
    best = 0
    for d in range(8, cap + 1, 8):
        if b % d == 0:
            best = d
    return best if best else b


@functools.partial(jax.jit, static_argnames=(
    "hp", "tc", "bt", "fuse", "use_bf16", "vmem_limit", "single_buffer_weights"))
def _lstm_pooler_impl(x, wif, whf, bf, wib, whb, bb, *,
                      hp, tc, bt, fuse, use_bf16, vmem_limit, single_buffer_weights):
    B, T, H = x.shape
    Hp, TC, Bt = hp, tc, bt
    NC = T // TC
    f32 = jnp.float32
    cdt = jnp.bfloat16 if use_bf16 else f32

    # ---- weight prep: PyTorch gate order (i, f, g, o) -> (i, f, o, g); pad each
    # gate block H -> Hp with zeros (padded hidden lanes then stay exactly 0);
    # matmul operands cast to the compute dtype, biases stay f32.
    def prep_w(w):
        w = w.astype(f32)
        blocks = (w[:, 0:H], w[:, H:2 * H], w[:, 3 * H:4 * H], w[:, 2 * H:3 * H])
        out = jnp.zeros((Hp, 4 * Hp), f32)
        for g, blk in enumerate(blocks):
            out = out.at[:H, g * Hp:g * Hp + H].set(blk)
        return out

    def prep_b(b):
        b = b.reshape(1, 4 * H).astype(f32)
        blocks = (b[:, 0:H], b[:, H:2 * H], b[:, 3 * H:4 * H], b[:, 2 * H:3 * H])
        out = jnp.zeros((1, 4 * Hp), f32)
        for g, blk in enumerate(blocks):
            out = out.at[:, g * Hp:g * Hp + H].set(blk)
        return out

    wif_p = prep_w(wif).astype(cdt)
    wib_p = prep_w(wib).astype(cdt)
    whh_p = jnp.zeros((2 * Hp, 8 * Hp), f32)
    whh_p = whh_p.at[:Hp, :4 * Hp].set(prep_w(whf))
    whh_p = whh_p.at[Hp:, 4 * Hp:].set(prep_w(whb))
    whh_p = whh_p.astype(cdt)
    bf_p = prep_b(bf)
    bb_p = prep_b(bb)

    # ---- x: pad hidden to Hp, cast, and go time-major (one XLA transpose).
    if Hp != H:
        x = jnp.concatenate([x.astype(f32), jnp.zeros((B, T, Hp - H), f32)], axis=-1)
    x_tm = jnp.transpose(x, (1, 0, 2)).astype(cdt)          # (T, B, Hp)

    x_fwd_spec = pl.BlockSpec((TC, Bt, Hp), lambda b, t: (t, b, 0))
    x_bwd_spec = pl.BlockSpec((TC, Bt, Hp), lambda b, t: (NC - 1 - t, b, 0))
    const = dict(pipeline_mode=pl.Buffered(1)) if single_buffer_weights else {}
    wih_spec = pl.BlockSpec((Hp, 4 * Hp), lambda b, t: (0, 0), **const)
    whh_spec = pl.BlockSpec((2 * Hp, 8 * Hp), lambda b, t: (0, 0), **const)
    bia_spec = pl.BlockSpec((1, 4 * Hp), lambda b, t: (0, 0), **const)
    out_spec = pl.BlockSpec((Bt, 4 * Hp), lambda b, t: (b, 0))

    flops = 32 * B * T * Hp * Hp                       # input proj + recurrent, 2 dirs
    transcendentals = 10 * B * T * Hp                  # 4 tanh-gates + tanh(c), 2 dirs
    bytes_accessed = (2 * B * T * Hp * x_tm.dtype.itemsize
                      + (2 * Hp * 8 * Hp + 2 * Hp * 4 * Hp) * wif_p.dtype.itemsize
                      + B * 4 * Hp * 4)

    kernel = functools.partial(_lstm_pooler_kernel, seq_len=T, fuse=fuse)
    out = pl.pallas_call(
        kernel,
        out_shape=jax.ShapeDtypeStruct((B, 4 * Hp), f32),
        grid_spec=pltpu.PrefetchScalarGridSpec(
            num_scalar_prefetch=0,
            grid=(B // Bt, NC),
            in_specs=[x_fwd_spec, x_bwd_spec,
                      wih_spec, wih_spec, whh_spec, bia_spec, bia_spec],
            out_specs=out_spec,
            scratch_shapes=[
                pltpu.VMEM((TC, Bt, 4 * Hp), f32),     # gx fwd (time-major)
                pltpu.VMEM((TC, Bt, 4 * Hp), f32),     # gx bwd (time-major)
                pltpu.VMEM((Bt, 2 * Hp), f32),         # h  [fwd | bwd]
                pltpu.VMEM((Bt, 2 * Hp), f32),         # c
                pltpu.VMEM((Bt, 2 * Hp), f32),         # running sum
                pltpu.VMEM((Bt, 2 * Hp), f32),         # running max
            ]),
        compiler_params=pltpu.CompilerParams(
            dimension_semantics=("parallel", "arbitrary"),
            vmem_limit_bytes=vmem_limit),
        cost_estimate=pl.CostEstimate(flops=flops,
                                      transcendentals=transcendentals,
                                      bytes_accessed=bytes_accessed),
    )(x_tm, x_tm, wif_p, wib_p, whh_p, bf_p, bb_p)

    if Hp == H:
        return out
    # drop padded hidden lanes: out layout is [mean_f | mean_b | max_f | max_b], Hp each.
    return jnp.concatenate([out[:, 0:H], out[:, Hp:Hp + H],
                            out[:, 2 * Hp:2 * Hp + H], out[:, 3 * Hp:3 * Hp + H]],
                           axis=1)


def lstm_pooler(x, wif, whf, bf, wib, whb, bb, *,
                time_chunk=None, batch_tile=None, use_bf16=True, fuse_dirs=None):
    """x: (B, T, H) -> (B, 4H) = concat(mean_t([h_f, h_b]), max_t([h_f, h_b]))."""
    B, T, H = x.shape
    kind = _device_kind()
    Hp = max(128, _round_up(H, 128))
    TC = _pick_time_chunk(T) if time_chunk is None else min(int(time_chunk), T)
    assert T % TC == 0, "time_chunk must divide T"
    Bt = _pick_batch_tile(B, kind) if batch_tile is None else int(batch_tile)
    assert B % Bt == 0 and (Bt == B or Bt % 8 == 0), \
        "batch_tile must divide B and be a multiple of 8 (or equal B)"
    if fuse_dirs is None:
        # block-diagonal recurrent matmul only pays on 256-deep MXUs (v6e / v7x)
        # and only when 2*Hp fits a single K pass.
        fuse_dirs = (Hp <= 128) and (("v6" in kind) or ("v7" in kind))
    # v5e/v6e have 128 MiB physical VMEM; v7x only 64 MiB -> stay below it.
    vmem_limit = (100 if ("v5" in kind or "v6" in kind or "v4" in kind or "v3" in kind)
                  else 56) * 1024 * 1024

    args = (x, wif, whf, bf, wib, whb, bb)
    cfg = dict(hp=Hp, tc=TC, bt=Bt, fuse=bool(fuse_dirs), use_bf16=bool(use_bf16),
               vmem_limit=vmem_limit)
    try:
        return _lstm_pooler_impl(*args, **cfg, single_buffer_weights=True)
    except Exception:
        # fall back to default (double-buffered) weight specs if pipeline_mode /
        # pl.Buffered(1) is not supported by the installed jax.
        return _lstm_pooler_impl(*args, **cfg, single_buffer_weights=False)


# ------------------------------------------------------------------ reference & init


def lstm_pooler_reference(x, wif, whf, bf, wib, whb, bb):
    """Pure-JAX reference matching PyTorch bi-LSTM(batch_first) + concat(mean, max)."""
    B, T, H = x.shape
    x_tbh = jnp.transpose(x, (1, 0, 2)).astype(jnp.float32)
    hi = jax.lax.Precision.HIGHEST

    def make_step(wi, wh, b):
        def step(carry, xt):
            h, c = carry
            gates = jnp.dot(xt, wi, precision=hi) + jnp.dot(h, wh, precision=hi) + b
            i = jax.nn.sigmoid(gates[:, 0 * H:1 * H])
            f = jax.nn.sigmoid(gates[:, 1 * H:2 * H])
            g = jnp.tanh(gates[:, 2 * H:3 * H])
            o = jax.nn.sigmoid(gates[:, 3 * H:4 * H])
            c = f * c + i * g
            h = o * jnp.tanh(c)
            return (h, c), h
        return step

    zeros = (jnp.zeros((B, H), jnp.float32), jnp.zeros((B, H), jnp.float32))
    _, h_f = lax.scan(make_step(wif, whf, bf), zeros, x_tbh)            # (T, B, H)
    _, h_b = lax.scan(make_step(wib, whb, bb), zeros, x_tbh[::-1])      # reversed time
    h_b = h_b[::-1]
    h_lstm = jnp.concatenate([h_f, h_b], axis=-1)                       # (T, B, 2H)
    h_lstm = jnp.transpose(h_lstm, (1, 0, 2))                           # (B, T, 2H)
    return jnp.concatenate([h_lstm.mean(axis=1), h_lstm.max(axis=1)], axis=1)


def init_params(key, hidden_size):
    """Deterministic init mimicking PyTorch LSTM's uniform(-1/sqrt(H), 1/sqrt(H)).

    Weights stored pre-transposed as (H, 4H) (PyTorch stores (4H, H)), gate order
    i, f, g, o; biases are b_ih + b_hh combined, shape (1, 4H).
    """
    H = hidden_size
    scale = 1.0 / jnp.sqrt(jnp.float32(H))
    ks = jax.random.split(key, 8)
    u = lambda k, shape: jax.random.uniform(k, shape, jnp.float32, -scale, scale)
    wif = u(ks[0], (H, 4 * H))
    whf = u(ks[1], (H, 4 * H))
    bf = u(ks[2], (1, 4 * H)) + u(ks[3], (1, 4 * H))
    wib = u(ks[4], (H, 4 * H))
    whb = u(ks[5], (H, 4 * H))
    bb = u(ks[6], (1, 4 * H)) + u(ks[7], (1, 4 * H))
    return wif, whf, bf, wib, whb, bb


# ------------------------------------------------------------------ test


if __name__ == "__main__":
    key = jax.random.PRNGKey(0)
    kx, kp, kx2 = jax.random.split(key, 3)

    # Small shape consistent with the module: batch=2, seq=8, hidden=32.
    B, T, H = 2, 8, 32
    x = jax.random.normal(kx, (B, T, H), jnp.float32)
    params = init_params(kp, H)
    ref = lstm_pooler_reference(x, *params)

    # exact path (f32 matmuls): tight check
    out_f32 = jax.block_until_ready(lstm_pooler(x, *params, use_bf16=False))
    assert out_f32.shape == (B, 4 * H), out_f32.shape
    assert jnp.allclose(out_f32, ref, rtol=1e-4, atol=1e-4), (
        float(jnp.max(jnp.abs(out_f32 - ref))))

    # default fast path (bf16 matmuls, f32 accumulation): looser check
    out_bf16 = jax.block_until_ready(lstm_pooler(x, *params))
    assert out_bf16.shape == (B, 4 * H), out_bf16.shape
    assert jnp.allclose(out_bf16, ref, rtol=5e-2, atol=5e-2), (
        float(jnp.max(jnp.abs(out_bf16 - ref))))

    # Multi-chunk / multi-batch-tile grid; exercise both recurrent-matmul variants.
    B2, T2 = 16, 32
    x2 = jax.random.normal(kx2, (B2, T2, H), jnp.float32)
    ref2 = lstm_pooler_reference(x2, *params)
    for fuse in (False, True):
        out2 = jax.block_until_ready(
            lstm_pooler(x2, *params, time_chunk=8, batch_tile=8,
                        use_bf16=False, fuse_dirs=fuse))
        assert jnp.allclose(out2, ref2, rtol=1e-4, atol=1e-4), (
            fuse, float(jnp.max(jnp.abs(out2 - ref2))))

    print("KERNEL_OK")
</pallas_src>

<mosaic_0001>
module attributes {stable_mosaic.version = 11 : i64} {
  func.func @_lstm_pooler_kernel(%arg0: i32, %arg1: i32, %arg2: memref<8x2x128xf32, #tpu.memory_space<vmem>>, %arg3: memref<8x2x128xf32, #tpu.memory_space<vmem>>, %arg4: memref<128x512xf32, #tpu.memory_space<vmem>>, %arg5: memref<128x512xf32, #tpu.memory_space<vmem>>, %arg6: memref<256x1024xf32, #tpu.memory_space<vmem>>, %arg7: memref<1x512xf32, #tpu.memory_space<vmem>>, %arg8: memref<1x512xf32, #tpu.memory_space<vmem>>, %arg9: memref<2x512xf32, #tpu.memory_space<vmem>>, %arg10: memref<8x2x512xf32, #tpu.memory_space<vmem>>, %arg11: memref<8x2x512xf32, #tpu.memory_space<vmem>>, %arg12: memref<2x256xf32, #tpu.memory_space<vmem>>, %arg13: memref<2x256xf32, #tpu.memory_space<vmem>>, %arg14: memref<2x256xf32, #tpu.memory_space<vmem>>, %arg15: memref<2x256xf32, #tpu.memory_space<vmem>>) attributes {dimension_semantics = [#tpu.dimension_semantics<parallel>, #tpu.dimension_semantics<arbitrary>], iteration_bounds = array<i64: 1, 1>, scalar_prefetch = 0 : i64, scratch_operands = 6 : i64, tpu.core_type = #tpu.core_type<tc>, window_params = [{transform_indices = @transform_0, window_bounds = array<i64: 8, 2, 128>}, {transform_indices = @transform_1, window_bounds = array<i64: 8, 2, 128>}, {pipeline_mode = #tpu.pipeline_mode<synchronous>, transform_indices = @transform_2, window_bounds = array<i64: 128, 512>}, {pipeline_mode = #tpu.pipeline_mode<synchronous>, transform_indices = @transform_3, window_bounds = array<i64: 128, 512>}, {pipeline_mode = #tpu.pipeline_mode<synchronous>, transform_indices = @transform_4, window_bounds = array<i64: 256, 1024>}, {pipeline_mode = #tpu.pipeline_mode<synchronous>, transform_indices = @transform_5, window_bounds = array<i64: 1, 512>}, {pipeline_mode = #tpu.pipeline_mode<synchronous>, transform_indices = @transform_6, window_bounds = array<i64: 1, 512>}, {transform_indices = @transform_7, window_bounds = array<i64: 2, 512>}]} {
    %c0_i32 = arith.constant 0 : i32
    %0 = arith.cmpi eq, %arg1, %c0_i32 : i32
    %1 = arith.extui %0 : i1 to i32
    %c0_i32_0 = arith.constant 0 : i32
    %2 = arith.cmpi ne, %1, %c0_i32_0 : i32
    scf.if %2 {
      %cst_234 = arith.constant 0.000000e+00 : f32
      %470 = vector.broadcast %cst_234 : f32 to vector<2x256xf32>
      %c0_235 = arith.constant 0 : index
      %c0_236 = arith.constant 0 : index
      %471 = vector.load %arg12[%c0_235, %c0_236] : memref<2x256xf32, #tpu.memory_space<vmem>>, vector<2x256xf32>
      tpu.vector_store %arg12[%c0_235, %c0_236], %470 {strides = array<i32>} : memref<2x256xf32, #tpu.memory_space<vmem>>, vector<2x256xf32>,
      %cst_237 = arith.constant 0.000000e+00 : f32
      %472 = vector.broadcast %cst_237 : f32 to vector<2x256xf32>
      %c0_238 = arith.constant 0 : index
      %c0_239 = arith.constant 0 : index
      %473 = vector.load %arg13[%c0_238, %c0_239] : memref<2x256xf32, #tpu.memory_space<vmem>>, vector<2x256xf32>
      tpu.vector_store %arg13[%c0_238, %c0_239], %472 {strides = array<i32>} : memref<2x256xf32, #tpu.memory_space<vmem>>, vector<2x256xf32>,
      %cst_240 = arith.constant 0.000000e+00 : f32
      %474 = vector.broadcast %cst_240 : f32 to vector<2x256xf32>
      %c0_241 = arith.constant 0 : index
      %c0_242 = arith.constant 0 : index
      %475 = vector.load %arg14[%c0_241, %c0_242] : memref<2x256xf32, #tpu.memory_space<vmem>>, vector<2x256xf32>
      tpu.vector_store %arg14[%c0_241, %c0_242], %474 {strides = array<i32>} : memref<2x256xf32, #tpu.memory_space<vmem>>, vector<2x256xf32>,
      %cst_243 = arith.constant 0xFF800000 : f32
      %476 = vector.broadcast %cst_243 : f32 to vector<2x256xf32>
      %c0_244 = arith.constant 0 : index
      %c0_245 = arith.constant 0 : index
      %477 = vector.load %arg15[%c0_244, %c0_245] : memref<2x256xf32, #tpu.memory_space<vmem>>, vector<2x256xf32>
      tpu.vector_store %arg15[%c0_244, %c0_245], %476 {strides = array<i32>} : memref<2x256xf32, #tpu.memory_space<vmem>>, vector<2x256xf32>,
    } else {
    }
    %c0 = arith.constant 0 : index
    %c0_1 = arith.constant 0 : index
    %c0_2 = arith.constant 0 : index
    %3 = vector.load %arg2[%c0, %c0_1, %c0_2] : memref<8x2x128xf32, #tpu.memory_space<vmem>>, vector<8x2x128xf32>
    %4 = vector.shape_cast %3 : vector<8x2x128xf32> to vector<16x128xf32>
    %c0_3 = arith.constant 0 : index
    %c0_4 = arith.constant 0 : index
    %5 = vector.load %arg4[%c0_3, %c0_4] : memref<128x512xf32, #tpu.memory_space<vmem>>, vector<128x512xf32>
    %cst = arith.constant dense<0.000000e+00> : vector<16x512xf32>
    %6 = tpu.matmul %4, %5, %cst {dimension_numbers = #tpu.dot_dimension_numbers<[1], [0], [0], [1], [0, 0, 1, 1], [], []>} : vector<16x128xf32>, vector<128x512xf32>, vector<16x512xf32> -> vector<16x512xf32>
    %c0_5 = arith.constant 0 : index
    %c0_6 = arith.constant 0 : index
    %7 = vector.load %arg7[%c0_5, %c0_6] : memref<1x512xf32, #tpu.memory_space<vmem>>, vector<1x512xf32>
    %8 = vector.broadcast %7 : vector<1x512xf32> to vector<16x512xf32>
    %9 = arith.addf %6, %8 : vector<16x512xf32>
    %10 = vector.shape_cast %9 : vector<16x512xf32> to vector<8x2x512xf32>
    %c0_7 = arith.constant 0 : index
    %c0_8 = arith.constant 0 : index
    %c0_9 = arith.constant 0 : index
    %11 = vector.load %arg10[%c0_7, %c0_8, %c0_9] : memref<8x2x512xf32, #tpu.memory_space<vmem>>, vector<8x2x512xf32>
    tpu.vector_store %arg10[%c0_7, %c0_8, %c0_9], %10 {strides = array<i32>} : memref<8x2x512xf32, #tpu.memory_space<vmem>>, vector<8x2x512xf32>,
    %c0_10 = arith.constant 0 : index
    %c0_11 = arith.constant 0 : index
    %c0_12 = arith.constant 0 : index
    %12 = vector.load %arg3[%c0_10, %c0_11, %c0_12] : memref<8x2x128xf32, #tpu.memory_space<vmem>>, vector<8x2x128xf32>
    %13 = vector.shape_cast %12 : vector<8x2x128xf32> to vector<16x128xf32>
    %c0_13 = arith.constant 0 : index
    %c0_14 = arith.constant 0 : index
    %14 = vector.load %arg5[%c0_13, %c0_14] : memref<128x512xf32, #tpu.memory_space<vmem>>, vector<128x512xf32>
    %cst_15 = arith.constant dense<0.000000e+00> : vector<16x512xf32>
    %15 = tpu.matmul %13, %14, %cst_15 {dimension_numbers = #tpu.dot_dimension_numbers<[1], [0], [0], [1], [0, 0, 1, 1], [], []>} : vector<16x128xf32>, vector<128x512xf32>, vector<16x512xf32> -> vector<16x512xf32>
    %c0_16 = arith.constant 0 : index
    %c0_17 = arith.constant 0 : index
    %16 = vector.load %arg8[%c0_16, %c0_17] : memref<1x512xf32, #tpu.memory_space<vmem>>, vector<1x512xf32>
    %17 = vector.broadcast %16 : vector<1x512xf32> to vector<16x512xf32>
    %18 = arith.addf %15, %17 : vector<16x512xf32>
    %19 = vector.shape_cast %18 : vector<16x512xf32> to vector<8x2x512xf32>
    %c0_18 = arith.constant 0 : index
    %c0_19 = arith.constant 0 : index
    %c0_20 = arith.constant 0 : index
    %20 = vector.load %arg11[%c0_18, %c0_19, %c0_20] : memref<8x2x512xf32, #tpu.memory_space<vmem>>, vector<8x2x512xf32>
    tpu.vector_store %arg11[%c0_18, %c0_19, %c0_20], %19 {strides = array<i32>} : memref<8x2x512xf32, #tpu.memory_space<vmem>>, vector<8x2x512xf32>,
    %c0_21 = arith.constant 0 : index
    %c0_22 = arith.constant 0 : index
    %21 = vector.load %arg12[%c0_21, %c0_22] : memref<2x256xf32, #tpu.memory_space<vmem>>, vector<2x256xf32>
    %c0_23 = arith.constant 0 : index
    %c0_24 = arith.constant 0 : index
    %22 = vector.load %arg13[%c0_23, %c0_24] : memref<2x256xf32, #tpu.memory_space<vmem>>, vector<2x128xf32>
    %c0_25 = arith.constant 0 : index
    %c128 = arith.constant 128 : index
    %23 = vector.load %arg13[%c0_25, %c128] : memref<2x256xf32, #tpu.memory_space<vmem>>, vector<2x128xf32>
    %24 = vector.extract_strided_slice %21 {offsets = [0, 0], sizes = [2, 128], strides = [1, 1]} : vector<2x256xf32> to vector<2x128xf32>
    %c0_26 = arith.constant 0 : index
    %c0_27 = arith.constant 0 : index
    %25 = vector.load %arg6[%c0_26, %c0_27] : memref<256x1024xf32, #tpu.memory_space<vmem>>, vector<128x512xf32>
    %cst_28 = arith.constant dense<0.000000e+00> : vector<2x512xf32>
    %26 = tpu.matmul %24, %25, %cst_28 {dimension_numbers = #tpu.dot_dimension_numbers<[1], [0], [0], [1], [0, 0, 1, 1], [], []>} : vector<2x128xf32>, vector<128x512xf32>, vector<2x512xf32> -> vector<2x512xf32>
    %27 = vector.extract_strided_slice %21 {offsets = [0, 128], sizes = [2, 128], strides = [1, 1]} : vector<2x256xf32> to vector<2x128xf32>
    %c128_29 = arith.constant 128 : index
    %c512 = arith.constant 512 : index
    %28 = vector.load %arg6[%c128_29, %c512] : memref<256x1024xf32, #tpu.memory_space<vmem>>, vector<128x512xf32>
    %cst_30 = arith.constant dense<0.000000e+00> : vector<2x512xf32>
    %29 = tpu.matmul %27, %28, %cst_30 {dimension_numbers = #tpu.dot_dimension_numbers<[1], [0], [0], [1], [0, 0, 1, 1], [], []>} : vector<2x128xf32>, vector<128x512xf32>, vector<2x512xf32> -> vector<2x512xf32>
    %c0_31 = arith.constant 0 : index
    %c0_32 = arith.constant 0 : index
    %c0_33 = arith.constant 0 : index
    %30 = vector.load %arg10[%c0_31, %c0_32, %c0_33] : memref<8x2x512xf32, #tpu.memory_space<vmem>>, vector<1x2x512xf32>
    %31 = vector.shape_cast %30 : vector<1x2x512xf32> to vector<2x512xf32>
    %32 = arith.addf %31, %26 : vector<2x512xf32>
    %33 = vector.extract_strided_slice %32 {offsets = [0, 0], sizes = [2, 384], strides = [1, 1]} : vector<2x512xf32> to vector<2x384xf32>
    %cst_34 = arith.constant 5.000000e-01 : f32
    %34 = vector.broadcast %cst_34 : f32 to vector<2x384xf32>
    %35 = arith.mulf %34, %33 : vector<2x384xf32>
    %36 = math.tanh %35 : vector<2x384xf32>
    %cst_35 = arith.constant 5.000000e-01 : f32
    %37 = vector.broadcast %cst_35 : f32 to vector<2x384xf32>
    %38 = arith.mulf %37, %36 : vector<2x384xf32>
    %cst_36 = arith.constant 5.000000e-01 : f32
    %39 = vector.broadcast %cst_36 : f32 to vector<2x384xf32>
    %40 = arith.addf %38, %39 : vector<2x384xf32>
    %41 = vector.extract_strided_slice %32 {offsets = [0, 384], sizes = [2, 128], strides = [1, 1]} : vector<2x512xf32> to vector<2x128xf32>
    %42 = math.tanh %41 : vector<2x128xf32>
    %43 = vector.extract_strided_slice %40 {offsets = [0, 128], sizes = [2, 128], strides = [1, 1]} : vector<2x384xf32> to vector<2x128xf32>
    %44 = arith.mulf %43, %22 : vector<2x128xf32>
    %45 = vector.extract_strided_slice %40 {offsets = [0, 0], sizes = [2, 128], strides = [1, 1]} : vector<2x384xf32> to vector<2x128xf32>
    %46 = arith.mulf %45, %42 : vector<2x128xf32>
    %47 = arith.addf %44, %46 : vector<2x128xf32>
    %48 = vector.extract_strided_slice %40 {offsets = [0, 256], sizes = [2, 128], strides = [1, 1]} : vector<2x384xf32> to vector<2x128xf32>
    %49 = math.tanh %47 : vector<2x128xf32>
    %50 = arith.mulf %48, %49 : vector<2x128xf32>
    %c7 = arith.constant 7 : index
    %c0_37 = arith.constant 0 : index
    %c0_38 = arith.constant 0 : index
    %51 = vector.load %arg11[%c7, %c0_37, %c0_38] : memref<8x2x512xf32, #tpu.memory_space<vmem>>, vector<1x2x512xf32>
    %52 = vector.shape_cast %51 : vector<1x2x512xf32> to vector<2x512xf32>
    %53 = arith.addf %52, %29 : vector<2x512xf32>
    %54 = vector.extract_strided_slice %53 {offsets = [0, 0], sizes = [2, 384], strides = [1, 1]} : vector<2x512xf32> to vector<2x384xf32>
    %cst_39 = arith.constant 5.000000e-01 : f32
    %55 = vector.broadcast %cst_39 : f32 to vector<2x384xf32>
    %56 = arith.mulf %55, %54 : vector<2x384xf32>
    %57 = math.tanh %56 : vector<2x384xf32>
    %cst_40 = arith.constant 5.000000e-01 : f32
    %58 = vector.broadcast %cst_40 : f32 to vector<2x384xf32>
    %59 = arith.mulf %58, %57 : vector<2x384xf32>
    %cst_41 = arith.constant 5.000000e-01 : f32
    %60 = vector.broadcast %cst_41 : f32 to vector<2x384xf32>
    %61 = arith.addf %59, %60 : vector<2x384xf32>
    %62 = vector.extract_strided_slice %53 {offsets = [0, 384], sizes = [2, 128], strides = [1, 1]} : vector<2x512xf32> to vector<2x128xf32>
    %63 = math.tanh %62 : vector<2x128xf32>
    %64 = vector.extract_strided_slice %61 {offsets = [0, 128], sizes = [2, 128], strides = [1, 1]} : vector<2x384xf32> to vector<2x128xf32>
    %65 = arith.mulf %64, %23 : vector<2x128xf32>
    %66 = vector.extract_strided_slice %61 {offsets = [0, 0], sizes = [2, 128], strides = [1, 1]} : vector<2x384xf32> to vector<2x128xf32>
    %67 = arith.mulf %66, %63 : vector<2x128xf32>
    %68 = arith.addf %65, %67 : vector<2x128xf32>
    %69 = vector.extract_strided_slice %61 {offsets = [0, 256], sizes = [2, 128], strides = [1, 1]} : vector<2x384xf32> to vector<2x128xf32>
    %70 = math.tanh %68 : vector<2x128xf32>
    %71 = arith.mulf %69, %70 : vector<2x128xf32>
    %72 = tpu.concatenate %50, %71 in 1 : vector<2x128xf32>, vector<2x128xf32> -> vector<2x256xf32>
    %c0_42 = arith.constant 0 : index
    %c0_43 = arith.constant 0 : index
    %73 = vector.load %arg14[%c0_42, %c0_43] : memref<2x256xf32, #tpu.memory_space<vmem>>, vector<2x256xf32>
    %74 = arith.addf %73, %72 : vector<2x256xf32>
    %c0_44 = arith.constant 0 : index
    %c0_45 = arith.constant 0 : index
    %75 = vector.load %arg14[%c0_44, %c0_45] : memref<2x256xf32, #tpu.memory_space<vmem>>, vector<2x256xf32>
    tpu.vector_store %arg14[%c0_44, %c0_45], %74 {strides = array<i32>} : memref<2x256xf32, #tpu.memory_space<vmem>>, vector<2x256xf32>,
    %c0_46 = arith.constant 0 : index
    %c0_47 = arith.constant 0 : index
    %76 = vector.load %arg15[%c0_46, %c0_47] : memref<2x256xf32, #tpu.memory_space<vmem>>, vector<2x256xf32>
    %77 = arith.maximumf %76, %72 : vector<2x256xf32>
    %c0_48 = arith.constant 0 : index
    %c0_49 = arith.constant 0 : index
    %78 = vector.load %arg15[%c0_48, %c0_49] : memref<2x256xf32, #tpu.memory_space<vmem>>, vector<2x256xf32>
    tpu.vector_store %arg15[%c0_48, %c0_49], %77 {strides = array<i32>} : memref<2x256xf32, #tpu.memory_space<vmem>>, vector<2x256xf32>,
    %79 = vector.extract_strided_slice %72 {offsets = [0, 0], sizes = [2, 128], strides = [1, 1]} : vector<2x256xf32> to vector<2x128xf32>
    %c0_50 = arith.constant 0 : index
    %c0_51 = arith.constant 0 : index
    %80 = vector.load %arg6[%c0_50, %c0_51] : memref<256x1024xf32, #tpu.memory_space<vmem>>, vector<128x512xf32>
    %cst_52 = arith.constant dense<0.000000e+00> : vector<2x512xf32>
    %81 = tpu.matmul %79, %80, %cst_52 {dimension_numbers = #tpu.dot_dimension_numbers<[1], [0], [0], [1], [0, 0, 1, 1], [], []>} : vector<2x128xf32>, vector<128x512xf32>, vector<2x512xf32> -> vector<2x512xf32>
    %82 = vector.extract_strided_slice %72 {offsets = [0, 128], sizes = [2, 128], strides = [1, 1]} : vector<2x256xf32> to vector<2x128xf32>
    %c128_53 = arith.constant 128 : index
    %c512_54 = arith.constant 512 : index
    %83 = vector.load %arg6[%c128_53, %c512_54] : memref<256x1024xf32, #tpu.memory_space<vmem>>, vector<128x512xf32>
    %cst_55 = arith.constant dense<0.000000e+00> : vector<2x512xf32>
    %84 = tpu.matmul %82, %83, %cst_55 {dimension_numbers = #tpu.dot_dimension_numbers<[1], [0], [0], [1], [0, 0, 1, 1], [], []>} : vector<2x128xf32>, vector<128x512xf32>, vector<2x512xf32> -> vector<2x512xf32>
    %c1 = arith.constant 1 : index
    %c0_56 = arith.constant 0 : index
    %c0_57 = arith.constant 0 : index
    %85 = vector.load %arg10[%c1, %c0_56, %c0_57] : memref<8x2x512xf32, #tpu.memory_space<vmem>>, vector<1x2x512xf32>
    %86 = vector.shape_cast %85 : vector<1x2x512xf32> to vector<2x512xf32>
    %87 = arith.addf %86, %81 : vector<2x512xf32>
    %88 = vector.extract_strided_slice %87 {offsets = [0, 0], sizes = [2, 384], strides = [1, 1]} : vector<2x512xf32> to vector<2x384xf32>
    %cst_58 = arith.constant 5.000000e-01 : f32
    %89 = vector.broadcast %cst_58 : f32 to vector<2x384xf32>
    %90 = arith.mulf %89, %88 : vector<2x384xf32>
    %91 = math.tanh %90 : vector<2x384xf32>
    %cst_59 = arith.constant 5.000000e-01 : f32
    %92 = vector.broadcast %cst_59 : f32 to vector<2x384xf32>
    %93 = arith.mulf %92, %91 : vector<2x384xf32>
    %cst_60 = arith.constant 5.000000e-01 : f32
    %94 = vector.broadcast %cst_60 : f32 to vector<2x384xf32>
    %95 = arith.addf %93, %94 : vector<2x384xf32>
    %96 = vector.extract_strided_slice %87 {offsets = [0, 384], sizes = [2, 128], strides = [1, 1]} : vector<2x512xf32> to vector<2x128xf32>
    %97 = math.tanh %96 : vector<2x128xf32>
    %98 = vector.extract_strided_slice %95 {offsets = [0, 128], sizes = [2, 128], strides = [1, 1]} : vector<2x384xf32> to vector<2x128xf32>
    %99 = arith.mulf %98, %47 : vector<2x128xf32>
    %100 = vector.extract_strided_slice %95 {offsets = [0, 0], sizes = [2, 128], strides = [1, 1]} : vector<2x384xf32> to vector<2x128xf32>
    %101 = arith.mulf %100, %97 : vector<2x128xf32>
    %102 = arith.addf %99, %101 : vector<2x128xf32>
    %103 = vector.extract_strided_slice %95 {offsets = [0, 256], sizes = [2, 128], strides = [1, 1]} : vector<2x384xf32> to vector<2x128xf32>
    %104 = math.tanh %102 : vector<2x128xf32>
    %105 = arith.mulf %103, %104 : vector<2x128xf32>
    %c6 = arith.constant 6 : index
    %c0_61 = arith.constant 0 : index
    %c0_62 = arith.constant 0 : index
    %106 = vector.load %arg11[%c6, %c0_61, %c0_62] : memref<8x2x512xf32, #tpu.memory_space<vmem>>, vector<1x2x512xf32>
    %107 = vector.shape_cast %106 : vector<1x2x512xf32> to vector<2x512xf32>
    %108 = arith.addf %107, %84 : vector<2x512xf32>
    %109 = vector.extract_strided_slice %108 {offsets = [0, 0], sizes = [2, 384], strides = [1, 1]} : vector<2x512xf32> to vector<2x384xf32>
    %cst_63 = arith.constant 5.000000e-01 : f32
    %110 = vector.broadcast %cst_63 : f32 to vector<2x384xf32>
    %111 = arith.mulf %110, %109 : vector<2x384xf32>
    %112 = math.tanh %111 : vector<2x384xf32>
    %cst_64 = arith.constant 5.000000e-01 : f32
    %113 = vector.broadcast %cst_64 : f32 to vector<2x384xf32>
    %114 = arith.mulf %113, %112 : vector<2x384xf32>
    %cst_65 = arith.constant 5.000000e-01 : f32
    %115 = vector.broadcast %cst_65 : f32 to vector<2x384xf32>
    %116 = arith.addf %114, %115 : vector<2x384xf32>
    %117 = vector.extract_strided_slice %108 {offsets = [0, 384], sizes = [2, 128], strides = [1, 1]} : vector<2x512xf32> to vector<2x128xf32>
    %118 = math.tanh %117 : vector<2x128xf32>
    %119 = vector.extract_strided_slice %116 {offsets = [0, 128], sizes = [2, 128], strides = [1, 1]} : vector<2x384xf32> to vector<2x128xf32>
    %120 = arith.mulf %119, %68 : vector<2x128xf32>
    %121 = vector.extract_strided_slice %116 {offsets = [0, 0], sizes = [2, 128], strides = [1, 1]} : vector<2x384xf32> to vector<2x128xf32>
    %122 = arith.mulf %121, %118 : vector<2x128xf32>
    %123 = arith.addf %120, %122 : vector<2x128xf32>
    %124 = vector.extract_strided_slice %116 {offsets = [0, 256], sizes = [2, 128], strides = [1, 1]} : vector<2x384xf32> to vector<2x128xf32>
    %125 = math.tanh %123 : vector<2x128xf32>
    %126 = arith.mulf %124, %125 : vector<2x128xf32>
    %127 = tpu.concatenate %105, %126 in 1 : vector<2x128xf32>, vector<2x128xf32> -> vector<2x256xf32>
    %c0_66 = arith.constant 0 : index
    %c0_67 = arith.constant 0 : index
    %128 = vector.load %arg14[%c0_66, %c0_67] : memref<2x256xf32, #tpu.memory_space<vmem>>, vector<2x256xf32>
    %129 = arith.addf %128, %127 : vector<2x256xf32>
    %c0_68 = arith.constant 0 : index
    %c0_69 = arith.constant 0 : index
    %130 = vector.load %arg14[%c0_68, %c0_69] : memref<2x256xf32, #tpu.memory_space<vmem>>, vector<2x256xf32>
    tpu.vector_store %arg14[%c0_68, %c0_69], %129 {strides = array<i32>} : memref<2x256xf32, #tpu.memory_space<vmem>>, vector<2x256xf32>,
    %c0_70 = arith.constant 0 : index
    %c0_71 = arith.constant 0 : index
    %131 = vector.load %arg15[%c0_70, %c0_71] : memref<2x256xf32, #tpu.memory_space<vmem>>, vector<2x256xf32>
    %132 = arith.maximumf %131, %127 : vector<2x256xf32>
    %c0_72 = arith.constant 0 : index
    %c0_73 = arith.constant 0 : index
    %133 = vector.load %arg15[%c0_72, %c0_73] : memref<2x256xf32, #tpu.memory_space<vmem>>, vector<2x256xf32>
    tpu.vector_store %arg15[%c0_72, %c0_73], %132 {strides = array<i32>} : memref<2x256xf32, #tpu.memory_space<vmem>>, vector<2x256xf32>,
    %134 = vector.extract_strided_slice %127 {offsets = [0, 0], sizes = [2, 128], strides = [1, 1]} : vector<2x256xf32> to vector<2x128xf32>
    %c0_74 = arith.constant 0 : index
    %c0_75 = arith.constant 0 : index
    %135 = vector.load %arg6[%c0_74, %c0_75] : memref<256x1024xf32, #tpu.memory_space<vmem>>, vector<128x512xf32>
    %cst_76 = arith.constant dense<0.000000e+00> : vector<2x512xf32>
    %136 = tpu.matmul %134, %135, %cst_76 {dimension_numbers = #tpu.dot_dimension_numbers<[1], [0], [0], [1], [0, 0, 1, 1], [], []>} : vector<2x128xf32>, vector<128x512xf32>, vector<2x512xf32> -> vector<2x512xf32>
    %137 = vector.extract_strided_slice %127 {offsets = [0, 128], sizes = [2, 128], strides = [1, 1]} : vector<2x256xf32> to vector<2x128xf32>
    %c128_77 = arith.constant 128 : index
    %c512_78 = arith.constant 512 : index
    %138 = vector.load %arg6[%c128_77, %c512_78] : memref<256x1024xf32, #tpu.memory_space<vmem>>, vector<128x512xf32>
    %cst_79 = arith.constant dense<0.000000e+00> : vector<2x512xf32>
    %139 = tpu.matmul %137, %138, %cst_79 {dimension_numbers = #tpu.dot_dimension_numbers<[1], [0], [0], [1], [0, 0, 1, 1], [], []>} : vector<2x128xf32>, vector<128x512xf32>, vector<2x512xf32> -> vector<2x512xf32>
    %c2 = arith.constant 2 : index
    %c0_80 = arith.constant 0 : index
    %c0_81 = arith.constant 0 : index
    %140 = vector.load %arg10[%c2, %c0_80, %c0_81] : memref<8x2x512xf32, #tpu.memory_space<vmem>>, vector<1x2x512xf32>
    %141 = vector.shape_cast %140 : vector<1x2x512xf32> to vector<2x512xf32>
    %142 = arith.addf %141, %136 : vector<2x512xf32>
    %143 = vector.extract_strided_slice %142 {offsets = [0, 0], sizes = [2, 384], strides = [1, 1]} : vector<2x512xf32> to vector<2x384xf32>
    %cst_82 = arith.constant 5.000000e-01 : f32
    %144 = vector.broadcast %cst_82 : f32 to vector<2x384xf32>
    %145 = arith.mulf %144, %143 : vector<2x384xf32>
    %146 = math.tanh %145 : vector<2x384xf32>
    %cst_83 = arith.constant 5.000000e-01 : f32
    %147 = vector.broadcast %cst_83 : f32 to vector<2x384xf32>
    %148 = arith.mulf %147, %146 : vector<2x384xf32>
    %cst_84 = arith.constant 5.000000e-01 : f32
    %149 = vector.broadcast %cst_84 : f32 to vector<2x384xf32>
    %150 = arith.addf %148, %149 : vector<2x384xf32>
    %151 = vector.extract_strided_slice %142 {offsets = [0, 384], sizes = [2, 128], strides = [1, 1]} : vector<2x512xf32> to vector<2x128xf32>
    %152 = math.tanh %151 : vector<2x128xf32>
    %153 = vector.extract_strided_slice %150 {offsets = [0, 128], sizes = [2, 128], strides = [1, 1]} : vector<2x384xf32> to vector<2x128xf32>
    %154 = arith.mulf %153, %102 : vector<2x128xf32>
    %155 = vector.extract_strided_slice %150 {offsets = [0, 0], sizes = [2, 128], strides = [1, 1]} : vector<2x384xf32> to vector<2x128xf32>
    %156 = arith.mulf %155, %152 : vector<2x128xf32>
    %157 = arith.addf %154, %156 : vector<2x128xf32>
    %158 = vector.extract_strided_slice %150 {offsets = [0, 256], sizes = [2, 128], strides = [1, 1]} : vector<2x384xf32> to vector<2x128xf32>
    %159 = math.tanh %157 : vector<2x128xf32>
    %160 = arith.mulf %158, %159 : vector<2x128xf32>
    %c5 = arith.constant 5 : index
    %c0_85 = arith.constant 0 : index
    %c0_86 = arith.constant 0 : index
    %161 = vector.load %arg11[%c5, %c0_85, %c0_86] : memref<8x2x512xf32, #tpu.memory_space<vmem>>, vector<1x2x512xf32>
    %162 = vector.shape_cast %161 : vector<1x2x512xf32> to vector<2x512xf32>
    %163 = arith.addf %162, %139 : vector<2x512xf32>
    %164 = vector.extract_strided_slice %163 {offsets = [0, 0], sizes = [2, 384], strides = [1, 1]} : vector<2x512xf32> to vector<2x384xf32>
    %cst_87 = arith.constant 5.000000e-01 : f32
    %165 = vector.broadcast %cst_87 : f32 to vector<2x384xf32>
    %166 = arith.mulf %165, %164 : vector<2x384xf32>
    %167 = math.tanh %166 : vector<2x384xf32>
    %cst_88 = arith.constant 5.000000e-01 : f32
    %168 = vector.broadcast %cst_88 : f32 to vector<2x384xf32>
    %169 = arith.mulf %168, %167 : vector<2x384xf32>
    %cst_89 = arith.constant 5.000000e-01 : f32
    %170 = vector.broadcast %cst_89 : f32 to vector<2x384xf32>
    %171 = arith.addf %169, %170 : vector<2x384xf32>
    %172 = vector.extract_strided_slice %163 {offsets = [0, 384], sizes = [2, 128], strides = [1, 1]} : vector<2x512xf32> to vector<2x128xf32>
    %173 = math.tanh %172 : vector<2x128xf32>
    %174 = vector.extract_strided_slice %171 {offsets = [0, 128], sizes = [2, 128], strides = [1, 1]} : vector<2x384xf32> to vector<2x128xf32>
    %175 = arith.mulf %174, %123 : vector<2x128xf32>
    %176 = vector.extract_strided_slice %171 {offsets = [0, 0], sizes = [2, 128], strides = [1, 1]} : vector<2x384xf32> to vector<2x128xf32>
    %177 = arith.mulf %176, %173 : vector<2x128xf32>
    %178 = arith.addf %175, %177 : vector<2x128xf32>
    %179 = vector.extract_strided_slice %171 {offsets = [0, 256], sizes = [2, 128], strides = [1, 1]} : vector<2x384xf32> to vector<2x128xf32>
    %180 = math.tanh %178 : vector<2x128xf32>
    %181 = arith.mulf %179, %180 : vector<2x128xf32>
    %182 = tpu.concatenate %160, %181 in 1 : vector<2x128xf32>, vector<2x128xf32> -> vector<2x256xf32>
    %c0_90 = arith.constant 0 : index
    %c0_91 = arith.constant 0 : index
    %183 = vector.load %arg14[%c0_90, %c0_91] : memref<2x256xf32, #tpu.memory_space<vmem>>, vector<2x256xf32>
    %184 = arith.addf %183, %182 : vector<2x256xf32>
    %c0_92 = arith.constant 0 : index
    %c0_93 = arith.constant 0 : index
    %185 = vector.load %arg14[%c0_92, %c0_93] : memref<2x256xf32, #tpu.memory_space<vmem>>, vector<2x256xf32>
    tpu.vector_store %arg14[%c0_92, %c0_93], %184 {strides = array<i32>} : memref<2x256xf32, #tpu.memory_space<vmem>>, vector<2x256xf32>,
    %c0_94 = arith.constant 0 : index
    %c0_95 = arith.constant 0 : index
    %186 = vector.load %arg15[%c0_94, %c0_95] : memref<2x256xf32, #tpu.memory_space<vmem>>, vector<2x256xf32>
    %187 = arith.maximumf %186, %182 : vector<2x256xf32>
    %c0_96 = arith.constant 0 : index
    %c0_97 = arith.constant 0 : index
    %188 = vector.load %arg15[%c0_96, %c0_97] : memref<2x256xf32, #tpu.memory_space<vmem>>, vector<2x256xf32>
    tpu.vector_store %arg15[%c0_96, %c0_97], %187 {strides = array<i32>} : memref<2x256xf32, #tpu.memory_space<vmem>>, vector<2x256xf32>,
    %189 = vector.extract_strided_slice %182 {offsets = [0, 0], sizes = [2, 128], strides = [1, 1]} : vector<2x256xf32> to vector<2x128xf32>
    %c0_98 = arith.constant 0 : index
    %c0_99 = arith.constant 0 : index
    %190 = vector.load %arg6[%c0_98, %c0_99] : memref<256x1024xf32, #tpu.memory_space<vmem>>, vector<128x512xf32>
    %cst_100 = arith.constant dense<0.000000e+00> : vector<2x512xf32>
    %191 = tpu.matmul %189, %190, %cst_100 {dimension_numbers = #tpu.dot_dimension_numbers<[1], [0], [0], [1], [0, 0, 1, 1], [], []>} : vector<2x128xf32>, vector<128x512xf32>, vector<2x512xf32> -> vector<2x512xf32>
    %192 = vector.extract_strided_slice %182 {offsets = [0, 128], sizes = [2, 128], strides = [1, 1]} : vector<2x256xf32> to vector<2x128xf32>
    %c128_101 = arith.constant 128 : index
    %c512_102 = arith.constant 512 : index
    %193 = vector.load %arg6[%c128_101, %c512_102] : memref<256x1024xf32, #tpu.memory_space<vmem>>, vector<128x512xf32>
    %cst_103 = arith.constant dense<0.000000e+00> : vector<2x512xf32>
    %194 = tpu.matmul %192, %193, %cst_103 {dimension_numbers = #tpu.dot_dimension_numbers<[1], [0], [0], [1], [0, 0, 1, 1], [], []>} : vector<2x128xf32>, vector<128x512xf32>, vector<2x512xf32> -> vector<2x512xf32>
    %c3 = arith.constant 3 : index
    %c0_104 = arith.constant 0 : index
    %c0_105 = arith.constant 0 : index
    %195 = vector.load %arg10[%c3, %c0_104, %c0_105] : memref<8x2x512xf32, #tpu.memory_space<vmem>>, vector<1x2x512xf32>
    %196 = vector.shape_cast %195 : vector<1x2x512xf32> to vector<2x512xf32>
    %197 = arith.addf %196, %191 : vector<2x512xf32>
    %198 = vector.extract_strided_slice %197 {offsets = [0, 0], sizes = [2, 384], strides = [1, 1]} : vector<2x512xf32> to vector<2x384xf32>
    %cst_106 = arith.constant 5.000000e-01 : f32
    %199 = vector.broadcast %cst_106 : f32 to vector<2x384xf32>
    %200 = arith.mulf %199, %198 : vector<2x384xf32>
    %201 = math.tanh %200 : vector<2x384xf32>
    %cst_107 = arith.constant 5.000000e-01 : f32
    %202 = vector.broadcast %cst_107 : f32 to vector<2x384xf32>
    %203 = arith.mulf %202, %201 : vector<2x384xf32>
    %cst_108 = arith.constant 5.000000e-01 : f32
    %204 = vector.broadcast %cst_108 : f32 to vector<2x384xf32>
    %205 = arith.addf %203, %204 : vector<2x384xf32>
    %206 = vector.extract_strided_slice %197 {offsets = [0, 384], sizes = [2, 128], strides = [1, 1]} : vector<2x512xf32> to vector<2x128xf32>
    %207 = math.tanh %206 : vector<2x128xf32>
    %208 = vector.extract_strided_slice %205 {offsets = [0, 128], sizes = [2, 128], strides = [1, 1]} : vector<2x384xf32> to vector<2x128xf32>
    %209 = arith.mulf %208, %157 : vector<2x128xf32>
    %210 = vector.extract_strided_slice %205 {offsets = [0, 0], sizes = [2, 128], strides = [1, 1]} : vector<2x384xf32> to vector<2x128xf32>
    %211 = arith.mulf %210, %207 : vector<2x128xf32>
    %212 = arith.addf %209, %211 : vector<2x128xf32>
    %213 = vector.extract_strided_slice %205 {offsets = [0, 256], sizes = [2, 128], strides = [1, 1]} : vector<2x384xf32> to vector<2x128xf32>
    %214 = math.tanh %212 : vector<2x128xf32>
    %215 = arith.mulf %213, %214 : vector<2x128xf32>
    %c4 = arith.constant 4 : index
    %c0_109 = arith.constant 0 : index
    %c0_110 = arith.constant 0 : index
    %216 = vector.load %arg11[%c4, %c0_109, %c0_110] : memref<8x2x512xf32, #tpu.memory_space<vmem>>, vector<1x2x512xf32>
    %217 = vector.shape_cast %216 : vector<1x2x512xf32> to vector<2x512xf32>
    %218 = arith.addf %217, %194 : vector<2x512xf32>
    %219 = vector.extract_strided_slice %218 {offsets = [0, 0], sizes = [2, 384], strides = [1, 1]} : vector<2x512xf32> to vector<2x384xf32>
    %cst_111 = arith.constant 5.000000e-01 : f32
    %220 = vector.broadcast %cst_111 : f32 to vector<2x384xf32>
    %221 = arith.mulf %220, %219 : vector<2x384xf32>
    %222 = math.tanh %221 : vector<2x384xf32>
    %cst_112 = arith.constant 5.000000e-01 : f32
    %223 = vector.broadcast %cst_112 : f32 to vector<2x384xf32>
    %224 = arith.mulf %223, %222 : vector<2x384xf32>
    %cst_113 = arith.constant 5.000000e-01 : f32
    %225 = vector.broadcast %cst_113 : f32 to vector<2x384xf32>
    %226 = arith.addf %224, %225 : vector<2x384xf32>
    %227 = vector.extract_strided_slice %218 {offsets = [0, 384], sizes = [2, 128], strides = [1, 1]} : vector<2x512xf32> to vector<2x128xf32>
    %228 = math.tanh %227 : vector<2x128xf32>
    %229 = vector.extract_strided_slice %226 {offsets = [0, 128], sizes = [2, 128], strides = [1, 1]} : vector<2x384xf32> to vector<2x128xf32>
    %230 = arith.mulf %229, %178 : vector<2x128xf32>
    %231 = vector.extract_strided_slice %226 {offsets = [0, 0], sizes = [2, 128], strides = [1, 1]} : vector<2x384xf32> to vector<2x128xf32>
    %232 = arith.mulf %231, %228 : vector<2x128xf32>
    %233 = arith.addf %230, %232 : vector<2x128xf32>
    %234 = vector.extract_strided_slice %226 {offsets = [0, 256], sizes = [2, 128], strides = [1, 1]} : vector<2x384xf32> to vector<2x128xf32>
    %235 = math.tanh %233 : vector<2x128xf32>
    %236 = arith.mulf %234, %235 : vector<2x128xf32>
    %237 = tpu.concatenate %215, %236 in 1 : vector<2x128xf32>, vector<2x128xf32> -> vector<2x256xf32>
    %c0_114 = arith.constant 0 : index
    %c0_115 = arith.constant 0 : index
    %238 = vector.load %arg14[%c0_114, %c0_115] : memref<2x256xf32, #tpu.memory_space<vmem>>, vector<2x256xf32>
    %239 = arith.addf %238, %237 : vector<2x256xf32>
    %c0_116 = arith.constant 0 : index
    %c0_117 = arith.constant 0 : index
    %240 = vector.load %arg14[%c0_116, %c0_117] : memref<2x256xf32, #tpu.memory_space<vmem>>, vector<2x256xf32>
    tpu.vector_store %arg14[%c0_116, %c0_117], %239 {strides = array<i32>} : memref<2x256xf32, #tpu.memory_space<vmem>>, vector<2x256xf32>,
    %c0_118 = arith.constant 0 : index
    %c0_119 = arith.constant 0 : index
    %241 = vector.load %arg15[%c0_118, %c0_119] : memref<2x256xf32, #tpu.memory_space<vmem>>, vector<2x256xf32>
    %242 = arith.maximumf %241, %237 : vector<2x256xf32>
    %c0_120 = arith.constant 0 : index
    %c0_121 = arith.constant 0 : index
    %243 = vector.load %arg15[%c0_120, %c0_121] : memref<2x256xf32, #tpu.memory_space<vmem>>, vector<2x256xf32>
    tpu.vector_store %arg15[%c0_120, %c0_121], %242 {strides = array<i32>} : memref<2x256xf32, #tpu.memory_space<vmem>>, vector<2x256xf32>,
    %244 = vector.extract_strided_slice %237 {offsets = [0, 0], sizes = [2, 128], strides = [1, 1]} : vector<2x256xf32> to vector<2x128xf32>
    %c0_122 = arith.constant 0 : index
    %c0_123 = arith.constant 0 : index
    %245 = vector.load %arg6[%c0_122, %c0_123] : memref<256x1024xf32, #tpu.memory_space<vmem>>, vector<128x512xf32>
    %cst_124 = arith.constant dense<0.000000e+00> : vector<2x512xf32>
    %246 = tpu.matmul %244, %245, %cst_124 {dimension_numbers = #tpu.dot_dimension_numbers<[1], [0], [0], [1], [0, 0, 1, 1], [], []>} : vector<2x128xf32>, vector<128x512xf32>, vector<2x512xf32> -> vector<2x512xf32>
    %247 = vector.extract_strided_slice %237 {offsets = [0, 128], sizes = [2, 128], strides = [1, 1]} : vector<2x256xf32> to vector<2x128xf32>
    %c128_125 = arith.constant 128 : index
    %c512_126 = arith.constant 512 : index
    %248 = vector.load %arg6[%c128_125, %c512_126] : memref<256x1024xf32, #tpu.memory_space<vmem>>, vector<128x512xf32>
    %cst_127 = arith.constant dense<0.000000e+00> : vector<2x512xf32>
    %249 = tpu.matmul %247, %248, %cst_127 {dimension_numbers = #tpu.dot_dimension_numbers<[1], [0], [0], [1], [0, 0, 1, 1], [], []>} : vector<2x128xf32>, vector<128x512xf32>, vector<2x512xf32> -> vector<2x512xf32>
    %c4_128 = arith.constant 4 : index
    %c0_129 = arith.constant 0 : index
    %c0_130 = arith.constant 0 : index
    %250 = vector.load %arg10[%c4_128, %c0_129, %c0_130] : memref<8x2x512xf32, #tpu.memory_space<vmem>>, vector<1x2x512xf32>
    %251 = vector.shape_cast %250 : vector<1x2x512xf32> to vector<2x512xf32>
    %252 = arith.addf %251, %246 : vector<2x512xf32>
    %253 = vector.extract_strided_slice %252 {offsets = [0, 0], sizes = [2, 384], strides = [1, 1]} : vector<2x512xf32> to vector<2x384xf32>
    %cst_131 = arith.constant 5.000000e-01 : f32
    %254 = vector.broadcast %cst_131 : f32 to vector<2x384xf32>
    %255 = arith.mulf %254, %253 : vector<2x384xf32>
    %256 = math.tanh %255 : vector<2x384xf32>
    %cst_132 = arith.constant 5.000000e-01 : f32
    %257 = vector.broadcast %cst_132 : f32 to vector<2x384xf32>
    %258 = arith.mulf %257, %256 : vector<2x384xf32>
    %cst_133 = arith.constant 5.000000e-01 : f32
    %259 = vector.broadcast %cst_133 : f32 to vector<2x384xf32>
    %260 = arith.addf %258, %259 : vector<2x384xf32>
    %261 = vector.extract_strided_slice %252 {offsets = [0, 384], sizes = [2, 128], strides = [1, 1]} : vector<2x512xf32> to vector<2x128xf32>
    %262 = math.tanh %261 : vector<2x128xf32>
    %263 = vector.extract_strided_slice %260 {offsets = [0, 128], sizes = [2, 128], strides = [1, 1]} : vector<2x384xf32> to vector<2x128xf32>
    %264 = arith.mulf %263, %212 : vector<2x128xf32>
    %265 = vector.extract_strided_slice %260 {offsets = [0, 0], sizes = [2, 128], strides = [1, 1]} : vector<2x384xf32> to vector<2x128xf32>
    %266 = arith.mulf %265, %262 : vector<2x128xf32>
    %267 = arith.addf %264, %266 : vector<2x128xf32>
    %268 = vector.extract_strided_slice %260 {offsets = [0, 256], sizes = [2, 128], strides = [1, 1]} : vector<2x384xf32> to vector<2x128xf32>
    %269 = math.tanh %267 : vector<2x128xf32>
    %270 = arith.mulf %268, %269 : vector<2x128xf32>
    %c3_134 = arith.constant 3 : index
    %c0_135 = arith.constant 0 : index
    %c0_136 = arith.constant 0 : index
    %271 = vector.load %arg11[%c3_134, %c0_135, %c0_136] : memref<8x2x512xf32, #tpu.memory_space<vmem>>, vector<1x2x512xf32>
    %272 = vector.shape_cast %271 : vector<1x2x512xf32> to vector<2x512xf32>
    %273 = arith.addf %272, %249 : vector<2x512xf32>
    %274 = vector.extract_strided_slice %273 {offsets = [0, 0], sizes = [2, 384], strides = [1, 1]} : vector<2x512xf32> to vector<2x384xf32>
    %cst_137 = arith.constant 5.000000e-01 : f32
    %275 = vector.broadcast %cst_137 : f32 to vector<2x384xf32>
    %276 = arith.mulf %275, %274 : vector<2x384xf32>
    %277 = math.tanh %276 : vector<2x384xf32>
    %cst_138 = arith.constant 5.000000e-01 : f32
    %278 = vector.broadcast %cst_138 : f32 to vector<2x384xf32>
    %279 = arith.mulf %278, %277 : vector<2x384xf32>
    %cst_139 = arith.constant 5.000000e-01 : f32
    %280 = vector.broadcast %cst_139 : f32 to vector<2x384xf32>
    %281 = arith.addf %279, %280 : vector<2x384xf32>
    %282 = vector.extract_strided_slice %273 {offsets = [0, 384], sizes = [2, 128], strides = [1, 1]} : vector<2x512xf32> to vector<2x128xf32>
    %283 = math.tanh %282 : vector<2x128xf32>
    %284 = vector.extract_strided_slice %281 {offsets = [0, 128], sizes = [2, 128], strides = [1, 1]} : vector<2x384xf32> to vector<2x128xf32>
    %285 = arith.mulf %284, %233 : vector<2x128xf32>
    %286 = vector.extract_strided_slice %281 {offsets = [0, 0], sizes = [2, 128], strides = [1, 1]} : vector<2x384xf32> to vector<2x128xf32>
    %287 = arith.mulf %286, %283 : vector<2x128xf32>
    %288 = arith.addf %285, %287 : vector<2x128xf32>
    %289 = vector.extract_strided_slice %281 {offsets = [0, 256], sizes = [2, 128], strides = [1, 1]} : vector<2x384xf32> to vector<2x128xf32>
    %290 = math.tanh %288 : vector<2x128xf32>
    %291 = arith.mulf %289, %290 : vector<2x128xf32>
    %292 = tpu.concatenate %270, %291 in 1 : vector<2x128xf32>, vector<2x128xf32> -> vector<2x256xf32>
    %c0_140 = arith.constant 0 : index
    %c0_141 = arith.constant 0 : index
    %293 = vector.load %arg14[%c0_140, %c0_141] : memref<2x256xf32, #tpu.memory_space<vmem>>, vector<2x256xf32>
    %294 = arith.addf %293, %292 : vector<2x256xf32>
    %c0_142 = arith.constant 0 : index
    %c0_143 = arith.constant 0 : index
    %295 = vector.load %arg14[%c0_142, %c0_143] : memref<2x256xf32, #tpu.memory_space<vmem>>, vector<2x256xf32>
    tpu.vector_store %arg14[%c0_142, %c0_143], %294 {strides = array<i32>} : memref<2x256xf32, #tpu.memory_space<vmem>>, vector<2x256xf32>,
    %c0_144 = arith.constant 0 : index
    %c0_145 = arith.constant 0 : index
    %296 = vector.load %arg15[%c0_144, %c0_145] : memref<2x256xf32, #tpu.memory_space<vmem>>, vector<2x256xf32>
    %297 = arith.maximumf %296, %292 : vector<2x256xf32>
    %c0_146 = arith.constant 0 : index
    %c0_147 = arith.constant 0 : index
    %298 = vector.load %arg15[%c0_146, %c0_147] : memref<2x256xf32, #tpu.memory_space<vmem>>, vector<2x256xf32>
    tpu.vector_store %arg15[%c0_146, %c0_147], %297 {strides = array<i32>} : memref<2x256xf32, #tpu.memory_space<vmem>>, vector<2x256xf32>,
    %299 = vector.extract_strided_slice %292 {offsets = [0, 0], sizes = [2, 128], strides = [1, 1]} : vector<2x256xf32> to vector<2x128xf32>
    %c0_148 = arith.constant 0 : index
    %c0_149 = arith.constant 0 : index
    %300 = vector.load %arg6[%c0_148, %c0_149] : memref<256x1024xf32, #tpu.memory_space<vmem>>, vector<128x512xf32>
    %cst_150 = arith.constant dense<0.000000e+00> : vector<2x512xf32>
    %301 = tpu.matmul %299, %300, %cst_150 {dimension_numbers = #tpu.dot_dimension_numbers<[1], [0], [0], [1], [0, 0, 1, 1], [], []>} : vector<2x128xf32>, vector<128x512xf32>, vector<2x512xf32> -> vector<2x512xf32>
    %302 = vector.extract_strided_slice %292 {offsets = [0, 128], sizes = [2, 128], strides = [1, 1]} : vector<2x256xf32> to vector<2x128xf32>
    %c128_151 = arith.constant 128 : index
    %c512_152 = arith.constant 512 : index
    %303 = vector.load %arg6[%c128_151, %c512_152] : memref<256x1024xf32, #tpu.memory_space<vmem>>, vector<128x512xf32>
    %cst_153 = arith.constant dense<0.000000e+00> : vector<2x512xf32>
    %304 = tpu.matmul %302, %303, %cst_153 {dimension_numbers = #tpu.dot_dimension_numbers<[1], [0], [0], [1], [0, 0, 1, 1], [], []>} : vector<2x128xf32>, vector<128x512xf32>, vector<2x512xf32> -> vector<2x512xf32>
    %c5_154 = arith.constant 5 : index
    %c0_155 = arith.constant 0 : index
    %c0_156 = arith.constant 0 : index
    %305 = vector.load %arg10[%c5_154, %c0_155, %c0_156] : memref<8x2x512xf32, #tpu.memory_space<vmem>>, vector<1x2x512xf32>
    %306 = vector.shape_cast %305 : vector<1x2x512xf32> to vector<2x512xf32>
    %307 = arith.addf %306, %301 : vector<2x512xf32>
    %308 = vector.extract_strided_slice %307 {offsets = [0, 0], sizes = [2, 384], strides = [1, 1]} : vector<2x512xf32> to vector<2x384xf32>
    %cst_157 = arith.constant 5.000000e-01 : f32
    %309 = vector.broadcast %cst_157 : f32 to vector<2x384xf32>
    %310 = arith.mulf %309, %308 : vector<2x384xf32>
    %311 = math.tanh %310 : vector<2x384xf32>
    %cst_158 = arith.constant 5.000000e-01 : f32
    %312 = vector.broadcast %cst_158 : f32 to vector<2x384xf32>
    %313 = arith.mulf %312, %311 : vector<2x384xf32>
    %cst_159 = arith.constant 5.000000e-01 : f32
    %314 = vector.broadcast %cst_159 : f32 to vector<2x384xf32>
    %315 = arith.addf %313, %314 : vector<2x384xf32>
    %316 = vector.extract_strided_slice %307 {offsets = [0, 384], sizes = [2, 128], strides = [1, 1]} : vector<2x512xf32> to vector<2x128xf32>
    %317 = math.tanh %316 : vector<2x128xf32>
    %318 = vector.extract_strided_slice %315 {offsets = [0, 128], sizes = [2, 128], strides = [1, 1]} : vector<2x384xf32> to vector<2x128xf32>
    %319 = arith.mulf %318, %267 : vector<2x128xf32>
    %320 = vector.extract_strided_slice %315 {offsets = [0, 0], sizes = [2, 128], strides = [1, 1]} : vector<2x384xf32> to vector<2x128xf32>
    %321 = arith.mulf %320, %317 : vector<2x128xf32>
    %322 = arith.addf %319, %321 : vector<2x128xf32>
    %323 = vector.extract_strided_slice %315 {offsets = [0, 256], sizes = [2, 128], strides = [1, 1]} : vector<2x384xf32> to vector<2x128xf32>
    %324 = math.tanh %322 : vector<2x128xf32>
    %325 = arith.mulf %323, %324 : vector<2x128xf32>
    %c2_160 = arith.constant 2 : index
    %c0_161 = arith.constant 0 : index
    %c0_162 = arith.constant 0 : index
    %326 = vector.load %arg11[%c2_160, %c0_161, %c0_162] : memref<8x2x512xf32, #tpu.memory_space<vmem>>, vector<1x2x512xf32>
    %327 = vector.shape_cast %326 : vector<1x2x512xf32> to vector<2x512xf32>
    %328 = arith.addf %327, %304 : vector<2x512xf32>
    %329 = vector.extract_strided_slice %328 {offsets = [0, 0], sizes = [2, 384], strides = [1, 1]} : vector<2x512xf32> to vector<2x384xf32>
    %cst_163 = arith.constant 5.000000e-01 : f32
    %330 = vector.broadcast %cst_163 : f32 to vector<2x384xf32>
    %331 = arith.mulf %330, %329 : vector<2x384xf32>
    %332 = math.tanh %331 : vector<2x384xf32>
    %cst_164 = arith.constant 5.000000e-01 : f32
    %333 = vector.broadcast %cst_164 : f32 to vector<2x384xf32>
    %334 = arith.mulf %333, %332 : vector<2x384xf32>
    %cst_165 = arith.constant 5.000000e-01 : f32
    %335 = vector.broadcast %cst_165 : f32 to vector<2x384xf32>
    %336 = arith.addf %334, %335 : vector<2x384xf32>
    %337 = vector.extract_strided_slice %328 {offsets = [0, 384], sizes = [2, 128], strides = [1, 1]} : vector<2x512xf32> to vector<2x128xf32>
    %338 = math.tanh %337 : vector<2x128xf32>
    %339 = vector.extract_strided_slice %336 {offsets = [0, 128], sizes = [2, 128], strides = [1, 1]} : vector<2x384xf32> to vector<2x128xf32>
    %340 = arith.mulf %339, %288 : vector<2x128xf32>
    %341 = vector.extract_strided_slice %336 {offsets = [0, 0], sizes = [2, 128], strides = [1, 1]} : vector<2x384xf32> to vector<2x128xf32>
    %342 = arith.mulf %341, %338 : vector<2x128xf32>
    %343 = arith.addf %340, %342 : vector<2x128xf32>
    %344 = vector.extract_strided_slice %336 {offsets = [0, 256], sizes = [2, 128], strides = [1, 1]} : vector<2x384xf32> to vector<2x128xf32>
    %345 = math.tanh %343 : vector<2x128xf32>
    %346 = arith.mulf %344, %345 : vector<2x128xf32>
    %347 = tpu.concatenate %325, %346 in 1 : vector<2x128xf32>, vector<2x128xf32> -> vector<2x256xf32>
    %c0_166 = arith.constant 0 : index
    %c0_167 = arith.constant 0 : index
    %348 = vector.load %arg14[%c0_166, %c0_167] : memref<2x256xf32, #tpu.memory_space<vmem>>, vector<2x256xf32>
    %349 = arith.addf %348, %347 : vector<2x256xf32>
    %c0_168 = arith.constant 0 : index
    %c0_169 = arith.constant 0 : index
    %350 = vector.load %arg14[%c0_168, %c0_169] : memref<2x256xf32, #tpu.memory_space<vmem>>, vector<2x256xf32>
    tpu.vector_store %arg14[%c0_168, %c0_169], %349 {strides = array<i32>} : memref<2x256xf32, #tpu.memory_space<vmem>>, vector<2x256xf32>,
    %c0_170 = arith.constant 0 : index
    %c0_171 = arith.constant 0 : index
    %351 = vector.load %arg15[%c0_170, %c0_171] : memref<2x256xf32, #tpu.memory_space<vmem>>, vector<2x256xf32>
    %352 = arith.maximumf %351, %347 : vector<2x256xf32>
    %c0_172 = arith.constant 0 : index
    %c0_173 = arith.constant 0 : index
    %353 = vector.load %arg15[%c0_172, %c0_173] : memref<2x256xf32, #tpu.memory_space<vmem>>, vector<2x256xf32>
    tpu.vector_store %arg15[%c0_172, %c0_173], %352 {strides = array<i32>} : memref<2x256xf32, #tpu.memory_space<vmem>>, vector<2x256xf32>,
    %354 = vector.extract_strided_slice %347 {offsets = [0, 0], sizes = [2, 128], strides = [1, 1]} : vector<2x256xf32> to vector<2x128xf32>
    %c0_174 = arith.constant 0 : index
    %c0_175 = arith.constant 0 : index
    %355 = vector.load %arg6[%c0_174, %c0_175] : memref<256x1024xf32, #tpu.memory_space<vmem>>, vector<128x512xf32>
    %cst_176 = arith.constant dense<0.000000e+00> : vector<2x512xf32>
    %356 = tpu.matmul %354, %355, %cst_176 {dimension_numbers = #tpu.dot_dimension_numbers<[1], [0], [0], [1], [0, 0, 1, 1], [], []>} : vector<2x128xf32>, vector<128x512xf32>, vector<2x512xf32> -> vector<2x512xf32>
    %357 = vector.extract_strided_slice %347 {offsets = [0, 128], sizes = [2, 128], strides = [1, 1]} : vector<2x256xf32> to vector<2x128xf32>
    %c128_177 = arith.constant 128 : index
    %c512_178 = arith.constant 512 : index
    %358 = vector.load %arg6[%c128_177, %c512_178] : memref<256x1024xf32, #tpu.memory_space<vmem>>, vector<128x512xf32>
    %cst_179 = arith.constant dense<0.000000e+00> : vector<2x512xf32>
    %359 = tpu.matmul %357, %358, %cst_179 {dimension_numbers = #tpu.dot_dimension_numbers<[1], [0], [0], [1], [0, 0, 1, 1], [], []>} : vector<2x128xf32>, vector<128x512xf32>, vector<2x512xf32> -> vector<2x512xf32>
    %c6_180 = arith.constant 6 : index
    %c0_181 = arith.constant 0 : index
    %c0_182 = arith.constant 0 : index
    %360 = vector.load %arg10[%c6_180, %c0_181, %c0_182] : memref<8x2x512xf32, #tpu.memory_space<vmem>>, vector<1x2x512xf32>
    %361 = vector.shape_cast %360 : vector<1x2x512xf32> to vector<2x512xf32>
    %362 = arith.addf %361, %356 : vector<2x512xf32>
    %363 = vector.extract_strided_slice %362 {offsets = [0, 0], sizes = [2, 384], strides = [1, 1]} : vector<2x512xf32> to vector<2x384xf32>
    %cst_183 = arith.constant 5.000000e-01 : f32
    %364 = vector.broadcast %cst_183 : f32 to vector<2x384xf32>
    %365 = arith.mulf %364, %363 : vector<2x384xf32>
    %366 = math.tanh %365 : vector<2x384xf32>
    %cst_184 = arith.constant 5.000000e-01 : f32
    %367 = vector.broadcast %cst_184 : f32 to vector<2x384xf32>
    %368 = arith.mulf %367, %366 : vector<2x384xf32>
    %cst_185 = arith.constant 5.000000e-01 : f32
    %369 = vector.broadcast %cst_185 : f32 to vector<2x384xf32>
    %370 = arith.addf %368, %369 : vector<2x384xf32>
    %371 = vector.extract_strided_slice %362 {offsets = [0, 384], sizes = [2, 128], strides = [1, 1]} : vector<2x512xf32> to vector<2x128xf32>
    %372 = math.tanh %371 : vector<2x128xf32>
    %373 = vector.extract_strided_slice %370 {offsets = [0, 128], sizes = [2, 128], strides = [1, 1]} : vector<2x384xf32> to vector<2x128xf32>
    %374 = arith.mulf %373, %322 : vector<2x128xf32>
    %375 = vector.extract_strided_slice %370 {offsets = [0, 0], sizes = [2, 128], strides = [1, 1]} : vector<2x384xf32> to vector<2x128xf32>
    %376 = arith.mulf %375, %372 : vector<2x128xf32>
    %377 = arith.addf %374, %376 : vector<2x128xf32>
    %378 = vector.extract_strided_slice %370 {offsets = [0, 256], sizes = [2, 128], strides = [1, 1]} : vector<2x384xf32> to vector<2x128xf32>
    %379 = math.tanh %377 : vector<2x128xf32>
    %380 = arith.mulf %378, %379 : vector<2x128xf32>
    %c1_186 = arith.constant 1 : index
    %c0_187 = arith.constant 0 : index
    %c0_188 = arith.constant 0 : index
    %381 = vector.load %arg11[%c1_186, %c0_187, %c0_188] : memref<8x2x512xf32, #tpu.memory_space<vmem>>, vector<1x2x512xf32>
    %382 = vector.shape_cast %381 : vector<1x2x512xf32> to vector<2x512xf32>
    %383 = arith.addf %382, %359 : vector<2x512xf32>
    %384 = vector.extract_strided_slice %383 {offsets = [0, 0], sizes = [2, 384], strides = [1, 1]} : vector<2x512xf32> to vector<2x384xf32>
    %cst_189 = arith.constant 5.000000e-01 : f32
    %385 = vector.broadcast %cst_189 : f32 to vector<2x384xf32>
    %386 = arith.mulf %385, %384 : vector<2x384xf32>
    %387 = math.tanh %386 : vector<2x384xf32>
    %cst_190 = arith.constant 5.000000e-01 : f32
    %388 = vector.broadcast %cst_190 : f32 to vector<2x384xf32>
    %389 = arith.mulf %388, %387 : vector<2x384xf32>
    %cst_191 = arith.constant 5.000000e-01 : f32
    %390 = vector.broadcast %cst_191 : f32 to vector<2x384xf32>
    %391 = arith.addf %389, %390 : vector<2x384xf32>
    %392 = vector.extract_strided_slice %383 {offsets = [0, 384], sizes = [2, 128], strides = [1, 1]} : vector<2x512xf32> to vector<2x128xf32>
    %393 = math.tanh %392 : vector<2x128xf32>
    %394 = vector.extract_strided_slice %391 {offsets = [0, 128], sizes = [2, 128], strides = [1, 1]} : vector<2x384xf32> to vector<2x128xf32>
    %395 = arith.mulf %394, %343 : vector<2x128xf32>
    %396 = vector.extract_strided_slice %391 {offsets = [0, 0], sizes = [2, 128], strides = [1, 1]} : vector<2x384xf32> to vector<2x128xf32>
    %397 = arith.mulf %396, %393 : vector<2x128xf32>
    %398 = arith.addf %395, %397 : vector<2x128xf32>
    %399 = vector.extract_strided_slice %391 {offsets = [0, 256], sizes = [2, 128], strides = [1, 1]} : vector<2x384xf32> to vector<2x128xf32>
    %400 = math.tanh %398 : vector<2x128xf32>
    %401 = arith.mulf %399, %400 : vector<2x128xf32>
    %402 = tpu.concatenate %380, %401 in 1 : vector<2x128xf32>, vector<2x128xf32> -> vector<2x256xf32>
    %c0_192 = arith.constant 0 : index
    %c0_193 = arith.constant 0 : index
    %403 = vector.load %arg14[%c0_192, %c0_193] : memref<2x256xf32, #tpu.memory_space<vmem>>, vector<2x256xf32>
    %404 = arith.addf %403, %402 : vector<2x256xf32>
    %c0_194 = arith.constant 0 : index
    %c0_195 = arith.constant 0 : index
    %405 = vector.load %arg14[%c0_194, %c0_195] : memref<2x256xf32, #tpu.memory_space<vmem>>, vector<2x256xf32>
    tpu.vector_store %arg14[%c0_194, %c0_195], %404 {strides = array<i32>} : memref<2x256xf32, #tpu.memory_space<vmem>>, vector<2x256xf32>,
    %c0_196 = arith.constant 0 : index
    %c0_197 = arith.constant 0 : index
    %406 = vector.load %arg15[%c0_196, %c0_197] : memref<2x256xf32, #tpu.memory_space<vmem>>, vector<2x256xf32>
    %407 = arith.maximumf %406, %402 : vector<2x256xf32>
    %c0_198 = arith.constant 0 : index
    %c0_199 = arith.constant 0 : index
    %408 = vector.load %arg15[%c0_198, %c0_199] : memref<2x256xf32, #tpu.memory_space<vmem>>, vector<2x256xf32>
    tpu.vector_store %arg15[%c0_198, %c0_199], %407 {strides = array<i32>} : memref<2x256xf32, #tpu.memory_space<vmem>>, vector<2x256xf32>,
    %409 = vector.extract_strided_slice %402 {offsets = [0, 0], sizes = [2, 128], strides = [1, 1]} : vector<2x256xf32> to vector<2x128xf32>
    %c0_200 = arith.constant 0 : index
    %c0_201 = arith.constant 0 : index
    %410 = vector.load %arg6[%c0_200, %c0_201] : memref<256x1024xf32, #tpu.memory_space<vmem>>, vector<128x512xf32>
    %cst_202 = arith.constant dense<0.000000e+00> : vector<2x512xf32>
    %411 = tpu.matmul %409, %410, %cst_202 {dimension_numbers = #tpu.dot_dimension_numbers<[1], [0], [0], [1], [0, 0, 1, 1], [], []>} : vector<2x128xf32>, vector<128x512xf32>, vector<2x512xf32> -> vector<2x512xf32>
    %412 = vector.extract_strided_slice %402 {offsets = [0, 128], sizes = [2, 128], strides = [1, 1]} : vector<2x256xf32> to vector<2x128xf32>
    %c128_203 = arith.constant 128 : index
    %c512_204 = arith.constant 512 : index
    %413 = vector.load %arg6[%c128_203, %c512_204] : memref<256x1024xf32, #tpu.memory_space<vmem>>, vector<128x512xf32>
    %cst_205 = arith.constant dense<0.000000e+00> : vector<2x512xf32>
    %414 = tpu.matmul %412, %413, %cst_205 {dimension_numbers = #tpu.dot_dimension_numbers<[1], [0], [0], [1], [0, 0, 1, 1], [], []>} : vector<2x128xf32>, vector<128x512xf32>, vector<2x512xf32> -> vector<2x512xf32>
    %c7_206 = arith.constant 7 : index
    %c0_207 = arith.constant 0 : index
    %c0_208 = arith.constant 0 : index
    %415 = vector.load %arg10[%c7_206, %c0_207, %c0_208] : memref<8x2x512xf32, #tpu.memory_space<vmem>>, vector<1x2x512xf32>
    %416 = vector.shape_cast %415 : vector<1x2x512xf32> to vector<2x512xf32>
    %417 = arith.addf %416, %411 : vector<2x512xf32>
    %418 = vector.extract_strided_slice %417 {offsets = [0, 0], sizes = [2, 384], strides = [1, 1]} : vector<2x512xf32> to vector<2x384xf32>
    %cst_209 = arith.constant 5.000000e-01 : f32
    %419 = vector.broadcast %cst_209 : f32 to vector<2x384xf32>
    %420 = arith.mulf %419, %418 : vector<2x384xf32>
    %421 = math.tanh %420 : vector<2x384xf32>
    %cst_210 = arith.constant 5.000000e-01 : f32
    %422 = vector.broadcast %cst_210 : f32 to vector<2x384xf32>
    %423 = arith.mulf %422, %421 : vector<2x384xf32>
    %cst_211 = arith.constant 5.000000e-01 : f32
    %424 = vector.broadcast %cst_211 : f32 to vector<2x384xf32>
    %425 = arith.addf %423, %424 : vector<2x384xf32>
    %426 = vector.extract_strided_slice %417 {offsets = [0, 384], sizes = [2, 128], strides = [1, 1]} : vector<2x512xf32> to vector<2x128xf32>
    %427 = math.tanh %426 : vector<2x128xf32>
    %428 = vector.extract_strided_slice %425 {offsets = [0, 128], sizes = [2, 128], strides = [1, 1]} : vector<2x384xf32> to vector<2x128xf32>
    %429 = arith.mulf %428, %377 : vector<2x128xf32>
    %430 = vector.extract_strided_slice %425 {offsets = [0, 0], sizes = [2, 128], strides = [1, 1]} : vector<2x384xf32> to vector<2x128xf32>
    %431 = arith.mulf %430, %427 : vector<2x128xf32>
    %432 = arith.addf %429, %431 : vector<2x128xf32>
    %433 = vector.extract_strided_slice %425 {offsets = [0, 256], sizes = [2, 128], strides = [1, 1]} : vector<2x384xf32> to vector<2x128xf32>
    %434 = math.tanh %432 : vector<2x128xf32>
    %435 = arith.mulf %433, %434 : vector<2x128xf32>
    %c0_212 = arith.constant 0 : index
    %c0_213 = arith.constant 0 : index
    %c0_214 = arith.constant 0 : index
    %436 = vector.load %arg11[%c0_212, %c0_213, %c0_214] : memref<8x2x512xf32, #tpu.memory_space<vmem>>, vector<1x2x512xf32>
    %437 = vector.shape_cast %436 : vector<1x2x512xf32> to vector<2x512xf32>
    %438 = arith.addf %437, %414 : vector<2x512xf32>
    %439 = vector.extract_strided_slice %438 {offsets = [0, 0], sizes = [2, 384], strides = [1, 1]} : vector<2x512xf32> to vector<2x384xf32>
    %cst_215 = arith.constant 5.000000e-01 : f32
    %440 = vector.broadcast %cst_215 : f32 to vector<2x384xf32>
    %441 = arith.mulf %440, %439 : vector<2x384xf32>
    %442 = math.tanh %441 : vector<2x384xf32>
    %cst_216 = arith.constant 5.000000e-01 : f32
    %443 = vector.broadcast %cst_216 : f32 to vector<2x384xf32>
    %444 = arith.mulf %443, %442 : vector<2x384xf32>
    %cst_217 = arith.constant 5.000000e-01 : f32
    %445 = vector.broadcast %cst_217 : f32 to vector<2x384xf32>
    %446 = arith.addf %444, %445 : vector<2x384xf32>
    %447 = vector.extract_strided_slice %438 {offsets = [0, 384], sizes = [2, 128], strides = [1, 1]} : vector<2x512xf32> to vector<2x128xf32>
    %448 = math.tanh %447 : vector<2x128xf32>
    %449 = vector.extract_strided_slice %446 {offsets = [0, 128], sizes = [2, 128], strides = [1, 1]} : vector<2x384xf32> to vector<2x128xf32>
    %450 = arith.mulf %449, %398 : vector<2x128xf32>
    %451 = vector.extract_strided_slice %446 {offsets = [0, 0], sizes = [2, 128], strides = [1, 1]} : vector<2x384xf32> to vector<2x128xf32>
    %452 = arith.mulf %451, %448 : vector<2x128xf32>
    %453 = arith.addf %450, %452 : vector<2x128xf32>
    %454 = vector.extract_strided_slice %446 {offsets = [0, 256], sizes = [2, 128], strides = [1, 1]} : vector<2x384xf32> to vector<2x128xf32>
    %455 = math.tanh %453 : vector<2x128xf32>
    %456 = arith.mulf %454, %455 : vector<2x128xf32>
    %457 = tpu.concatenate %435, %456 in 1 : vector<2x128xf32>, vector<2x128xf32> -> vector<2x256xf32>
    %c0_218 = arith.constant 0 : index
    %c0_219 = arith.constant 0 : index
    %458 = vector.load %arg14[%c0_218, %c0_219] : memref<2x256xf32, #tpu.memory_space<vmem>>, vector<2x256xf32>
    %459 = arith.addf %458, %457 : vector<2x256xf32>
    %c0_220 = arith.constant 0 : index
    %c0_221 = arith.constant 0 : index
    %460 = vector.load %arg14[%c0_220, %c0_221] : memref<2x256xf32, #tpu.memory_space<vmem>>, vector<2x256xf32>
    tpu.vector_store %arg14[%c0_220, %c0_221], %459 {strides = array<i32>} : memref<2x256xf32, #tpu.memory_space<vmem>>, vector<2x256xf32>,
    %c0_222 = arith.constant 0 : index
    %c0_223 = arith.constant 0 : index
    %461 = vector.load %arg15[%c0_222, %c0_223] : memref<2x256xf32, #tpu.memory_space<vmem>>, vector<2x256xf32>
    %462 = arith.maximumf %461, %457 : vector<2x256xf32>
    %c0_224 = arith.constant 0 : index
    %c0_225 = arith.constant 0 : index
    %463 = vector.load %arg15[%c0_224, %c0_225] : memref<2x256xf32, #tpu.memory_space<vmem>>, vector<2x256xf32>
    tpu.vector_store %arg15[%c0_224, %c0_225], %462 {strides = array<i32>} : memref<2x256xf32, #tpu.memory_space<vmem>>, vector<2x256xf32>,
    %c0_226 = arith.constant 0 : index
    %c0_227 = arith.constant 0 : index
    %464 = vector.load %arg12[%c0_226, %c0_227] : memref<2x256xf32, #tpu.memory_space<vmem>>, vector<2x256xf32>
    tpu.vector_store %arg12[%c0_226, %c0_227], %457 {strides = array<i32>} : memref<2x256xf32, #tpu.memory_space<vmem>>, vector<2x256xf32>,
    %c0_228 = arith.constant 0 : index
    %c0_229 = arith.constant 0 : index
    %465 = vector.load %arg13[%c0_228, %c0_229] : memref<2x256xf32, #tpu.memory_space<vmem>>, vector<2x128xf32>
    tpu.vector_store %arg13[%c0_228, %c0_229], %432 {strides = array<i32>} : memref<2x256xf32, #tpu.memory_space<vmem>>, vector<2x128xf32>,
    %c0_230 = arith.constant 0 : index
    %c128_231 = arith.constant 128 : index
    %466 = vector.load %arg13[%c0_230, %c128_231] : memref<2x256xf32, #tpu.memory_space<vmem>>, vector<2x128xf32>
    tpu.vector_store %arg13[%c0_230, %c128_231], %453 {strides = array<i32>} : memref<2x256xf32, #tpu.memory_space<vmem>>, vector<2x128xf32>,
    %c0_i32_232 = arith.constant 0 : i32
    %467 = arith.cmpi eq, %arg1, %c0_i32_232 : i32
    %468 = arith.extui %467 : i1 to i32
    %c0_i32_233 = arith.constant 0 : i32
    %469 = arith.cmpi ne, %468, %c0_i32_233 : i32
    scf.if %469 {
      %c0_234 = arith.constant 0 : index
      %c0_235 = arith.constant 0 : index
      %470 = vector.load %arg14[%c0_234, %c0_235] : memref<2x256xf32, #tpu.memory_space<vmem>>, vector<2x256xf32>
      %cst_236 = arith.constant 1.250000e-01 : f32
      %471 = vector.broadcast %cst_236 : f32 to vector<2x256xf32>
      %472 = arith.mulf %470, %471 : vector<2x256xf32>
      %c0_237 = arith.constant 0 : index
      %c0_238 = arith.constant 0 : index
      %473 = vector.load %arg9[%c0_237, %c0_238] : memref<2x512xf32, #tpu.memory_space<vmem>>, vector<2x256xf32>
      tpu.vector_store %arg9[%c0_237, %c0_238], %472 {strides = array<i32>} : memref<2x512xf32, #tpu.memory_space<vmem>>, vector<2x256xf32>,
      %c0_239 = arith.constant 0 : index
      %c0_240 = arith.constant 0 : index
      %474 = vector.load %arg15[%c0_239, %c0_240] : memref<2x256xf32, #tpu.memory_space<vmem>>, vector<2x256xf32>
      %c0_241 = arith.constant 0 : index
      %c256 = arith.constant 256 : index
      %475 = vector.load %arg9[%c0_241, %c256] : memref<2x512xf32, #tpu.memory_space<vmem>>, vector<2x256xf32>
      tpu.vector_store %arg9[%c0_241, %c256], %474 {strides = array<i32>} : memref<2x512xf32, #tpu.memory_space<vmem>>, vector<2x256xf32>,
    } else {
    }
    return
  }
  func.func @transform_0(%arg0: i32, %arg1: i32) -> (i32, i32, i32) {
    %c0_i32 = arith.constant 0 : i32
    %c0_i32_0 = arith.constant 0 : i32
    return %arg1, %arg0, %c0_i32 : i32, i32, i32
  }
  func.func @transform_1(%arg0: i32, %arg1: i32) -> (i32, i32, i32) {
    %c0_i32 = arith.constant 0 : i32
    %0 = arith.subi %c0_i32, %arg1 : i32
    %c0_i32_0 = arith.constant 0 : i32
    %c0_i32_1 = arith.constant 0 : i32
    return %0, %arg0, %c0_i32_0 : i32, i32, i32
  }
  func.func @transform_2(%arg0: i32, %arg1: i32) -> (i32, i32) {
    %c0_i32 = arith.constant 0 : i32
    %c0_i32_0 = arith.constant 0 : i32
    %c0_i32_1 = arith.constant 0 : i32
    return %c0_i32, %c0_i32_0 : i32, i32
  }
  func.func @transform_3(%arg0: i32, %arg1: i32) -> (i32, i32) {
    %c0_i32 = arith.constant 0 : i32
    %c0_i32_0 = arith.constant 0 : i32
    %c0_i32_1 = arith.constant 0 : i32
    return %c0_i32, %c0_i32_0 : i32, i32
  }
  func.func @transform_4(%arg0: i32, %arg1: i32) -> (i32, i32) {
    %c0_i32 = arith.constant 0 : i32
    %c0_i32_0 = arith.constant 0 : i32
    %c0_i32_1 = arith.constant 0 : i32
    return %c0_i32, %c0_i32_0 : i32, i32
  }
  func.func @transform_5(%arg0: i32, %arg1: i32) -> (i32, i32) {
    %c0_i32 = arith.constant 0 : i32
    %c0_i32_0 = arith.constant 0 : i32
    %c0_i32_1 = arith.constant 0 : i32
    return %c0_i32, %c0_i32_0 : i32, i32
  }
  func.func @transform_6(%arg0: i32, %arg1: i32) -> (i32, i32) {
    %c0_i32 = arith.constant 0 : i32
    %c0_i32_0 = arith.constant 0 : i32
    %c0_i32_1 = arith.constant 0 : i32
    return %c0_i32, %c0_i32_0 : i32, i32
  }
  func.func @transform_7(%arg0: i32, %arg1: i32) -> (i32, i32) {
    %c0_i32 = arith.constant 0 : i32
    %c0_i32_0 = arith.constant 0 : i32
    return %arg0, %c0_i32 : i32, i32
  }
}

module attributes {stable_mosaic.version = 11 : i64} {
  func.func @_lstm_pooler_kernel(%arg0: i32, %arg1: i32, %arg2: memref<8x2x128xf32, #tpu.memory_space<vmem>>, %arg3: memref<8x2x128xf32, #tpu.memory_space<vmem>>, %arg4: memref<128x512xf32, #tpu.memory_space<vmem>>, %arg5: memref<128x512xf32, #tpu.memory_space<vmem>>, %arg6: memref<256x1024xf32, #tpu.memory_space<vmem>>, %arg7: memref<1x512xf32, #tpu.memory_space<vmem>>, %arg8: memref<1x512xf32, #tpu.memory_space<vmem>>, %arg9: memref<2x512xf32, #tpu.memory_space<vmem>>, %arg10: memref<8x2x512xf32, #tpu.memory_space<vmem>>, %arg11: memref<8x2x512xf32, #tpu.memory_space<vmem>>, %arg12: memref<2x256xf32, #tpu.memory_space<vmem>>, %arg13: memref<2x256xf32, #tpu.memory_space<vmem>>, %arg14: memref<2x256xf32, #tpu.memory_space<vmem>>, %arg15: memref<2x256xf32, #tpu.memory_space<vmem>>) attributes {dimension_semantics = [#tpu.dimension_semantics<parallel>, #tpu.dimension_semantics<arbitrary>], iteration_bounds = array<i64: 1, 1>, scalar_prefetch = 0 : i64, scratch_operands = 6 : i64, tpu.core_type = #tpu.core_type<tc>, window_params = [{transform_indices = @transform_0, window_bounds = array<i64: 8, 2, 128>}, {transform_indices = @transform_1, window_bounds = array<i64: 8, 2, 128>}, {pipeline_mode = #tpu.pipeline_mode<synchronous>, transform_indices = @transform_2, window_bounds = array<i64: 128, 512>}, {pipeline_mode = #tpu.pipeline_mode<synchronous>, transform_indices = @transform_3, window_bounds = array<i64: 128, 512>}, {pipeline_mode = #tpu.pipeline_mode<synchronous>, transform_indices = @transform_4, window_bounds = array<i64: 256, 1024>}, {pipeline_mode = #tpu.pipeline_mode<synchronous>, transform_indices = @transform_5, window_bounds = array<i64: 1, 512>}, {pipeline_mode = #tpu.pipeline_mode<synchronous>, transform_indices = @transform_6, window_bounds = array<i64: 1, 512>}, {transform_indices = @transform_7, window_bounds = array<i64: 2, 512>}]} {
    %c0_i32 = arith.constant 0 : i32
    %0 = arith.cmpi eq, %arg1, %c0_i32 : i32
    %1 = arith.extui %0 : i1 to i32
    %c0_i32_0 = arith.constant 0 : i32
    %2 = arith.cmpi ne, %1, %c0_i32_0 : i32
    scf.if %2 {
      %cst_234 = arith.constant 0.000000e+00 : f32
      %470 = vector.broadcast %cst_234 : f32 to vector<2x256xf32>
      %c0_235 = arith.constant 0 : index
      %c0_236 = arith.constant 0 : index
      %471 = vector.load %arg12[%c0_235, %c0_236] : memref<2x256xf32, #tpu.memory_space<vmem>>, vector<2x256xf32>
      tpu.vector_store %arg12[%c0_235, %c0_236], %470 {strides = array<i32>} : memref<2x256xf32, #tpu.memory_space<vmem>>, vector<2x256xf32>,
      %cst_237 = arith.constant 0.000000e+00 : f32
      %472 = vector.broadcast %cst_237 : f32 to vector<2x256xf32>
      %c0_238 = arith.constant 0 : index
      %c0_239 = arith.constant 0 : index
      %473 = vector.load %arg13[%c0_238, %c0_239] : memref<2x256xf32, #tpu.memory_space<vmem>>, vector<2x256xf32>
      tpu.vector_store %arg13[%c0_238, %c0_239], %472 {strides = array<i32>} : memref<2x256xf32, #tpu.memory_space<vmem>>, vector<2x256xf32>,
      %cst_240 = arith.constant 0.000000e+00 : f32
      %474 = vector.broadcast %cst_240 : f32 to vector<2x256xf32>
      %c0_241 = arith.constant 0 : index
      %c0_242 = arith.constant 0 : index
      %475 = vector.load %arg14[%c0_241, %c0_242] : memref<2x256xf32, #tpu.memory_space<vmem>>, vector<2x256xf32>
      tpu.vector_store %arg14[%c0_241, %c0_242], %474 {strides = array<i32>} : memref<2x256xf32, #tpu.memory_space<vmem>>, vector<2x256xf32>,
      %cst_243 = arith.constant 0xFF800000 : f32
      %476 = vector.broadcast %cst_243 : f32 to vector<2x256xf32>
      %c0_244 = arith.constant 0 : index
      %c0_245 = arith.constant 0 : index
      %477 = vector.load %arg15[%c0_244, %c0_245] : memref<2x256xf32, #tpu.memory_space<vmem>>, vector<2x256xf32>
      tpu.vector_store %arg15[%c0_244, %c0_245], %476 {strides = array<i32>} : memref<2x256xf32, #tpu.memory_space<vmem>>, vector<2x256xf32>,
    } else {
    }
    %c0 = arith.constant 0 : index
    %c0_1 = arith.constant 0 : index
    %c0_2 = arith.constant 0 : index
    %3 = vector.load %arg2[%c0, %c0_1, %c0_2] : memref<8x2x128xf32, #tpu.memory_space<vmem>>, vector<8x2x128xf32>
    %4 = vector.shape_cast %3 : vector<8x2x128xf32> to vector<16x128xf32>
    %c0_3 = arith.constant 0 : index
    %c0_4 = arith.constant 0 : index
    %5 = vector.load %arg4[%c0_3, %c0_4] : memref<128x512xf32, #tpu.memory_space<vmem>>, vector<128x512xf32>
    %cst = arith.constant dense<0.000000e+00> : vector<16x512xf32>
    %6 = tpu.matmul %4, %5, %cst {dimension_numbers = #tpu.dot_dimension_numbers<[1], [0], [0], [1], [0, 0, 1, 1], [], []>} : vector<16x128xf32>, vector<128x512xf32>, vector<16x512xf32> -> vector<16x512xf32>
    %c0_5 = arith.constant 0 : index
    %c0_6 = arith.constant 0 : index
    %7 = vector.load %arg7[%c0_5, %c0_6] : memref<1x512xf32, #tpu.memory_space<vmem>>, vector<1x512xf32>
    %8 = vector.broadcast %7 : vector<1x512xf32> to vector<16x512xf32>
    %9 = arith.addf %6, %8 : vector<16x512xf32>
    %10 = vector.shape_cast %9 : vector<16x512xf32> to vector<8x2x512xf32>
    %c0_7 = arith.constant 0 : index
    %c0_8 = arith.constant 0 : index
    %c0_9 = arith.constant 0 : index
    %11 = vector.load %arg10[%c0_7, %c0_8, %c0_9] : memref<8x2x512xf32, #tpu.memory_space<vmem>>, vector<8x2x512xf32>
    tpu.vector_store %arg10[%c0_7, %c0_8, %c0_9], %10 {strides = array<i32>} : memref<8x2x512xf32, #tpu.memory_space<vmem>>, vector<8x2x512xf32>,
    %c0_10 = arith.constant 0 : index
    %c0_11 = arith.constant 0 : index
    %c0_12 = arith.constant 0 : index
    %12 = vector.load %arg3[%c0_10, %c0_11, %c0_12] : memref<8x2x128xf32, #tpu.memory_space<vmem>>, vector<8x2x128xf32>
    %13 = vector.shape_cast %12 : vector<8x2x128xf32> to vector<16x128xf32>
    %c0_13 = arith.constant 0 : index
    %c0_14 = arith.constant 0 : index
    %14 = vector.load %arg5[%c0_13, %c0_14] : memref<128x512xf32, #tpu.memory_space<vmem>>, vector<128x512xf32>
    %cst_15 = arith.constant dense<0.000000e+00> : vector<16x512xf32>
    %15 = tpu.matmul %13, %14, %cst_15 {dimension_numbers = #tpu.dot_dimension_numbers<[1], [0], [0], [1], [0, 0, 1, 1], [], []>} : vector<16x128xf32>, vector<128x512xf32>, vector<16x512xf32> -> vector<16x512xf32>
    %c0_16 = arith.constant 0 : index
    %c0_17 = arith.constant 0 : index
    %16 = vector.load %arg8[%c0_16, %c0_17] : memref<1x512xf32, #tpu.memory_space<vmem>>, vector<1x512xf32>
    %17 = vector.broadcast %16 : vector<1x512xf32> to vector<16x512xf32>
    %18 = arith.addf %15, %17 : vector<16x512xf32>
    %19 = vector.shape_cast %18 : vector<16x512xf32> to vector<8x2x512xf32>
    %c0_18 = arith.constant 0 : index
    %c0_19 = arith.constant 0 : index
    %c0_20 = arith.constant 0 : index
    %20 = vector.load %arg11[%c0_18, %c0_19, %c0_20] : memref<8x2x512xf32, #tpu.memory_space<vmem>>, vector<8x2x512xf32>
    tpu.vector_store %arg11[%c0_18, %c0_19, %c0_20], %19 {strides = array<i32>} : memref<8x2x512xf32, #tpu.memory_space<vmem>>, vector<8x2x512xf32>,
    %c0_21 = arith.constant 0 : index
    %c0_22 = arith.constant 0 : index
    %21 = vector.load %arg12[%c0_21, %c0_22] : memref<2x256xf32, #tpu.memory_space<vmem>>, vector<2x256xf32>
    %c0_23 = arith.constant 0 : index
    %c0_24 = arith.constant 0 : index
    %22 = vector.load %arg13[%c0_23, %c0_24] : memref<2x256xf32, #tpu.memory_space<vmem>>, vector<2x128xf32>
    %c0_25 = arith.constant 0 : index
    %c128 = arith.constant 128 : index
    %23 = vector.load %arg13[%c0_25, %c128] : memref<2x256xf32, #tpu.memory_space<vmem>>, vector<2x128xf32>
    %24 = vector.extract_strided_slice %21 {offsets = [0, 0], sizes = [2, 128], strides = [1, 1]} : vector<2x256xf32> to vector<2x128xf32>
    %c0_26 = arith.constant 0 : index
    %c0_27 = arith.constant 0 : index
    %25 = vector.load %arg6[%c0_26, %c0_27] : memref<256x1024xf32, #tpu.memory_space<vmem>>, vector<128x512xf32>
    %cst_28 = arith.constant dense<0.000000e+00> : vector<2x512xf32>
    %26 = tpu.matmul %24, %25, %cst_28 {dimension_numbers = #tpu.dot_dimension_numbers<[1], [0], [0], [1], [0, 0, 1, 1], [], []>} : vector<2x128xf32>, vector<128x512xf32>, vector<2x512xf32> -> vector<2x512xf32>
    %27 = vector.extract_strided_slice %21 {offsets = [0, 128], sizes = [2, 128], strides = [1, 1]} : vector<2x256xf32> to vector<2x128xf32>
    %c128_29 = arith.constant 128 : index
    %c512 = arith.constant 512 : index
    %28 = vector.load %arg6[%c128_29, %c512] : memref<256x1024xf32, #tpu.memory_space<vmem>>, vector<128x512xf32>
    %cst_30 = arith.constant dense<0.000000e+00> : vector<2x512xf32>
    %29 = tpu.matmul %27, %28, %cst_30 {dimension_numbers = #tpu.dot_dimension_numbers<[1], [0], [0], [1], [0, 0, 1, 1], [], []>} : vector<2x128xf32>, vector<128x512xf32>, vector<2x512xf32> -> vector<2x512xf32>
    %c0_31 = arith.constant 0 : index
    %c0_32 = arith.constant 0 : index
    %c0_33 = arith.constant 0 : index
    %30 = vector.load %arg10[%c0_31, %c0_32, %c0_33] : memref<8x2x512xf32, #tpu.memory_space<vmem>>, vector<1x2x512xf32>
    %31 = vector.shape_cast %30 : vector<1x2x512xf32> to vector<2x512xf32>
    %32 = arith.addf %31, %26 : vector<2x512xf32>
    %33 = vector.extract_strided_slice %32 {offsets = [0, 0], sizes = [2, 384], strides = [1, 1]} : vector<2x512xf32> to vector<2x384xf32>
    %cst_34 = arith.constant 5.000000e-01 : f32
    %34 = vector.broadcast %cst_34 : f32 to vector<2x384xf32>
    %35 = arith.mulf %34, %33 : vector<2x384xf32>
    %36 = math.tanh %35 : vector<2x384xf32>
    %cst_35 = arith.constant 5.000000e-01 : f32
    %37 = vector.broadcast %cst_35 : f32 to vector<2x384xf32>
    %38 = arith.mulf %37, %36 : vector<2x384xf32>
    %cst_36 = arith.constant 5.000000e-01 : f32
    %39 = vector.broadcast %cst_36 : f32 to vector<2x384xf32>
    %40 = arith.addf %38, %39 : vector<2x384xf32>
    %41 = vector.extract_strided_slice %32 {offsets = [0, 384], sizes = [2, 128], strides = [1, 1]} : vector<2x512xf32> to vector<2x128xf32>
    %42 = math.tanh %41 : vector<2x128xf32>
    %43 = vector.extract_strided_slice %40 {offsets = [0, 128], sizes = [2, 128], strides = [1, 1]} : vector<2x384xf32> to vector<2x128xf32>
    %44 = arith.mulf %43, %22 : vector<2x128xf32>
    %45 = vector.extract_strided_slice %40 {offsets = [0, 0], sizes = [2, 128], strides = [1, 1]} : vector<2x384xf32> to vector<2x128xf32>
    %46 = arith.mulf %45, %42 : vector<2x128xf32>
    %47 = arith.addf %44, %46 : vector<2x128xf32>
    %48 = vector.extract_strided_slice %40 {offsets = [0, 256], sizes = [2, 128], strides = [1, 1]} : vector<2x384xf32> to vector<2x128xf32>
    %49 = math.tanh %47 : vector<2x128xf32>
    %50 = arith.mulf %48, %49 : vector<2x128xf32>
    %c7 = arith.constant 7 : index
    %c0_37 = arith.constant 0 : index
    %c0_38 = arith.constant 0 : index
    %51 = vector.load %arg11[%c7, %c0_37, %c0_38] : memref<8x2x512xf32, #tpu.memory_space<vmem>>, vector<1x2x512xf32>
    %52 = vector.shape_cast %51 : vector<1x2x512xf32> to vector<2x512xf32>
    %53 = arith.addf %52, %29 : vector<2x512xf32>
    %54 = vector.extract_strided_slice %53 {offsets = [0, 0], sizes = [2, 384], strides = [1, 1]} : vector<2x512xf32> to vector<2x384xf32>
    %cst_39 = arith.constant 5.000000e-01 : f32
    %55 = vector.broadcast %cst_39 : f32 to vector<2x384xf32>
    %56 = arith.mulf %55, %54 : vector<2x384xf32>
    %57 = math.tanh %56 : vector<2x384xf32>
    %cst_40 = arith.constant 5.000000e-01 : f32
    %58 = vector.broadcast %cst_40 : f32 to vector<2x384xf32>
    %59 = arith.mulf %58, %57 : vector<2x384xf32>
    %cst_41 = arith.constant 5.000000e-01 : f32
    %60 = vector.broadcast %cst_41 : f32 to vector<2x384xf32>
    %61 = arith.addf %59, %60 : vector<2x384xf32>
    %62 = vector.extract_strided_slice %53 {offsets = [0, 384], sizes = [2, 128], strides = [1, 1]} : vector<2x512xf32> to vector<2x128xf32>
    %63 = math.tanh %62 : vector<2x128xf32>
    %64 = vector.extract_strided_slice %61 {offsets = [0, 128], sizes = [2, 128], strides = [1, 1]} : vector<2x384xf32> to vector<2x128xf32>
    %65 = arith.mulf %64, %23 : vector<2x128xf32>
    %66 = vector.extract_strided_slice %61 {offsets = [0, 0], sizes = [2, 128], strides = [1, 1]} : vector<2x384xf32> to vector<2x128xf32>
    %67 = arith.mulf %66, %63 : vector<2x128xf32>
    %68 = arith.addf %65, %67 : vector<2x128xf32>
    %69 = vector.extract_strided_slice %61 {offsets = [0, 256], sizes = [2, 128], strides = [1, 1]} : vector<2x384xf32> to vector<2x128xf32>
    %70 = math.tanh %68 : vector<2x128xf32>
    %71 = arith.mulf %69, %70 : vector<2x128xf32>
    %72 = tpu.concatenate %50, %71 in 1 : vector<2x128xf32>, vector<2x128xf32> -> vector<2x256xf32>
    %c0_42 = arith.constant 0 : index
    %c0_43 = arith.constant 0 : index
    %73 = vector.load %arg14[%c0_42, %c0_43] : memref<2x256xf32, #tpu.memory_space<vmem>>, vector<2x256xf32>
    %74 = arith.addf %73, %72 : vector<2x256xf32>
    %c0_44 = arith.constant 0 : index
    %c0_45 = arith.constant 0 : index
    %75 = vector.load %arg14[%c0_44, %c0_45] : memref<2x256xf32, #tpu.memory_space<vmem>>, vector<2x256xf32>
    tpu.vector_store %arg14[%c0_44, %c0_45], %74 {strides = array<i32>} : memref<2x256xf32, #tpu.memory_space<vmem>>, vector<2x256xf32>,
    %c0_46 = arith.constant 0 : index
    %c0_47 = arith.constant 0 : index
    %76 = vector.load %arg15[%c0_46, %c0_47] : memref<2x256xf32, #tpu.memory_space<vmem>>, vector<2x256xf32>
    %77 = arith.maximumf %76, %72 : vector<2x256xf32>
    %c0_48 = arith.constant 0 : index
    %c0_49 = arith.constant 0 : index
    %78 = vector.load %arg15[%c0_48, %c0_49] : memref<2x256xf32, #tpu.memory_space<vmem>>, vector<2x256xf32>
    tpu.vector_store %arg15[%c0_48, %c0_49], %77 {strides = array<i32>} : memref<2x256xf32, #tpu.memory_space<vmem>>, vector<2x256xf32>,
    %79 = vector.extract_strided_slice %72 {offsets = [0, 0], sizes = [2, 128], strides = [1, 1]} : vector<2x256xf32> to vector<2x128xf32>
    %c0_50 = arith.constant 0 : index
    %c0_51 = arith.constant 0 : index
    %80 = vector.load %arg6[%c0_50, %c0_51] : memref<256x1024xf32, #tpu.memory_space<vmem>>, vector<128x512xf32>
    %cst_52 = arith.constant dense<0.000000e+00> : vector<2x512xf32>
    %81 = tpu.matmul %79, %80, %cst_52 {dimension_numbers = #tpu.dot_dimension_numbers<[1], [0], [0], [1], [0, 0, 1, 1], [], []>} : vector<2x128xf32>, vector<128x512xf32>, vector<2x512xf32> -> vector<2x512xf32>
    %82 = vector.extract_strided_slice %72 {offsets = [0, 128], sizes = [2, 128], strides = [1, 1]} : vector<2x256xf32> to vector<2x128xf32>
    %c128_53 = arith.constant 128 : index
    %c512_54 = arith.constant 512 : index
    %83 = vector.load %arg6[%c128_53, %c512_54] : memref<256x1024xf32, #tpu.memory_space<vmem>>, vector<128x512xf32>
    %cst_55 = arith.constant dense<0.000000e+00> : vector<2x512xf32>
    %84 = tpu.matmul %82, %83, %cst_55 {dimension_numbers = #tpu.dot_dimension_numbers<[1], [0], [0], [1], [0, 0, 1, 1], [], []>} : vector<2x128xf32>, vector<128x512xf32>, vector<2x512xf32> -> vector<2x512xf32>
    %c1 = arith.constant 1 : index
    %c0_56 = arith.constant 0 : index
    %c0_57 = arith.constant 0 : index
    %85 = vector.load %arg10[%c1, %c0_56, %c0_57] : memref<8x2x512xf32, #tpu.memory_space<vmem>>, vector<1x2x512xf32>
    %86 = vector.shape_cast %85 : vector<1x2x512xf32> to vector<2x512xf32>
    %87 = arith.addf %86, %81 : vector<2x512xf32>
    %88 = vector.extract_strided_slice %87 {offsets = [0, 0], sizes = [2, 384], strides = [1, 1]} : vector<2x512xf32> to vector<2x384xf32>
    %cst_58 = arith.constant 5.000000e-01 : f32
    %89 = vector.broadcast %cst_58 : f32 to vector<2x384xf32>
    %90 = arith.mulf %89, %88 : vector<2x384xf32>
    %91 = math.tanh %90 : vector<2x384xf32>
    %cst_59 = arith.constant 5.000000e-01 : f32
    %92 = vector.broadcast %cst_59 : f32 to vector<2x384xf32>
    %93 = arith.mulf %92, %91 : vector<2x384xf32>
    %cst_60 = arith.constant 5.000000e-01 : f32
    %94 = vector.broadcast %cst_60 : f32 to vector<2x384xf32>
    %95 = arith.addf %93, %94 : vector<2x384xf32>
    %96 = vector.extract_strided_slice %87 {offsets = [0, 384], sizes = [2, 128], strides = [1, 1]} : vector<2x512xf32> to vector<2x128xf32>
    %97 = math.tanh %96 : vector<2x128xf32>
    %98 = vector.extract_strided_slice %95 {offsets = [0, 128], sizes = [2, 128], strides = [1, 1]} : vector<2x384xf32> to vector<2x128xf32>
    %99 = arith.mulf %98, %47 : vector<2x128xf32>
    %100 = vector.extract_strided_slice %95 {offsets = [0, 0], sizes = [2, 128], strides = [1, 1]} : vector<2x384xf32> to vector<2x128xf32>
    %101 = arith.mulf %100, %97 : vector<2x128xf32>
    %102 = arith.addf %99, %101 : vector<2x128xf32>
    %103 = vector.extract_strided_slice %95 {offsets = [0, 256], sizes = [2, 128], strides = [1, 1]} : vector<2x384xf32> to vector<2x128xf32>
    %104 = math.tanh %102 : vector<2x128xf32>
    %105 = arith.mulf %103, %104 : vector<2x128xf32>
    %c6 = arith.constant 6 : index
    %c0_61 = arith.constant 0 : index
    %c0_62 = arith.constant 0 : index
    %106 = vector.load %arg11[%c6, %c0_61, %c0_62] : memref<8x2x512xf32, #tpu.memory_space<vmem>>, vector<1x2x512xf32>
    %107 = vector.shape_cast %106 : vector<1x2x512xf32> to vector<2x512xf32>
    %108 = arith.addf %107, %84 : vector<2x512xf32>
    %109 = vector.extract_strided_slice %108 {offsets = [0, 0], sizes = [2, 384], strides = [1, 1]} : vector<2x512xf32> to vector<2x384xf32>
    %cst_63 = arith.constant 5.000000e-01 : f32
    %110 = vector.broadcast %cst_63 : f32 to vector<2x384xf32>
    %111 = arith.mulf %110, %109 : vector<2x384xf32>
    %112 = math.tanh %111 : vector<2x384xf32>
    %cst_64 = arith.constant 5.000000e-01 : f32
    %113 = vector.broadcast %cst_64 : f32 to vector<2x384xf32>
    %114 = arith.mulf %113, %112 : vector<2x384xf32>
    %cst_65 = arith.constant 5.000000e-01 : f32
    %115 = vector.broadcast %cst_65 : f32 to vector<2x384xf32>
    %116 = arith.addf %114, %115 : vector<2x384xf32>
    %117 = vector.extract_strided_slice %108 {offsets = [0, 384], sizes = [2, 128], strides = [1, 1]} : vector<2x512xf32> to vector<2x128xf32>
    %118 = math.tanh %117 : vector<2x128xf32>
    %119 = vector.extract_strided_slice %116 {offsets = [0, 128], sizes = [2, 128], strides = [1, 1]} : vector<2x384xf32> to vector<2x128xf32>
    %120 = arith.mulf %119, %68 : vector<2x128xf32>
    %121 = vector.extract_strided_slice %116 {offsets = [0, 0], sizes = [2, 128], strides = [1, 1]} : vector<2x384xf32> to vector<2x128xf32>
    %122 = arith.mulf %121, %118 : vector<2x128xf32>
    %123 = arith.addf %120, %122 : vector<2x128xf32>
    %124 = vector.extract_strided_slice %116 {offsets = [0, 256], sizes = [2, 128], strides = [1, 1]} : vector<2x384xf32> to vector<2x128xf32>
    %125 = math.tanh %123 : vector<2x128xf32>
    %126 = arith.mulf %124, %125 : vector<2x128xf32>
    %127 = tpu.concatenate %105, %126 in 1 : vector<2x128xf32>, vector<2x128xf32> -> vector<2x256xf32>
    %c0_66 = arith.constant 0 : index
    %c0_67 = arith.constant 0 : index
    %128 = vector.load %arg14[%c0_66, %c0_67] : memref<2x256xf32, #tpu.memory_space<vmem>>, vector<2x256xf32>
    %129 = arith.addf %128, %127 : vector<2x256xf32>
    %c0_68 = arith.constant 0 : index
    %c0_69 = arith.constant 0 : index
    %130 = vector.load %arg14[%c0_68, %c0_69] : memref<2x256xf32, #tpu.memory_space<vmem>>, vector<2x256xf32>
    tpu.vector_store %arg14[%c0_68, %c0_69], %129 {strides = array<i32>} : memref<2x256xf32, #tpu.memory_space<vmem>>, vector<2x256xf32>,
    %c0_70 = arith.constant 0 : index
    %c0_71 = arith.constant 0 : index
    %131 = vector.load %arg15[%c0_70, %c0_71] : memref<2x256xf32, #tpu.memory_space<vmem>>, vector<2x256xf32>
    %132 = arith.maximumf %131, %127 : vector<2x256xf32>
    %c0_72 = arith.constant 0 : index
    %c0_73 = arith.constant 0 : index
    %133 = vector.load %arg15[%c0_72, %c0_73] : memref<2x256xf32, #tpu.memory_space<vmem>>, vector<2x256xf32>
    tpu.vector_store %arg15[%c0_72, %c0_73], %132 {strides = array<i32>} : memref<2x256xf32, #tpu.memory_space<vmem>>, vector<2x256xf32>,
    %134 = vector.extract_strided_slice %127 {offsets = [0, 0], sizes = [2, 128], strides = [1, 1]} : vector<2x256xf32> to vector<2x128xf32>
    %c0_74 = arith.constant 0 : index
    %c0_75 = arith.constant 0 : index
    %135 = vector.load %arg6[%c0_74, %c0_75] : memref<256x1024xf32, #tpu.memory_space<vmem>>, vector<128x512xf32>
    %cst_76 = arith.constant dense<0.000000e+00> : vector<2x512xf32>
    %136 = tpu.matmul %134, %135, %cst_76 {dimension_numbers = #tpu.dot_dimension_numbers<[1], [0], [0], [1], [0, 0, 1, 1], [], []>} : vector<2x128xf32>, vector<128x512xf32>, vector<2x512xf32> -> vector<2x512xf32>
    %137 = vector.extract_strided_slice %127 {offsets = [0, 128], sizes = [2, 128], strides = [1, 1]} : vector<2x256xf32> to vector<2x128xf32>
    %c128_77 = arith.constant 128 : index
    %c512_78 = arith.constant 512 : index
    %138 = vector.load %arg6[%c128_77, %c512_78] : memref<256x1024xf32, #tpu.memory_space<vmem>>, vector<128x512xf32>
    %cst_79 = arith.constant dense<0.000000e+00> : vector<2x512xf32>
    %139 = tpu.matmul %137, %138, %cst_79 {dimension_numbers = #tpu.dot_dimension_numbers<[1], [0], [0], [1], [0, 0, 1, 1], [], []>} : vector<2x128xf32>, vector<128x512xf32>, vector<2x512xf32> -> vector<2x512xf32>
    %c2 = arith.constant 2 : index
    %c0_80 = arith.constant 0 : index
    %c0_81 = arith.constant 0 : index
    %140 = vector.load %arg10[%c2, %c0_80, %c0_81] : memref<8x2x512xf32, #tpu.memory_space<vmem>>, vector<1x2x512xf32>
    %141 = vector.shape_cast %140 : vector<1x2x512xf32> to vector<2x512xf32>
    %142 = arith.addf %141, %136 : vector<2x512xf32>
    %143 = vector.extract_strided_slice %142 {offsets = [0, 0], sizes = [2, 384], strides = [1, 1]} : vector<2x512xf32> to vector<2x384xf32>
    %cst_82 = arith.constant 5.000000e-01 : f32
    %144 = vector.broadcast %cst_82 : f32 to vector<2x384xf32>
    %145 = arith.mulf %144, %143 : vector<2x384xf32>
    %146 = math.tanh %145 : vector<2x384xf32>
    %cst_83 = arith.constant 5.000000e-01 : f32
    %147 = vector.broadcast %cst_83 : f32 to vector<2x384xf32>
    %148 = arith.mulf %147, %146 : vector<2x384xf32>
    %cst_84 = arith.constant 5.000000e-01 : f32
    %149 = vector.broadcast %cst_84 : f32 to vector<2x384xf32>
    %150 = arith.addf %148, %149 : vector<2x384xf32>
    %151 = vector.extract_strided_slice %142 {offsets = [0, 384], sizes = [2, 128], strides = [1, 1]} : vector<2x512xf32> to vector<2x128xf32>
    %152 = math.tanh %151 : vector<2x128xf32>
    %153 = vector.extract_strided_slice %150 {offsets = [0, 128], sizes = [2, 128], strides = [1, 1]} : vector<2x384xf32> to vector<2x128xf32>
    %154 = arith.mulf %153, %102 : vector<2x128xf32>
    %155 = vector.extract_strided_slice %150 {offsets = [0, 0], sizes = [2, 128], strides = [1, 1]} : vector<2x384xf32> to vector<2x128xf32>
    %156 = arith.mulf %155, %152 : vector<2x128xf32>
    %157 = arith.addf %154, %156 : vector<2x128xf32>
    %158 = vector.extract_strided_slice %150 {offsets = [0, 256], sizes = [2, 128], strides = [1, 1]} : vector<2x384xf32> to vector<2x128xf32>
    %159 = math.tanh %157 : vector<2x128xf32>
    %160 = arith.mulf %158, %159 : vector<2x128xf32>
    %c5 = arith.constant 5 : index
    %c0_85 = arith.constant 0 : index
    %c0_86 = arith.constant 0 : index
    %161 = vector.load %arg11[%c5, %c0_85, %c0_86] : memref<8x2x512xf32, #tpu.memory_space<vmem>>, vector<1x2x512xf32>
    %162 = vector.shape_cast %161 : vector<1x2x512xf32> to vector<2x512xf32>
    %163 = arith.addf %162, %139 : vector<2x512xf32>
    %164 = vector.extract_strided_slice %163 {offsets = [0, 0], sizes = [2, 384], strides = [1, 1]} : vector<2x512xf32> to vector<2x384xf32>
    %cst_87 = arith.constant 5.000000e-01 : f32
    %165 = vector.broadcast %cst_87 : f32 to vector<2x384xf32>
    %166 = arith.mulf %165, %164 : vector<2x384xf32>
    %167 = math.tanh %166 : vector<2x384xf32>
    %cst_88 = arith.constant 5.000000e-01 : f32
    %168 = vector.broadcast %cst_88 : f32 to vector<2x384xf32>
    %169 = arith.mulf %168, %167 : vector<2x384xf32>
    %cst_89 = arith.constant 5.000000e-01 : f32
    %170 = vector.broadcast %cst_89 : f32 to vector<2x384xf32>
    %171 = arith.addf %169, %170 : vector<2x384xf32>
    %172 = vector.extract_strided_slice %163 {offsets = [0, 384], sizes = [2, 128], strides = [1, 1]} : vector<2x512xf32> to vector<2x128xf32>
    %173 = math.tanh %172 : vector<2x128xf32>
    %174 = vector.extract_strided_slice %171 {offsets = [0, 128], sizes = [2, 128], strides = [1, 1]} : vector<2x384xf32> to vector<2x128xf32>
    %175 = arith.mulf %174, %123 : vector<2x128xf32>
    %176 = vector.extract_strided_slice %171 {offsets = [0, 0], sizes = [2, 128], strides = [1, 1]} : vector<2x384xf32> to vector<2x128xf32>
    %177 = arith.mulf %176, %173 : vector<2x128xf32>
    %178 = arith.addf %175, %177 : vector<2x128xf32>
    %179 = vector.extract_strided_slice %171 {offsets = [0, 256], sizes = [2, 128], strides = [1, 1]} : vector<2x384xf32> to vector<2x128xf32>
    %180 = math.tanh %178 : vector<2x128xf32>
    %181 = arith.mulf %179, %180 : vector<2x128xf32>
    %182 = tpu.concatenate %160, %181 in 1 : vector<2x128xf32>, vector<2x128xf32> -> vector<2x256xf32>
    %c0_90 = arith.constant 0 : index
    %c0_91 = arith.constant 0 : index
    %183 = vector.load %arg14[%c0_90, %c0_91] : memref<2x256xf32, #tpu.memory_space<vmem>>, vector<2x256xf32>
    %184 = arith.addf %183, %182 : vector<2x256xf32>
    %c0_92 = arith.constant 0 : index
    %c0_93 = arith.constant 0 : index
    %185 = vector.load %arg14[%c0_92, %c0_93] : memref<2x256xf32, #tpu.memory_space<vmem>>, vector<2x256xf32>
    tpu.vector_store %arg14[%c0_92, %c0_93], %184 {strides = array<i32>} : memref<2x256xf32, #tpu.memory_space<vmem>>, vector<2x256xf32>,
    %c0_94 = arith.constant 0 : index
    %c0_95 = arith.constant 0 : index
    %186 = vector.load %arg15[%c0_94, %c0_95] : memref<2x256xf32, #tpu.memory_space<vmem>>, vector<2x256xf32>
    %187 = arith.maximumf %186, %182 : vector<2x256xf32>
    %c0_96 = arith.constant 0 : index
    %c0_97 = arith.constant 0 : index
    %188 = vector.load %arg15[%c0_96, %c0_97] : memref<2x256xf32, #tpu.memory_space<vmem>>, vector<2x256xf32>
    tpu.vector_store %arg15[%c0_96, %c0_97], %187 {strides = array<i32>} : memref<2x256xf32, #tpu.memory_space<vmem>>, vector<2x256xf32>,
    %189 = vector.extract_strided_slice %182 {offsets = [0, 0], sizes = [2, 128], strides = [1, 1]} : vector<2x256xf32> to vector<2x128xf32>
    %c0_98 = arith.constant 0 : index
    %c0_99 = arith.constant 0 : index
    %190 = vector.load %arg6[%c0_98, %c0_99] : memref<256x1024xf32, #tpu.memory_space<vmem>>, vector<128x512xf32>
    %cst_100 = arith.constant dense<0.000000e+00> : vector<2x512xf32>
    %191 = tpu.matmul %189, %190, %cst_100 {dimension_numbers = #tpu.dot_dimension_numbers<[1], [0], [0], [1], [0, 0, 1, 1], [], []>} : vector<2x128xf32>, vector<128x512xf32>, vector<2x512xf32> -> vector<2x512xf32>
    %192 = vector.extract_strided_slice %182 {offsets = [0, 128], sizes = [2, 128], strides = [1, 1]} : vector<2x256xf32> to vector<2x128xf32>
    %c128_101 = arith.constant 128 : index
    %c512_102 = arith.constant 512 : index
    %193 = vector.load %arg6[%c128_101, %c512_102] : memref<256x1024xf32, #tpu.memory_space<vmem>>, vector<128x512xf32>
    %cst_103 = arith.constant dense<0.000000e+00> : vector<2x512xf32>
    %194 = tpu.matmul %192, %193, %cst_103 {dimension_numbers = #tpu.dot_dimension_numbers<[1], [0], [0], [1], [0, 0, 1, 1], [], []>} : vector<2x128xf32>, vector<128x512xf32>, vector<2x512xf32> -> vector<2x512xf32>
    %c3 = arith.constant 3 : index
    %c0_104 = arith.constant 0 : index
    %c0_105 = arith.constant 0 : index
    %195 = vector.load %arg10[%c3, %c0_104, %c0_105] : memref<8x2x512xf32, #tpu.memory_space<vmem>>, vector<1x2x512xf32>
    %196 = vector.shape_cast %195 : vector<1x2x512xf32> to vector<2x512xf32>
    %197 = arith.addf %196, %191 : vector<2x512xf32>
    %198 = vector.extract_strided_slice %197 {offsets = [0, 0], sizes = [2, 384], strides = [1, 1]} : vector<2x512xf32> to vector<2x384xf32>
    %cst_106 = arith.constant 5.000000e-01 : f32
    %199 = vector.broadcast %cst_106 : f32 to vector<2x384xf32>
    %200 = arith.mulf %199, %198 : vector<2x384xf32>
    %201 = math.tanh %200 : vector<2x384xf32>
    %cst_107 = arith.constant 5.000000e-01 : f32
    %202 = vector.broadcast %cst_107 : f32 to vector<2x384xf32>
    %203 = arith.mulf %202, %201 : vector<2x384xf32>
    %cst_108 = arith.constant 5.000000e-01 : f32
    %204 = vector.broadcast %cst_108 : f32 to vector<2x384xf32>
    %205 = arith.addf %203, %204 : vector<2x384xf32>
    %206 = vector.extract_strided_slice %197 {offsets = [0, 384], sizes = [2, 128], strides = [1, 1]} : vector<2x512xf32> to vector<2x128xf32>
    %207 = math.tanh %206 : vector<2x128xf32>
    %208 = vector.extract_strided_slice %205 {offsets = [0, 128], sizes = [2, 128], strides = [1, 1]} : vector<2x384xf32> to vector<2x128xf32>
    %209 = arith.mulf %208, %157 : vector<2x128xf32>
    %210 = vector.extract_strided_slice %205 {offsets = [0, 0], sizes = [2, 128], strides = [1, 1]} : vector<2x384xf32> to vector<2x128xf32>
    %211 = arith.mulf %210, %207 : vector<2x128xf32>
    %212 = arith.addf %209, %211 : vector<2x128xf32>
    %213 = vector.extract_strided_slice %205 {offsets = [0, 256], sizes = [2, 128], strides = [1, 1]} : vector<2x384xf32> to vector<2x128xf32>
    %214 = math.tanh %212 : vector<2x128xf32>
    %215 = arith.mulf %213, %214 : vector<2x128xf32>
    %c4 = arith.constant 4 : index
    %c0_109 = arith.constant 0 : index
    %c0_110 = arith.constant 0 : index
    %216 = vector.load %arg11[%c4, %c0_109, %c0_110] : memref<8x2x512xf32, #tpu.memory_space<vmem>>, vector<1x2x512xf32>
    %217 = vector.shape_cast %216 : vector<1x2x512xf32> to vector<2x512xf32>
    %218 = arith.addf %217, %194 : vector<2x512xf32>
    %219 = vector.extract_strided_slice %218 {offsets = [0, 0], sizes = [2, 384], strides = [1, 1]} : vector<2x512xf32> to vector<2x384xf32>
    %cst_111 = arith.constant 5.000000e-01 : f32
    %220 = vector.broadcast %cst_111 : f32 to vector<2x384xf32>
    %221 = arith.mulf %220, %219 : vector<2x384xf32>
    %222 = math.tanh %221 : vector<2x384xf32>
    %cst_112 = arith.constant 5.000000e-01 : f32
    %223 = vector.broadcast %cst_112 : f32 to vector<2x384xf32>
    %224 = arith.mulf %223, %222 : vector<2x384xf32>
    %cst_113 = arith.constant 5.000000e-01 : f32
    %225 = vector.broadcast %cst_113 : f32 to vector<2x384xf32>
    %226 = arith.addf %224, %225 : vector<2x384xf32>
    %227 = vector.extract_strided_slice %218 {offsets = [0, 384], sizes = [2, 128], strides = [1, 1]} : vector<2x512xf32> to vector<2x128xf32>
    %228 = math.tanh %227 : vector<2x128xf32>
    %229 = vector.extract_strided_slice %226 {offsets = [0, 128], sizes = [2, 128], strides = [1, 1]} : vector<2x384xf32> to vector<2x128xf32>
    %230 = arith.mulf %229, %178 : vector<2x128xf32>
    %231 = vector.extract_strided_slice %226 {offsets = [0, 0], sizes = [2, 128], strides = [1, 1]} : vector<2x384xf32> to vector<2x128xf32>
    %232 = arith.mulf %231, %228 : vector<2x128xf32>
    %233 = arith.addf %230, %232 : vector<2x128xf32>
    %234 = vector.extract_strided_slice %226 {offsets = [0, 256], sizes = [2, 128], strides = [1, 1]} : vector<2x384xf32> to vector<2x128xf32>
    %235 = math.tanh %233 : vector<2x128xf32>
    %236 = arith.mulf %234, %235 : vector<2x128xf32>
    %237 = tpu.concatenate %215, %236 in 1 : vector<2x128xf32>, vector<2x128xf32> -> vector<2x256xf32>
    %c0_114 = arith.constant 0 : index
    %c0_115 = arith.constant 0 : index
    %238 = vector.load %arg14[%c0_114, %c0_115] : memref<2x256xf32, #tpu.memory_space<vmem>>, vector<2x256xf32>
    %239 = arith.addf %238, %237 : vector<2x256xf32>
    %c0_116 = arith.constant 0 : index
    %c0_117 = arith.constant 0 : index
    %240 = vector.load %arg14[%c0_116, %c0_117] : memref<2x256xf32, #tpu.memory_space<vmem>>, vector<2x256xf32>
    tpu.vector_store %arg14[%c0_116, %c0_117], %239 {strides = array<i32>} : memref<2x256xf32, #tpu.memory_space<vmem>>, vector<2x256xf32>,
    %c0_118 = arith.constant 0 : index
    %c0_119 = arith.constant 0 : index
    %241 = vector.load %arg15[%c0_118, %c0_119] : memref<2x256xf32, #tpu.memory_space<vmem>>, vector<2x256xf32>
    %242 = arith.maximumf %241, %237 : vector<2x256xf32>
    %c0_120 = arith.constant 0 : index
    %c0_121 = arith.constant 0 : index
    %243 = vector.load %arg15[%c0_120, %c0_121] : memref<2x256xf32, #tpu.memory_space<vmem>>, vector<2x256xf32>
    tpu.vector_store %arg15[%c0_120, %c0_121], %242 {strides = array<i32>} : memref<2x256xf32, #tpu.memory_space<vmem>>, vector<2x256xf32>,
    %244 = vector.extract_strided_slice %237 {offsets = [0, 0], sizes = [2, 128], strides = [1, 1]} : vector<2x256xf32> to vector<2x128xf32>
    %c0_122 = arith.constant 0 : index
    %c0_123 = arith.constant 0 : index
    %245 = vector.load %arg6[%c0_122, %c0_123] : memref<256x1024xf32, #tpu.memory_space<vmem>>, vector<128x512xf32>
    %cst_124 = arith.constant dense<0.000000e+00> : vector<2x512xf32>
    %246 = tpu.matmul %244, %245, %cst_124 {dimension_numbers = #tpu.dot_dimension_numbers<[1], [0], [0], [1], [0, 0, 1, 1], [], []>} : vector<2x128xf32>, vector<128x512xf32>, vector<2x512xf32> -> vector<2x512xf32>
    %247 = vector.extract_strided_slice %237 {offsets = [0, 128], sizes = [2, 128], strides = [1, 1]} : vector<2x256xf32> to vector<2x128xf32>
    %c128_125 = arith.constant 128 : index
    %c512_126 = arith.constant 512 : index
    %248 = vector.load %arg6[%c128_125, %c512_126] : memref<256x1024xf32, #tpu.memory_space<vmem>>, vector<128x512xf32>
    %cst_127 = arith.constant dense<0.000000e+00> : vector<2x512xf32>
    %249 = tpu.matmul %247, %248, %cst_127 {dimension_numbers = #tpu.dot_dimension_numbers<[1], [0], [0], [1], [0, 0, 1, 1], [], []>} : vector<2x128xf32>, vector<128x512xf32>, vector<2x512xf32> -> vector<2x512xf32>
    %c4_128 = arith.constant 4 : index
    %c0_129 = arith.constant 0 : index
    %c0_130 = arith.constant 0 : index
    %250 = vector.load %arg10[%c4_128, %c0_129, %c0_130] : memref<8x2x512xf32, #tpu.memory_space<vmem>>, vector<1x2x512xf32>
    %251 = vector.shape_cast %250 : vector<1x2x512xf32> to vector<2x512xf32>
    %252 = arith.addf %251, %246 : vector<2x512xf32>
    %253 = vector.extract_strided_slice %252 {offsets = [0, 0], sizes = [2, 384], strides = [1, 1]} : vector<2x512xf32> to vector<2x384xf32>
    %cst_131 = arith.constant 5.000000e-01 : f32
    %254 = vector.broadcast %cst_131 : f32 to vector<2x384xf32>
    %255 = arith.mulf %254, %253 : vector<2x384xf32>
    %256 = math.tanh %255 : vector<2x384xf32>
    %cst_132 = arith.constant 5.000000e-01 : f32
    %257 = vector.broadcast %cst_132 : f32 to vector<2x384xf32>
    %258 = arith.mulf %257, %256 : vector<2x384xf32>
    %cst_133 = arith.constant 5.000000e-01 : f32
    %259 = vector.broadcast %cst_133 : f32 to vector<2x384xf32>
    %260 = arith.addf %258, %259 : vector<2x384xf32>
    %261 = vector.extract_strided_slice %252 {offsets = [0, 384], sizes = [2, 128], strides = [1, 1]} : vector<2x512xf32> to vector<2x128xf32>
    %262 = math.tanh %261 : vector<2x128xf32>
    %263 = vector.extract_strided_slice %260 {offsets = [0, 128], sizes = [2, 128], strides = [1, 1]} : vector<2x384xf32> to vector<2x128xf32>
    %264 = arith.mulf %263, %212 : vector<2x128xf32>
    %265 = vector.extract_strided_slice %260 {offsets = [0, 0], sizes = [2, 128], strides = [1, 1]} : vector<2x384xf32> to vector<2x128xf32>
    %266 = arith.mulf %265, %262 : vector<2x128xf32>
    %267 = arith.addf %264, %266 : vector<2x128xf32>
    %268 = vector.extract_strided_slice %260 {offsets = [0, 256], sizes = [2, 128], strides = [1, 1]} : vector<2x384xf32> to vector<2x128xf32>
    %269 = math.tanh %267 : vector<2x128xf32>
    %270 = arith.mulf %268, %269 : vector<2x128xf32>
    %c3_134 = arith.constant 3 : index
    %c0_135 = arith.constant 0 : index
    %c0_136 = arith.constant 0 : index
    %271 = vector.load %arg11[%c3_134, %c0_135, %c0_136] : memref<8x2x512xf32, #tpu.memory_space<vmem>>, vector<1x2x512xf32>
    %272 = vector.shape_cast %271 : vector<1x2x512xf32> to vector<2x512xf32>
    %273 = arith.addf %272, %249 : vector<2x512xf32>
    %274 = vector.extract_strided_slice %273 {offsets = [0, 0], sizes = [2, 384], strides = [1, 1]} : vector<2x512xf32> to vector<2x384xf32>
    %cst_137 = arith.constant 5.000000e-01 : f32
    %275 = vector.broadcast %cst_137 : f32 to vector<2x384xf32>
    %276 = arith.mulf %275, %274 : vector<2x384xf32>
    %277 = math.tanh %276 : vector<2x384xf32>
    %cst_138 = arith.constant 5.000000e-01 : f32
    %278 = vector.broadcast %cst_138 : f32 to vector<2x384xf32>
    %279 = arith.mulf %278, %277 : vector<2x384xf32>
    %cst_139 = arith.constant 5.000000e-01 : f32
    %280 = vector.broadcast %cst_139 : f32 to vector<2x384xf32>
    %281 = arith.addf %279, %280 : vector<2x384xf32>
    %282 = vector.extract_strided_slice %273 {offsets = [0, 384], sizes = [2, 128], strides = [1, 1]} : vector<2x512xf32> to vector<2x128xf32>
    %283 = math.tanh %282 : vector<2x128xf32>
    %284 = vector.extract_strided_slice %281 {offsets = [0, 128], sizes = [2, 128], strides = [1, 1]} : vector<2x384xf32> to vector<2x128xf32>
    %285 = arith.mulf %284, %233 : vector<2x128xf32>
    %286 = vector.extract_strided_slice %281 {offsets = [0, 0], sizes = [2, 128], strides = [1, 1]} : vector<2x384xf32> to vector<2x128xf32>
    %287 = arith.mulf %286, %283 : vector<2x128xf32>
    %288 = arith.addf %285, %287 : vector<2x128xf32>
    %289 = vector.extract_strided_slice %281 {offsets = [0, 256], sizes = [2, 128], strides = [1, 1]} : vector<2x384xf32> to vector<2x128xf32>
    %290 = math.tanh %288 : vector<2x128xf32>
    %291 = arith.mulf %289, %290 : vector<2x128xf32>
    %292 = tpu.concatenate %270, %291 in 1 : vector<2x128xf32>, vector<2x128xf32> -> vector<2x256xf32>
    %c0_140 = arith.constant 0 : index
    %c0_141 = arith.constant 0 : index
    %293 = vector.load %arg14[%c0_140, %c0_141] : memref<2x256xf32, #tpu.memory_space<vmem>>, vector<2x256xf32>
    %294 = arith.addf %293, %292 : vector<2x256xf32>
    %c0_142 = arith.constant 0 : index
    %c0_143 = arith.constant 0 : index
    %295 = vector.load %arg14[%c0_142, %c0_143] : memref<2x256xf32, #tpu.memory_space<vmem>>, vector<2x256xf32>
    tpu.vector_store %arg14[%c0_142, %c0_143], %294 {strides = array<i32>} : memref<2x256xf32, #tpu.memory_space<vmem>>, vector<2x256xf32>,
    %c0_144 = arith.constant 0 : index
    %c0_145 = arith.constant 0 : index
    %296 = vector.load %arg15[%c0_144, %c0_145] : memref<2x256xf32, #tpu.memory_space<vmem>>, vector<2x256xf32>
    %297 = arith.maximumf %296, %292 : vector<2x256xf32>
    %c0_146 = arith.constant 0 : index
    %c0_147 = arith.constant 0 : index
    %298 = vector.load %arg15[%c0_146, %c0_147] : memref<2x256xf32, #tpu.memory_space<vmem>>, vector<2x256xf32>
    tpu.vector_store %arg15[%c0_146, %c0_147], %297 {strides = array<i32>} : memref<2x256xf32, #tpu.memory_space<vmem>>, vector<2x256xf32>,
    %299 = vector.extract_strided_slice %292 {offsets = [0, 0], sizes = [2, 128], strides = [1, 1]} : vector<2x256xf32> to vector<2x128xf32>
    %c0_148 = arith.constant 0 : index
    %c0_149 = arith.constant 0 : index
    %300 = vector.load %arg6[%c0_148, %c0_149] : memref<256x1024xf32, #tpu.memory_space<vmem>>, vector<128x512xf32>
    %cst_150 = arith.constant dense<0.000000e+00> : vector<2x512xf32>
    %301 = tpu.matmul %299, %300, %cst_150 {dimension_numbers = #tpu.dot_dimension_numbers<[1], [0], [0], [1], [0, 0, 1, 1], [], []>} : vector<2x128xf32>, vector<128x512xf32>, vector<2x512xf32> -> vector<2x512xf32>
    %302 = vector.extract_strided_slice %292 {offsets = [0, 128], sizes = [2, 128], strides = [1, 1]} : vector<2x256xf32> to vector<2x128xf32>
    %c128_151 = arith.constant 128 : index
    %c512_152 = arith.constant 512 : index
    %303 = vector.load %arg6[%c128_151, %c512_152] : memref<256x1024xf32, #tpu.memory_space<vmem>>, vector<128x512xf32>
    %cst_153 = arith.constant dense<0.000000e+00> : vector<2x512xf32>
    %304 = tpu.matmul %302, %303, %cst_153 {dimension_numbers = #tpu.dot_dimension_numbers<[1], [0], [0], [1], [0, 0, 1, 1], [], []>} : vector<2x128xf32>, vector<128x512xf32>, vector<2x512xf32> -> vector<2x512xf32>
    %c5_154 = arith.constant 5 : index
    %c0_155 = arith.constant 0 : index
    %c0_156 = arith.constant 0 : index
    %305 = vector.load %arg10[%c5_154, %c0_155, %c0_156] : memref<8x2x512xf32, #tpu.memory_space<vmem>>, vector<1x2x512xf32>
    %306 = vector.shape_cast %305 : vector<1x2x512xf32> to vector<2x512xf32>
    %307 = arith.addf %306, %301 : vector<2x512xf32>
    %308 = vector.extract_strided_slice %307 {offsets = [0, 0], sizes = [2, 384], strides = [1, 1]} : vector<2x512xf32> to vector<2x384xf32>
    %cst_157 = arith.constant 5.000000e-01 : f32
    %309 = vector.broadcast %cst_157 : f32 to vector<2x384xf32>
    %310 = arith.mulf %309, %308 : vector<2x384xf32>
    %311 = math.tanh %310 : vector<2x384xf32>
    %cst_158 = arith.constant 5.000000e-01 : f32
    %312 = vector.broadcast %cst_158 : f32 to vector<2x384xf32>
    %313 = arith.mulf %312, %311 : vector<2x384xf32>
    %cst_159 = arith.constant 5.000000e-01 : f32
    %314 = vector.broadcast %cst_159 : f32 to vector<2x384xf32>
    %315 = arith.addf %313, %314 : vector<2x384xf32>
    %316 = vector.extract_strided_slice %307 {offsets = [0, 384], sizes = [2, 128], strides = [1, 1]} : vector<2x512xf32> to vector<2x128xf32>
    %317 = math.tanh %316 : vector<2x128xf32>
    %318 = vector.extract_strided_slice %315 {offsets = [0, 128], sizes = [2, 128], strides = [1, 1]} : vector<2x384xf32> to vector<2x128xf32>
    %319 = arith.mulf %318, %267 : vector<2x128xf32>
    %320 = vector.extract_strided_slice %315 {offsets = [0, 0], sizes = [2, 128], strides = [1, 1]} : vector<2x384xf32> to vector<2x128xf32>
    %321 = arith.mulf %320, %317 : vector<2x128xf32>
    %322 = arith.addf %319, %321 : vector<2x128xf32>
    %323 = vector.extract_strided_slice %315 {offsets = [0, 256], sizes = [2, 128], strides = [1, 1]} : vector<2x384xf32> to vector<2x128xf32>
    %324 = math.tanh %322 : vector<2x128xf32>
    %325 = arith.mulf %323, %324 : vector<2x128xf32>
    %c2_160 = arith.constant 2 : index
    %c0_161 = arith.constant 0 : index
    %c0_162 = arith.constant 0 : index
    %326 = vector.load %arg11[%c2_160, %c0_161, %c0_162] : memref<8x2x512xf32, #tpu.memory_space<vmem>>, vector<1x2x512xf32>
    %327 = vector.shape_cast %326 : vector<1x2x512xf32> to vector<2x512xf32>
    %328 = arith.addf %327, %304 : vector<2x512xf32>
    %329 = vector.extract_strided_slice %328 {offsets = [0, 0], sizes = [2, 384], strides = [1, 1]} : vector<2x512xf32> to vector<2x384xf32>
    %cst_163 = arith.constant 5.000000e-01 : f32
    %330 = vector.broadcast %cst_163 : f32 to vector<2x384xf32>
    %331 = arith.mulf %330, %329 : vector<2x384xf32>
    %332 = math.tanh %331 : vector<2x384xf32>
    %cst_164 = arith.constant 5.000000e-01 : f32
    %333 = vector.broadcast %cst_164 : f32 to vector<2x384xf32>
    %334 = arith.mulf %333, %332 : vector<2x384xf32>
    %cst_165 = arith.constant 5.000000e-01 : f32
    %335 = vector.broadcast %cst_165 : f32 to vector<2x384xf32>
    %336 = arith.addf %334, %335 : vector<2x384xf32>
    %337 = vector.extract_strided_slice %328 {offsets = [0, 384], sizes = [2, 128], strides = [1, 1]} : vector<2x512xf32> to vector<2x128xf32>
    %338 = math.tanh %337 : vector<2x128xf32>
    %339 = vector.extract_strided_slice %336 {offsets = [0, 128], sizes = [2, 128], strides = [1, 1]} : vector<2x384xf32> to vector<2x128xf32>
    %340 = arith.mulf %339, %288 : vector<2x128xf32>
    %341 = vector.extract_strided_slice %336 {offsets = [0, 0], sizes = [2, 128], strides = [1, 1]} : vector<2x384xf32> to vector<2x128xf32>
    %342 = arith.mulf %341, %338 : vector<2x128xf32>
    %343 = arith.addf %340, %342 : vector<2x128xf32>
    %344 = vector.extract_strided_slice %336 {offsets = [0, 256], sizes = [2, 128], strides = [1, 1]} : vector<2x384xf32> to vector<2x128xf32>
    %345 = math.tanh %343 : vector<2x128xf32>
    %346 = arith.mulf %344, %345 : vector<2x128xf32>
    %347 = tpu.concatenate %325, %346 in 1 : vector<2x128xf32>, vector<2x128xf32> -> vector<2x256xf32>
    %c0_166 = arith.constant 0 : index
    %c0_167 = arith.constant 0 : index
    %348 = vector.load %arg14[%c0_166, %c0_167] : memref<2x256xf32, #tpu.memory_space<vmem>>, vector<2x256xf32>
    %349 = arith.addf %348, %347 : vector<2x256xf32>
    %c0_168 = arith.constant 0 : index
    %c0_169 = arith.constant 0 : index
    %350 = vector.load %arg14[%c0_168, %c0_169] : memref<2x256xf32, #tpu.memory_space<vmem>>, vector<2x256xf32>
    tpu.vector_store %arg14[%c0_168, %c0_169], %349 {strides = array<i32>} : memref<2x256xf32, #tpu.memory_space<vmem>>, vector<2x256xf32>,
    %c0_170 = arith.constant 0 : index
    %c0_171 = arith.constant 0 : index
    %351 = vector.load %arg15[%c0_170, %c0_171] : memref<2x256xf32, #tpu.memory_space<vmem>>, vector<2x256xf32>
    %352 = arith.maximumf %351, %347 : vector<2x256xf32>
    %c0_172 = arith.constant 0 : index
    %c0_173 = arith.constant 0 : index
    %353 = vector.load %arg15[%c0_172, %c0_173] : memref<2x256xf32, #tpu.memory_space<vmem>>, vector<2x256xf32>
    tpu.vector_store %arg15[%c0_172, %c0_173], %352 {strides = array<i32>} : memref<2x256xf32, #tpu.memory_space<vmem>>, vector<2x256xf32>,
    %354 = vector.extract_strided_slice %347 {offsets = [0, 0], sizes = [2, 128], strides = [1, 1]} : vector<2x256xf32> to vector<2x128xf32>
    %c0_174 = arith.constant 0 : index
    %c0_175 = arith.constant 0 : index
    %355 = vector.load %arg6[%c0_174, %c0_175] : memref<256x1024xf32, #tpu.memory_space<vmem>>, vector<128x512xf32>
    %cst_176 = arith.constant dense<0.000000e+00> : vector<2x512xf32>
    %356 = tpu.matmul %354, %355, %cst_176 {dimension_numbers = #tpu.dot_dimension_numbers<[1], [0], [0], [1], [0, 0, 1, 1], [], []>} : vector<2x128xf32>, vector<128x512xf32>, vector<2x512xf32> -> vector<2x512xf32>
    %357 = vector.extract_strided_slice %347 {offsets = [0, 128], sizes = [2, 128], strides = [1, 1]} : vector<2x256xf32> to vector<2x128xf32>
    %c128_177 = arith.constant 128 : index
    %c512_178 = arith.constant 512 : index
    %358 = vector.load %arg6[%c128_177, %c512_178] : memref<256x1024xf32, #tpu.memory_space<vmem>>, vector<128x512xf32>
    %cst_179 = arith.constant dense<0.000000e+00> : vector<2x512xf32>
    %359 = tpu.matmul %357, %358, %cst_179 {dimension_numbers = #tpu.dot_dimension_numbers<[1], [0], [0], [1], [0, 0, 1, 1], [], []>} : vector<2x128xf32>, vector<128x512xf32>, vector<2x512xf32> -> vector<2x512xf32>
    %c6_180 = arith.constant 6 : index
    %c0_181 = arith.constant 0 : index
    %c0_182 = arith.constant 0 : index
    %360 = vector.load %arg10[%c6_180, %c0_181, %c0_182] : memref<8x2x512xf32, #tpu.memory_space<vmem>>, vector<1x2x512xf32>
    %361 = vector.shape_cast %360 : vector<1x2x512xf32> to vector<2x512xf32>
    %362 = arith.addf %361, %356 : vector<2x512xf32>
    %363 = vector.extract_strided_slice %362 {offsets = [0, 0], sizes = [2, 384], strides = [1, 1]} : vector<2x512xf32> to vector<2x384xf32>
    %cst_183 = arith.constant 5.000000e-01 : f32
    %364 = vector.broadcast %cst_183 : f32 to vector<2x384xf32>
    %365 = arith.mulf %364, %363 : vector<2x384xf32>
    %366 = math.tanh %365 : vector<2x384xf32>
    %cst_184 = arith.constant 5.000000e-01 : f32
    %367 = vector.broadcast %cst_184 : f32 to vector<2x384xf32>
    %368 = arith.mulf %367, %366 : vector<2x384xf32>
    %cst_185 = arith.constant 5.000000e-01 : f32
    %369 = vector.broadcast %cst_185 : f32 to vector<2x384xf32>
    %370 = arith.addf %368, %369 : vector<2x384xf32>
    %371 = vector.extract_strided_slice %362 {offsets = [0, 384], sizes = [2, 128], strides = [1, 1]} : vector<2x512xf32> to vector<2x128xf32>
    %372 = math.tanh %371 : vector<2x128xf32>
    %373 = vector.extract_strided_slice %370 {offsets = [0, 128], sizes = [2, 128], strides = [1, 1]} : vector<2x384xf32> to vector<2x128xf32>
    %374 = arith.mulf %373, %322 : vector<2x128xf32>
    %375 = vector.extract_strided_slice %370 {offsets = [0, 0], sizes = [2, 128], strides = [1, 1]} : vector<2x384xf32> to vector<2x128xf32>
    %376 = arith.mulf %375, %372 : vector<2x128xf32>
    %377 = arith.addf %374, %376 : vector<2x128xf32>
    %378 = vector.extract_strided_slice %370 {offsets = [0, 256], sizes = [2, 128], strides = [1, 1]} : vector<2x384xf32> to vector<2x128xf32>
    %379 = math.tanh %377 : vector<2x128xf32>
    %380 = arith.mulf %378, %379 : vector<2x128xf32>
    %c1_186 = arith.constant 1 : index
    %c0_187 = arith.constant 0 : index
    %c0_188 = arith.constant 0 : index
    %381 = vector.load %arg11[%c1_186, %c0_187, %c0_188] : memref<8x2x512xf32, #tpu.memory_space<vmem>>, vector<1x2x512xf32>
    %382 = vector.shape_cast %381 : vector<1x2x512xf32> to vector<2x512xf32>
    %383 = arith.addf %382, %359 : vector<2x512xf32>
    %384 = vector.extract_strided_slice %383 {offsets = [0, 0], sizes = [2, 384], strides = [1, 1]} : vector<2x512xf32> to vector<2x384xf32>
    %cst_189 = arith.constant 5.000000e-01 : f32
    %385 = vector.broadcast %cst_189 : f32 to vector<2x384xf32>
    %386 = arith.mulf %385, %384 : vector<2x384xf32>
    %387 = math.tanh %386 : vector<2x384xf32>
    %cst_190 = arith.constant 5.000000e-01 : f32
    %388 = vector.broadcast %cst_190 : f32 to vector<2x384xf32>
    %389 = arith.mulf %388, %387 : vector<2x384xf32>
    %cst_191 = arith.constant 5.000000e-01 : f32
    %390 = vector.broadcast %cst_191 : f32 to vector<2x384xf32>
    %391 = arith.addf %389, %390 : vector<2x384xf32>
    %392 = vector.extract_strided_slice %383 {offsets = [0, 384], sizes = [2, 128], strides = [1, 1]} : vector<2x512xf32> to vector<2x128xf32>
    %393 = math.tanh %392 : vector<2x128xf32>
    %394 = vector.extract_strided_slice %391 {offsets = [0, 128], sizes = [2, 128], strides = [1, 1]} : vector<2x384xf32> to vector<2x128xf32>
    %395 = arith.mulf %394, %343 : vector<2x128xf32>
    %396 = vector.extract_strided_slice %391 {offsets = [0, 0], sizes = [2, 128], strides = [1, 1]} : vector<2x384xf32> to vector<2x128xf32>
    %397 = arith.mulf %396, %393 : vector<2x128xf32>
    %398 = arith.addf %395, %397 : vector<2x128xf32>
    %399 = vector.extract_strided_slice %391 {offsets = [0, 256], sizes = [2, 128], strides = [1, 1]} : vector<2x384xf32> to vector<2x128xf32>
    %400 = math.tanh %398 : vector<2x128xf32>
    %401 = arith.mulf %399, %400 : vector<2x128xf32>
    %402 = tpu.concatenate %380, %401 in 1 : vector<2x128xf32>, vector<2x128xf32> -> vector<2x256xf32>
    %c0_192 = arith.constant 0 : index
    %c0_193 = arith.constant 0 : index
    %403 = vector.load %arg14[%c0_192, %c0_193] : memref<2x256xf32, #tpu.memory_space<vmem>>, vector<2x256xf32>
    %404 = arith.addf %403, %402 : vector<2x256xf32>
    %c0_194 = arith.constant 0 : index
    %c0_195 = arith.constant 0 : index
    %405 = vector.load %arg14[%c0_194, %c0_195] : memref<2x256xf32, #tpu.memory_space<vmem>>, vector<2x256xf32>
    tpu.vector_store %arg14[%c0_194, %c0_195], %404 {strides = array<i32>} : memref<2x256xf32, #tpu.memory_space<vmem>>, vector<2x256xf32>,
    %c0_196 = arith.constant 0 : index
    %c0_197 = arith.constant 0 : index
    %406 = vector.load %arg15[%c0_196, %c0_197] : memref<2x256xf32, #tpu.memory_space<vmem>>, vector<2x256xf32>
    %407 = arith.maximumf %406, %402 : vector<2x256xf32>
    %c0_198 = arith.constant 0 : index
    %c0_199 = arith.constant 0 : index
    %408 = vector.load %arg15[%c0_198, %c0_199] : memref<2x256xf32, #tpu.memory_space<vmem>>, vector<2x256xf32>
    tpu.vector_store %arg15[%c0_198, %c0_199], %407 {strides = array<i32>} : memref<2x256xf32, #tpu.memory_space<vmem>>, vector<2x256xf32>,
    %409 = vector.extract_strided_slice %402 {offsets = [0, 0], sizes = [2, 128], strides = [1, 1]} : vector<2x256xf32> to vector<2x128xf32>
    %c0_200 = arith.constant 0 : index
    %c0_201 = arith.constant 0 : index
    %410 = vector.load %arg6[%c0_200, %c0_201] : memref<256x1024xf32, #tpu.memory_space<vmem>>, vector<128x512xf32>
    %cst_202 = arith.constant dense<0.000000e+00> : vector<2x512xf32>
    %411 = tpu.matmul %409, %410, %cst_202 {dimension_numbers = #tpu.dot_dimension_numbers<[1], [0], [0], [1], [0, 0, 1, 1], [], []>} : vector<2x128xf32>, vector<128x512xf32>, vector<2x512xf32> -> vector<2x512xf32>
    %412 = vector.extract_strided_slice %402 {offsets = [0, 128], sizes = [2, 128], strides = [1, 1]} : vector<2x256xf32> to vector<2x128xf32>
    %c128_203 = arith.constant 128 : index
    %c512_204 = arith.constant 512 : index
    %413 = vector.load %arg6[%c128_203, %c512_204] : memref<256x1024xf32, #tpu.memory_space<vmem>>, vector<128x512xf32>
    %cst_205 = arith.constant dense<0.000000e+00> : vector<2x512xf32>
    %414 = tpu.matmul %412, %413, %cst_205 {dimension_numbers = #tpu.dot_dimension_numbers<[1], [0], [0], [1], [0, 0, 1, 1], [], []>} : vector<2x128xf32>, vector<128x512xf32>, vector<2x512xf32> -> vector<2x512xf32>
    %c7_206 = arith.constant 7 : index
    %c0_207 = arith.constant 0 : index
    %c0_208 = arith.constant 0 : index
    %415 = vector.load %arg10[%c7_206, %c0_207, %c0_208] : memref<8x2x512xf32, #tpu.memory_space<vmem>>, vector<1x2x512xf32>
    %416 = vector.shape_cast %415 : vector<1x2x512xf32> to vector<2x512xf32>
    %417 = arith.addf %416, %411 : vector<2x512xf32>
    %418 = vector.extract_strided_slice %417 {offsets = [0, 0], sizes = [2, 384], strides = [1, 1]} : vector<2x512xf32> to vector<2x384xf32>
    %cst_209 = arith.constant 5.000000e-01 : f32
    %419 = vector.broadcast %cst_209 : f32 to vector<2x384xf32>
    %420 = arith.mulf %419, %418 : vector<2x384xf32>
    %421 = math.tanh %420 : vector<2x384xf32>
    %cst_210 = arith.constant 5.000000e-01 : f32
    %422 = vector.broadcast %cst_210 : f32 to vector<2x384xf32>
    %423 = arith.mulf %422, %421 : vector<2x384xf32>
    %cst_211 = arith.constant 5.000000e-01 : f32
    %424 = vector.broadcast %cst_211 : f32 to vector<2x384xf32>
    %425 = arith.addf %423, %424 : vector<2x384xf32>
    %426 = vector.extract_strided_slice %417 {offsets = [0, 384], sizes = [2, 128], strides = [1, 1]} : vector<2x512xf32> to vector<2x128xf32>
    %427 = math.tanh %426 : vector<2x128xf32>
    %428 = vector.extract_strided_slice %425 {offsets = [0, 128], sizes = [2, 128], strides = [1, 1]} : vector<2x384xf32> to vector<2x128xf32>
    %429 = arith.mulf %428, %377 : vector<2x128xf32>
    %430 = vector.extract_strided_slice %425 {offsets = [0, 0], sizes = [2, 128], strides = [1, 1]} : vector<2x384xf32> to vector<2x128xf32>
    %431 = arith.mulf %430, %427 : vector<2x128xf32>
    %432 = arith.addf %429, %431 : vector<2x128xf32>
    %433 = vector.extract_strided_slice %425 {offsets = [0, 256], sizes = [2, 128], strides = [1, 1]} : vector<2x384xf32> to vector<2x128xf32>
    %434 = math.tanh %432 : vector<2x128xf32>
    %435 = arith.mulf %433, %434 : vector<2x128xf32>
    %c0_212 = arith.constant 0 : index
    %c0_213 = arith.constant 0 : index
    %c0_214 = arith.constant 0 : index
    %436 = vector.load %arg11[%c0_212, %c0_213, %c0_214] : memref<8x2x512xf32, #tpu.memory_space<vmem>>, vector<1x2x512xf32>
    %437 = vector.shape_cast %436 : vector<1x2x512xf32> to vector<2x512xf32>
    %438 = arith.addf %437, %414 : vector<2x512xf32>
    %439 = vector.extract_strided_slice %438 {offsets = [0, 0], sizes = [2, 384], strides = [1, 1]} : vector<2x512xf32> to vector<2x384xf32>
    %cst_215 = arith.constant 5.000000e-01 : f32
    %440 = vector.broadcast %cst_215 : f32 to vector<2x384xf32>
    %441 = arith.mulf %440, %439 : vector<2x384xf32>
    %442 = math.tanh %441 : vector<2x384xf32>
    %cst_216 = arith.constant 5.000000e-01 : f32
    %443 = vector.broadcast %cst_216 : f32 to vector<2x384xf32>
    %444 = arith.mulf %443, %442 : vector<2x384xf32>
    %cst_217 = arith.constant 5.000000e-01 : f32
    %445 = vector.broadcast %cst_217 : f32 to vector<2x384xf32>
    %446 = arith.addf %444, %445 : vector<2x384xf32>
    %447 = vector.extract_strided_slice %438 {offsets = [0, 384], sizes = [2, 128], strides = [1, 1]} : vector<2x512xf32> to vector<2x128xf32>
    %448 = math.tanh %447 : vector<2x128xf32>
    %449 = vector.extract_strided_slice %446 {offsets = [0, 128], sizes = [2, 128], strides = [1, 1]} : vector<2x384xf32> to vector<2x128xf32>
    %450 = arith.mulf %449, %398 : vector<2x128xf32>
    %451 = vector.extract_strided_slice %446 {offsets = [0, 0], sizes = [2, 128], strides = [1, 1]} : vector<2x384xf32> to vector<2x128xf32>
    %452 = arith.mulf %451, %448 : vector<2x128xf32>
    %453 = arith.addf %450, %452 : vector<2x128xf32>
    %454 = vector.extract_strided_slice %446 {offsets = [0, 256], sizes = [2, 128], strides = [1, 1]} : vector<2x384xf32> to vector<2x128xf32>
    %455 = math.tanh %453 : vector<2x128xf32>
    %456 = arith.mulf %454, %455 : vector<2x128xf32>
    %457 = tpu.concatenate %435, %456 in 1 : vector<2x128xf32>, vector<2x128xf32> -> vector<2x256xf32>
    %c0_218 = arith.constant 0 : index
    %c0_219 = arith.constant 0 : index
    %458 = vector.load %arg14[%c0_218, %c0_219] : memref<2x256xf32, #tpu.memory_space<vmem>>, vector<2x256xf32>
    %459 = arith.addf %458, %457 : vector<2x256xf32>
    %c0_220 = arith.constant 0 : index
    %c0_221 = arith.constant 0 : index
    %460 = vector.load %arg14[%c0_220, %c0_221] : memref<2x256xf32, #tpu.memory_space<vmem>>, vector<2x256xf32>
    tpu.vector_store %arg14[%c0_220, %c0_221], %459 {strides = array<i32>} : memref<2x256xf32, #tpu.memory_space<vmem>>, vector<2x256xf32>,
    %c0_222 = arith.constant 0 : index
    %c0_223 = arith.constant 0 : index
    %461 = vector.load %arg15[%c0_222, %c0_223] : memref<2x256xf32, #tpu.memory_space<vmem>>, vector<2x256xf32>
    %462 = arith.maximumf %461, %457 : vector<2x256xf32>
    %c0_224 = arith.constant 0 : index
    %c0_225 = arith.constant 0 : index
    %463 = vector.load %arg15[%c0_224, %c0_225] : memref<2x256xf32, #tpu.memory_space<vmem>>, vector<2x256xf32>
    tpu.vector_store %arg15[%c0_224, %c0_225], %462 {strides = array<i32>} : memref<2x256xf32, #tpu.memory_space<vmem>>, vector<2x256xf32>,
    %c0_226 = arith.constant 0 : index
    %c0_227 = arith.constant 0 : index
    %464 = vector.load %arg12[%c0_226, %c0_227] : memref<2x256xf32, #tpu.memory_space<vmem>>, vector<2x256xf32>
    tpu.vector_store %arg12[%c0_226, %c0_227], %457 {strides = array<i32>} : memref<2x256xf32, #tpu.memory_space<vmem>>, vector<2x256xf32>,
    %c0_228 = arith.constant 0 : index
    %c0_229 = arith.constant 0 : index
    %465 = vector.load %arg13[%c0_228, %c0_229] : memref<2x256xf32, #tpu.memory_space<vmem>>, vector<2x128xf32>
    tpu.vector_store %arg13[%c0_228, %c0_229], %432 {strides = array<i32>} : memref<2x256xf32, #tpu.memory_space<vmem>>, vector<2x128xf32>,
    %c0_230 = arith.constant 0 : index
    %c128_231 = arith.constant 128 : index
    %466 = vector.load %arg13[%c0_230, %c128_231] : memref<2x256xf32, #tpu.memory_space<vmem>>, vector<2x128xf32>
    tpu.vector_store %arg13[%c0_230, %c128_231], %453 {strides = array<i32>} : memref<2x256xf32, #tpu.memory_space<vmem>>, vector<2x128xf32>,
    %c0_i32_232 = arith.constant 0 : i32
    %467 = arith.cmpi eq, %arg1, %c0_i32_232 : i32
    %468 = arith.extui %467 : i1 to i32
    %c0_i32_233 = arith.constant 0 : i32
    %469 = arith.cmpi ne, %468, %c0_i32_233 : i32
    scf.if %469 {
      %c0_234 = arith.constant 0 : index
      %c0_235 = arith.constant 0 : index
      %470 = vector.load %arg14[%c0_234, %c0_235] : memref<2x256xf32, #tpu.memory_space<vmem>>, vector<2x256xf32>
      %cst_236 = arith.constant 1.250000e-01 : f32
      %471 = vector.broadcast %cst_236 : f32 to vector<2x256xf32>
      %472 = arith.mulf %470, %471 : vector<2x256xf32>
      %c0_237 = arith.constant 0 : index
      %c0_238 = arith.constant 0 : index
      %473 = vector.load %arg9[%c0_237, %c0_238] : memref<2x512xf32, #tpu.memory_space<vmem>>, vector<2x256xf32>
      tpu.vector_store %arg9[%c0_237, %c0_238], %472 {strides = array<i32>} : memref<2x512xf32, #tpu.memory_space<vmem>>, vector<2x256xf32>,
      %c0_239 = arith.constant 0 : index
      %c0_240 = arith.constant 0 : index
      %474 = vector.load %arg15[%c0_239, %c0_240] : memref<2x256xf32, #tpu.memory_space<vmem>>, vector<2x256xf32>
      %c0_241 = arith.constant 0 : index
      %c256 = arith.constant 256 : index
      %475 = vector.load %arg9[%c0_241, %c256] : memref<2x512xf32, #tpu.memory_space<vmem>>, vector<2x256xf32>
      tpu.vector_store %arg9[%c0_241, %c256], %474 {strides = array<i32>} : memref<2x512xf32, #tpu.memory_space<vmem>>, vector<2x256xf32>,
    } else {
    }
    return
  }
  func.func @transform_0(%arg0: i32, %arg1: i32) -> (i32, i32, i32) {
    %c0_i32 = arith.constant 0 : i32
    %c0_i32_0 = arith.constant 0 : i32
    return %arg1, %arg0, %c0_i32 : i32, i32, i32
  }
  func.func @transform_1(%arg0: i32, %arg1: i32) -> (i32, i32, i32) {
    %c0_i32 = arith.constant 0 : i32
    %0 = arith.subi %c0_i32, %arg1 : i32
    %c0_i32_0 = arith.constant 0 : i32
    %c0_i32_1 = arith.constant 0 : i32
    return %0, %arg0, %c0_i32_0 : i32, i32, i32
  }
  func.func @transform_2(%arg0: i32, %arg1: i32) -> (i32, i32) {
    %c0_i32 = arith.constant 0 : i32
    %c0_i32_0 = arith.constant 0 : i32
    %c0_i32_1 = arith.constant 0 : i32
    return %c0_i32, %c0_i32_0 : i32, i32
  }
  func.func @transform_3(%arg0: i32, %arg1: i32) -> (i32, i32) {
    %c0_i32 = arith.constant 0 : i32
    %c0_i32_0 = arith.constant 0 : i32
    %c0_i32_1 = arith.constant 0 : i32
    return %c0_i32, %c0_i32_0 : i32, i32
  }
  func.func @transform_4(%arg0: i32, %arg1: i32) -> (i32, i32) {
    %c0_i32 = arith.constant 0 : i32
    %c0_i32_0 = arith.constant 0 : i32
    %c0_i32_1 = arith.constant 0 : i32
    return %c0_i32, %c0_i32_0 : i32, i32
  }
  func.func @transform_5(%arg0: i32, %arg1: i32) -> (i32, i32) {
    %c0_i32 = arith.constant 0 : i32
    %c0_i32_0 = arith.constant 0 : i32
    %c0_i32_1 = arith.constant 0 : i32
    return %c0_i32, %c0_i32_0 : i32, i32
  }
  func.func @transform_6(%arg0: i32, %arg1: i32) -> (i32, i32) {
    %c0_i32 = arith.constant 0 : i32
    %c0_i32_0 = arith.constant 0 : i32
    %c0_i32_1 = arith.constant 0 : i32
    return %c0_i32, %c0_i32_0 : i32, i32
  }
  func.func @transform_7(%arg0: i32, %arg1: i32) -> (i32, i32) {
    %c0_i32 = arith.constant 0 : i32
    %c0_i32_0 = arith.constant 0 : i32
    return %arg0, %c0_i32 : i32, i32
  }
}

</mosaic_0001>

<bundles_post_ra>
// kernel: _lstm_pooler_impl.1
= control target key start
LH: loop header
LB: loop body
LE: loop exit
PB: predicated region body
PF: predicated region fallthrough
CT: control target
= control target key end

     0   :  { %v9608_v3 = vmov 0.0   ;;  %v130_v63 = vlaneseq  ;;  %s9600_s2 = inlined_call_operand.vmem [shape: f32[128,512], index: 2, kind: input, shape index: {}]   ;;  %s9601_s0 = inlined_call_operand.vmem [shape: f32[8,2,128], index: 0, kind: input, shape index: {}, may-alias: {0,1}]   ;;  %s9602_s3 = inlined_call_operand.vmem [shape: f32[128,512], index: 3, kind: input, shape index: {}]   ;;  %s9603_s1 = inlined_call_operand.vmem [shape: f32[8,2,128], index: 1, kind: input, shape index: {}, may-alias: {0,1}]   ;;  %s9604_s4 = inlined_call_operand.vmem [shape: f32[256,1024], index: 4, kind: input, shape index: {}]   ;;  %s9605_s5 = inlined_call_operand.vmem [shape: f32[1,512], index: 5, kind: input, shape index: {}]   ;;  %s9606_s6 = inlined_call_operand.vmem [shape: f32[1,512], index: 6, kind: input, shape index: {}]   ;;  %s9607_s7 = inlined_call_operand.vmem [shape: f32[2,512], index: 7, kind: output, shape index: {}]  }
   0x1   :  { %v65_v0 = vld [vmem:[%s9600_s2 + $0x8] sm:$0xff]  ;;  %v67_v2 = vld [vmem:[%s9600_s2 + $0x18] sm:$0xff]  ;;  %258 = vmatprep.mubr.f32.mxu0 %v9608_v3  ;;  %52 = vst [vmem:[#allocation4] sm:$0xf] %v9608_v3  ;;  %53 = vst [vmem:[#allocation5] sm:$0xf] %v9608_v3  ;;  %335 = vmatprep.mubr.f32.mxu1 %v9608_v3 }
   0x2   :  { %v69_v1 = vld [vmem:[%s9600_s2 + $0x28] sm:$0xff]  ;;  %54 = vst [vmem:[#allocation6] sm:$0xf] %v9608_v3  ;;  %v71_v5 = vld [vmem:[%s9600_s2 + $0x38] sm:$0xff]  ;;  %v64_v6 = vld [vmem:[%s9600_s2] sm:$0xff] }
   0x3   :  { %v4985_v4 = vpack.c.bf16 %v69_v1, %v65_v0  ;;  %v68_v7 = vld [vmem:[%s9600_s2 + $0x20] sm:$0xff]  ;;  %v5017_v8 = vpack.c.bf16 %v71_v5, %v67_v2  ;;  %v66_v10 = vld [vmem:[%s9600_s2 + $0x10] sm:$0xff]  ;;  %v73_v12 = vld [vmem:[%s9600_s2 + $0x48] sm:$0xff]  ;;  %v6237_v0 = vmov 1983009808  }
   0x4   :  { %v4987_v9 = vpack.c.bf16 %v68_v7, %v64_v6  ;;  %v70_v11 = vld [vmem:[%s9600_s2 + $0x30] sm:$0xff]  ;;  %v77_v14 = vld [vmem:[%s9600_s2 + $0x68] sm:$0xff]  ;;  %v75_v15 = vld [vmem:[%s9600_s2 + $0x58] sm:$0xff]  ;;  %v161_v1 = vunpack.c.l.s4 %v6237_v0 }
   0x5   :  { %4986 = vmatprep.subr.bf16.mxu0 %v4985_v4  ;;  %v5019_v13 = vpack.c.bf16 %v70_v11, %v66_v10  ;;  %v79_v16 = vld [vmem:[%s9600_s2 + $0x78] sm:$0xff]  ;;  %5018 = vmatprep.subr.bf16.mxu1 %v5017_v8  ;;  %v4989_v17 = vpack.c.bf16 %v77_v14, %v73_v12  ;;  %v72_v19 = vld [vmem:[%s9600_s2 + $0x40] sm:$0xff]  ;;  %v74_v21 = vld [vmem:[%s9600_s2 + $0x50] sm:$0xff] }
   0x6   :  { %4988 = vmatpush1.bf16.msra.mxu0 %v4987_v9  ;;  %v5021_v18 = vpack.c.bf16 %v79_v16, %v75_v15  ;;  %v76_v20 = vld [vmem:[%s9600_s2 + $0x60] sm:$0xff]  ;;  %v78_v23 = vld [vmem:[%s9600_s2 + $0x70] sm:$0xff]  ;;  %v81_v24 = vld [vmem:[%s9600_s2 + $0x88] sm:$0xff]  ;;  %v6443_v16 = vshrl.u32 %v130_v63, 7 }
   0x7   :  { %5020 = vmatpush1.bf16.msra.mxu1 %v5019_v13  ;;  %v4991_v22 = vpack.c.bf16 %v76_v20, %v72_v19  ;;  %v85_v25 = vld [vmem:[%s9600_s2 + $0xa8] sm:$0xff]  ;;  %4990 = vmatprep.subr.bf16.mxu0 %v4989_v17  ;;  %v5023_v26 = vpack.c.bf16 %v78_v23, %v74_v21  ;;  %v83_v28 = vld [vmem:[%s9600_s2 + $0x98] sm:$0xff]  ;;  %v80_v30 = vld [vmem:[%s9600_s2 + $0x80] sm:$0xff]  ;;  %v162_v17 = vunpack.c.0.s8 %v161_v1 }
   0x8   :  { %5022 = vmatprep.subr.bf16.mxu1 %v5021_v18  ;;  %v4993_v27 = vpack.c.bf16 %v85_v25, %v81_v24  ;;  %v87_v29 = vld [vmem:[%s9600_s2 + $0xb8] sm:$0xff]  ;;  %v84_v32 = vld [vmem:[%s9600_s2 + $0xa0] sm:$0xff]  ;;  %v82_v33 = vld [vmem:[%s9600_s2 + $0x90] sm:$0xff] }
   0x9   :  { %v5025_v31 = vpack.c.bf16 %v87_v29, %v83_v28  ;;  %v86_v34 = vld [vmem:[%s9600_s2 + $0xb0] sm:$0xff]  ;;  %v4995_v35 = vpack.c.bf16 %v84_v32, %v80_v30  ;;  %v89_v36 = vld [vmem:[%s9600_s2 + $0xc8] sm:$0xff]  ;;  %v91_v38 = vld [vmem:[%s9600_s2 + $0xd8] sm:$0xff] }
   0xa   :  { %4992 = vmatpush1.bf16.msra.mxu0 %v4991_v22  ;;  %v93_v37 = vld [vmem:[%s9600_s2 + $0xe8] sm:$0xff]  ;;  %v5027_v39 = vpack.c.bf16 %v86_v34, %v82_v33  ;;  %v95_v41 = vld [vmem:[%s9600_s2 + $0xf8] sm:$0xff]  ;;  %v88_v42 = vld [vmem:[%s9600_s2 + $0xc0] sm:$0xff] }
   0xb   :  { %5024 = vmatpush1.bf16.msra.mxu1 %v5023_v26  ;;  %4994 = vmatprep.subr.bf16.mxu0 %v4993_v27  ;;  %v4997_v40 = vpack.c.bf16 %v93_v37, %v89_v36  ;;  %v92_v43 = vld [vmem:[%s9600_s2 + $0xe0] sm:$0xff]  ;;  %v5029_v44 = vpack.c.bf16 %v95_v41, %v91_v38  ;;  %v90_v45 = vld [vmem:[%s9600_s2 + $0xd0] sm:$0xff]  ;;  %v97_v47 = vld [vmem:[%s9600_s2 + $0x108] sm:$0xff] }
   0xc   :  { %5026 = vmatprep.subr.bf16.mxu1 %v5025_v31  ;;  %v94_v46 = vld [vmem:[%s9600_s2 + $0xf0] sm:$0xff]  ;;  %v101_v48 = vld [vmem:[%s9600_s2 + $0x128] sm:$0xff]  ;;  %v99_v49 = vld [vmem:[%s9600_s2 + $0x118] sm:$0xff]  ;;  %v4999_v51 = vpack.c.bf16 %v92_v43, %v88_v42 }
   0xd   :  { %v103_v50 = vld [vmem:[%s9600_s2 + $0x138] sm:$0xff]  ;;  %v5031_v52 = vpack.c.bf16 %v94_v46, %v90_v45  ;;  %v5001_v53 = vpack.c.bf16 %v101_v48, %v97_v47  ;;  %v96_v54 = vld [vmem:[%s9600_s2 + $0x100] sm:$0xff]  ;;  %v98_v56 = vld [vmem:[%s9600_s2 + $0x110] sm:$0xff] }
   0xe   :  { %4996 = vmatpush1.bf16.msra.mxu0 %v4995_v35  ;;  %v100_v55 = vld [vmem:[%s9600_s2 + $0x120] sm:$0xff]  ;;  %v5033_v57 = vpack.c.bf16 %v103_v50, %v99_v49  ;;  %v102_v58 = vld [vmem:[%s9600_s2 + $0x130] sm:$0xff]  ;;  %v105_v59 = vld [vmem:[%s9600_s2 + $0x148] sm:$0xff]  ;;  %v6479_v35 = vsub.s32 %v162_v17, %v6443_v16 }
   0xf   :  { %5028 = vmatpush1.bf16.msra.mxu1 %v5027_v39  ;;  %4998 = vmatprep.subr.bf16.mxu0 %v4997_v40  ;;  %v109_v60 = vld [vmem:[%s9600_s2 + $0x168] sm:$0xff]  ;;  %v107_v61 = vld [vmem:[%s9600_s2 + $0x158] sm:$0xff]  ;;  %v5003_v2 = vpack.c.bf16 %v100_v55, %v96_v54  ;;  %v5035_v4 = vpack.c.bf16 %v102_v58, %v98_v56  ;;  %v104_v6 = vld [vmem:[%s9600_s2 + $0x140] sm:$0xff] }
  0x10   :  { %5030 = vmatprep.subr.bf16.mxu1 %v5029_v44  ;;  %v111_v62 = vld [vmem:[%s9600_s2 + $0x178] sm:$0xff]  ;;  %v5005_v5 = vpack.c.bf16 %v109_v60, %v105_v59  ;;  %v108_v7 = vld [vmem:[%s9600_s2 + $0x160] sm:$0xff]  ;;  %v106_v8 = vld [vmem:[%s9600_s2 + $0x150] sm:$0xff] }
  0x11   :  { %v5037_v9 = vpack.c.bf16 %v111_v62, %v107_v61  ;;  %v110_v10 = vld [vmem:[%s9600_s2 + $0x170] sm:$0xff]  ;;  %v113_v11 = vld [vmem:[%s9600_s2 + $0x188] sm:$0xff]  ;;  %v115_v13 = vld [vmem:[%s9600_s2 + $0x198] sm:$0xff]  ;;  %v5007_v18 = vpack.c.bf16 %v108_v7, %v104_v6 }
  0x12   :  { %5000 = vmatpush1.bf16.msra.mxu0 %v4999_v51  ;;  %v117_v12 = vld [vmem:[%s9600_s2 + $0x1a8] sm:$0xff]  ;;  %v119_v14 = vld [vmem:[%s9600_s2 + $0x1b8] sm:$0xff]  ;;  %v112_v15 = vld [vmem:[%s9600_s2 + $0x180] sm:$0xff]  ;;  %v5039_v22 = vpack.c.bf16 %v110_v10, %v106_v8 }
  0x13   :  { %5032 = vmatpush1.bf16.msra.mxu1 %v5031_v52  ;;  %5002 = vmatprep.subr.bf16.mxu0 %v5001_v53  ;;  %v116_v19 = vld [vmem:[%s9600_s2 + $0x1a0] sm:$0xff]  ;;  %v114_v20 = vld [vmem:[%s9600_s2 + $0x190] sm:$0xff]  ;;  %v5009_v23 = vpack.c.bf16 %v117_v12, %v113_v11  ;;  %v121_v24 = vld [vmem:[%s9600_s2 + $0x1c8] sm:$0xff]  ;;  %v5041_v27 = vpack.c.bf16 %v119_v14, %v115_v13 }
  0x14   :  { %5034 = vmatprep.subr.bf16.mxu1 %v5033_v57  ;;  %v118_v21 = vld [vmem:[%s9600_s2 + $0x1b0] sm:$0xff]  ;;  %v56_v25 = vld [vmem:[%s9601_s0] sm:$0x3]  ;;  %v57_v26 = vld [vmem:[%s9601_s0 + $0x2] sm:$0x3]  ;;  %v5011_v36 = vpack.c.bf16 %v116_v19, %v112_v15 }
  0x15   :  { %v125_v28 = vld [vmem:[%s9600_s2 + $0x1e8] sm:$0xff]  ;;  %v58_v29 = vld [vmem:[%s9601_s0 + $0x4] sm:$0x3]  ;;  %v59_v30 = vld [vmem:[%s9601_s0 + $0x6] sm:$0x3]  ;;  %v158_v33 = vcombine.low %v56_v25, %v57_v26  ;;  %v5043_v37 = vpack.c.bf16 %v118_v21, %v114_v20 }
  0x16   :  { %5004 = vmatpush1.bf16.msra.mxu0 %v5003_v2  ;;  %v123_v31 = vld [vmem:[%s9600_s2 + $0x1d8] sm:$0xff]  ;;  %v159_v34 = vcombine.low %v58_v29, %v59_v30  ;;  %v5013_v38 = vpack.c.bf16 %v125_v28, %v121_v24  ;;  %v120_v39 = vld [vmem:[%s9600_s2 + $0x1c0] sm:$0xff]  ;;  %v122_v41 = vld [vmem:[%s9600_s2 + $0x1d0] sm:$0xff] }
  0x17   :  { %5036 = vmatpush1.bf16.msra.mxu1 %v5035_v4  ;;  %5006 = vmatprep.subr.bf16.mxu0 %v5005_v5  ;;  %v127_v32 = vld [vmem:[%s9600_s2 + $0x1f8] sm:$0xff]  ;;  %v124_v40 = vld [vmem:[%s9600_s2 + $0x1e0] sm:$0xff]  ;;  %v126_v43 = vld [vmem:[%s9600_s2 + $0x1f0] sm:$0xff]  ;;  %v166_v46 = vrot.slane %v158_v33, %v6479_v35 }
  0x18   :  { %5038 = vmatprep.subr.bf16.mxu1 %v5037_v9  ;;  %v5045_v42 = vpack.c.bf16 %v127_v32, %v123_v31  ;;  %v453_v44 = vld [vmem:[%s9602_s3 + $0x8] sm:$0xff]  ;;  %v173_v47 = vrot.slane %v159_v34, %v6479_v35  ;;  %v455_v48 = vld [vmem:[%s9602_s3 + $0x18] sm:$0xff]  ;;  %v5015_v50 = vpack.c.bf16 %v124_v40, %v120_v39  ;;  %v5047_v51 = vpack.c.bf16 %v126_v43, %v122_v41  ;;  %v452_v53 = vld [vmem:[%s9602_s3] sm:$0xff] }
  0x19   :  { %v457_v45 = vld [vmem:[%s9602_s3 + $0x28] sm:$0xff]  ;;  %v459_v49 = vld [vmem:[%s9602_s3 + $0x38] sm:$0xff]  ;;  %v456_v54 = vld [vmem:[%s9602_s3 + $0x20] sm:$0xff] }
  0x1a   :  { %5008 = vmatpush1.bf16.msra.mxu0 %v5007_v18  ;;  %v5049_v52 = vpack.c.bf16 %v457_v45, %v453_v44  ;;  %v454_v55 = vld [vmem:[%s9602_s3 + $0x10] sm:$0xff]  ;;  %v5081_v56 = vpack.c.bf16 %v459_v49, %v455_v48  ;;  %v461_v58 = vld [vmem:[%s9602_s3 + $0x48] sm:$0xff]  ;;  %v174_v60 = vcombine.low %v166_v46, %v173_v47  ;;  %v463_v61 = vld [vmem:[%s9602_s3 + $0x58] sm:$0xff]  ;;  %v5051_v63 = vpack.c.bf16 %v456_v54, %v452_v53 }
  0x1b   :  { %5040 = vmatpush1.bf16.msra.mxu1 %v5039_v22  ;;  %5010 = vmatprep.subr.bf16.mxu0 %v5009_v23  ;;  %v458_v57 = vld [vmem:[%s9602_s3 + $0x30] sm:$0xff]  ;;  %v465_v59 = vld [vmem:[%s9602_s3 + $0x68] sm:$0xff]  ;;  %v467_v62 = vld [vmem:[%s9602_s3 + $0x78] sm:$0xff] }
  0x1c   :  { %5042 = vmatprep.subr.bf16.mxu1 %v5041_v27  ;;  %v5083_v0 = vpack.c.bf16 %v458_v57, %v454_v55  ;;  %v5053_v1 = vpack.c.bf16 %v465_v59, %v461_v58  ;;  %v460_v2 = vld [vmem:[%s9602_s3 + $0x40] sm:$0xff]  ;;  %v462_v5 = vld [vmem:[%s9602_s3 + $0x50] sm:$0xff]  ;;  %v5085_v6 = vpack.c.bf16 %v467_v62, %v463_v61  ;;  %v469_v8 = vld [vmem:[%s9602_s3 + $0x88] sm:$0xff] }
  0x1d   :  { %v464_v4 = vld [vmem:[%s9602_s3 + $0x60] sm:$0xff]  ;;  %v466_v7 = vld [vmem:[%s9602_s3 + $0x70] sm:$0xff]  ;;  %v473_v9 = vld [vmem:[%s9602_s3 + $0xa8] sm:$0xff] }
  0x1e   :  { %5012 = vmatpush1.bf16.msra.mxu0 %v5011_v36  ;;  %v471_v10 = vld [vmem:[%s9602_s3 + $0x98] sm:$0xff]  ;;  %v5055_v12 = vpack.c.bf16 %v464_v4, %v460_v2  ;;  %v5087_v13 = vpack.c.bf16 %v466_v7, %v462_v5  ;;  %v5057_v14 = vpack.c.bf16 %v473_v9, %v469_v8  ;;  %v468_v15 = vld [vmem:[%s9602_s3 + $0x80] sm:$0xff]  ;;  %v470_v18 = vld [vmem:[%s9602_s3 + $0x90] sm:$0xff] }
  0x1f   :  { %5044 = vmatpush1.bf16.msra.mxu1 %v5043_v37  ;;  %5014 = vmatprep.subr.bf16.mxu0 %v5013_v38  ;;  %v475_v11 = vld [vmem:[%s9602_s3 + $0xb8] sm:$0xff]  ;;  %v472_v17 = vld [vmem:[%s9602_s3 + $0xa0] sm:$0xff]  ;;  %v474_v20 = vld [vmem:[%s9602_s3 + $0xb0] sm:$0xff] }
  0x20   :  { %5046 = vmatprep.subr.bf16.mxu1 %v5045_v42  ;;  %v5089_v19 = vpack.c.bf16 %v475_v11, %v471_v10  ;;  %v477_v21 = vld [vmem:[%s9602_s3 + $0xc8] sm:$0xff]  ;;  %v479_v23 = vld [vmem:[%s9602_s3 + $0xd8] sm:$0xff]  ;;  %v476_v25 = vld [vmem:[%s9602_s3 + $0xc0] sm:$0xff]  ;;  %v5059_v26 = vpack.c.bf16 %v472_v17, %v468_v15  ;;  %v5091_v30 = vpack.c.bf16 %v474_v20, %v470_v18 }
  0x21   :  { %v481_v22 = vld [vmem:[%s9602_s3 + $0xe8] sm:$0xff]  ;;  %v483_v24 = vld [vmem:[%s9602_s3 + $0xf8] sm:$0xff]  ;;  %v480_v27 = vld [vmem:[%s9602_s3 + $0xe0] sm:$0xff] }
  0x22   :  { %5016 = vmatpush1.bf16.msra.mxu0 %v5015_v50  ;;  %v478_v28 = vld [vmem:[%s9602_s3 + $0xd0] sm:$0xff]  ;;  %v5061_v31 = vpack.c.bf16 %v481_v22, %v477_v21  ;;  %v485_v32 = vld [vmem:[%s9602_s3 + $0x108] sm:$0xff]  ;;  %v5093_v36 = vpack.c.bf16 %v483_v24, %v479_v23  ;;  %v487_v41 = vld [vmem:[%s9602_s3 + $0x118] sm:$0xff]  ;;  %v5063_v44 = vpack.c.bf16 %v480_v27, %v476_v25 }
  0x23   :  { %5048 = vmatpush1.bf16.msra.mxu1 %v5047_v51  ;;  %5050 = vmatprep.subr.bf16.mxu0 %v5049_v52  ;;  %v482_v29 = vld [vmem:[%s9602_s3 + $0xf0] sm:$0xff]  ;;  %v60_v33 = vld [vmem:[%s9601_s0 + $0x8] sm:$0x3]  ;;  %v61_v34 = vld [vmem:[%s9601_s0 + $0xa] sm:$0x3] }
  0x24   :  { %5082 = vmatprep.subr.bf16.mxu1 %v5081_v56  ;;  %v489_v37 = vld [vmem:[%s9602_s3 + $0x128] sm:$0xff]  ;;  %v175_v40 = vcombine.low %v60_v33, %v61_v34  ;;  %v491_v42 = vld [vmem:[%s9602_s3 + $0x138] sm:$0xff]  ;;  %v5095_v46 = vpack.c.bf16 %v482_v29, %v478_v28  ;;  %v484_v48 = vld [vmem:[%s9602_s3 + $0x100] sm:$0xff] }
  0x25   :  { %259 = vmatmul.mubr.f32.vlgmr.msra.gmra.mrb[0].mxu0 %v174_v60  ;;  %v62_v38 = vld [vmem:[%s9601_s0 + $0xc] sm:$0x3]  ;;  %v63_v39 = vld [vmem:[%s9601_s0 + $0xe] sm:$0x3]  ;;  %v5065_v47 = vpack.c.bf16 %v489_v37, %v485_v32  ;;  %v488_v49 = vld [vmem:[%s9602_s3 + $0x120] sm:$0xff]  ;;  %v5097_v52 = vpack.c.bf16 %v491_v42, %v487_v41 }
  0x26   :  { %336 = vmatmul.mubr.f32.vlgmr.msra.gmra.mrb[0].mxu1 %v174_v60  ;;  %5052 = vmatpush1.bf16.msra.mxu0 %v5051_v63  ;;  %v176_v43 = vcombine.low %v62_v38, %v63_v39  ;;  %v183_v45 = vrot.slane %v175_v40, %v6479_v35  ;;  %v486_v50 = vld [vmem:[%s9602_s3 + $0x110] sm:$0xff]  ;;  %v493_v54 = vld [vmem:[%s9602_s3 + $0x148] sm:$0xff]  ;;  %v495_v56 = vld [vmem:[%s9602_s3 + $0x158] sm:$0xff]  ;;  %v5067_v59 = vpack.c.bf16 %v488_v49, %v484_v48 }
  0x27   :  { %5084 = vmatpush1.bf16.msra.mxu1 %v5083_v0  ;;  %5054 = vmatprep.subr.bf16.mxu0 %v5053_v1  ;;  %v490_v53 = vld [vmem:[%s9602_s3 + $0x130] sm:$0xff]  ;;  %v497_v55 = vld [vmem:[%s9602_s3 + $0x168] sm:$0xff]  ;;  %v499_v57 = vld [vmem:[%s9602_s3 + $0x178] sm:$0xff] }
  0x28   :  { %5086 = vmatprep.subr.bf16.mxu1 %v5085_v6  ;;  %264 = vmatprep.mubr.f32.mxu0 %v9608_v3  ;;  %v190_v51 = vrot.slane %v176_v43, %v6479_v35  ;;  %v5099_v60 = vpack.c.bf16 %v490_v53, %v486_v50  ;;  %v5069_v61 = vpack.c.bf16 %v497_v55, %v493_v54  ;;  %v492_v62 = vld [vmem:[%s9602_s3 + $0x140] sm:$0xff]  ;;  %v494_v0 = vld [vmem:[%s9602_s3 + $0x150] sm:$0xff]  ;;  %v501_v4 = vld [vmem:[%s9602_s3 + $0x188] sm:$0xff] }
  0x29   :  { %341 = vmatprep.mubr.f32.mxu1 %v9608_v3  ;;  %v496_v63 = vld [vmem:[%s9602_s3 + $0x160] sm:$0xff]  ;;  %v5101_v1 = vpack.c.bf16 %v499_v57, %v495_v56  ;;  %v498_v2 = vld [vmem:[%s9602_s3 + $0x170] sm:$0xff]  ;;  %v505_v5 = vld [vmem:[%s9602_s3 + $0x1a8] sm:$0xff] }
  0x2a   :  { %5056 = vmatpush1.bf16.msra.mxu0 %v5055_v12  ;;  %v191_v58 = vcombine.low %v183_v45, %v190_v51  ;;  %v503_v6 = vld [vmem:[%s9602_s3 + $0x198] sm:$0xff]  ;;  %v444_v8 = vld [vmem:[%s9603_s1] sm:$0x3]  ;;  %v5071_v9 = vpack.c.bf16 %v496_v63, %v492_v62  ;;  %v445_v10 = vld [vmem:[%s9603_s1 + $0x2] sm:$0x3] }
  0x2b   :  { %5088 = vmatpush1.bf16.msra.mxu1 %v5087_v13  ;;  %5058 = vmatprep.subr.bf16.mxu0 %v5057_v14  ;;  %v507_v7 = vld [vmem:[%s9602_s3 + $0x1b8] sm:$0xff]  ;;  %v446_v11 = vld [vmem:[%s9603_s1 + $0x4] sm:$0x3]  ;;  %v447_v12 = vld [vmem:[%s9603_s1 + $0x6] sm:$0x3]  ;;  %v5103_v13 = vpack.c.bf16 %v498_v2, %v494_v0  ;;  %v5073_v14 = vpack.c.bf16 %v505_v5, %v501_v4  ;;  %v546_v25 = vcombine.low %v444_v8, %v445_v10 }
  0x2c   :  { %5090 = vmatprep.subr.bf16.mxu1 %v5089_v19  ;;  %265 = vmatmul.mubr.f32.gmra.mrb[2].mxu0 %v191_v58  ;;  %v500_v15 = vld [vmem:[%s9602_s3 + $0x180] sm:$0xff]  ;;  %v502_v18 = vld [vmem:[%s9602_s3 + $0x190] sm:$0xff]  ;;  %v5105_v19 = vpack.c.bf16 %v507_v7, %v503_v6  ;;  %v509_v21 = vld [vmem:[%s9602_s3 + $0x1c8] sm:$0xff] }
  0x2d   :  { %342 = vmatmul.mubr.f32.gmra.mrb[2].mxu1 %v191_v58  ;;  %646 = vmatprep.mubr.f32.mxu0 %v9608_v3  ;;  %v504_v17 = vld [vmem:[%s9602_s3 + $0x1a0] sm:$0xff]  ;;  %v506_v20 = vld [vmem:[%s9602_s3 + $0x1b0] sm:$0xff]  ;;  %v513_v22 = vld [vmem:[%s9602_s3 + $0x1e8] sm:$0xff]  ;;  %v554_v38 = vrot.slane %v546_v25, %v6479_v35 }
  0x2e   :  { %5060 = vmatpush1.bf16.msra.mxu0 %v5059_v26  ;;  %723 = vmatprep.mubr.f32.mxu1 %v9608_v3  ;;  %v511_v23 = vld [vmem:[%s9602_s3 + $0x1d8] sm:$0xff]  ;;  %v547_v26 = vcombine.low %v446_v11, %v447_v12  ;;  %v5075_v27 = vpack.c.bf16 %v504_v17, %v500_v15  ;;  %v5107_v28 = vpack.c.bf16 %v506_v20, %v502_v18  ;;  %v510_v32 = vld [vmem:[%s9602_s3 + $0x1d0] sm:$0xff]  ;;  %v840_v37 = vld [vmem:[%s9604_s4 + $0x48] sm:$0xff] }
  0x2f   :  { %5092 = vmatpush1.bf16.msra.mxu1 %v5091_v30  ;;  %5062 = vmatprep.subr.bf16.mxu0 %v5061_v31  ;;  %v515_v24 = vld [vmem:[%s9602_s3 + $0x1f8] sm:$0xff]  ;;  %v5077_v29 = vpack.c.bf16 %v513_v22, %v509_v21  ;;  %v508_v30 = vld [vmem:[%s9602_s3 + $0x1c0] sm:$0xff]  ;;  %v514_v34 = vld [vmem:[%s9602_s3 + $0x1f0] sm:$0xff] }
  0x30   :  { %5094 = vmatprep.subr.bf16.mxu1 %v5093_v36  ;;  %v512_v31 = vld [vmem:[%s9602_s3 + $0x1e0] sm:$0xff]  ;;  %v5109_v33 = vpack.c.bf16 %v515_v24, %v511_v23  ;;  %v836_v36 = vld [vmem:[%s9604_s4 + $0x8] sm:$0xff]  ;;  %v561_v39 = vrot.slane %v547_v26, %v6479_v35  ;;  %v838_v40 = vld [vmem:[%s9604_s4 + $0x18] sm:$0xff]  ;;  %v5111_v43 = vpack.c.bf16 %v514_v34, %v510_v32 }
  0x31   :  { %v842_v41 = vld [vmem:[%s9604_s4 + $0x58] sm:$0xff]  ;;  %v5079_v42 = vpack.c.bf16 %v512_v31, %v508_v30  ;;  %v835_v45 = vld [vmem:[%s9604_s4] sm:$0xff]  ;;  %v841_v49 = vld [vmem:[%s9604_s4 + $0x50] sm:$0xff] }
  0x32   :  { %5064 = vmatpush1.bf16.msra.mxu0 %v5063_v44  ;;  %v6731_v44 = vpack.c.bf16 %v840_v37, %v836_v36  ;;  %v6742_v48 = vpack.c.bf16 %v842_v41, %v838_v40  ;;  %v844_v50 = vld [vmem:[%s9604_s4 + $0x88] sm:$0xff]  ;;  %v846_v53 = vld [vmem:[%s9604_s4 + $0x98] sm:$0xff]  ;;  %v843_v55 = vld [vmem:[%s9604_s4 + $0x80] sm:$0xff] }
  0x33   :  { %5096 = vmatpush1.bf16.msra.mxu1 %v5095_v46  ;;  %5066 = vmatprep.subr.bf16.mxu0 %v5065_v47  ;;  %v839_v46 = vld [vmem:[%s9604_s4 + $0x40] sm:$0xff]  ;;  %v837_v47 = vld [vmem:[%s9604_s4 + $0x10] sm:$0xff]  ;;  %v848_v51 = vld [vmem:[%s9604_s4 + $0xc8] sm:$0xff] }
  0x34   :  { %5098 = vmatprep.subr.bf16.mxu1 %v5097_v52  ;;  %v562_v52 = vcombine.low %v554_v38, %v561_v39  ;;  %v850_v54 = vld [vmem:[%s9604_s4 + $0xd8] sm:$0xff]  ;;  %v6762_v56 = vpack.c.bf16 %v839_v46, %v835_v45  ;;  %v847_v57 = vld [vmem:[%s9604_s4 + $0xc0] sm:$0xff]  ;;  %v845_v58 = vld [vmem:[%s9604_s4 + $0x90] sm:$0xff] }
  0x35   :  { %v852_v62 = vld [vmem:[%s9604_s4 + $0x108] sm:$0xff]  ;;  %v854_v7 = vld [vmem:[%s9604_s4 + $0x118] sm:$0xff]  ;;  %v6806_v10 = vpack.c.bf16 %v847_v57, %v843_v55  ;;  %v855_v15 = vld [vmem:[%s9604_s4 + $0x140] sm:$0xff] }
  0x36   :  { %5068 = vmatpush1.bf16.msra.mxu0 %v5067_v59  ;;  %v849_v59 = vld [vmem:[%s9604_s4 + $0xd0] sm:$0xff]  ;;  %v448_v63 = vld [vmem:[%s9603_s1 + $0x8] sm:$0x3]  ;;  %v449_v0 = vld [vmem:[%s9603_s1 + $0xa] sm:$0x3] }
  0x37   :  { %5100 = vmatpush1.bf16.msra.mxu1 %v5099_v60  ;;  %5070 = vmatprep.subr.bf16.mxu0 %v5069_v61  ;;  %v6774_v60 = vpack.c.bf16 %v841_v49, %v837_v47  ;;  %v6776_v61 = vpack.c.bf16 %v848_v51, %v844_v50  ;;  %v856_v2 = vld [vmem:[%s9604_s4 + $0x148] sm:$0xff]  ;;  %v563_v6 = vcombine.low %v448_v63, %v449_v0  ;;  %v858_v8 = vld [vmem:[%s9604_s4 + $0x158] sm:$0xff]  ;;  %v853_v17 = vld [vmem:[%s9604_s4 + $0x110] sm:$0xff] }
  0x38   :  { %5102 = vmatprep.subr.bf16.mxu1 %v5101_v1  ;;  %v6788_v1 = vpack.c.bf16 %v850_v54, %v846_v53  ;;  %v450_v4 = vld [vmem:[%s9603_s1 + $0xc] sm:$0x3]  ;;  %v451_v5 = vld [vmem:[%s9603_s1 + $0xe] sm:$0x3]  ;;  %v6811_v12 = vpack.c.bf16 %v849_v59, %v845_v58  ;;  %v857_v20 = vld [vmem:[%s9604_s4 + $0x150] sm:$0xff] }
  0x39   :  { %v571_v11 = vrot.slane %v563_v6, %v6479_v35  ;;  %v860_v21 = vld [vmem:[%s9604_s4 + $0x188] sm:$0xff]  ;;  %v862_v23 = vld [vmem:[%s9604_s4 + $0x198] sm:$0xff]  ;;  %v863_v30 = vld [vmem:[%s9604_s4 + $0x1c0] sm:$0xff] }
  0x3a   :  { %5072 = vmatpush1.bf16.msra.mxu0 %v5071_v9  ;;  %v564_v9 = vcombine.low %v450_v4, %v451_v5  ;;  %v864_v22 = vld [vmem:[%s9604_s4 + $0x1c8] sm:$0xff]  ;;  %v866_v24 = vld [vmem:[%s9604_s4 + $0x1d8] sm:$0xff]  ;;  %v861_v31 = vld [vmem:[%s9604_s4 + $0x190] sm:$0xff] }
  0x3b   :  { %5104 = vmatpush1.bf16.msra.mxu1 %v5103_v13  ;;  %5074 = vmatprep.subr.bf16.mxu0 %v5073_v14  ;;  %v6813_v13 = vpack.c.bf16 %v856_v2, %v852_v62  ;;  %v851_v14 = vld [vmem:[%s9604_s4 + $0x100] sm:$0xff]  ;;  %v6864_v32 = vpack.c.bf16 %v866_v24, %v862_v23  ;;  %v868_v34 = vld [vmem:[%s9604_s4 + $0x208] sm:$0xff]  ;;  %v870_v37 = vld [vmem:[%s9604_s4 + $0x218] sm:$0xff] }
  0x3c   :  { %5106 = vmatprep.subr.bf16.mxu1 %v5105_v19  ;;  %v578_v18 = vrot.slane %v564_v9, %v6479_v35  ;;  %v6826_v19 = vpack.c.bf16 %v858_v8, %v854_v7  ;;  %v6846_v26 = vpack.c.bf16 %v855_v15, %v851_v14  ;;  %v872_v36 = vld [vmem:[%s9604_s4 + $0x248] sm:$0xff]  ;;  %v874_v38 = vld [vmem:[%s9604_s4 + $0x258] sm:$0xff]  ;;  %v869_v45 = vld [vmem:[%s9604_s4 + $0x210] sm:$0xff] }
  0x3d   :  { %v6890_v41 = vpack.c.bf16 %v872_v36, %v868_v34  ;;  %v6902_v46 = vpack.c.bf16 %v874_v38, %v870_v37  ;;  %v873_v47 = vld [vmem:[%s9604_s4 + $0x250] sm:$0xff]  ;;  %v876_v49 = vld [vmem:[%s9604_s4 + $0x288] sm:$0xff]  ;;  %v878_v51 = vld [vmem:[%s9604_s4 + $0x298] sm:$0xff] }
  0x3e   :  { %5076 = vmatpush1.bf16.msra.mxu0 %v5075_v27  ;;  %v579_v25 = vcombine.low %v571_v11, %v578_v18  ;;  %v6850_v27 = vpack.c.bf16 %v857_v20, %v853_v17  ;;  %v880_v50 = vld [vmem:[%s9604_s4 + $0x2c8] sm:$0xff]  ;;  %v6924_v54 = vpack.c.bf16 %v873_v47, %v869_v45  ;;  %v875_v57 = vld [vmem:[%s9604_s4 + $0x280] sm:$0xff]  ;;  %v877_v59 = vld [vmem:[%s9604_s4 + $0x290] sm:$0xff] }
  0x3f   :  { %5108 = vmatpush1.bf16.msra.mxu1 %v5107_v28  ;;  %5078 = vmatprep.subr.bf16.mxu0 %v5077_v29  ;;  %v6852_v28 = vpack.c.bf16 %v864_v22, %v860_v21  ;;  %v859_v29 = vld [vmem:[%s9604_s4 + $0x180] sm:$0xff]  ;;  %v6926_v55 = vpack.c.bf16 %v880_v50, %v876_v49  ;;  %v881_v63 = vld [vmem:[%s9604_s4 + $0x2d0] sm:$0xff]  ;;  %v884_v0 = vld [vmem:[%s9604_s4 + $0x308] sm:$0xff] }
  0x40   :  { %5110 = vmatprep.subr.bf16.mxu1 %v5109_v33  ;;  %v865_v33 = vld [vmem:[%s9604_s4 + $0x1d0] sm:$0xff]  ;;  %v6883_v39 = vpack.c.bf16 %v863_v30, %v859_v29  ;;  %v879_v58 = vld [vmem:[%s9604_s4 + $0x2c0] sm:$0xff]  ;;  %v888_v2 = vld [vmem:[%s9604_s4 + $0x348] sm:$0xff]  ;;  %v6960_v7 = vpack.c.bf16 %v881_v63, %v877_v59 }
  0x41   :  { %v6888_v40 = vpack.c.bf16 %v865_v33, %v861_v31  ;;  %v886_v4 = vld [vmem:[%s9604_s4 + $0x318] sm:$0xff]  ;;  %v6956_v6 = vpack.c.bf16 %v879_v58, %v875_v57  ;;  %v6962_v8 = vpack.c.bf16 %v888_v2, %v884_v0  ;;  %v883_v9 = vld [vmem:[%s9604_s4 + $0x300] sm:$0xff]  ;;  %v885_v14 = vld [vmem:[%s9604_s4 + $0x310] sm:$0xff] }
  0x42   :  { %5080 = vmatpush1.bf16.msra.mxu0 %v5079_v42  ;;  %v867_v42 = vld [vmem:[%s9604_s4 + $0x200] sm:$0xff]  ;;  %v890_v5 = vld [vmem:[%s9604_s4 + $0x358] sm:$0xff]  ;;  %v889_v17 = vld [vmem:[%s9604_s4 + $0x350] sm:$0xff] }
  0x43   :  { %5112 = vmatpush1.bf16.msra.mxu1 %v5111_v43  ;;  %5114 = vmatprep.subr.bf16.mxu0 %v6731_v44  ;;  %v871_v43 = vld [vmem:[%s9604_s4 + $0x240] sm:$0xff]  ;;  %v6974_v15 = vpack.c.bf16 %v890_v5, %v886_v4  ;;  %v892_v18 = vld [vmem:[%s9604_s4 + $0x388] sm:$0xff]  ;;  %v894_v21 = vld [vmem:[%s9604_s4 + $0x398] sm:$0xff]  ;;  %v6996_v24 = vpack.c.bf16 %v889_v17, %v885_v14 }
  0x44   :  { %5146 = vmatprep.subr.bf16.mxu1 %v6742_v48  ;;  %v6920_v53 = vpack.c.bf16 %v871_v43, %v867_v42  ;;  %v887_v11 = vld [vmem:[%s9604_s4 + $0x340] sm:$0xff]  ;;  %v896_v20 = vld [vmem:[%s9604_s4 + $0x3c8] sm:$0xff]  ;;  %v898_v22 = vld [vmem:[%s9604_s4 + $0x3d8] sm:$0xff] }
  0x45   :  { %647 = vmatmul.mubr.f32.vlgmr.msra.gmra.mrb[4].mxu0 %v562_v52  ;;  %v6992_v23 = vpack.c.bf16 %v887_v11, %v883_v9  ;;  %v891_v29 = vld [vmem:[%s9604_s4 + $0x380] sm:$0xff]  ;;  %v893_v31 = vld [vmem:[%s9604_s4 + $0x390] sm:$0xff]  ;;  %v7010_v33 = vpack.c.bf16 %v898_v22, %v894_v21  ;;  %v1042_v36 = vld [vmem:[%s9604_s4 + $0x428] sm:$0xff] }
  0x46   :  { %724 = vmatmul.mubr.f32.vlgmr.msra.gmra.mrb[4].mxu1 %v562_v52  ;;  %5116 = vmatpush1.bf16.msra.mxu0 %v6762_v56  ;;  %v882_v52 = vld [vmem:[%s9604_s4 + $0x2d8] sm:$0xff]  ;;  %v895_v30 = vld [vmem:[%s9604_s4 + $0x3c0] sm:$0xff]  ;;  %v897_v34 = vld [vmem:[%s9604_s4 + $0x3d0] sm:$0xff] }
  0x47   :  { %5148 = vmatpush1.bf16.msra.mxu1 %v6774_v60  ;;  %5118 = vmatprep.subr.bf16.mxu0 %v6776_v61  ;;  %v6938_v62 = vpack.c.bf16 %v882_v52, %v878_v51  ;;  %v1046_v37 = vld [vmem:[%s9604_s4 + $0x468] sm:$0xff]  ;;  %v1044_v38 = vld [vmem:[%s9604_s4 + $0x438] sm:$0xff]  ;;  %v7028_v43 = vpack.c.bf16 %v895_v30, %v891_v29  ;;  %v7032_v45 = vpack.c.bf16 %v897_v34, %v893_v31  ;;  %v1041_v49 = vld [vmem:[%s9604_s4 + $0x420] sm:$0xff] }
  0x48   :  { %5150 = vmatprep.subr.bf16.mxu1 %v6788_v1  ;;  %652 = vmatprep.mubr.f32.mxu0 %v9608_v3  ;;  %v1048_v42 = vld [vmem:[%s9604_s4 + $0x478] sm:$0xff]  ;;  %v7034_v47 = vpack.c.bf16 %v1046_v37, %v1042_v36  ;;  %v1045_v50 = vld [vmem:[%s9604_s4 + $0x460] sm:$0xff]  ;;  %v1043_v51 = vld [vmem:[%s9604_s4 + $0x430] sm:$0xff] }
  0x49   :  { %729 = vmatprep.mubr.f32.mxu1 %v9608_v3  ;;  %653 = vmatmul.mubr.f32.gmra.mrb[6].mxu0 %v579_v25  ;;  %v7046_v52 = vpack.c.bf16 %v1048_v42, %v1044_v38  ;;  %v1047_v57 = vld [vmem:[%s9604_s4 + $0x470] sm:$0xff]  ;;  %v1050_v58 = vld [vmem:[%s9604_s4 + $0x4a8] sm:$0xff]  ;;  %v1052_v63 = vld [vmem:[%s9604_s4 + $0x4b8] sm:$0xff]  ;;  %v7066_v4 = vpack.c.bf16 %v1045_v50, %v1041_v49 }
  0x4a   :  { %5120 = vmatpush1.bf16.msra.mxu0 %v6806_v10  ;;  %730 = vmatmul.mubr.f32.gmra.mrb[6].mxu1 %v579_v25  ;;  %v6998_v25 = vpack.c.bf16 %v896_v20, %v892_v18  ;;  %v1054_v59 = vld [vmem:[%s9604_s4 + $0x4e8] sm:$0xff]  ;;  %v1056_v0 = vld [vmem:[%s9604_s4 + $0x4f8] sm:$0xff]  ;;  %v7064_v2 = vld [vmem:[#allocation4] sm:$0xf]  ;;  %v7070_v5 = vpack.c.bf16 %v1047_v57, %v1043_v51 }
  0x4b   :  { %5152 = vmatpush1.bf16.msra.mxu1 %v6811_v12  ;;  %5122 = vmatprep.subr.bf16.mxu0 %v6813_v13  ;;  %v7072_v9 = vpack.c.bf16 %v1054_v59, %v1050_v58  ;;  %v1049_v11 = vld [vmem:[%s9604_s4 + $0x4a0] sm:$0xff]  ;;  %v1051_v17 = vld [vmem:[%s9604_s4 + $0x4b0] sm:$0xff]  ;;  %v7084_v18 = vpack.c.bf16 %v1056_v0, %v1052_v63  ;;  %v1058_v21 = vld [vmem:[%s9604_s4 + $0x528] sm:$0xff] }
  0x4c   :  { %5154 = vmatprep.subr.bf16.mxu1 %v6826_v19  ;;  %963 = vmatprep.mubr.f32.mxu0 %v9608_v3  ;;  %v1053_v14 = vld [vmem:[%s9604_s4 + $0x4e0] sm:$0xff]  ;;  %v1055_v20 = vld [vmem:[%s9604_s4 + $0x4f0] sm:$0xff]  ;;  %v1062_v22 = vld [vmem:[%s9604_s4 + $0x568] sm:$0xff] }
  0x4d   :  { %1034 = vmatprep.mubr.f32.mxu1 %v9608_v3  ;;  %v1060_v29 = vld [vmem:[%s9604_s4 + $0x538] sm:$0xff]  ;;  %v7104_v31 = vpack.c.bf16 %v1053_v14, %v1049_v11  ;;  %v7108_v34 = vpack.c.bf16 %v1055_v20, %v1051_v17  ;;  %v7110_v36 = vpack.c.bf16 %v1062_v22, %v1058_v21  ;;  %v1057_v37 = vld [vmem:[%s9604_s4 + $0x520] sm:$0xff]  ;;  %v1059_v42 = vld [vmem:[%s9604_s4 + $0x530] sm:$0xff] }
  0x4e   :  { %5124 = vmatpush1.bf16.msra.mxu0 %v6846_v26  ;;  %v1064_v30 = vld [vmem:[%s9604_s4 + $0x578] sm:$0xff]  ;;  %v1061_v38 = vld [vmem:[%s9604_s4 + $0x560] sm:$0xff]  ;;  %v1063_v50 = vld [vmem:[%s9604_s4 + $0x570] sm:$0xff] }
  0x4f   :  { %5156 = vmatpush1.bf16.msra.mxu1 %v6850_v27  ;;  %5126 = vmatprep.subr.bf16.mxu0 %v6852_v28  ;;  %v7122_v49 = vpack.c.bf16 %v1064_v30, %v1060_v29  ;;  %v1066_v51 = vld [vmem:[%s9604_s4 + $0x5a8] sm:$0xff]  ;;  %v1068_v58 = vld [vmem:[%s9604_s4 + $0x5b8] sm:$0xff]  ;;  %v7142_v63 = vpack.c.bf16 %v1061_v38, %v1057_v37  ;;  %v7146_v0 = vpack.c.bf16 %v1063_v50, %v1059_v42  ;;  %v1065_v14 = vld [vmem:[%s9604_s4 + $0x5a0] sm:$0xff] }
  0x50   :  { %5158 = vmatprep.subr.bf16.mxu1 %v6864_v32  ;;  %v1070_v57 = vld [vmem:[%s9604_s4 + $0x5e8] sm:$0xff]  ;;  %v1072_v59 = vld [vmem:[%s9604_s4 + $0x5f8] sm:$0xff]  ;;  %v1069_v17 = vld [vmem:[%s9604_s4 + $0x5e0] sm:$0xff] }
  0x51   :  { %v7148_v11 = vpack.c.bf16 %v1070_v57, %v1066_v51  ;;  %v1067_v20 = vld [vmem:[%s9604_s4 + $0x5b0] sm:$0xff]  ;;  %v7160_v21 = vpack.c.bf16 %v1072_v59, %v1068_v58  ;;  %v1074_v29 = vld [vmem:[%s9604_s4 + $0x628] sm:$0xff]  ;;  %v1076_v37 = vld [vmem:[%s9604_s4 + $0x638] sm:$0xff]  ;;  %v7178_v42 = vpack.c.bf16 %v1069_v17, %v1065_v14 }
  0x52   :  { %5128 = vmatpush1.bf16.msra.mxu0 %v6883_v39  ;;  %v1071_v22 = vld [vmem:[%s9604_s4 + $0x5f0] sm:$0xff]  ;;  %v1078_v30 = vld [vmem:[%s9604_s4 + $0x668] sm:$0xff]  ;;  %v1080_v38 = vld [vmem:[%s9604_s4 + $0x678] sm:$0xff] }
  0x53   :  { %5160 = vmatpush1.bf16.msra.mxu1 %v6888_v40  ;;  %5130 = vmatprep.subr.bf16.mxu0 %v6890_v41  ;;  %9682 = vst [vmem:[#allocation8_spill] sm:$0xff] %v7148_v11  ;;  %9683 = vst [vmem:[#allocation9_spill] sm:$0xff] %v7160_v21  ;;  %v7182_v50 = vpack.c.bf16 %v1071_v22, %v1067_v20  ;;  %v7184_v51 = vpack.c.bf16 %v1078_v30, %v1074_v29  ;;  %v1073_v57 = vld [vmem:[%s9604_s4 + $0x620] sm:$0xff]  ;;  %v1075_v59 = vld [vmem:[%s9604_s4 + $0x630] sm:$0xff] }
  0x54   :  { %5162 = vmatprep.subr.bf16.mxu1 %v6902_v46  ;;  %9684 = vst [vmem:[#allocation10_spill] sm:$0xff] %v7178_v42  ;;  %v1077_v58 = vld [vmem:[%s9604_s4 + $0x660] sm:$0xff]  ;;  %v7196_v14 = vpack.c.bf16 %v1080_v38, %v1076_v37  ;;  %v1079_v17 = vld [vmem:[%s9604_s4 + $0x670] sm:$0xff]  ;;  %v1082_v20 = vld [vmem:[%s9604_s4 + $0x6a8] sm:$0xff] }
  0x55   :  { %9685 = vst [vmem:[#allocation11_spill] sm:$0xff] %v7182_v50  ;;  %9686 = vst [vmem:[#allocation12_spill] sm:$0xff] %v7184_v51  ;;  %v1086_v22 = vld [vmem:[%s9604_s4 + $0x6e8] sm:$0xff]  ;;  %v1084_v29 = vld [vmem:[%s9604_s4 + $0x6b8] sm:$0xff]  ;;  %v7214_v37 = vpack.c.bf16 %v1077_v58, %v1073_v57  ;;  %v7218_v38 = vpack.c.bf16 %v1079_v17, %v1075_v59 }
  0x56   :  { %5132 = vmatpush1.bf16.msra.mxu0 %v6920_v53  ;;  %9687 = vst [vmem:[#allocation13_spill] sm:$0xff] %v7196_v14  ;;  %v1088_v30 = vld [vmem:[%s9604_s4 + $0x6f8] sm:$0xff]  ;;  %v1083_v57 = vld [vmem:[%s9604_s4 + $0x6b0] sm:$0xff]  ;;  %v1090_v17 = vld [vmem:[%s9604_s4 + $0x728] sm:$0xff] }
  0x57   :  { %5164 = vmatpush1.bf16.msra.mxu1 %v6924_v54  ;;  %5134 = vmatprep.subr.bf16.mxu0 %v6926_v55  ;;  %9688 = vst [vmem:[#allocation14_spill] sm:$0xff] %v7214_v37  ;;  %9689 = vst [vmem:[#allocation15_spill] sm:$0xff] %v7218_v38  ;;  %v7232_v58 = vpack.c.bf16 %v1088_v30, %v1084_v29  ;;  %v1087_v59 = vld [vmem:[%s9604_s4 + $0x6f0] sm:$0xff]  ;;  %v1096_v29 = vld [vmem:[%s9604_s4 + $0x778] sm:$0xff] }
  0x58   :  { %5166 = vmatprep.subr.bf16.mxu1 %v6938_v62 }
  0x59   :  { %9691 = vst [vmem:[#allocation17_spill] sm:$0xff] %v7232_v58 }
  0x5a   :  { %5136 = vmatpush1.bf16.msra.mxu0 %v6956_v6 }
  0x5b   :  { %5168 = vmatpush1.bf16.msra.mxu1 %v6960_v7  ;;  %5138 = vmatprep.subr.bf16.mxu0 %v6962_v8 }
  0x5c   :  { %5170 = vmatprep.subr.bf16.mxu1 %v6974_v15 }
  0x5e   :  { %5140 = vmatpush1.bf16.msra.mxu0 %v6992_v23 }
  0x5f   :  { %5172 = vmatpush1.bf16.msra.mxu1 %v6996_v24  ;;  %5142 = vmatprep.subr.bf16.mxu0 %v6998_v25 }
  0x60   :  { %5174 = vmatprep.subr.bf16.mxu1 %v7010_v33 }
  0x62   :  { %5144 = vmatpush1.bf16.msra.mxu0 %v7028_v43 }
  0x63   :  { %5176 = vmatpush1.bf16.msra.mxu1 %v7032_v45  ;;  %5178 = vmatprep.subr.bf16.mxu0 %v7034_v47 }
  0x64   :  { %5210 = vmatprep.subr.bf16.mxu1 %v7046_v52 }
  0x65   :  { %964 = vmatmul.mubr.f32.vlgmr.msra.gmra.mrb[8].mxu0 %v7064_v2 }
  0x66   :  { %1035 = vmatmul.mubr.f32.vlgmr.msra.gmra.mrb[8].mxu1 %v7064_v2  ;;  %5180 = vmatpush1.bf16.msra.mxu0 %v7066_v4 }
  0x67   :  { %5212 = vmatpush1.bf16.msra.mxu1 %v7070_v5  ;;  %5182 = vmatprep.subr.bf16.mxu0 %v7072_v9 }
  0x68   :  { %5214 = vmatprep.subr.bf16.mxu1 %v7084_v18  ;;  %1179 = vmatprep.mubr.f32.mxu0 %v9608_v3 }
  0x69   :  { %1250 = vmatprep.mubr.f32.mxu1 %v9608_v3  ;;  %v7220_v3 = vpack.c.bf16 %v1086_v22, %v1082_v20  ;;  %v1094_v20 = vld [vmem:[%s9604_s4 + $0x768] sm:$0xff]  ;;  %v1092_v22 = vld [vmem:[%s9604_s4 + $0x738] sm:$0xff] }
  0x6a   :  { %5184 = vmatpush1.bf16.msra.mxu0 %v7104_v31 }
  0x6b   :  { %5216 = vmatpush1.bf16.msra.mxu1 %v7108_v34  ;;  %5186 = vmatprep.subr.bf16.mxu0 %v7110_v36  ;;  %9690 = vst [vmem:[#allocation16_spill] sm:$0xff] %v7220_v3 }
  0x6c   :  { %5218 = vmatprep.subr.bf16.mxu1 %v7122_v49 }
  0x6e   :  { %5188 = vmatpush1.bf16.msra.mxu0 %v7142_v63 }
  0x6f   :  { %5220 = vmatpush1.bf16.msra.mxu1 %v7146_v0  ;;  %5190 = vmatprep.subr.bf16.mxu0 %v7148_v11  ;;  %v1085_v11 = vld [vmem:[%s9604_s4 + $0x6e0] sm:$0xff] }
  0x70   :  { %5222 = vmatprep.subr.bf16.mxu1 %v7160_v21  ;;  %v1081_v21 = vld [vmem:[%s9604_s4 + $0x6a0] sm:$0xff] }
  0x71   :  { %v7250_v30 = vpack.c.bf16 %v1085_v11, %v1081_v21  ;;  %v1091_v11 = vld [vmem:[%s9604_s4 + $0x730] sm:$0xff]  ;;  %v7268_v21 = vpack.c.bf16 %v1096_v29, %v1092_v22  ;;  %v1104_v22 = vld [vmem:[%s9604_s4 + $0x7f8] sm:$0xff] }
  0x72   :  { %5192 = vmatpush1.bf16.msra.mxu0 %v7178_v42  ;;  %v1093_v42 = vld [vmem:[%s9604_s4 + $0x760] sm:$0xff] }
  0x73   :  { %5224 = vmatpush1.bf16.msra.mxu1 %v7182_v50  ;;  %5194 = vmatprep.subr.bf16.mxu0 %v7184_v51  ;;  %v7256_v51 = vpack.c.bf16 %v1094_v20, %v1090_v17  ;;  %v1089_v50 = vld [vmem:[%s9604_s4 + $0x720] sm:$0xff]  ;;  %v1102_v17 = vld [vmem:[%s9604_s4 + $0x7e8] sm:$0xff]  ;;  %v1100_v20 = vld [vmem:[%s9604_s4 + $0x7b8] sm:$0xff] }
  0x74   :  { %5226 = vmatprep.subr.bf16.mxu1 %v7196_v14  ;;  %v7254_v14 = vpack.c.bf16 %v1087_v59, %v1083_v57  ;;  %v1095_v57 = vld [vmem:[%s9604_s4 + $0x770] sm:$0xff]  ;;  %v1098_v59 = vld [vmem:[%s9604_s4 + $0x7a8] sm:$0xff]  ;;  %v7286_v29 = vpack.c.bf16 %v1093_v42, %v1089_v50  ;;  %v7301_v42 = vpack.c.bf16 %v1104_v22, %v1100_v20 }
  0x75   :  { %v1099_v50 = vld [vmem:[%s9604_s4 + $0x7b0] sm:$0xff] }
  0x76   :  { %5196 = vmatpush1.bf16.msra.mxu0 %v7214_v37  ;;  %v1101_v37 = vld [vmem:[%s9604_s4 + $0x7e0] sm:$0xff] }
  0x77   :  { %5228 = vmatpush1.bf16.msra.mxu1 %v7218_v38  ;;  %5198 = vmatprep.subr.bf16.mxu0 %v7220_v3  ;;  %v7292_v3 = vpack.c.bf16 %v1102_v17, %v1098_v59  ;;  %v1097_v38 = vld [vmem:[%s9604_s4 + $0x7a0] sm:$0xff] }
  0x78   :  { %5230 = vmatprep.subr.bf16.mxu1 %v7232_v58  ;;  %v7290_v58 = vpack.c.bf16 %v1095_v57, %v1091_v11  ;;  %v1103_v11 = vld [vmem:[%s9604_s4 + $0x7f0] sm:$0xff]  ;;  %v1112_v57 = vrot.slane %v7064_v2, %v6479_v35  ;;  %v7312_v59 = vpack.c.bf16 %v1101_v37, %v1097_v38  ;;  %v9692_v2 = vmov 0.0  }
  0x79   :  { %v7316_v17 = vpack.c.bf16 %v1103_v11, %v1099_v50 }
  0x7a   :  { %5200 = vmatpush1.bf16.msra.mxu0 %v7250_v30  ;;  %v1113_v20 = vcombine.high %v1112_v57, %v1112_v57 }
  0x7b   :  { %5232 = vmatpush1.bf16.msra.mxu1 %v7254_v14  ;;  %5202 = vmatprep.subr.bf16.mxu0 %v7256_v51 }
  0x7c   :  { %5234 = vmatprep.subr.bf16.mxu1 %v7268_v21 }
  0x7e   :  { %5204 = vmatpush1.bf16.msra.mxu0 %v7286_v29 }
  0x7f   :  { %5236 = vmatpush1.bf16.msra.mxu1 %v7290_v58  ;;  %5206 = vmatprep.subr.bf16.mxu0 %v7292_v3 }
  0x80   :  { %5238 = vmatprep.subr.bf16.mxu1 %v7301_v42 }
  0x82   :  { %5208 = vmatpush1.bf16.msra.mxu0 %v7312_v59 }
  0x83   :  { %5240 = vmatpush1.bf16.msra.mxu1 %v7316_v17  ;;  %5242 = vmatprep.subr.bf16.mxu0 %v6731_v44  ;;  %v132_v44 = vsub.s32 0, %v6443_v16 }
  0x84   :  { %5274 = vmatprep.subr.bf16.mxu1 %v6742_v48  ;;  %v128_v48 = vld [vmem:[%s9605_s5] sm:$0xf] }
  0x85   :  { %1180 = vmatmul.mubr.f32.vlgmr.msra.gmra.mrb[10].mxu0 %v1113_v20 }
  0x86   :  { %1251 = vmatmul.mubr.f32.vlgmr.msra.gmra.mrb[10].mxu1 %v1113_v20  ;;  %5244 = vmatpush1.bf16.msra.mxu0 %v6762_v56  ;;  %v140_v56 = vsub.s32 2, %v6443_v16 }
  0x87   :  { %5276 = vmatpush1.bf16.msra.mxu1 %v6774_v60  ;;  %5246 = vmatprep.subr.bf16.mxu0 %v6776_v61  ;;  %v136_v60 = vsub.s32 1, %v6443_v16  ;;  %v144_v61 = vsub.s32 3, %v6443_v16 }
  0x88   :  { %5278 = vmatprep.subr.bf16.mxu1 %v6788_v1  ;;  %1487 = vmatprep.mubr.f32.mxu0 %v9692_v2  ;;  %v133_v1 = vrot.slane %v128_v48, %v132_v44 }
  0x89   :  { %1558 = vmatprep.mubr.f32.mxu1 %v9692_v2 }
  0x8a   :  { %5248 = vmatpush1.bf16.msra.mxu0 %v6806_v10  ;;  %v141_v10 = vrot.slane %v128_v48, %v140_v56 }
  0x8b   :  { %5280 = vmatpush1.bf16.msra.mxu1 %v6811_v12  ;;  %5250 = vmatprep.subr.bf16.mxu0 %v6813_v13  ;;  %v137_v12 = vrot.slane %v128_v48, %v136_v60  ;;  %v145_v13 = vrot.slane %v128_v48, %v144_v61 }
  0x8c   :  { %5282 = vmatprep.subr.bf16.mxu1 %v6826_v19 }
  0x8e   :  { %5252 = vmatpush1.bf16.msra.mxu0 %v6846_v26 }
  0x8f   :  { %5284 = vmatpush1.bf16.msra.mxu1 %v6850_v27  ;;  %5254 = vmatprep.subr.bf16.mxu0 %v6852_v28 }
  0x90   :  { %5286 = vmatprep.subr.bf16.mxu1 %v6864_v32 }
  0x92   :  { %5256 = vmatpush1.bf16.msra.mxu0 %v6883_v39 }
  0x93   :  { %5288 = vmatpush1.bf16.msra.mxu1 %v6888_v40  ;;  %5258 = vmatprep.subr.bf16.mxu0 %v6890_v41 }
  0x94   :  { %5290 = vmatprep.subr.bf16.mxu1 %v6902_v46 }
  0x96   :  { %5260 = vmatpush1.bf16.msra.mxu0 %v6920_v53 }
  0x97   :  { %5292 = vmatpush1.bf16.msra.mxu1 %v6924_v54  ;;  %5262 = vmatprep.subr.bf16.mxu0 %v6926_v55 }
  0x98   :  { %5294 = vmatprep.subr.bf16.mxu1 %v6938_v62 }
  0x9a   :  { %5264 = vmatpush1.bf16.msra.mxu0 %v6956_v6 }
  0x9b   :  { %5296 = vmatpush1.bf16.msra.mxu1 %v6960_v7  ;;  %5266 = vmatprep.subr.bf16.mxu0 %v6962_v8 }
  0x9c   :  { %5298 = vmatprep.subr.bf16.mxu1 %v6974_v15 }
  0x9e   :  { %5268 = vmatpush1.bf16.msra.mxu0 %v6992_v23 }
  0x9f   :  { %5300 = vmatpush1.bf16.msra.mxu1 %v6996_v24  ;;  %5270 = vmatprep.subr.bf16.mxu0 %v6998_v25  ;;  %v6238_v25 = vmov -inf  }
  0xa0   :  { %5302 = vmatprep.subr.bf16.mxu1 %v7010_v33  ;;  %55 = vst [vmem:[#allocation7] sm:$0xf] %v6238_v25 }
  0xa2   :  { %5272 = vmatpush1.bf16.msra.mxu0 %v7028_v43 }
  0xa3   :  { %5304 = vmatpush1.bf16.msra.mxu1 %v7032_v45  ;;  %5306 = vmatprep.subr.bf16.mxu0 %v7034_v47 }
  0xa4   :  { %5338 = vmatprep.subr.bf16.mxu1 %v7046_v52 }
  0xf8   :  { %v260_v19 = vpop.f32.mrb[0].mxu0 }
  0xf9   :  { %v261_v26 = vadd.f32 %v260_v19, %v133_v1  ;;  %v337_v27 = vpop.f32.mrb[0].mxu1  ;;  %v262_v28 = vpop.f32.mrb[1].mxu0 }
  0xfa   :  { %v338_v32 = vadd.f32 %v337_v27, %v141_v10  ;;  %v263_v39 = vadd.f32 %v262_v28, %v137_v12  ;;  %v339_v40 = vpop.f32.mrb[1].mxu1  ;;  %v516_v28 = vld [vmem:[%s9606_s6] sm:$0xf] }
  0xfb   :  { %v340_v41 = vadd.f32 %v339_v40, %v145_v13  ;;  %v525_v40 = vrot.slane %v516_v28, %v136_v60 }
  0xfc   :  { %v356_v46 = vcombine.low %v261_v26, %v263_v39  ;;  %v357_v53 = vcombine.high %v261_v26, %v263_v39  ;;  %v529_v39 = vrot.slane %v516_v28, %v140_v56 }
  0xfd   :  { %v358_v54 = vcombine.low %v338_v32, %v340_v41  ;;  %v359_v55 = vcombine.high %v338_v32, %v340_v41  ;;  %v521_v32 = vrot.slane %v516_v28, %v132_v44  ;;  %v533_v41 = vrot.slane %v516_v28, %v144_v61 }
  0xfe   :  { %v7365_v62 = vrot.slane %v356_v46, %v6479_v35  ;;  %v7368_v16 = vrot.slane %v357_v53, %v6479_v35 }
  0xff   :  { %v7371_v6 = vrot.slane %v358_v54, %v6479_v35  ;;  %v7374_v7 = vrot.slane %v359_v55, %v6479_v35  ;;  %v266_v33 = vpop.f32.mrb[2].mxu0 }
 0x100   :  { %v267_v43 = vadd.f32 %v266_v33, %v133_v1  ;;  %v343_v45 = vpop.f32.mrb[2].mxu1  ;;  %v268_v47 = vpop.f32.mrb[3].mxu0 }
 0x101   :  { %v388_v8 = vcombine.low %v7365_v62, %v7371_v6  ;;  %v344_v52 = vadd.f32 %v343_v45, %v141_v10  ;;  %v269_v37 = vadd.f32 %v268_v47, %v137_v12  ;;  %v345_v38 = vpop.f32.mrb[3].mxu1  ;;  %v833_v12 = vld [vmem:[#allocation5] sm:$0x3] }
 0x102   :  { %v346_v22 = vadd.f32 %v345_v38, %v145_v13 }
 0x103   :  { %v392_v50 = vcombine.low %v267_v43, %v269_v37  ;;  %v393_v11 = vcombine.high %v267_v43, %v269_v37 }
 0x104   :  { %v394_v57 = vcombine.low %v344_v52, %v346_v22  ;;  %v395_v20 = vcombine.high %v344_v52, %v346_v22 }
 0x105   :  { %v7385_v48 = vrot.slane %v392_v50, %v6479_v35  ;;  %v7388_v19 = vrot.slane %v393_v11, %v6479_v35 }
 0x106   :  { %v7391_v26 = vrot.slane %v394_v57, %v6479_v35  ;;  %v7394_v1 = vrot.slane %v395_v20, %v6479_v35 }
 0x107   :  { %9693 = vst [vmem:[#allocation18_spill] sm:$0xff] %v7385_v48  ;;  %9694 = vst [vmem:[#allocation19_spill] sm:$0xff] %v7388_v19 }
 0x108   :  { %9695 = vst [vmem:[#allocation20_spill] sm:$0xff] %v7391_v26  ;;  %9696 = vst [vmem:[#allocation21_spill] sm:$0xff] %v7394_v1 }
 0x118   :  { %v648_v46 = vpop.f32.mrb[4].mxu0 }
 0x119   :  { %v649_v53 = vadd.f32 %v648_v46, %v521_v32  ;;  %v725_v54 = vpop.f32.mrb[4].mxu1  ;;  %v650_v55 = vpop.f32.mrb[5].mxu0 }
 0x11a   :  { %v726_v25 = vadd.f32 %v725_v54, %v529_v39  ;;  %v651_v33 = vadd.f32 %v650_v55, %v525_v40  ;;  %v727_v43 = vpop.f32.mrb[5].mxu1 }
 0x11b   :  { %v728_v45 = vadd.f32 %v727_v43, %v533_v41 }
 0x11c   :  { %v744_v47 = vcombine.low %v649_v53, %v651_v33  ;;  %v745_v52 = vcombine.high %v649_v53, %v651_v33  ;;  %v654_v61 = vpop.f32.mrb[6].mxu0 }
 0x11d   :  { %v746_v37 = vcombine.low %v726_v25, %v728_v45  ;;  %v747_v38 = vcombine.high %v726_v25, %v728_v45  ;;  %v655_v50 = vadd.f32 %v654_v61, %v521_v32  ;;  %v731_v11 = vpop.f32.mrb[6].mxu1  ;;  %v656_v57 = vpop.f32.mrb[7].mxu0 }
 0x11e   :  { %v7408_v22 = vrot.slane %v744_v47, %v6479_v35  ;;  %v7411_v44 = vrot.slane %v745_v52, %v6479_v35  ;;  %v733_v54 = vpop.f32.mrb[7].mxu1  ;;  %v732_v55 = vadd.f32 %v731_v11, %v529_v39  ;;  %v657_v25 = vadd.f32 %v656_v57, %v525_v40 }
 0x11f   :  { %v7414_v56 = vrot.slane %v746_v37, %v6479_v35  ;;  %v7417_v60 = vrot.slane %v747_v38, %v6479_v35  ;;  %v734_v33 = vadd.f32 %v733_v54, %v533_v41 }
 0x120   :  { %9697 = vst [vmem:[#allocation22_spill] sm:$0xff] %v7408_v22  ;;  %9698 = vst [vmem:[#allocation23_spill] sm:$0xff] %v7411_v44  ;;  %v780_v43 = vcombine.low %v655_v50, %v657_v25  ;;  %v781_v32 = vcombine.high %v655_v50, %v657_v25  ;;  %v9711_v22 = vcombine.high %v7365_v62, %v7371_v6 }
 0x121   :  { %9699 = vst [vmem:[#allocation24_spill] sm:$0xff] %v7414_v56  ;;  %9700 = vst [vmem:[#allocation25_spill] sm:$0xff] %v7417_v60  ;;  %v782_v45 = vcombine.low %v732_v55, %v734_v33  ;;  %v783_v47 = vcombine.high %v732_v55, %v734_v33 }
 0x122   :  { %v7428_v52 = vrot.slane %v780_v43, %v6479_v35  ;;  %v7431_v37 = vrot.slane %v781_v32, %v6479_v35 }
 0x123   :  { %v7434_v38 = vrot.slane %v782_v45, %v6479_v35  ;;  %v7437_v61 = vrot.slane %v783_v47, %v6479_v35 }
 0x125   :  { %v815_v50 = vcombine.high %v7431_v37, %v7437_v61 }
 0x138   :  { %v965_v11 = vpop.f32.mrb[8].mxu0 }
 0x139   :  { %v1036_v57 = vpop.f32.mrb[8].mxu1  ;;  %v967_v54 = vpop.f32.mrb[9].mxu0 }
 0x13a   :  { %v1262_v55 = vcombine.low %v965_v11, %v967_v54  ;;  %v1038_v25 = vpop.f32.mrb[9].mxu1 }
 0x13b   :  { %v1263_v33 = vcombine.low %v1036_v57, %v1038_v25 }
 0x13c   :  { %v1270_v43 = vrot.slane %v1262_v55, %v6479_v35 }
 0x13d   :  { %v1277_v32 = vrot.slane %v1263_v33, %v6479_v35 }
 0x13f   :  { %v1278_v45 = vcombine.low %v1270_v43, %v1277_v32 }
 0x141   :  { %v1280_v47 = vadd.f32 %v1278_v45, %v388_v8 }
 0x143   :  { %v1281_v20 = vmul.f32 0.5, %v1280_v47  ;;  %v1286_v27 = vrot.slane %v1280_v47, 6 }
 0x145   :  { %6140 = vtanh.f32 %v1281_v20 }
 0x146   :  { %6142 = vtanh.f32 %v1286_v27 }
 0x14f   :  { %v6141_v28 = vpop.eup %6140 }
 0x150   :  { %v1283_v13 = vmul.f32 0.5, %v6141_v28  ;;  %v6143_v54 = vpop.eup %6142 }
 0x152   :  { %v1284_v46 = vadd.f32 0.5, %v1283_v13 }
 0x154   :  { %v1290_v11 = vrot.slane %v1284_v46, 2  ;;  %v1293_v25 = vmul.f32 %v6143_v54, %v1284_v46  ;;  %v1296_v47 = vrot.slane %v1284_v46, 4  ;;  %v834_v46 = vld [vmem:[#allocation5 + $0x2] sm:$0x3] }
 0x156   :  { %v1292_v57 = vmul.f32 %v1290_v11, %v833_v12 }
 0x158   :  { %v7452_v55 = vadd.f32 %v1293_v25, %v1292_v57  ;;  %v1181_v33 = vpop.f32.mrb[10].mxu0 }
 0x159   :  { %v1252_v43 = vpop.f32.mrb[10].mxu1  ;;  %v1183_v32 = vpop.f32.mrb[11].mxu0 }
 0x15a   :  { %v1305_v53 = vcombine.low %v1181_v33, %v1183_v32  ;;  %v1254_v10 = vpop.f32.mrb[11].mxu1  ;;  %6144 = vtanh.f32 %v7452_v55  ;;  %v9708_v33 = vld [vmem:[#allocation15_spill] sm:$0xff]  ;;  %v9710_v32 = vld [vmem:[#allocation17_spill] sm:$0xff] }
 0x15b   :  { %v1306_v8 = vcombine.low %v1252_v43, %v1254_v10  ;;  %v9709_v43 = vld [vmem:[#allocation16_spill] sm:$0xff] }
 0x15c   :  { %v1313_v27 = vrot.slane %v1305_v53, %v6479_v35 }
 0x15d   :  { %v1320_v20 = vrot.slane %v1306_v8, %v6479_v35 }
 0x15f   :  { %v1321_v13 = vcombine.low %v1313_v27, %v1320_v20 }
 0x161   :  { %v1323_v28 = vadd.f32 %v1321_v13, %v815_v50  ;;  %v9705_v50 = vld [vmem:[#allocation12_spill] sm:$0xff]  ;;  %v1881_v13 = vld [vmem:[%s9604_s4 + $0x58] sm:$0xff] }
 0x163   :  { %v1324_v45 = vmul.f32 0.5, %v1323_v28  ;;  %v1329_v54 = vrot.slane %v1323_v28, 6  ;;  %v1874_v28 = vld [vmem:[%s9604_s4] sm:$0xff] }
 0x164   :  { %v6145_v12 = vpop.eup %6144 }
 0x165   :  { %6146 = vtanh.f32 %v1324_v45  ;;  %v1298_v11 = vmul.f32 %v6145_v12, %v1296_v47  ;;  %v1878_v45 = vld [vmem:[%s9604_s4 + $0x40] sm:$0xff] }
 0x166   :  { %6148 = vtanh.f32 %v1329_v54  ;;  %v7517_v12 = vpack.c.bf16 %v1878_v45, %v1874_v28  ;;  %v1880_v54 = vld [vmem:[%s9604_s4 + $0x50] sm:$0xff]  ;;  %v1902_v28 = vld [vmem:[%s9604_s4 + $0x1c0] sm:$0xff] }
 0x167   :  { %1488 = vmatmul.mubr.f32.vlgmr.msra.gmra.mrb[12].mxu0 %v1298_v11  ;;  %1559 = vmatmul.mubr.f32.vlgmr.msra.gmra.mrb[12].mxu1 %v1298_v11 }
 0x168   :  { %5308 = vmatpush1.bf16.msra.mxu0 %v7066_v4  ;;  %5340 = vmatpush1.bf16.msra.mxu1 %v7070_v5  ;;  %v9701_v5 = vld [vmem:[#allocation8_spill] sm:$0xff] }
 0x169   :  { %5310 = vmatprep.subr.bf16.mxu0 %v7072_v9  ;;  %5342 = vmatprep.subr.bf16.mxu1 %v7084_v18  ;;  %v9702_v9 = vld [vmem:[#allocation9_spill] sm:$0xff] }
 0x16a   :  { %1693 = vmatprep.mubr.f32.mxu0 %v9692_v2  ;;  %1764 = vmatprep.mubr.f32.mxu1 %v9692_v2 }
 0x16c   :  { %5312 = vmatpush1.bf16.msra.mxu0 %v7104_v31  ;;  %5344 = vmatpush1.bf16.msra.mxu1 %v7108_v34  ;;  %v9703_v31 = vld [vmem:[#allocation10_spill] sm:$0xff]  ;;  %v9704_v34 = vld [vmem:[#allocation11_spill] sm:$0xff] }
 0x16d   :  { %5314 = vmatprep.subr.bf16.mxu0 %v7110_v36  ;;  %5346 = vmatprep.subr.bf16.mxu1 %v7122_v49  ;;  %v9706_v49 = vld [vmem:[#allocation13_spill] sm:$0xff] }
 0x16f   :  { %v6147_v4 = vpop.eup %6146 }
 0x170   :  { %v1326_v10 = vmul.f32 0.5, %v6147_v4  ;;  %5316 = vmatpush1.bf16.msra.mxu0 %v7142_v63  ;;  %5348 = vmatpush1.bf16.msra.mxu1 %v7146_v0  ;;  %v6149_v36 = vpop.eup %6148  ;;  %v9707_v0 = vld [vmem:[#allocation14_spill] sm:$0xff] }
 0x171   :  { %5318 = vmatprep.subr.bf16.mxu0 %v9701_v5  ;;  %5350 = vmatprep.subr.bf16.mxu1 %v9702_v9  ;;  %v1887_v5 = vld [vmem:[%s9604_s4 + $0xc8] sm:$0xff]  ;;  %v1885_v9 = vld [vmem:[%s9604_s4 + $0x98] sm:$0xff] }
 0x172   :  { %v1327_v18 = vadd.f32 0.5, %v1326_v10  ;;  %v1883_v10 = vld [vmem:[%s9604_s4 + $0x88] sm:$0xff] }
 0x174   :  { %v1333_v53 = vrot.slane %v1327_v18, 2  ;;  %5320 = vmatpush1.bf16.msra.mxu0 %v9703_v31  ;;  %5352 = vmatpush1.bf16.msra.mxu1 %v9704_v34  ;;  %v1336_v63 = vmul.f32 %v6149_v36, %v1327_v18  ;;  %v1339_v8 = vrot.slane %v1327_v18, 4  ;;  %v7540_v18 = vpack.c.bf16 %v1887_v5, %v1883_v10  ;;  %v1886_v31 = vld [vmem:[%s9604_s4 + $0xc0] sm:$0xff]  ;;  %v1904_v10 = vld [vmem:[%s9604_s4 + $0x1d0] sm:$0xff] }
 0x175   :  { %5322 = vmatprep.subr.bf16.mxu0 %v9705_v50  ;;  %5354 = vmatprep.subr.bf16.mxu1 %v9706_v49  ;;  %v1884_v50 = vld [vmem:[%s9604_s4 + $0x90] sm:$0xff] }
 0x176   :  { %v1335_v57 = vmul.f32 %v1333_v53, %v834_v46  ;;  %v1889_v46 = vld [vmem:[%s9604_s4 + $0xd8] sm:$0xff]  ;;  %v1882_v53 = vld [vmem:[%s9604_s4 + $0x80] sm:$0xff]  ;;  %v1888_v49 = vld [vmem:[%s9604_s4 + $0xd0] sm:$0xff] }
 0x177   :  { %v7551_v34 = vpack.c.bf16 %v1889_v46, %v1885_v9  ;;  %v7553_v36 = vpack.c.bf16 %v1886_v31, %v1882_v53  ;;  %v1907_v9 = vld [vmem:[%s9604_s4 + $0x208] sm:$0xff]  ;;  %v1909_v53 = vld [vmem:[%s9604_s4 + $0x218] sm:$0xff] }
 0x178   :  { %v7475_v25 = vadd.f32 %v1336_v63, %v1335_v57  ;;  %5324 = vmatpush1.bf16.msra.mxu0 %v9707_v0  ;;  %5356 = vmatpush1.bf16.msra.mxu1 %v9708_v33  ;;  %v7562_v57 = vpack.c.bf16 %v1888_v49, %v1884_v50  ;;  %v1891_v63 = vld [vmem:[%s9604_s4 + $0x108] sm:$0xff]  ;;  %v1893_v33 = vld [vmem:[%s9604_s4 + $0x118] sm:$0xff]  ;;  %v1906_v49 = vld [vmem:[%s9604_s4 + $0x200] sm:$0xff] }
 0x179   :  { %5326 = vmatprep.subr.bf16.mxu0 %v9709_v43  ;;  %5358 = vmatprep.subr.bf16.mxu1 %v9710_v32  ;;  %v1895_v0 = vld [vmem:[%s9604_s4 + $0x148] sm:$0xff]  ;;  %v1897_v32 = vld [vmem:[%s9604_s4 + $0x158] sm:$0xff] }
 0x17a   :  { %6150 = vtanh.f32 %v7475_v25  ;;  %v7576_v43 = vpack.c.bf16 %v1895_v0, %v1891_v63  ;;  %v1911_v46 = vld [vmem:[%s9604_s4 + $0x248] sm:$0xff]  ;;  %v1913_v50 = vld [vmem:[%s9604_s4 + $0x258] sm:$0xff]  ;;  %v1910_v63 = vld [vmem:[%s9604_s4 + $0x240] sm:$0xff] }
 0x17b   :  { %v7648_v31 = vpack.c.bf16 %v1911_v46, %v1907_v9  ;;  %v7659_v0 = vpack.c.bf16 %v1913_v50, %v1909_v53  ;;  %v1920_v9 = vld [vmem:[%s9604_s4 + $0x2d0] sm:$0xff]  ;;  %v1923_v53 = vld [vmem:[%s9604_s4 + $0x308] sm:$0xff] }
 0x17c   :  { %5328 = vmatpush1.bf16.msra.mxu0 %v7250_v30  ;;  %5360 = vmatpush1.bf16.msra.mxu1 %v7254_v14  ;;  %v1927_v50 = vld [vmem:[%s9604_s4 + $0x348] sm:$0xff] }
 0x17d   :  { %5330 = vmatprep.subr.bf16.mxu0 %v7256_v51  ;;  %5362 = vmatprep.subr.bf16.mxu1 %v7268_v21  ;;  %v1342_v51 = vld [vmem:[#allocation6] sm:$0xf]  ;;  %v1356_v21 = vld [vmem:[#allocation7] sm:$0xf] }
 0x180   :  { %5332 = vmatpush1.bf16.msra.mxu0 %v7286_v29  ;;  %5364 = vmatpush1.bf16.msra.mxu1 %v7290_v58 }
 0x181   :  { %5334 = vmatprep.subr.bf16.mxu0 %v7292_v3  ;;  %5366 = vmatprep.subr.bf16.mxu1 %v7301_v42  ;;  %v1875_v42 = vld [vmem:[%s9604_s4 + $0x8] sm:$0xff] }
 0x184   :  { %v6151_v27 = vpop.eup %6150  ;;  %5336 = vmatpush1.bf16.msra.mxu0 %v7312_v59  ;;  %5368 = vmatpush1.bf16.msra.mxu1 %v7316_v17  ;;  %v1879_v59 = vld [vmem:[%s9604_s4 + $0x48] sm:$0xff]  ;;  %v1877_v17 = vld [vmem:[%s9604_s4 + $0x18] sm:$0xff] }
 0x185   :  { %v1341_v30 = vmul.f32 %v6151_v27, %v1339_v8  ;;  %v7504_v20 = vpack.c.bf16 %v1879_v59, %v1875_v42  ;;  %v7515_v47 = vpack.c.bf16 %v1881_v13, %v1877_v17  ;;  %v1890_v8 = vld [vmem:[%s9604_s4 + $0x100] sm:$0xff]  ;;  %v1901_v42 = vld [vmem:[%s9604_s4 + $0x198] sm:$0xff] }
 0x186   :  { %v1894_v27 = vld [vmem:[%s9604_s4 + $0x140] sm:$0xff]  ;;  %v1905_v17 = vld [vmem:[%s9604_s4 + $0x1d8] sm:$0xff] }
 0x187   :  { %v1345_v14 = vcombine.low %v1298_v11, %v1341_v30  ;;  %1694 = vmatmul.mubr.f32.vlgmr.msra.gmra.mrb[14].mxu0 %v1341_v30  ;;  %1765 = vmatmul.mubr.f32.vlgmr.msra.gmra.mrb[14].mxu1 %v1341_v30  ;;  %v1876_v11 = vld [vmem:[%s9604_s4 + $0x10] sm:$0xff]  ;;  %v7587_v30 = vpack.c.bf16 %v1897_v32, %v1893_v33  ;;  %v1898_v13 = vld [vmem:[%s9604_s4 + $0x180] sm:$0xff]  ;;  %v7623_v45 = vpack.c.bf16 %v1905_v17, %v1901_v42  ;;  %v1921_v42 = vld [vmem:[%s9604_s4 + $0x2d8] sm:$0xff] }
 0x188   :  { %2002 = vmatprep.mubr.f32.mxu0 %v9692_v2  ;;  %2073 = vmatprep.mubr.f32.mxu1 %v9692_v2  ;;  %v7526_v4 = vpack.c.bf16 %v1880_v54, %v1876_v11  ;;  %v7625_v11 = vpack.c.bf16 %v1902_v28, %v1898_v13  ;;  %v1900_v54 = vld [vmem:[%s9604_s4 + $0x190] sm:$0xff]  ;;  %v7661_v33 = vpack.c.bf16 %v1910_v63, %v1906_v49  ;;  %v1914_v17 = vld [vmem:[%s9604_s4 + $0x280] sm:$0xff]  ;;  %v1925_v49 = vld [vmem:[%s9604_s4 + $0x318] sm:$0xff] }
 0x189   :  { %v1352_v3 = vrot.slane %v1345_v14, %v6479_v35  ;;  %5370 = vmatprep.subr.bf16.mxu0 %v7504_v20  ;;  %5402 = vmatprep.subr.bf16.mxu1 %v7515_v47  ;;  %v7589_v14 = vpack.c.bf16 %v1894_v27, %v1890_v8  ;;  %v7634_v5 = vpack.c.bf16 %v1904_v10, %v1900_v54  ;;  %v1908_v32 = vld [vmem:[%s9604_s4 + $0x210] sm:$0xff]  ;;  %v1918_v13 = vld [vmem:[%s9604_s4 + $0x2c0] sm:$0xff] }
 0x18a   :  { %5372 = vmatpush1.bf16.msra.mxu0 %v7517_v12  ;;  %5404 = vmatpush1.bf16.msra.mxu1 %v7526_v4  ;;  %v1912_v8 = vld [vmem:[%s9604_s4 + $0x250] sm:$0xff]  ;;  %v7697_v54 = vpack.c.bf16 %v1918_v13, %v1914_v17  ;;  %v7720_v63 = vpack.c.bf16 %v1927_v50, %v1923_v53  ;;  %v1933_v53 = vld [vmem:[%s9604_s4 + $0x398] sm:$0xff] }
 0x18b   :  { %v1354_v58 = vadd.f32 %v1352_v3, %v1342_v51  ;;  %v1357_v29 = vmax.f32 %v1356_v21, %v1352_v3  ;;  %5374 = vmatprep.subr.bf16.mxu0 %v7540_v18  ;;  %5406 = vmatprep.subr.bf16.mxu1 %v7551_v34  ;;  %v1892_v51 = vld [vmem:[%s9604_s4 + $0x110] sm:$0xff]  ;;  %v7670_v27 = vpack.c.bf16 %v1912_v8, %v1908_v32  ;;  %v1929_v32 = vld [vmem:[%s9604_s4 + $0x358] sm:$0xff]  ;;  %v1922_v8 = vld [vmem:[%s9604_s4 + $0x300] sm:$0xff] }
 0x18c   :  { %v1896_v21 = vld [vmem:[%s9604_s4 + $0x150] sm:$0xff] }
 0x18d   :  { %1355 = vst [vmem:[#allocation6] sm:$0xf] %v1354_v58  ;;  %1358 = vst [vmem:[#allocation7] sm:$0xf] %v1357_v29  ;;  %v7598_v3 = vpack.c.bf16 %v1896_v21, %v1892_v51  ;;  %v1899_v58 = vld [vmem:[%s9604_s4 + $0x188] sm:$0xff]  ;;  %v1916_v10 = vld [vmem:[%s9604_s4 + $0x290] sm:$0xff] }
 0x18e   :  { %5376 = vmatpush1.bf16.msra.mxu0 %v7553_v36  ;;  %5408 = vmatpush1.bf16.msra.mxu1 %v7562_v57  ;;  %v1903_v29 = vld [vmem:[%s9604_s4 + $0x1c8] sm:$0xff]  ;;  %v7706_v46 = vpack.c.bf16 %v1920_v9, %v1916_v10  ;;  %v1928_v17 = vld [vmem:[%s9604_s4 + $0x350] sm:$0xff] }
 0x18f   :  { %5378 = vmatprep.subr.bf16.mxu0 %v7576_v43  ;;  %5410 = vmatprep.subr.bf16.mxu1 %v7587_v30  ;;  %v7612_v59 = vpack.c.bf16 %v1903_v29, %v1899_v58  ;;  %v1915_v51 = vld [vmem:[%s9604_s4 + $0x288] sm:$0xff]  ;;  %v1917_v58 = vld [vmem:[%s9604_s4 + $0x298] sm:$0xff] }
 0x190   :  { %v1919_v21 = vld [vmem:[%s9604_s4 + $0x2c8] sm:$0xff]  ;;  %v7695_v28 = vpack.c.bf16 %v1921_v42, %v1917_v58  ;;  %v1924_v42 = vld [vmem:[%s9604_s4 + $0x310] sm:$0xff] }
 0x191   :  { %v7684_v29 = vpack.c.bf16 %v1919_v21, %v1915_v51  ;;  %v1926_v51 = vld [vmem:[%s9604_s4 + $0x340] sm:$0xff]  ;;  %v7731_v21 = vpack.c.bf16 %v1929_v32, %v1925_v49  ;;  %v7742_v13 = vpack.c.bf16 %v1928_v17, %v1924_v42  ;;  %v1931_v10 = vld [vmem:[%s9604_s4 + $0x388] sm:$0xff]  ;;  %v1937_v49 = vld [vmem:[%s9604_s4 + $0x3d8] sm:$0xff] }
 0x192   :  { %5380 = vmatpush1.bf16.msra.mxu0 %v7589_v14  ;;  %5412 = vmatpush1.bf16.msra.mxu1 %v7598_v3  ;;  %v7733_v58 = vpack.c.bf16 %v1926_v51, %v1922_v8  ;;  %v1935_v9 = vld [vmem:[%s9604_s4 + $0x3c8] sm:$0xff]  ;;  %v1930_v32 = vld [vmem:[%s9604_s4 + $0x380] sm:$0xff]  ;;  %v7767_v51 = vpack.c.bf16 %v1937_v49, %v1933_v53  ;;  %v1932_v17 = vld [vmem:[%s9604_s4 + $0x390] sm:$0xff] }
 0x193   :  { %5382 = vmatprep.subr.bf16.mxu0 %v7612_v59  ;;  %5414 = vmatprep.subr.bf16.mxu1 %v7623_v45  ;;  %v7756_v50 = vpack.c.bf16 %v1935_v9, %v1931_v10  ;;  %v1934_v8 = vld [vmem:[%s9604_s4 + $0x3c0] sm:$0xff]  ;;  %v1936_v10 = vld [vmem:[%s9604_s4 + $0x3d0] sm:$0xff]  ;;  %v2081_v53 = vld [vmem:[%s9604_s4 + $0x428] sm:$0xff] }
 0x194   :  { %v7769_v42 = vpack.c.bf16 %v1934_v8, %v1930_v32  ;;  %v7778_v9 = vpack.c.bf16 %v1936_v10, %v1932_v17  ;;  %v2085_v49 = vld [vmem:[%s9604_s4 + $0x468] sm:$0xff]  ;;  %v2083_v32 = vld [vmem:[%s9604_s4 + $0x438] sm:$0xff] }
 0x195   :  { %v7792_v8 = vpack.c.bf16 %v2085_v49, %v2081_v53  ;;  %v2087_v17 = vld [vmem:[%s9604_s4 + $0x478] sm:$0xff] }
 0x196   :  { %5384 = vmatpush1.bf16.msra.mxu0 %v7625_v11  ;;  %5416 = vmatpush1.bf16.msra.mxu1 %v7634_v5  ;;  %v7797_v10 = vpack.c.bf16 %v2087_v17, %v2083_v32 }
 0x197   :  { %5386 = vmatprep.subr.bf16.mxu0 %v7648_v31  ;;  %5418 = vmatprep.subr.bf16.mxu1 %v7659_v0 }
 0x19a   :  { %5388 = vmatpush1.bf16.msra.mxu0 %v7661_v33  ;;  %5420 = vmatpush1.bf16.msra.mxu1 %v7670_v27 }
 0x19b   :  { %5390 = vmatprep.subr.bf16.mxu0 %v7684_v29  ;;  %5422 = vmatprep.subr.bf16.mxu1 %v7695_v28 }
 0x19e   :  { %5392 = vmatpush1.bf16.msra.mxu0 %v7697_v54  ;;  %5424 = vmatpush1.bf16.msra.mxu1 %v7706_v46 }
 0x19f   :  { %5394 = vmatprep.subr.bf16.mxu0 %v7720_v63  ;;  %5426 = vmatprep.subr.bf16.mxu1 %v7731_v21 }
 0x1a2   :  { %5396 = vmatpush1.bf16.msra.mxu0 %v7733_v58  ;;  %5428 = vmatpush1.bf16.msra.mxu1 %v7742_v13 }
 0x1a3   :  { %5398 = vmatprep.subr.bf16.mxu0 %v7756_v50  ;;  %5430 = vmatprep.subr.bf16.mxu1 %v7767_v51 }
 0x1a6   :  { %5400 = vmatpush1.bf16.msra.mxu0 %v7769_v42  ;;  %5432 = vmatpush1.bf16.msra.mxu1 %v7778_v9 }
 0x1a7   :  { %5434 = vmatprep.subr.bf16.mxu0 %v7792_v8  ;;  %5466 = vmatprep.subr.bf16.mxu1 %v7797_v10 }
 0x23a   :  { %v1489_v39 = vpop.f32.mrb[12].mxu0  ;;  %v1560_v24 = vpop.f32.mrb[12].mxu1 }
 0x23b   :  { %v1491_v40 = vpop.f32.mrb[13].mxu0  ;;  %v1562_v23 = vpop.f32.mrb[13].mxu1 }
 0x23c   :  { %v1777_v41 = vcombine.low %v1489_v39, %v1491_v40  ;;  %v1778_v15 = vcombine.low %v1560_v24, %v1562_v23 }
 0x23e   :  { %v1785_v56 = vrot.slane %v1777_v41, %v6479_v35  ;;  %v1792_v53 = vrot.slane %v1778_v15, %v6479_v35 }
 0x240   :  { %v1793_v49 = vcombine.low %v1785_v56, %v1792_v53  ;;  %v2082_v53 = vld [vmem:[%s9604_s4 + $0x430] sm:$0xff] }
 0x242   :  { %v1795_v32 = vadd.f32 %v1793_v49, %v9711_v22  ;;  %v2086_v49 = vld [vmem:[%s9604_s4 + $0x470] sm:$0xff] }
 0x244   :  { %v1796_v17 = vmul.f32 0.5, %v1795_v32  ;;  %v1801_v1 = vrot.slane %v1795_v32, 6  ;;  %v2089_v32 = vld [vmem:[%s9604_s4 + $0x4a8] sm:$0xff] }
 0x246   :  { %6152 = vtanh.f32 %v1796_v17  ;;  %v2093_v17 = vld [vmem:[%s9604_s4 + $0x4e8] sm:$0xff] }
 0x247   :  { %6154 = vtanh.f32 %v1801_v1 }
 0x250   :  { %v6153_v19 = vpop.eup %6152 }
 0x251   :  { %v1798_v60 = vmul.f32 0.5, %v6153_v19  ;;  %v6155_v48 = vpop.eup %6154 }
 0x253   :  { %v1799_v44 = vadd.f32 0.5, %v1798_v60  ;;  %v9712_v60 = vcombine.low %v7431_v37, %v7437_v61  ;;  %v2091_v37 = vld [vmem:[%s9604_s4 + $0x4b8] sm:$0xff] }
 0x254   :  { %v2095_v61 = vld [vmem:[%s9604_s4 + $0x4f8] sm:$0xff] }
 0x255   :  { %v1805_v26 = vrot.slane %v1799_v44, 2  ;;  %v1808_v24 = vmul.f32 %v6155_v48, %v1799_v44  ;;  %v2084_v48 = vld [vmem:[%s9604_s4 + $0x460] sm:$0xff] }
 0x257   :  { %v1807_v23 = vmul.f32 %v1805_v26, %v7452_v55  ;;  %v2080_v26 = vld [vmem:[%s9604_s4 + $0x420] sm:$0xff] }
 0x259   :  { %v7807_v39 = vadd.f32 %v1808_v24, %v1807_v23  ;;  %v1811_v24 = vrot.slane %v1799_v44, 4  ;;  %v2090_v44 = vld [vmem:[%s9604_s4 + $0x4b0] sm:$0xff] }
 0x25a   :  { %v1695_v15 = vpop.f32.mrb[14].mxu0  ;;  %v1766_v56 = vpop.f32.mrb[14].mxu1 }
 0x25b   :  { %v1697_v40 = vpop.f32.mrb[15].mxu0  ;;  %v1768_v41 = vpop.f32.mrb[15].mxu1  ;;  %6156 = vtanh.f32 %v7807_v39 }
 0x25c   :  { %v1820_v62 = vcombine.low %v1695_v15, %v1697_v40  ;;  %v1821_v6 = vcombine.low %v1766_v56, %v1768_v41  ;;  %v7839_v56 = vpack.c.bf16 %v2084_v48, %v2080_v26  ;;  %v7841_v40 = vpack.c.bf16 %v2086_v49, %v2082_v53  ;;  %v2088_v41 = vld [vmem:[%s9604_s4 + $0x4a0] sm:$0xff]  ;;  %v2097_v26 = vld [vmem:[%s9604_s4 + $0x528] sm:$0xff]  ;;  %v2103_v53 = vld [vmem:[%s9604_s4 + $0x578] sm:$0xff] }
 0x25d   :  { %v2101_v48 = vld [vmem:[%s9604_s4 + $0x568] sm:$0xff] }
 0x25e   :  { %v1828_v1 = vrot.slane %v1820_v62, %v6479_v35  ;;  %v1835_v19 = vrot.slane %v1821_v6, %v6479_v35  ;;  %v2092_v62 = vld [vmem:[%s9604_s4 + $0x4e0] sm:$0xff] }
 0x260   :  { %v1836_v22 = vcombine.low %v1828_v1, %v1835_v19  ;;  %v7851_v1 = vpack.c.bf16 %v2093_v17, %v2089_v32  ;;  %v7853_v19 = vpack.c.bf16 %v2095_v61, %v2091_v37  ;;  %v7877_v32 = vpack.c.bf16 %v2092_v62, %v2088_v41  ;;  %v2096_v37 = vld [vmem:[%s9604_s4 + $0x520] sm:$0xff]  ;;  %v2105_v41 = vld [vmem:[%s9604_s4 + $0x5a8] sm:$0xff] }
 0x261   :  { %v7889_v61 = vpack.c.bf16 %v2101_v48, %v2097_v26  ;;  %v2109_v62 = vld [vmem:[%s9604_s4 + $0x5e8] sm:$0xff] }
 0x262   :  { %v1838_v55 = vadd.f32 %v1836_v22, %v9712_v60  ;;  %9713 = vst [vmem:[#allocation8_spill] sm:$0xff] %v7851_v1  ;;  %9714 = vst [vmem:[#allocation9_spill] sm:$0xff] %v7853_v19  ;;  %v2094_v22 = vld [vmem:[%s9604_s4 + $0x4f0] sm:$0xff]  ;;  %v2099_v60 = vld [vmem:[%s9604_s4 + $0x538] sm:$0xff] }
 0x263   :  { %9715 = vst [vmem:[#allocation10_spill] sm:$0xff] %v7877_v32  ;;  %v7879_v17 = vpack.c.bf16 %v2094_v22, %v2090_v44  ;;  %9717 = vst [vmem:[#allocation12_spill] sm:$0xff] %v7889_v61  ;;  %v2107_v44 = vld [vmem:[%s9604_s4 + $0x5b8] sm:$0xff] }
 0x264   :  { %v1839_v23 = vmul.f32 0.5, %v1838_v55  ;;  %v1844_v49 = vrot.slane %v1838_v55, 6  ;;  %v2100_v55 = vld [vmem:[%s9604_s4 + $0x560] sm:$0xff]  ;;  %v2111_v22 = vld [vmem:[%s9604_s4 + $0x5f8] sm:$0xff] }
 0x265   :  { %v6157_v15 = vpop.eup %6156  ;;  %9716 = vst [vmem:[#allocation11_spill] sm:$0xff] %v7879_v17  ;;  %v7915_v26 = vpack.c.bf16 %v2100_v55, %v2096_v37  ;;  %v2106_v37 = vld [vmem:[%s9604_s4 + $0x5b0] sm:$0xff] }
 0x266   :  { %6158 = vtanh.f32 %v1839_v23  ;;  %v7849_v6 = vmul.f32 %v6157_v15, %v1811_v24  ;;  %v7891_v23 = vpack.c.bf16 %v2103_v53, %v2099_v60  ;;  %v2098_v24 = vld [vmem:[%s9604_s4 + $0x530] sm:$0xff]  ;;  %v2104_v60 = vld [vmem:[%s9604_s4 + $0x5a0] sm:$0xff] }
 0x267   :  { %v2102_v15 = vld [vmem:[%s9604_s4 + $0x570] sm:$0xff]  ;;  %6160 = vtanh.f32 %v1844_v49  ;;  %9719 = vst [vmem:[#allocation14_spill] sm:$0xff] %v7915_v26  ;;  %v2108_v53 = vld [vmem:[%s9604_s4 + $0x5e0] sm:$0xff]  ;;  %v7927_v49 = vpack.c.bf16 %v2109_v62, %v2105_v41  ;;  %v2115_v41 = vld [vmem:[%s9604_s4 + $0x638] sm:$0xff] }
 0x268   :  { %2003 = vmatmul.mubr.f32.vlgmr.msra.gmra.mrb[16].mxu0 %v7849_v6  ;;  %2074 = vmatmul.mubr.f32.vlgmr.msra.gmra.mrb[16].mxu1 %v7849_v6  ;;  %9718 = vst [vmem:[#allocation13_spill] sm:$0xff] %v7891_v23  ;;  %v7917_v48 = vpack.c.bf16 %v2102_v15, %v2098_v24  ;;  %v2110_v55 = vld [vmem:[%s9604_s4 + $0x5f0] sm:$0xff]  ;;  %v2113_v24 = vld [vmem:[%s9604_s4 + $0x628] sm:$0xff]  ;;  %v2119_v62 = vld [vmem:[%s9604_s4 + $0x678] sm:$0xff] }
 0x269   :  { %5436 = vmatpush1.bf16.msra.mxu0 %v7839_v56  ;;  %5468 = vmatpush1.bf16.msra.mxu1 %v7841_v40  ;;  %9721 = vst [vmem:[#allocation16_spill] sm:$0xff] %v7927_v49  ;;  %v2117_v15 = vld [vmem:[%s9604_s4 + $0x668] sm:$0xff] }
 0x26a   :  { %5438 = vmatprep.subr.bf16.mxu0 %v7851_v1  ;;  %5470 = vmatprep.subr.bf16.mxu1 %v7853_v19  ;;  %9720 = vst [vmem:[#allocation15_spill] sm:$0xff] %v7917_v48  ;;  %v2116_v19 = vld [vmem:[%s9604_s4 + $0x660] sm:$0xff] }
 0x26b   :  { %2208 = vmatprep.mubr.f32.mxu0 %v9692_v2  ;;  %2279 = vmatprep.mubr.f32.mxu1 %v9692_v2 }
 0x26d   :  { %5440 = vmatpush1.bf16.msra.mxu0 %v7877_v32  ;;  %5472 = vmatpush1.bf16.msra.mxu1 %v7879_v17  ;;  %v7929_v32 = vpack.c.bf16 %v2111_v22, %v2107_v44  ;;  %v2112_v17 = vld [vmem:[%s9604_s4 + $0x620] sm:$0xff] }
 0x26e   :  { %5442 = vmatprep.subr.bf16.mxu0 %v7889_v61  ;;  %5474 = vmatprep.subr.bf16.mxu1 %v7891_v23  ;;  %v7951_v23 = vpack.c.bf16 %v2108_v53, %v2104_v60  ;;  %v7953_v61 = vpack.c.bf16 %v2110_v55, %v2106_v37  ;;  %v2114_v60 = vld [vmem:[%s9604_s4 + $0x630] sm:$0xff]  ;;  %v2121_v37 = vld [vmem:[%s9604_s4 + $0x6a8] sm:$0xff] }
 0x26f   :  { %9722 = vst [vmem:[#allocation17_spill] sm:$0xff] %v7929_v32  ;;  %v2118_v53 = vld [vmem:[%s9604_s4 + $0x670] sm:$0xff] }
 0x270   :  { %v6159_v44 = vpop.eup %6158  ;;  %9723 = vst [vmem:[#allocation26_spill] sm:$0xff] %v7951_v23  ;;  %9724 = vst [vmem:[#allocation27_spill] sm:$0xff] %v7953_v61 }
 0x271   :  { %v1841_v22 = vmul.f32 0.5, %v6159_v44  ;;  %5444 = vmatpush1.bf16.msra.mxu0 %v7915_v26  ;;  %5476 = vmatpush1.bf16.msra.mxu1 %v7917_v48  ;;  %v7963_v44 = vpack.c.bf16 %v2117_v15, %v2113_v24  ;;  %v7965_v26 = vpack.c.bf16 %v2119_v62, %v2115_v41  ;;  %v2125_v24 = vld [vmem:[%s9604_s4 + $0x6e8] sm:$0xff]  ;;  %v2123_v15 = vld [vmem:[%s9604_s4 + $0x6b8] sm:$0xff]  ;;  %v2124_v48 = vld [vmem:[%s9604_s4 + $0x6e0] sm:$0xff]  ;;  %v6161_v1 = vpop.eup %6160 }
 0x272   :  { %5446 = vmatprep.subr.bf16.mxu0 %v7927_v49  ;;  %5478 = vmatprep.subr.bf16.mxu1 %v7929_v32  ;;  %v2127_v41 = vld [vmem:[%s9604_s4 + $0x6f8] sm:$0xff]  ;;  %v7992_v32 = vpack.c.bf16 %v2118_v53, %v2114_v60  ;;  %v2120_v49 = vld [vmem:[%s9604_s4 + $0x6a0] sm:$0xff]  ;;  %v2129_v60 = vld [vmem:[%s9604_s4 + $0x728] sm:$0xff] }
 0x273   :  { %9725 = vst [vmem:[#allocation28_spill] sm:$0xff] %v7963_v44  ;;  %9726 = vst [vmem:[#allocation29_spill] sm:$0xff] %v7965_v26  ;;  %v7976_v55 = vadd.f32 0.5, %v1841_v22  ;;  %v7990_v22 = vpack.c.bf16 %v2116_v19, %v2112_v17  ;;  %v2122_v19 = vld [vmem:[%s9604_s4 + $0x6b0] sm:$0xff] }
 0x274   :  { %9727 = vst [vmem:[#allocation30_spill] sm:$0xff] %v7992_v32  ;;  %v2126_v17 = vld [vmem:[%s9604_s4 + $0x6f0] sm:$0xff] }
 0x275   :  { %v1848_v62 = vrot.slane %v7976_v55, 2  ;;  %5448 = vmatpush1.bf16.msra.mxu0 %v7951_v23  ;;  %5480 = vmatpush1.bf16.msra.mxu1 %v7953_v61  ;;  %v8002_v23 = vpack.c.bf16 %v2125_v24, %v2121_v37  ;;  %v8004_v61 = vpack.c.bf16 %v2127_v41, %v2123_v15  ;;  %v2133_v37 = vld [vmem:[%s9604_s4 + $0x768] sm:$0xff]  ;;  %v2131_v24 = vld [vmem:[%s9604_s4 + $0x738] sm:$0xff] }
 0x276   :  { %5450 = vmatprep.subr.bf16.mxu0 %v7963_v44  ;;  %5482 = vmatprep.subr.bf16.mxu1 %v7965_v26  ;;  %v1851_v26 = vmul.f32 %v6161_v1, %v7976_v55  ;;  %v2135_v15 = vld [vmem:[%s9604_s4 + $0x778] sm:$0xff]  ;;  %v8032_v1 = vpack.c.bf16 %v2126_v17, %v2122_v19  ;;  %v2132_v44 = vld [vmem:[%s9604_s4 + $0x760] sm:$0xff]  ;;  %v2137_v19 = vld [vmem:[%s9604_s4 + $0x7a8] sm:$0xff] }
 0x277   :  { %9728 = vst [vmem:[#allocation31_spill] sm:$0xff] %v8002_v23  ;;  %9729 = vst [vmem:[#allocation32_spill] sm:$0xff] %v8004_v61  ;;  %v1850_v53 = vmul.f32 %v1848_v62, %v7475_v25  ;;  %v8030_v25 = vpack.c.bf16 %v2124_v48, %v2120_v49  ;;  %v2128_v62 = vld [vmem:[%s9604_s4 + $0x720] sm:$0xff]  ;;  %v2130_v48 = vld [vmem:[%s9604_s4 + $0x730] sm:$0xff] }
 0x278   :  { %9730 = vst [vmem:[#allocation33_spill] sm:$0xff] %v8032_v1  ;;  %v2134_v49 = vld [vmem:[%s9604_s4 + $0x770] sm:$0xff]  ;;  %v2141_v17 = vld [vmem:[%s9604_s4 + $0x7e8] sm:$0xff] }
 0x279   :  { %v8026_v41 = vadd.f32 %v1851_v26, %v1850_v53  ;;  %5452 = vmatpush1.bf16.msra.mxu0 %v7990_v22  ;;  %5484 = vmatpush1.bf16.msra.mxu1 %v7992_v32  ;;  %v8042_v26 = vpack.c.bf16 %v2133_v37, %v2129_v60  ;;  %v8044_v53 = vpack.c.bf16 %v2135_v15, %v2131_v24  ;;  %v2139_v60 = vld [vmem:[%s9604_s4 + $0x7b8] sm:$0xff] }
 0x27a   :  { %5454 = vmatprep.subr.bf16.mxu0 %v8002_v23  ;;  %5486 = vmatprep.subr.bf16.mxu1 %v8004_v61  ;;  %v2143_v37 = vld [vmem:[%s9604_s4 + $0x7f8] sm:$0xff]  ;;  %v8067_v24 = vpack.c.bf16 %v2132_v44, %v2128_v62  ;;  %v8069_v15 = vpack.c.bf16 %v2134_v49, %v2130_v48  ;;  %v2136_v61 = vld [vmem:[%s9604_s4 + $0x7a0] sm:$0xff]  ;;  %v8076_v23 = vpack.c.bf16 %v2141_v17, %v2137_v19  ;;  %v2138_v44 = vld [vmem:[%s9604_s4 + $0x7b0] sm:$0xff]  ;;  %v1854_v19 = vrot.slane %v7976_v55, 4 }
 0x27b   :  { %6162 = vtanh.f32 %v8026_v41  ;;  %v8078_v32 = vpack.c.bf16 %v2143_v37, %v2139_v60  ;;  %v2142_v62 = vld [vmem:[%s9604_s4 + $0x7f0] sm:$0xff]  ;;  %v1871_v37 = vld [vmem:[#allocation7] sm:$0xf] }
 0x27c   :  { %v8093_v49 = vpack.c.bf16 %v2142_v62, %v2138_v44 }
 0x27d   :  { %5456 = vmatpush1.bf16.msra.mxu0 %v8030_v25  ;;  %5488 = vmatpush1.bf16.msra.mxu1 %v8032_v1  ;;  %v2140_v1 = vld [vmem:[%s9604_s4 + $0x7e0] sm:$0xff] }
 0x27e   :  { %5458 = vmatprep.subr.bf16.mxu0 %v8042_v26  ;;  %5490 = vmatprep.subr.bf16.mxu1 %v8044_v53  ;;  %v8091_v48 = vpack.c.bf16 %v2140_v1, %v2136_v61  ;;  %v1857_v1 = vld [vmem:[#allocation6] sm:$0xf] }
 0x281   :  { %5460 = vmatpush1.bf16.msra.mxu0 %v8067_v24  ;;  %5492 = vmatpush1.bf16.msra.mxu1 %v8069_v15 }
 0x282   :  { %5462 = vmatprep.subr.bf16.mxu0 %v8076_v23  ;;  %5494 = vmatprep.subr.bf16.mxu1 %v8078_v32 }
 0x285   :  { %v6163_v17 = vpop.eup %6162  ;;  %5464 = vmatpush1.bf16.msra.mxu0 %v8091_v48  ;;  %5496 = vmatpush1.bf16.msra.mxu1 %v8093_v49 }
 0x286   :  { %v1856_v60 = vmul.f32 %v6163_v17, %v1854_v19  ;;  %5498 = vmatprep.subr.bf16.mxu0 %v7504_v20  ;;  %5530 = vmatprep.subr.bf16.mxu1 %v7515_v47  ;;  %v9733_v17 = vld [vmem:[#allocation8_spill] sm:$0xff] }
 0x288   :  { %v1860_v61 = vcombine.low %v7849_v6, %v1856_v60  ;;  %2209 = vmatmul.mubr.f32.vlgmr.msra.gmra.mrb[18].mxu0 %v1856_v60  ;;  %2280 = vmatmul.mubr.f32.vlgmr.msra.gmra.mrb[18].mxu1 %v1856_v60  ;;  %v9734_v60 = vld [vmem:[#allocation9_spill] sm:$0xff] }
 0x289   :  { %5500 = vmatpush1.bf16.msra.mxu0 %v7517_v12  ;;  %5532 = vmatpush1.bf16.msra.mxu1 %v7526_v4 }
 0x28a   :  { %v1867_v55 = vrot.slane %v1860_v61, %v6479_v35  ;;  %5502 = vmatprep.subr.bf16.mxu0 %v7540_v18  ;;  %5534 = vmatprep.subr.bf16.mxu1 %v7551_v34  ;;  %v9735_v61 = vld [vmem:[#allocation10_spill] sm:$0xff] }
 0x28b   :  { %2517 = vmatprep.mubr.f32.mxu0 %v9692_v2  ;;  %2588 = vmatprep.mubr.f32.mxu1 %v9692_v2 }
 0x28c   :  { %v1869_v20 = vadd.f32 %v1867_v55, %v1857_v1  ;;  %v1872_v47 = vmax.f32 %v1871_v37, %v1867_v55  ;;  %v9736_v55 = vld [vmem:[#allocation11_spill] sm:$0xff]  ;;  %v9737_v1 = vld [vmem:[#allocation12_spill] sm:$0xff]  ;;  %v9738_v37 = vld [vmem:[#allocation13_spill] sm:$0xff] }
 0x28d   :  { %5504 = vmatpush1.bf16.msra.mxu0 %v7553_v36  ;;  %5536 = vmatpush1.bf16.msra.mxu1 %v7562_v57 }
 0x28e   :  { %1870 = vst [vmem:[#allocation6] sm:$0xf] %v1869_v20  ;;  %1873 = vst [vmem:[#allocation7] sm:$0xf] %v1872_v47  ;;  %5506 = vmatprep.subr.bf16.mxu0 %v7576_v43  ;;  %5538 = vmatprep.subr.bf16.mxu1 %v7587_v30  ;;  %v9740_v47 = vld [vmem:[#allocation15_spill] sm:$0xff] }
 0x291   :  { %5508 = vmatpush1.bf16.msra.mxu0 %v7589_v14  ;;  %5540 = vmatpush1.bf16.msra.mxu1 %v7598_v3  ;;  %v9731_v3 = vcombine.low %v7368_v16, %v7374_v7 }
 0x292   :  { %5510 = vmatprep.subr.bf16.mxu0 %v7612_v59  ;;  %5542 = vmatprep.subr.bf16.mxu1 %v7623_v45 }
 0x295   :  { %5512 = vmatpush1.bf16.msra.mxu0 %v7625_v11  ;;  %5544 = vmatpush1.bf16.msra.mxu1 %v7634_v5 }
 0x296   :  { %5514 = vmatprep.subr.bf16.mxu0 %v7648_v31  ;;  %5546 = vmatprep.subr.bf16.mxu1 %v7659_v0 }
 0x299   :  { %5516 = vmatpush1.bf16.msra.mxu0 %v7661_v33  ;;  %5548 = vmatpush1.bf16.msra.mxu1 %v7670_v27 }
 0x29a   :  { %5518 = vmatprep.subr.bf16.mxu0 %v7684_v29  ;;  %5550 = vmatprep.subr.bf16.mxu1 %v7695_v28 }
 0x29d   :  { %5520 = vmatpush1.bf16.msra.mxu0 %v7697_v54  ;;  %5552 = vmatpush1.bf16.msra.mxu1 %v7706_v46 }
 0x29e   :  { %5522 = vmatprep.subr.bf16.mxu0 %v7720_v63  ;;  %5554 = vmatprep.subr.bf16.mxu1 %v7731_v21 }
 0x2a1   :  { %5524 = vmatpush1.bf16.msra.mxu0 %v7733_v58  ;;  %5556 = vmatpush1.bf16.msra.mxu1 %v7742_v13 }
 0x2a2   :  { %5526 = vmatprep.subr.bf16.mxu0 %v7756_v50  ;;  %5558 = vmatprep.subr.bf16.mxu1 %v7767_v51 }
 0x2a5   :  { %5528 = vmatpush1.bf16.msra.mxu0 %v7769_v42  ;;  %5560 = vmatpush1.bf16.msra.mxu1 %v7778_v9 }
 0x2a6   :  { %5562 = vmatprep.subr.bf16.mxu0 %v7792_v8  ;;  %5594 = vmatprep.subr.bf16.mxu1 %v7797_v10  ;;  %v9732_v8 = vcombine.high %v7428_v52, %v7434_v38 }
 0x33b   :  { %v2004_v12 = vpop.f32.mrb[16].mxu0  ;;  %v2075_v4 = vpop.f32.mrb[16].mxu1 }
 0x33c   :  { %v2006_v18 = vpop.f32.mrb[17].mxu0  ;;  %v2077_v34 = vpop.f32.mrb[17].mxu1 }
 0x33d   :  { %v2292_v36 = vcombine.low %v2004_v12, %v2006_v18  ;;  %v2293_v57 = vcombine.low %v2075_v4, %v2077_v34  ;;  %v9741_v12 = vld [vmem:[#allocation16_spill] sm:$0xff]  ;;  %v9742_v4 = vld [vmem:[#allocation17_spill] sm:$0xff] }
 0x33f   :  { %v2300_v43 = vrot.slane %v2292_v36, %v6479_v35  ;;  %v2307_v30 = vrot.slane %v2293_v57, %v6479_v35  ;;  %v9743_v36 = vld [vmem:[#allocation26_spill] sm:$0xff]  ;;  %v9744_v57 = vld [vmem:[#allocation27_spill] sm:$0xff] }
 0x341   :  { %v2308_v14 = vcombine.low %v2300_v43, %v2307_v30  ;;  %v9745_v30 = vld [vmem:[#allocation28_spill] sm:$0xff] }
 0x343   :  { %v2310_v59 = vadd.f32 %v2308_v14, %v9731_v3  ;;  %v9746_v14 = vld [vmem:[#allocation29_spill] sm:$0xff] }
 0x345   :  { %v2311_v45 = vmul.f32 0.5, %v2310_v59  ;;  %v2316_v11 = vrot.slane %v2310_v59, 6 }
 0x347   :  { %6164 = vtanh.f32 %v2311_v45 }
 0x348   :  { %6166 = vtanh.f32 %v2316_v11  ;;  %v9747_v11 = vld [vmem:[#allocation30_spill] sm:$0xff] }
 0x351   :  { %v6165_v5 = vpop.eup %6164 }
 0x352   :  { %v2313_v31 = vmul.f32 0.5, %v6165_v5  ;;  %v6167_v27 = vpop.eup %6166  ;;  %v9748_v5 = vld [vmem:[#allocation31_spill] sm:$0xff] }
 0x354   :  { %v2314_v0 = vadd.f32 0.5, %v2313_v31  ;;  %v9749_v31 = vld [vmem:[#allocation32_spill] sm:$0xff] }
 0x356   :  { %v2320_v33 = vrot.slane %v2314_v0, 2  ;;  %v2323_v28 = vmul.f32 %v6167_v27, %v2314_v0  ;;  %v2326_v6 = vrot.slane %v2314_v0, 4  ;;  %v9750_v0 = vld [vmem:[#allocation33_spill] sm:$0xff] }
 0x358   :  { %v2322_v29 = vmul.f32 %v2320_v33, %v7807_v39 }
 0x35a   :  { %v8144_v54 = vadd.f32 %v2323_v28, %v2322_v29  ;;  %v2911_v29 = vld [vmem:[%s9604_s4 + $0x58] sm:$0xff]  ;;  %v2904_v28 = vld [vmem:[%s9604_s4] sm:$0xff] }
 0x35b   :  { %v2210_v46 = vpop.f32.mrb[18].mxu0  ;;  %v2281_v63 = vpop.f32.mrb[18].mxu1 }
 0x35c   :  { %v2212_v21 = vpop.f32.mrb[19].mxu0  ;;  %v2283_v58 = vpop.f32.mrb[19].mxu1  ;;  %6168 = vtanh.f32 %v8144_v54 }
 0x35d   :  { %v2335_v13 = vcombine.low %v2210_v46, %v2212_v21  ;;  %v2336_v50 = vcombine.low %v2281_v63, %v2283_v58  ;;  %v2908_v46 = vld [vmem:[%s9604_s4 + $0x40] sm:$0xff]  ;;  %v2906_v58 = vld [vmem:[%s9604_s4 + $0x10] sm:$0xff] }
 0x35e   :  { %v8213_v21 = vpack.c.bf16 %v2908_v46, %v2904_v28  ;;  %v2945_v28 = vld [vmem:[%s9604_s4 + $0x288] sm:$0xff] }
 0x35f   :  { %v2343_v51 = vrot.slane %v2335_v13, %v6479_v35  ;;  %v2350_v42 = vrot.slane %v2336_v50, %v6479_v35  ;;  %v2910_v13 = vld [vmem:[%s9604_s4 + $0x50] sm:$0xff]  ;;  %v2949_v46 = vld [vmem:[%s9604_s4 + $0x2c8] sm:$0xff] }
 0x360   :  { %v8222_v50 = vpack.c.bf16 %v2910_v13, %v2906_v58  ;;  %v2947_v58 = vld [vmem:[%s9604_s4 + $0x298] sm:$0xff]  ;;  %v8380_v13 = vpack.c.bf16 %v2949_v46, %v2945_v28  ;;  %v3111_v28 = vld [vmem:[%s9604_s4 + $0x428] sm:$0xff] }
 0x361   :  { %v2351_v9 = vcombine.low %v2343_v51, %v2350_v42  ;;  %v2913_v51 = vld [vmem:[%s9604_s4 + $0x88] sm:$0xff] }
 0x362   :  { %v2917_v42 = vld [vmem:[%s9604_s4 + $0xc8] sm:$0xff] }
 0x363   :  { %v2353_v10 = vadd.f32 %v2351_v9, %v9732_v8  ;;  %v2915_v9 = vld [vmem:[%s9604_s4 + $0x98] sm:$0xff]  ;;  %v8236_v8 = vpack.c.bf16 %v2917_v42, %v2913_v51  ;;  %v2944_v42 = vld [vmem:[%s9604_s4 + $0x280] sm:$0xff]  ;;  %v3115_v46 = vld [vmem:[%s9604_s4 + $0x468] sm:$0xff] }
 0x364   :  { %v2951_v51 = vld [vmem:[%s9604_s4 + $0x2d8] sm:$0xff] }
 0x365   :  { %v2354_v39 = vmul.f32 0.5, %v2353_v10  ;;  %v2359_v19 = vrot.slane %v2353_v10, 6  ;;  %v2919_v10 = vld [vmem:[%s9604_s4 + $0xd8] sm:$0xff] }
 0x366   :  { %v6169_v44 = vpop.eup %6168 }
 0x367   :  { %6170 = vtanh.f32 %v2354_v39  ;;  %v2328_v62 = vmul.f32 %v6169_v44, %v2326_v6  ;;  %v2912_v39 = vld [vmem:[%s9604_s4 + $0x80] sm:$0xff]  ;;  %v8247_v44 = vpack.c.bf16 %v2919_v10, %v2915_v9  ;;  %v8391_v10 = vpack.c.bf16 %v2951_v51, %v2947_v58  ;;  %v3113_v58 = vld [vmem:[%s9604_s4 + $0x438] sm:$0xff] }
 0x368   :  { %6172 = vtanh.f32 %v2359_v19  ;;  %v2916_v6 = vld [vmem:[%s9604_s4 + $0xc0] sm:$0xff]  ;;  %v2914_v19 = vld [vmem:[%s9604_s4 + $0x90] sm:$0xff]  ;;  %v8488_v51 = vpack.c.bf16 %v3115_v46, %v3111_v28 }
 0x369   :  { %2518 = vmatmul.mubr.f32.vlgmr.msra.gmra.mrb[20].mxu0 %v2328_v62  ;;  %2589 = vmatmul.mubr.f32.vlgmr.msra.gmra.mrb[20].mxu1 %v2328_v62  ;;  %v2948_v9 = vld [vmem:[%s9604_s4 + $0x2c0] sm:$0xff] }
 0x36a   :  { %5564 = vmatpush1.bf16.msra.mxu0 %v7839_v56  ;;  %5596 = vmatpush1.bf16.msra.mxu1 %v7841_v40  ;;  %v9739_v40 = vld [vmem:[#allocation14_spill] sm:$0xff] }
 0x36b   :  { %5566 = vmatprep.subr.bf16.mxu0 %v9733_v17  ;;  %5598 = vmatprep.subr.bf16.mxu1 %v9734_v60  ;;  %v2918_v17 = vld [vmem:[%s9604_s4 + $0xd0] sm:$0xff] }
 0x36c   :  { %2723 = vmatprep.mubr.f32.mxu0 %v9692_v2  ;;  %2794 = vmatprep.mubr.f32.mxu1 %v9692_v2  ;;  %v8258_v60 = vpack.c.bf16 %v2918_v17, %v2914_v19  ;;  %v2950_v19 = vld [vmem:[%s9604_s4 + $0x2d0] sm:$0xff] }
 0x36e   :  { %5568 = vmatpush1.bf16.msra.mxu0 %v9735_v61  ;;  %5600 = vmatpush1.bf16.msra.mxu1 %v9736_v55  ;;  %v2921_v61 = vld [vmem:[%s9604_s4 + $0x108] sm:$0xff] }
 0x36f   :  { %5570 = vmatprep.subr.bf16.mxu0 %v9737_v1  ;;  %5602 = vmatprep.subr.bf16.mxu1 %v9738_v37  ;;  %v2925_v55 = vld [vmem:[%s9604_s4 + $0x148] sm:$0xff]  ;;  %v2923_v1 = vld [vmem:[%s9604_s4 + $0x118] sm:$0xff] }
 0x370   :  { %v8272_v37 = vpack.c.bf16 %v2925_v55, %v2921_v61  ;;  %v2953_v61 = vld [vmem:[%s9604_s4 + $0x308] sm:$0xff] }
 0x371   :  { %v6171_v56 = vpop.eup %6170  ;;  %v2957_v55 = vld [vmem:[%s9604_s4 + $0x348] sm:$0xff] }
 0x372   :  { %v2356_v20 = vmul.f32 0.5, %v6171_v56  ;;  %5572 = vmatpush1.bf16.msra.mxu0 %v9739_v40  ;;  %5604 = vmatpush1.bf16.msra.mxu1 %v9740_v47  ;;  %v6173_v43 = vpop.eup %6172  ;;  %v2927_v56 = vld [vmem:[%s9604_s4 + $0x158] sm:$0xff]  ;;  %v2924_v40 = vld [vmem:[%s9604_s4 + $0x140] sm:$0xff] }
 0x373   :  { %5574 = vmatprep.subr.bf16.mxu0 %v9741_v12  ;;  %5606 = vmatprep.subr.bf16.mxu1 %v9742_v4  ;;  %v8283_v47 = vpack.c.bf16 %v2927_v56, %v2923_v1  ;;  %v2922_v4 = vld [vmem:[%s9604_s4 + $0x110] sm:$0xff]  ;;  %v2955_v1 = vld [vmem:[%s9604_s4 + $0x318] sm:$0xff]  ;;  %v8416_v56 = vpack.c.bf16 %v2957_v55, %v2953_v61 }
 0x374   :  { %v2357_v18 = vadd.f32 0.5, %v2356_v20  ;;  %v2920_v20 = vld [vmem:[%s9604_s4 + $0x100] sm:$0xff] }
 0x375   :  { %v8285_v12 = vpack.c.bf16 %v2924_v40, %v2920_v20  ;;  %v2959_v20 = vld [vmem:[%s9604_s4 + $0x358] sm:$0xff]  ;;  %v2952_v40 = vld [vmem:[%s9604_s4 + $0x300] sm:$0xff] }
 0x376   :  { %v2363_v34 = vrot.slane %v2357_v18, 2  ;;  %5576 = vmatpush1.bf16.msra.mxu0 %v9743_v36  ;;  %5608 = vmatpush1.bf16.msra.mxu1 %v9744_v57  ;;  %v2366_v59 = vmul.f32 %v6173_v43, %v2357_v18  ;;  %v2929_v36 = vld [vmem:[%s9604_s4 + $0x188] sm:$0xff]  ;;  %v2931_v43 = vld [vmem:[%s9604_s4 + $0x198] sm:$0xff] }
 0x377   :  { %5578 = vmatprep.subr.bf16.mxu0 %v9745_v30  ;;  %5610 = vmatprep.subr.bf16.mxu1 %v9746_v14  ;;  %v2933_v57 = vld [vmem:[%s9604_s4 + $0x1c8] sm:$0xff]  ;;  %v2935_v14 = vld [vmem:[%s9604_s4 + $0x1d8] sm:$0xff] }
 0x378   :  { %v2365_v3 = vmul.f32 %v2363_v34, %v8026_v41  ;;  %v8308_v30 = vpack.c.bf16 %v2933_v57, %v2929_v36  ;;  %v2954_v57 = vld [vmem:[%s9604_s4 + $0x310] sm:$0xff] }
 0x37a   :  { %v8171_v45 = vadd.f32 %v2366_v59, %v2365_v3  ;;  %5580 = vmatpush1.bf16.msra.mxu0 %v7990_v22  ;;  %5612 = vmatpush1.bf16.msra.mxu1 %v9747_v11  ;;  %v2369_v22 = vrot.slane %v2357_v18, 4  ;;  %v2926_v18 = vld [vmem:[%s9604_s4 + $0x150] sm:$0xff]  ;;  %v2928_v3 = vld [vmem:[%s9604_s4 + $0x180] sm:$0xff]  ;;  %v8319_v11 = vpack.c.bf16 %v2935_v14, %v2931_v43 }
 0x37b   :  { %5582 = vmatprep.subr.bf16.mxu0 %v9748_v5  ;;  %5614 = vmatprep.subr.bf16.mxu1 %v9749_v31  ;;  %v8294_v34 = vpack.c.bf16 %v2926_v18, %v2922_v4  ;;  %v2932_v59 = vld [vmem:[%s9604_s4 + $0x1c0] sm:$0xff]  ;;  %v2930_v31 = vld [vmem:[%s9604_s4 + $0x190] sm:$0xff]  ;;  %v8427_v18 = vpack.c.bf16 %v2959_v20, %v2955_v1 }
 0x37c   :  { %6174 = vtanh.f32 %v8171_v45  ;;  %v8321_v5 = vpack.c.bf16 %v2932_v59, %v2928_v3  ;;  %v2956_v4 = vld [vmem:[%s9604_s4 + $0x340] sm:$0xff]  ;;  %v2958_v43 = vld [vmem:[%s9604_s4 + $0x350] sm:$0xff]  ;;  %v2961_v3 = vld [vmem:[%s9604_s4 + $0x388] sm:$0xff] }
 0x37d   :  { %v8429_v36 = vpack.c.bf16 %v2956_v4, %v2952_v40  ;;  %v8438_v14 = vpack.c.bf16 %v2958_v43, %v2954_v57  ;;  %v2965_v59 = vld [vmem:[%s9604_s4 + $0x3c8] sm:$0xff]  ;;  %v9751_v43 = vcombine.high %v7368_v16, %v7374_v7 }
 0x37e   :  { %5584 = vmatpush1.bf16.msra.mxu0 %v8030_v25  ;;  %5616 = vmatpush1.bf16.msra.mxu1 %v9750_v0  ;;  %v2934_v0 = vld [vmem:[%s9604_s4 + $0x1d0] sm:$0xff] }
 0x37f   :  { %5586 = vmatprep.subr.bf16.mxu0 %v8042_v26  ;;  %5618 = vmatprep.subr.bf16.mxu1 %v8044_v53  ;;  %v2372_v53 = vld [vmem:[#allocation6] sm:$0xf] }
 0x382   :  { %5588 = vmatpush1.bf16.msra.mxu0 %v8067_v24  ;;  %5620 = vmatpush1.bf16.msra.mxu1 %v8069_v15  ;;  %v2905_v15 = vld [vmem:[%s9604_s4 + $0x8] sm:$0xff] }
 0x383   :  { %5590 = vmatprep.subr.bf16.mxu0 %v8076_v23  ;;  %5622 = vmatprep.subr.bf16.mxu1 %v8078_v32  ;;  %v2386_v23 = vld [vmem:[#allocation7] sm:$0xf] }
 0x386   :  { %v6175_v41 = vpop.eup %6174  ;;  %5592 = vmatpush1.bf16.msra.mxu0 %v8091_v48  ;;  %5624 = vmatpush1.bf16.msra.mxu1 %v8093_v49  ;;  %v2909_v48 = vld [vmem:[%s9604_s4 + $0x48] sm:$0xff]  ;;  %v2907_v49 = vld [vmem:[%s9604_s4 + $0x18] sm:$0xff] }
 0x387   :  { %v2371_v25 = vmul.f32 %v6175_v41, %v2369_v22  ;;  %v8200_v27 = vpack.c.bf16 %v2909_v48, %v2905_v15  ;;  %v8211_v63 = vpack.c.bf16 %v2911_v29, %v2907_v49  ;;  %v8330_v22 = vpack.c.bf16 %v2934_v0, %v2930_v31  ;;  %v2937_v41 = vld [vmem:[%s9604_s4 + $0x208] sm:$0xff]  ;;  %v2938_v48 = vld [vmem:[%s9604_s4 + $0x210] sm:$0xff]  ;;  %v2963_v31 = vld [vmem:[%s9604_s4 + $0x398] sm:$0xff] }
 0x388   :  { %v2942_v49 = vld [vmem:[%s9604_s4 + $0x250] sm:$0xff]  ;;  %v8452_v0 = vpack.c.bf16 %v2965_v59, %v2961_v3 }
 0x389   :  { %v2375_v33 = vcombine.low %v2328_v62, %v2371_v25  ;;  %2724 = vmatmul.mubr.f32.vlgmr.msra.gmra.mrb[22].mxu0 %v2371_v25  ;;  %2795 = vmatmul.mubr.f32.vlgmr.msra.gmra.mrb[22].mxu1 %v2371_v25  ;;  %v8249_v62 = vpack.c.bf16 %v2916_v6, %v2912_v39  ;;  %v2941_v25 = vld [vmem:[%s9604_s4 + $0x248] sm:$0xff]  ;;  %v8366_v29 = vpack.c.bf16 %v2942_v49, %v2938_v48  ;;  %v2946_v6 = vld [vmem:[%s9604_s4 + $0x290] sm:$0xff] }
 0x38a   :  { %3032 = vmatprep.mubr.f32.mxu0 %v9692_v2  ;;  %3103 = vmatprep.mubr.f32.mxu1 %v9692_v2  ;;  %v8393_v39 = vpack.c.bf16 %v2948_v9, %v2944_v42  ;;  %v8402_v17 = vpack.c.bf16 %v2950_v19, %v2946_v6  ;;  %v2966_v48 = vld [vmem:[%s9604_s4 + $0x3d0] sm:$0xff]  ;;  %v3117_v42 = vld [vmem:[%s9604_s4 + $0x478] sm:$0xff] }
 0x38b   :  { %v2382_v26 = vrot.slane %v2375_v33, %v6479_v35  ;;  %5626 = vmatprep.subr.bf16.mxu0 %v8200_v27  ;;  %5658 = vmatprep.subr.bf16.mxu1 %v8211_v63  ;;  %v2939_v33 = vld [vmem:[%s9604_s4 + $0x218] sm:$0xff]  ;;  %v8493_v9 = vpack.c.bf16 %v3117_v42, %v3113_v58 }
 0x38c   :  { %5628 = vmatpush1.bf16.msra.mxu0 %v8213_v21  ;;  %5660 = vmatpush1.bf16.msra.mxu1 %v8222_v50 }
 0x38d   :  { %v2384_v24 = vadd.f32 %v2382_v26, %v2372_v53  ;;  %v2387_v32 = vmax.f32 %v2386_v23, %v2382_v26  ;;  %5630 = vmatprep.subr.bf16.mxu0 %v8236_v8  ;;  %5662 = vmatprep.subr.bf16.mxu1 %v8247_v44  ;;  %v8344_v26 = vpack.c.bf16 %v2941_v25, %v2937_v41  ;;  %v2943_v53 = vld [vmem:[%s9604_s4 + $0x258] sm:$0xff]  ;;  %v2936_v23 = vld [vmem:[%s9604_s4 + $0x200] sm:$0xff] }
 0x38e   :  { %v2967_v41 = vld [vmem:[%s9604_s4 + $0x3d8] sm:$0xff]  ;;  %v2960_v25 = vld [vmem:[%s9604_s4 + $0x380] sm:$0xff] }
 0x38f   :  { %2385 = vst [vmem:[#allocation6] sm:$0xf] %v2384_v24  ;;  %2388 = vst [vmem:[#allocation7] sm:$0xf] %v2387_v32  ;;  %v2940_v24 = vld [vmem:[%s9604_s4 + $0x240] sm:$0xff]  ;;  %v8355_v32 = vpack.c.bf16 %v2943_v53, %v2939_v33  ;;  %v8463_v53 = vpack.c.bf16 %v2967_v41, %v2963_v31 }
 0x390   :  { %5632 = vmatpush1.bf16.msra.mxu0 %v8249_v62  ;;  %5664 = vmatpush1.bf16.msra.mxu1 %v8258_v60  ;;  %v8357_v15 = vpack.c.bf16 %v2940_v24, %v2936_v23  ;;  %v2964_v33 = vld [vmem:[%s9604_s4 + $0x3c0] sm:$0xff]  ;;  %v2962_v24 = vld [vmem:[%s9604_s4 + $0x390] sm:$0xff] }
 0x391   :  { %5634 = vmatprep.subr.bf16.mxu0 %v8272_v37  ;;  %5666 = vmatprep.subr.bf16.mxu1 %v8283_v47  ;;  %v8465_v23 = vpack.c.bf16 %v2964_v33, %v2960_v25  ;;  %v8474_v49 = vpack.c.bf16 %v2966_v48, %v2962_v24 }
 0x394   :  { %5636 = vmatpush1.bf16.msra.mxu0 %v8285_v12  ;;  %5668 = vmatpush1.bf16.msra.mxu1 %v8294_v34 }
 0x395   :  { %5638 = vmatprep.subr.bf16.mxu0 %v8308_v30  ;;  %5670 = vmatprep.subr.bf16.mxu1 %v8319_v11 }
 0x398   :  { %5640 = vmatpush1.bf16.msra.mxu0 %v8321_v5  ;;  %5672 = vmatpush1.bf16.msra.mxu1 %v8330_v22 }
 0x399   :  { %5642 = vmatprep.subr.bf16.mxu0 %v8344_v26  ;;  %5674 = vmatprep.subr.bf16.mxu1 %v8355_v32 }
 0x39c   :  { %5644 = vmatpush1.bf16.msra.mxu0 %v8357_v15  ;;  %5676 = vmatpush1.bf16.msra.mxu1 %v8366_v29 }
 0x39d   :  { %5646 = vmatprep.subr.bf16.mxu0 %v8380_v13  ;;  %5678 = vmatprep.subr.bf16.mxu1 %v8391_v10 }
 0x3a0   :  { %5648 = vmatpush1.bf16.msra.mxu0 %v8393_v39  ;;  %5680 = vmatpush1.bf16.msra.mxu1 %v8402_v17 }
 0x3a1   :  { %5650 = vmatprep.subr.bf16.mxu0 %v8416_v56  ;;  %5682 = vmatprep.subr.bf16.mxu1 %v8427_v18 }
 0x3a4   :  { %5652 = vmatpush1.bf16.msra.mxu0 %v8429_v36  ;;  %5684 = vmatpush1.bf16.msra.mxu1 %v8438_v14 }
 0x3a5   :  { %5654 = vmatprep.subr.bf16.mxu0 %v8452_v0  ;;  %5686 = vmatprep.subr.bf16.mxu1 %v8463_v53 }
 0x3a8   :  { %5656 = vmatpush1.bf16.msra.mxu0 %v8465_v23  ;;  %5688 = vmatpush1.bf16.msra.mxu1 %v8474_v49 }
 0x3a9   :  { %5690 = vmatprep.subr.bf16.mxu0 %v8488_v51  ;;  %5722 = vmatprep.subr.bf16.mxu1 %v8493_v9 }
 0x43c   :  { %v2519_v6 = vpop.f32.mrb[20].mxu0  ;;  %v2590_v19 = vpop.f32.mrb[20].mxu1 }
 0x43d   :  { %v2521_v61 = vpop.f32.mrb[21].mxu0  ;;  %v2592_v55 = vpop.f32.mrb[21].mxu1 }
 0x43e   :  { %v2807_v1 = vcombine.low %v2519_v6, %v2521_v61  ;;  %v2808_v20 = vcombine.low %v2590_v19, %v2592_v55 }
 0x440   :  { %v2815_v40 = vrot.slane %v2807_v1, %v6479_v35  ;;  %v2822_v4 = vrot.slane %v2808_v20, %v6479_v35 }
 0x442   :  { %v2823_v57 = vcombine.low %v2815_v40, %v2822_v4  ;;  %v3114_v40 = vld [vmem:[%s9604_s4 + $0x460] sm:$0xff]  ;;  %v9752_v4 = vcombine.low %v7428_v52, %v7434_v38  ;;  %v3121_v52 = vld [vmem:[%s9604_s4 + $0x4b8] sm:$0xff] }
 0x443   :  { %v3125_v38 = vld [vmem:[%s9604_s4 + $0x4f8] sm:$0xff] }
 0x444   :  { %v2825_v3 = vadd.f32 %v2823_v57, %v9751_v43  ;;  %v3112_v43 = vld [vmem:[%s9604_s4 + $0x430] sm:$0xff] }
 0x446   :  { %v2826_v59 = vmul.f32 0.5, %v2825_v3  ;;  %v2831_v31 = vrot.slane %v2825_v3, 6  ;;  %v3116_v3 = vld [vmem:[%s9604_s4 + $0x470] sm:$0xff] }
 0x448   :  { %6176 = vtanh.f32 %v2826_v59  ;;  %v3119_v59 = vld [vmem:[%s9604_s4 + $0x4a8] sm:$0xff] }
 0x449   :  { %6178 = vtanh.f32 %v2831_v31  ;;  %v3123_v31 = vld [vmem:[%s9604_s4 + $0x4e8] sm:$0xff] }
 0x452   :  { %v6177_v41 = vpop.eup %6176 }
 0x453   :  { %v2828_v25 = vmul.f32 0.5, %v6177_v41  ;;  %v6179_v48 = vpop.eup %6178 }
 0x455   :  { %v2829_v33 = vadd.f32 0.5, %v2828_v25 }
 0x457   :  { %v2835_v24 = vrot.slane %v2829_v33, 2  ;;  %v2838_v46 = vmul.f32 %v6179_v48, %v2829_v33  ;;  %v2841_v25 = vrot.slane %v2829_v33, 4  ;;  %v3120_v33 = vld [vmem:[%s9604_s4 + $0x4b0] sm:$0xff] }
 0x459   :  { %v2837_v28 = vmul.f32 %v2835_v24, %v8144_v54  ;;  %v3110_v54 = vld [vmem:[%s9604_s4 + $0x420] sm:$0xff] }
 0x45a   :  { %v8535_v48 = vpack.c.bf16 %v3114_v40, %v3110_v54 }
 0x45b   :  { %v8503_v58 = vadd.f32 %v2838_v46, %v2837_v28  ;;  %v8537_v28 = vpack.c.bf16 %v3116_v3, %v3112_v43  ;;  %v3118_v46 = vld [vmem:[%s9604_s4 + $0x4a0] sm:$0xff] }
 0x45c   :  { %v2725_v42 = vpop.f32.mrb[22].mxu0  ;;  %v2796_v6 = vpop.f32.mrb[22].mxu1  ;;  %v3126_v43 = vld [vmem:[%s9604_s4 + $0x520] sm:$0xff] }
 0x45d   :  { %v2727_v19 = vpop.f32.mrb[23].mxu0  ;;  %v2798_v61 = vpop.f32.mrb[23].mxu1  ;;  %6180 = vtanh.f32 %v8503_v58 }
 0x45e   :  { %v2850_v16 = vcombine.low %v2725_v42, %v2727_v19  ;;  %v2851_v7 = vcombine.low %v2796_v6, %v2798_v61  ;;  %v3122_v42 = vld [vmem:[%s9604_s4 + $0x4e0] sm:$0xff]  ;;  %v8547_v19 = vpack.c.bf16 %v3123_v31, %v3119_v59  ;;  %v8549_v61 = vpack.c.bf16 %v3125_v38, %v3121_v52  ;;  %v3128_v31 = vld [vmem:[%s9604_s4 + $0x530] sm:$0xff]  ;;  %v3135_v38 = vld [vmem:[%s9604_s4 + $0x5a8] sm:$0xff] }
 0x45f   :  { %v8573_v40 = vpack.c.bf16 %v3122_v42, %v3118_v46  ;;  %v3132_v52 = vld [vmem:[%s9604_s4 + $0x570] sm:$0xff] }
 0x460   :  { %v2858_v55 = vrot.slane %v2850_v16, %v6479_v35  ;;  %v2865_v1 = vrot.slane %v2851_v7, %v6479_v35  ;;  %v3124_v16 = vld [vmem:[%s9604_s4 + $0x4f0] sm:$0xff]  ;;  %v3127_v7 = vld [vmem:[%s9604_s4 + $0x528] sm:$0xff]  ;;  %v8613_v42 = vpack.c.bf16 %v3132_v52, %v3128_v31  ;;  %v3149_v31 = vld [vmem:[%s9604_s4 + $0x678] sm:$0xff] }
 0x462   :  { %v2866_v20 = vcombine.low %v2858_v55, %v2865_v1  ;;  %v3131_v55 = vld [vmem:[%s9604_s4 + $0x568] sm:$0xff]  ;;  %v3129_v1 = vld [vmem:[%s9604_s4 + $0x538] sm:$0xff]  ;;  %9756 = vst [vmem:[#allocation11_spill] sm:$0xff] %v8613_v42 }
 0x463   :  { %v8585_v3 = vpack.c.bf16 %v3131_v55, %v3127_v7 }
 0x464   :  { %v2868_v57 = vadd.f32 %v2866_v20, %v9752_v4  ;;  %v3133_v20 = vld [vmem:[%s9604_s4 + $0x578] sm:$0xff]  ;;  %v8575_v4 = vpack.c.bf16 %v3124_v16, %v3120_v33  ;;  %v3134_v33 = vld [vmem:[%s9604_s4 + $0x5a0] sm:$0xff] }
 0x465   :  { %9753 = vst [vmem:[#allocation8_spill] sm:$0xff] %v8585_v3  ;;  %v8587_v59 = vpack.c.bf16 %v3133_v20, %v3129_v1  ;;  %v3138_v16 = vld [vmem:[%s9604_s4 + $0x5e0] sm:$0xff]  ;;  %v3136_v1 = vld [vmem:[%s9604_s4 + $0x5b0] sm:$0xff] }
 0x466   :  { %v2869_v41 = vmul.f32 0.5, %v2868_v57  ;;  %v2874_v54 = vrot.slane %v2868_v57, 6  ;;  %v3130_v57 = vld [vmem:[%s9604_s4 + $0x560] sm:$0xff]  ;;  %v3140_v20 = vld [vmem:[%s9604_s4 + $0x5f0] sm:$0xff] }
 0x467   :  { %v6181_v24 = vpop.eup %6180  ;;  %9754 = vst [vmem:[#allocation9_spill] sm:$0xff] %v8587_v59  ;;  %v8611_v46 = vpack.c.bf16 %v3130_v57, %v3126_v43  ;;  %v3147_v43 = vld [vmem:[%s9604_s4 + $0x668] sm:$0xff]  ;;  %v3145_v57 = vld [vmem:[%s9604_s4 + $0x638] sm:$0xff] }
 0x468   :  { %6182 = vtanh.f32 %v2869_v41  ;;  %v8545_v6 = vmul.f32 %v6181_v24, %v2841_v25  ;;  %v3139_v41 = vld [vmem:[%s9604_s4 + $0x5e8] sm:$0xff]  ;;  %v3137_v25 = vld [vmem:[%s9604_s4 + $0x5b8] sm:$0xff] }
 0x469   :  { %v3141_v24 = vld [vmem:[%s9604_s4 + $0x5f8] sm:$0xff]  ;;  %6184 = vtanh.f32 %v2874_v54  ;;  %9755 = vst [vmem:[#allocation10_spill] sm:$0xff] %v8611_v46  ;;  %v8623_v7 = vpack.c.bf16 %v3139_v41, %v3135_v38  ;;  %v3143_v54 = vld [vmem:[%s9604_s4 + $0x628] sm:$0xff]  ;;  %v8647_v41 = vpack.c.bf16 %v3138_v16, %v3134_v33  ;;  %v3144_v33 = vld [vmem:[%s9604_s4 + $0x630] sm:$0xff] }
 0x46a   :  { %3033 = vmatmul.mubr.f32.vlgmr.msra.gmra.mrb[24].mxu0 %v8545_v6  ;;  %3104 = vmatmul.mubr.f32.vlgmr.msra.gmra.mrb[24].mxu1 %v8545_v6  ;;  %v8625_v55 = vpack.c.bf16 %v3141_v24, %v3137_v25  ;;  %v8649_v25 = vpack.c.bf16 %v3140_v20, %v3136_v1  ;;  %v3142_v24 = vld [vmem:[%s9604_s4 + $0x620] sm:$0xff]  ;;  %v3148_v16 = vld [vmem:[%s9604_s4 + $0x670] sm:$0xff]  ;;  %v3151_v1 = vld [vmem:[%s9604_s4 + $0x6a8] sm:$0xff] }
 0x46b   :  { %5692 = vmatpush1.bf16.msra.mxu0 %v8535_v48  ;;  %5724 = vmatpush1.bf16.msra.mxu1 %v8537_v28  ;;  %9757 = vst [vmem:[#allocation12_spill] sm:$0xff] %v8623_v7  ;;  %9759 = vst [vmem:[#allocation14_spill] sm:$0xff] %v8647_v41 }
 0x46c   :  { %5694 = vmatprep.subr.bf16.mxu0 %v8547_v19  ;;  %5726 = vmatprep.subr.bf16.mxu1 %v8549_v61  ;;  %9758 = vst [vmem:[#allocation13_spill] sm:$0xff] %v8625_v55  ;;  %9760 = vst [vmem:[#allocation15_spill] sm:$0xff] %v8649_v25 }
 0x46d   :  { %3238 = vmatprep.mubr.f32.mxu0 %v9692_v2  ;;  %3309 = vmatprep.mubr.f32.mxu1 %v9692_v2 }
 0x46f   :  { %5696 = vmatpush1.bf16.msra.mxu0 %v8573_v40  ;;  %5728 = vmatpush1.bf16.msra.mxu1 %v8575_v4 }
 0x470   :  { %5698 = vmatprep.subr.bf16.mxu0 %v8585_v3  ;;  %5730 = vmatprep.subr.bf16.mxu1 %v8587_v59  ;;  %v3146_v59 = vld [vmem:[%s9604_s4 + $0x660] sm:$0xff] }
 0x472   :  { %v6183_v52 = vpop.eup %6182 }
 0x473   :  { %v2871_v38 = vmul.f32 0.5, %v6183_v52  ;;  %5700 = vmatpush1.bf16.msra.mxu0 %v8611_v46  ;;  %5732 = vmatpush1.bf16.msra.mxu1 %v8613_v42  ;;  %v8659_v52 = vpack.c.bf16 %v3147_v43, %v3143_v54  ;;  %v8661_v46 = vpack.c.bf16 %v3149_v31, %v3145_v57  ;;  %v3155_v54 = vld [vmem:[%s9604_s4 + $0x6e8] sm:$0xff]  ;;  %v3153_v43 = vld [vmem:[%s9604_s4 + $0x6b8] sm:$0xff]  ;;  %v3154_v42 = vld [vmem:[%s9604_s4 + $0x6e0] sm:$0xff]  ;;  %v6185_v3 = vpop.eup %6184 }
 0x474   :  { %5702 = vmatprep.subr.bf16.mxu0 %v8623_v7  ;;  %5734 = vmatprep.subr.bf16.mxu1 %v8625_v55  ;;  %v3157_v57 = vld [vmem:[%s9604_s4 + $0x6f8] sm:$0xff]  ;;  %v8688_v55 = vpack.c.bf16 %v3148_v16, %v3144_v33  ;;  %v3150_v7 = vld [vmem:[%s9604_s4 + $0x6a0] sm:$0xff]  ;;  %v3159_v33 = vld [vmem:[%s9604_s4 + $0x728] sm:$0xff] }
 0x475   :  { %9761 = vst [vmem:[#allocation16_spill] sm:$0xff] %v8659_v52  ;;  %9762 = vst [vmem:[#allocation17_spill] sm:$0xff] %v8661_v46  ;;  %v8672_v20 = vadd.f32 0.5, %v2871_v38  ;;  %v8686_v38 = vpack.c.bf16 %v3146_v59, %v3142_v24  ;;  %v3152_v59 = vld [vmem:[%s9604_s4 + $0x6b0] sm:$0xff] }
 0x476   :  { %9763 = vst [vmem:[#allocation26_spill] sm:$0xff] %v8688_v55  ;;  %v3156_v24 = vld [vmem:[%s9604_s4 + $0x6f0] sm:$0xff] }
 0x477   :  { %v2878_v31 = vrot.slane %v8672_v20, 2  ;;  %5704 = vmatpush1.bf16.msra.mxu0 %v8647_v41  ;;  %5736 = vmatpush1.bf16.msra.mxu1 %v8649_v25  ;;  %v8698_v41 = vpack.c.bf16 %v3155_v54, %v3151_v1  ;;  %v8700_v25 = vpack.c.bf16 %v3157_v57, %v3153_v43  ;;  %v3163_v1 = vld [vmem:[%s9604_s4 + $0x768] sm:$0xff]  ;;  %v3161_v54 = vld [vmem:[%s9604_s4 + $0x738] sm:$0xff] }
 0x478   :  { %5706 = vmatprep.subr.bf16.mxu0 %v8659_v52  ;;  %5738 = vmatprep.subr.bf16.mxu1 %v8661_v46  ;;  %v2881_v46 = vmul.f32 %v6185_v3, %v8672_v20  ;;  %v3165_v43 = vld [vmem:[%s9604_s4 + $0x778] sm:$0xff]  ;;  %v8728_v3 = vpack.c.bf16 %v3156_v24, %v3152_v59  ;;  %v3162_v52 = vld [vmem:[%s9604_s4 + $0x760] sm:$0xff]  ;;  %v3167_v59 = vld [vmem:[%s9604_s4 + $0x7a8] sm:$0xff] }
 0x479   :  { %9764 = vst [vmem:[#allocation27_spill] sm:$0xff] %v8698_v41  ;;  %9765 = vst [vmem:[#allocation28_spill] sm:$0xff] %v8700_v25  ;;  %v2880_v16 = vmul.f32 %v2878_v31, %v8171_v45  ;;  %v8726_v45 = vpack.c.bf16 %v3154_v42, %v3150_v7  ;;  %v3158_v31 = vld [vmem:[%s9604_s4 + $0x720] sm:$0xff]  ;;  %v3160_v42 = vld [vmem:[%s9604_s4 + $0x730] sm:$0xff] }
 0x47a   :  { %9766 = vst [vmem:[#allocation29_spill] sm:$0xff] %v8728_v3  ;;  %v3164_v7 = vld [vmem:[%s9604_s4 + $0x770] sm:$0xff]  ;;  %v3171_v24 = vld [vmem:[%s9604_s4 + $0x7e8] sm:$0xff] }
 0x47b   :  { %v8722_v57 = vadd.f32 %v2881_v46, %v2880_v16  ;;  %5708 = vmatpush1.bf16.msra.mxu0 %v8686_v38  ;;  %5740 = vmatpush1.bf16.msra.mxu1 %v8688_v55  ;;  %v8738_v46 = vpack.c.bf16 %v3163_v1, %v3159_v33  ;;  %v8740_v16 = vpack.c.bf16 %v3165_v43, %v3161_v54  ;;  %v3169_v33 = vld [vmem:[%s9604_s4 + $0x7b8] sm:$0xff] }
 0x47c   :  { %5710 = vmatprep.subr.bf16.mxu0 %v8698_v41  ;;  %5742 = vmatprep.subr.bf16.mxu1 %v8700_v25  ;;  %v3173_v1 = vld [vmem:[%s9604_s4 + $0x7f8] sm:$0xff]  ;;  %v8763_v54 = vpack.c.bf16 %v3162_v52, %v3158_v31  ;;  %v8765_v43 = vpack.c.bf16 %v3164_v7, %v3160_v42  ;;  %v3166_v25 = vld [vmem:[%s9604_s4 + $0x7a0] sm:$0xff]  ;;  %v8772_v41 = vpack.c.bf16 %v3171_v24, %v3167_v59  ;;  %v3168_v52 = vld [vmem:[%s9604_s4 + $0x7b0] sm:$0xff]  ;;  %v2884_v59 = vrot.slane %v8672_v20, 4 }
 0x47d   :  { %6186 = vtanh.f32 %v8722_v57  ;;  %v8774_v55 = vpack.c.bf16 %v3173_v1, %v3169_v33  ;;  %v3172_v31 = vld [vmem:[%s9604_s4 + $0x7f0] sm:$0xff]  ;;  %v2901_v1 = vld [vmem:[#allocation7] sm:$0xf] }
 0x47e   :  { %v8789_v7 = vpack.c.bf16 %v3172_v31, %v3168_v52  ;;  %v9771_v52 = vld [vmem:[#allocation25_spill] sm:$0xff] }
 0x47f   :  { %5712 = vmatpush1.bf16.msra.mxu0 %v8726_v45  ;;  %5744 = vmatpush1.bf16.msra.mxu1 %v8728_v3  ;;  %v3170_v3 = vld [vmem:[%s9604_s4 + $0x7e0] sm:$0xff] }
 0x480   :  { %5714 = vmatprep.subr.bf16.mxu0 %v8738_v46  ;;  %5746 = vmatprep.subr.bf16.mxu1 %v8740_v16  ;;  %v8787_v42 = vpack.c.bf16 %v3170_v3, %v3166_v25  ;;  %v2887_v3 = vld [vmem:[#allocation6] sm:$0xf] }
 0x483   :  { %5716 = vmatpush1.bf16.msra.mxu0 %v8763_v54  ;;  %5748 = vmatpush1.bf16.msra.mxu1 %v8765_v43 }
 0x484   :  { %5718 = vmatprep.subr.bf16.mxu0 %v8772_v41  ;;  %5750 = vmatprep.subr.bf16.mxu1 %v8774_v55 }
 0x487   :  { %v6187_v24 = vpop.eup %6186  ;;  %5720 = vmatpush1.bf16.msra.mxu0 %v8787_v42  ;;  %5752 = vmatpush1.bf16.msra.mxu1 %v8789_v7 }
 0x488   :  { %v2886_v33 = vmul.f32 %v6187_v24, %v2884_v59  ;;  %5754 = vmatprep.subr.bf16.mxu0 %v8200_v27  ;;  %5786 = vmatprep.subr.bf16.mxu1 %v8211_v63 }
 0x48a   :  { %v2890_v25 = vcombine.low %v8545_v6, %v2886_v33  ;;  %3239 = vmatmul.mubr.f32.vlgmr.msra.gmra.mrb[26].mxu0 %v2886_v33  ;;  %3310 = vmatmul.mubr.f32.vlgmr.msra.gmra.mrb[26].mxu1 %v2886_v33  ;;  %v9770_v6 = vld [vmem:[#allocation23_spill] sm:$0xff] }
 0x48b   :  { %5756 = vmatpush1.bf16.msra.mxu0 %v8213_v21  ;;  %5788 = vmatpush1.bf16.msra.mxu1 %v8222_v50  ;;  %v9772_v31 = vcombine.high %v9770_v6, %v9771_v52 }
 0x48c   :  { %v2897_v20 = vrot.slane %v2890_v25, %v6479_v35  ;;  %5758 = vmatprep.subr.bf16.mxu0 %v8236_v8  ;;  %5790 = vmatprep.subr.bf16.mxu1 %v8247_v44 }
 0x48d   :  { %3547 = vmatprep.mubr.f32.mxu0 %v9692_v2  ;;  %3618 = vmatprep.mubr.f32.mxu1 %v9692_v2 }
 0x48e   :  { %v2899_v27 = vadd.f32 %v2897_v20, %v2887_v3  ;;  %v2902_v63 = vmax.f32 %v2901_v1, %v2897_v20  ;;  %v9773_v3 = vld [vmem:[#allocation8_spill] sm:$0xff]  ;;  %v9774_v1 = vld [vmem:[#allocation9_spill] sm:$0xff] }
 0x48f   :  { %5760 = vmatpush1.bf16.msra.mxu0 %v8249_v62  ;;  %5792 = vmatpush1.bf16.msra.mxu1 %v8258_v60 }
 0x490   :  { %2900 = vst [vmem:[#allocation6] sm:$0xf] %v2899_v27  ;;  %2903 = vst [vmem:[#allocation7] sm:$0xf] %v2902_v63  ;;  %5762 = vmatprep.subr.bf16.mxu0 %v8272_v37  ;;  %5794 = vmatprep.subr.bf16.mxu1 %v8283_v47  ;;  %v9778_v63 = vld [vmem:[#allocation13_spill] sm:$0xff] }
 0x493   :  { %5764 = vmatpush1.bf16.msra.mxu0 %v8285_v12  ;;  %5796 = vmatpush1.bf16.msra.mxu1 %v8294_v34  ;;  %v9767_v34 = vld [vmem:[#allocation18_spill] sm:$0xff] }
 0x494   :  { %5766 = vmatprep.subr.bf16.mxu0 %v8308_v30  ;;  %5798 = vmatprep.subr.bf16.mxu1 %v8319_v11  ;;  %v9768_v30 = vld [vmem:[#allocation20_spill] sm:$0xff] }
 0x495   :  { %v9769_v11 = vcombine.low %v9767_v34, %v9768_v30 }
 0x497   :  { %5768 = vmatpush1.bf16.msra.mxu0 %v8321_v5  ;;  %5800 = vmatpush1.bf16.msra.mxu1 %v8330_v22 }
 0x498   :  { %5770 = vmatprep.subr.bf16.mxu0 %v8344_v26  ;;  %5802 = vmatprep.subr.bf16.mxu1 %v8355_v32 }
 0x49b   :  { %5772 = vmatpush1.bf16.msra.mxu0 %v8357_v15  ;;  %5804 = vmatpush1.bf16.msra.mxu1 %v8366_v29 }
 0x49c   :  { %5774 = vmatprep.subr.bf16.mxu0 %v8380_v13  ;;  %5806 = vmatprep.subr.bf16.mxu1 %v8391_v10 }
 0x49f   :  { %5776 = vmatpush1.bf16.msra.mxu0 %v8393_v39  ;;  %5808 = vmatpush1.bf16.msra.mxu1 %v8402_v17 }
 0x4a0   :  { %5778 = vmatprep.subr.bf16.mxu0 %v8416_v56  ;;  %5810 = vmatprep.subr.bf16.mxu1 %v8427_v18 }
 0x4a3   :  { %5780 = vmatpush1.bf16.msra.mxu0 %v8429_v36  ;;  %5812 = vmatpush1.bf16.msra.mxu1 %v8438_v14 }
 0x4a4   :  { %5782 = vmatprep.subr.bf16.mxu0 %v8452_v0  ;;  %5814 = vmatprep.subr.bf16.mxu1 %v8463_v53 }
 0x4a7   :  { %5784 = vmatpush1.bf16.msra.mxu0 %v8465_v23  ;;  %5816 = vmatpush1.bf16.msra.mxu1 %v8474_v49 }
 0x4a8   :  { %5818 = vmatprep.subr.bf16.mxu0 %v8488_v51  ;;  %5850 = vmatprep.subr.bf16.mxu1 %v8493_v9 }
 0x53d   :  { %v3034_v21 = vpop.f32.mrb[24].mxu0  ;;  %v3105_v50 = vpop.f32.mrb[24].mxu1 }
 0x53e   :  { %v3036_v8 = vpop.f32.mrb[25].mxu0  ;;  %v3107_v44 = vpop.f32.mrb[25].mxu1 }
 0x53f   :  { %v3322_v62 = vcombine.low %v3034_v21, %v3036_v8  ;;  %v3323_v60 = vcombine.low %v3105_v50, %v3107_v44  ;;  %v9779_v8 = vld [vmem:[#allocation14_spill] sm:$0xff]  ;;  %v9781_v44 = vld [vmem:[#allocation16_spill] sm:$0xff] }
 0x541   :  { %v3330_v37 = vrot.slane %v3322_v62, %v6479_v35  ;;  %v3337_v47 = vrot.slane %v3323_v60, %v6479_v35  ;;  %v9782_v62 = vld [vmem:[#allocation17_spill] sm:$0xff] }
 0x543   :  { %v3338_v12 = vcombine.low %v3330_v37, %v3337_v47 }
 0x545   :  { %v3340_v5 = vadd.f32 %v3338_v12, %v9769_v11  ;;  %v9783_v12 = vld [vmem:[#allocation26_spill] sm:$0xff]  ;;  %v9784_v11 = vld [vmem:[#allocation27_spill] sm:$0xff] }
 0x547   :  { %v3341_v22 = vmul.f32 0.5, %v3340_v5  ;;  %v3346_v26 = vrot.slane %v3340_v5, 6  ;;  %v9785_v5 = vld [vmem:[#allocation28_spill] sm:$0xff] }
 0x549   :  { %6188 = vtanh.f32 %v3341_v22  ;;  %v9786_v22 = vld [vmem:[#allocation29_spill] sm:$0xff] }
 0x54a   :  { %6190 = vtanh.f32 %v3346_v26 }
 0x553   :  { %v6189_v32 = vpop.eup %6188 }
 0x554   :  { %v3343_v15 = vmul.f32 0.5, %v6189_v32  ;;  %v6191_v10 = vpop.eup %6190 }
 0x556   :  { %v3344_v29 = vadd.f32 0.5, %v3343_v15  ;;  %v3941_v15 = vld [vmem:[%s9604_s4 + $0x58] sm:$0xff] }
 0x558   :  { %v3350_v13 = vrot.slane %v3344_v29, 2  ;;  %v3353_v17 = vmul.f32 %v6191_v10, %v3344_v29  ;;  %v3356_v24 = vrot.slane %v3344_v29, 4  ;;  %v3934_v29 = vld [vmem:[%s9604_s4] sm:$0xff] }
 0x55a   :  { %v3352_v39 = vmul.f32 %v3350_v13, %v8503_v58  ;;  %v3938_v13 = vld [vmem:[%s9604_s4 + $0x40] sm:$0xff] }
 0x55c   :  { %v8840_v56 = vadd.f32 %v3353_v17, %v3352_v39  ;;  %v8909_v39 = vpack.c.bf16 %v3938_v13, %v3934_v29  ;;  %v3936_v17 = vld [vmem:[%s9604_s4 + $0x10] sm:$0xff]  ;;  %v3975_v29 = vld [vmem:[%s9604_s4 + $0x288] sm:$0xff] }
 0x55d   :  { %v3240_v18 = vpop.f32.mrb[26].mxu0  ;;  %v3311_v36 = vpop.f32.mrb[26].mxu1  ;;  %v3979_v13 = vld [vmem:[%s9604_s4 + $0x2c8] sm:$0xff] }
 0x55e   :  { %v3242_v14 = vpop.f32.mrb[27].mxu0  ;;  %v3313_v0 = vpop.f32.mrb[27].mxu1  ;;  %6192 = vtanh.f32 %v8840_v56 }
 0x55f   :  { %v3365_v53 = vcombine.low %v3240_v18, %v3242_v14  ;;  %v3366_v23 = vcombine.low %v3311_v36, %v3313_v0  ;;  %v3940_v18 = vld [vmem:[%s9604_s4 + $0x50] sm:$0xff]  ;;  %v3943_v14 = vld [vmem:[%s9604_s4 + $0x88] sm:$0xff] }
 0x560   :  { %v8918_v36 = vpack.c.bf16 %v3940_v18, %v3936_v17  ;;  %v3947_v0 = vld [vmem:[%s9604_s4 + $0xc8] sm:$0xff]  ;;  %v3977_v17 = vld [vmem:[%s9604_s4 + $0x298] sm:$0xff]  ;;  %v9076_v18 = vpack.c.bf16 %v3979_v13, %v3975_v29 }
 0x561   :  { %v3373_v49 = vrot.slane %v3365_v53, %v6479_v35  ;;  %v3380_v51 = vrot.slane %v3366_v23, %v6479_v35  ;;  %v3945_v53 = vld [vmem:[%s9604_s4 + $0x98] sm:$0xff]  ;;  %v8932_v23 = vpack.c.bf16 %v3947_v0, %v3943_v14  ;;  %v3974_v0 = vld [vmem:[%s9604_s4 + $0x280] sm:$0xff]  ;;  %v4141_v29 = vld [vmem:[%s9604_s4 + $0x428] sm:$0xff] }
 0x562   :  { %v3981_v14 = vld [vmem:[%s9604_s4 + $0x2d8] sm:$0xff]  ;;  %v4145_v13 = vld [vmem:[%s9604_s4 + $0x468] sm:$0xff] }
 0x563   :  { %v3381_v9 = vcombine.low %v3373_v49, %v3380_v51  ;;  %v3949_v49 = vld [vmem:[%s9604_s4 + $0xd8] sm:$0xff]  ;;  %v3942_v51 = vld [vmem:[%s9604_s4 + $0x80] sm:$0xff] }
 0x565   :  { %v3383_v58 = vadd.f32 %v3381_v9, %v9772_v31  ;;  %v3946_v9 = vld [vmem:[%s9604_s4 + $0xc0] sm:$0xff]  ;;  %v8943_v31 = vpack.c.bf16 %v3949_v49, %v3945_v53  ;;  %v9087_v49 = vpack.c.bf16 %v3981_v14, %v3977_v17  ;;  %v4143_v17 = vld [vmem:[%s9604_s4 + $0x438] sm:$0xff]  ;;  %v9184_v14 = vpack.c.bf16 %v4145_v13, %v4141_v29 }
 0x566   :  { %v3978_v53 = vld [vmem:[%s9604_s4 + $0x2c0] sm:$0xff] }
 0x567   :  { %v3384_v59 = vmul.f32 0.5, %v3383_v58  ;;  %v3389_v20 = vrot.slane %v3383_v58, 6  ;;  %v8945_v58 = vpack.c.bf16 %v3946_v9, %v3942_v51  ;;  %v9089_v51 = vpack.c.bf16 %v3978_v53, %v3974_v0  ;;  %v3976_v9 = vld [vmem:[%s9604_s4 + $0x290] sm:$0xff]  ;;  %v4147_v0 = vld [vmem:[%s9604_s4 + $0x478] sm:$0xff] }
 0x568   :  { %v6193_v33 = vpop.eup %6192  ;;  %v9189_v53 = vpack.c.bf16 %v4147_v0, %v4143_v17 }
 0x569   :  { %6194 = vtanh.f32 %v3384_v59  ;;  %v3358_v25 = vmul.f32 %v6193_v33, %v3356_v24  ;;  %v3944_v59 = vld [vmem:[%s9604_s4 + $0x90] sm:$0xff] }
 0x56a   :  { %6196 = vtanh.f32 %v3389_v20  ;;  %v3948_v24 = vld [vmem:[%s9604_s4 + $0xd0] sm:$0xff]  ;;  %v3955_v20 = vld [vmem:[%s9604_s4 + $0x148] sm:$0xff] }
 0x56b   :  { %3548 = vmatmul.mubr.f32.vlgmr.msra.gmra.mrb[28].mxu0 %v3358_v25  ;;  %3619 = vmatmul.mubr.f32.vlgmr.msra.gmra.mrb[28].mxu1 %v3358_v25  ;;  %v8954_v33 = vpack.c.bf16 %v3948_v24, %v3944_v59  ;;  %v3980_v59 = vld [vmem:[%s9604_s4 + $0x2d0] sm:$0xff] }
 0x56c   :  { %5820 = vmatpush1.bf16.msra.mxu0 %v8535_v48  ;;  %5852 = vmatpush1.bf16.msra.mxu1 %v8537_v28  ;;  %v9775_v28 = vld [vmem:[#allocation10_spill] sm:$0xff]  ;;  %v9098_v24 = vpack.c.bf16 %v3980_v59, %v3976_v9 }
 0x56d   :  { %5822 = vmatprep.subr.bf16.mxu0 %v8547_v19  ;;  %5854 = vmatprep.subr.bf16.mxu1 %v8549_v61  ;;  %v9776_v19 = vld [vmem:[#allocation11_spill] sm:$0xff]  ;;  %v9777_v61 = vld [vmem:[#allocation12_spill] sm:$0xff] }
 0x56e   :  { %3753 = vmatprep.mubr.f32.mxu0 %v9692_v2  ;;  %3824 = vmatprep.mubr.f32.mxu1 %v9692_v2 }
 0x570   :  { %5824 = vmatpush1.bf16.msra.mxu0 %v8573_v40  ;;  %5856 = vmatpush1.bf16.msra.mxu1 %v8575_v4  ;;  %v9780_v40 = vld [vmem:[#allocation15_spill] sm:$0xff] }
 0x571   :  { %5826 = vmatprep.subr.bf16.mxu0 %v9773_v3  ;;  %5858 = vmatprep.subr.bf16.mxu1 %v9774_v1  ;;  %v3953_v3 = vld [vmem:[%s9604_s4 + $0x118] sm:$0xff] }
 0x573   :  { %v6195_v48 = vpop.eup %6194 }
 0x574   :  { %v3386_v27 = vmul.f32 0.5, %v6195_v48  ;;  %5828 = vmatpush1.bf16.msra.mxu0 %v9775_v28  ;;  %5860 = vmatpush1.bf16.msra.mxu1 %v9776_v19  ;;  %v6197_v4 = vpop.eup %6196  ;;  %v3957_v48 = vld [vmem:[%s9604_s4 + $0x158] sm:$0xff]  ;;  %v3954_v28 = vld [vmem:[%s9604_s4 + $0x140] sm:$0xff] }
 0x575   :  { %5830 = vmatprep.subr.bf16.mxu0 %v9777_v61  ;;  %5862 = vmatprep.subr.bf16.mxu1 %v9778_v63  ;;  %v8979_v19 = vpack.c.bf16 %v3957_v48, %v3953_v3  ;;  %v3952_v63 = vld [vmem:[%s9604_s4 + $0x110] sm:$0xff]  ;;  %v3985_v3 = vld [vmem:[%s9604_s4 + $0x318] sm:$0xff] }
 0x576   :  { %v3387_v21 = vadd.f32 0.5, %v3386_v27  ;;  %v3950_v27 = vld [vmem:[%s9604_s4 + $0x100] sm:$0xff] }
 0x577   :  { %v8981_v61 = vpack.c.bf16 %v3954_v28, %v3950_v27  ;;  %v3989_v27 = vld [vmem:[%s9604_s4 + $0x358] sm:$0xff]  ;;  %v3982_v28 = vld [vmem:[%s9604_s4 + $0x300] sm:$0xff] }
 0x578   :  { %v3393_v50 = vrot.slane %v3387_v21, 2  ;;  %5832 = vmatpush1.bf16.msra.mxu0 %v9779_v8  ;;  %5864 = vmatpush1.bf16.msra.mxu1 %v9780_v40  ;;  %v3396_v37 = vmul.f32 %v6197_v4, %v3387_v21  ;;  %v3959_v8 = vld [vmem:[%s9604_s4 + $0x188] sm:$0xff]  ;;  %v3961_v4 = vld [vmem:[%s9604_s4 + $0x198] sm:$0xff] }
 0x579   :  { %5834 = vmatprep.subr.bf16.mxu0 %v9781_v44  ;;  %5866 = vmatprep.subr.bf16.mxu1 %v9782_v62  ;;  %v3963_v40 = vld [vmem:[%s9604_s4 + $0x1c8] sm:$0xff]  ;;  %v3965_v62 = vld [vmem:[%s9604_s4 + $0x1d8] sm:$0xff] }
 0x57a   :  { %v3395_v60 = vmul.f32 %v3393_v50, %v8722_v57  ;;  %v9004_v44 = vpack.c.bf16 %v3963_v40, %v3959_v8  ;;  %v3984_v40 = vld [vmem:[%s9604_s4 + $0x310] sm:$0xff] }
 0x57c   :  { %v8867_v47 = vadd.f32 %v3396_v37, %v3395_v60  ;;  %5836 = vmatpush1.bf16.msra.mxu0 %v8686_v38  ;;  %5868 = vmatpush1.bf16.msra.mxu1 %v9783_v12  ;;  %v3399_v38 = vrot.slane %v3387_v21, 4  ;;  %v3956_v21 = vld [vmem:[%s9604_s4 + $0x150] sm:$0xff]  ;;  %v3958_v60 = vld [vmem:[%s9604_s4 + $0x180] sm:$0xff]  ;;  %v9015_v12 = vpack.c.bf16 %v3965_v62, %v3961_v4 }
 0x57d   :  { %5838 = vmatprep.subr.bf16.mxu0 %v9784_v11  ;;  %5870 = vmatprep.subr.bf16.mxu1 %v9785_v5  ;;  %v8990_v50 = vpack.c.bf16 %v3956_v21, %v3952_v63  ;;  %v3962_v37 = vld [vmem:[%s9604_s4 + $0x1c0] sm:$0xff]  ;;  %v3960_v5 = vld [vmem:[%s9604_s4 + $0x190] sm:$0xff]  ;;  %v9123_v21 = vpack.c.bf16 %v3989_v27, %v3985_v3 }
 0x57e   :  { %6198 = vtanh.f32 %v8867_v47  ;;  %v9017_v11 = vpack.c.bf16 %v3962_v37, %v3958_v60  ;;  %v3986_v63 = vld [vmem:[%s9604_s4 + $0x340] sm:$0xff]  ;;  %v3988_v4 = vld [vmem:[%s9604_s4 + $0x350] sm:$0xff]  ;;  %v3991_v60 = vld [vmem:[%s9604_s4 + $0x388] sm:$0xff] }
 0x57f   :  { %v9125_v8 = vpack.c.bf16 %v3986_v63, %v3982_v28  ;;  %v9134_v62 = vpack.c.bf16 %v3988_v4, %v3984_v40  ;;  %v3995_v37 = vld [vmem:[%s9604_s4 + $0x3c8] sm:$0xff]  ;;  %v9787_v4 = vcombine.high %v9767_v34, %v9768_v30 }
 0x580   :  { %5840 = vmatpush1.bf16.msra.mxu0 %v8726_v45  ;;  %5872 = vmatpush1.bf16.msra.mxu1 %v9786_v22  ;;  %v3964_v22 = vld [vmem:[%s9604_s4 + $0x1d0] sm:$0xff] }
 0x581   :  { %5842 = vmatprep.subr.bf16.mxu0 %v8738_v46  ;;  %5874 = vmatprep.subr.bf16.mxu1 %v8740_v16  ;;  %v3402_v16 = vld [vmem:[#allocation6] sm:$0xf] }
 0x584   :  { %5844 = vmatpush1.bf16.msra.mxu0 %v8763_v54  ;;  %5876 = vmatpush1.bf16.msra.mxu1 %v8765_v43  ;;  %v3935_v43 = vld [vmem:[%s9604_s4 + $0x8] sm:$0xff] }
 0x585   :  { %5846 = vmatprep.subr.bf16.mxu0 %v8772_v41  ;;  %5878 = vmatprep.subr.bf16.mxu1 %v8774_v55  ;;  %v3416_v41 = vld [vmem:[#allocation7] sm:$0xf] }
 0x588   :  { %v6199_v57 = vpop.eup %6198  ;;  %5848 = vmatpush1.bf16.msra.mxu0 %v8787_v42  ;;  %5880 = vmatpush1.bf16.msra.mxu1 %v8789_v7  ;;  %v3939_v42 = vld [vmem:[%s9604_s4 + $0x48] sm:$0xff]  ;;  %v3937_v7 = vld [vmem:[%s9604_s4 + $0x18] sm:$0xff] }
 0x589   :  { %v3401_v45 = vmul.f32 %v6199_v57, %v3399_v38  ;;  %v8896_v32 = vpack.c.bf16 %v3939_v42, %v3935_v43  ;;  %v8907_v10 = vpack.c.bf16 %v3941_v15, %v3937_v7  ;;  %v9026_v38 = vpack.c.bf16 %v3964_v22, %v3960_v5  ;;  %v3967_v57 = vld [vmem:[%s9604_s4 + $0x208] sm:$0xff]  ;;  %v3968_v42 = vld [vmem:[%s9604_s4 + $0x210] sm:$0xff]  ;;  %v3993_v5 = vld [vmem:[%s9604_s4 + $0x398] sm:$0xff] }
 0x58a   :  { %v3972_v7 = vld [vmem:[%s9604_s4 + $0x250] sm:$0xff]  ;;  %v9148_v22 = vpack.c.bf16 %v3995_v37, %v3991_v60 }
 0x58b   :  { %v3405_v26 = vcombine.low %v3358_v25, %v3401_v45  ;;  %3754 = vmatmul.mubr.f32.vlgmr.msra.gmra.mrb[30].mxu0 %v3401_v45  ;;  %3825 = vmatmul.mubr.f32.vlgmr.msra.gmra.mrb[30].mxu1 %v3401_v45  ;;  %v3951_v25 = vld [vmem:[%s9604_s4 + $0x108] sm:$0xff]  ;;  %v9062_v15 = vpack.c.bf16 %v3972_v7, %v3968_v42  ;;  %v3996_v42 = vld [vmem:[%s9604_s4 + $0x3d0] sm:$0xff] }
 0x58c   :  { %4062 = vmatprep.mubr.f32.mxu0 %v9692_v2  ;;  %4133 = vmatprep.mubr.f32.mxu1 %v9692_v2  ;;  %v8968_v1 = vpack.c.bf16 %v3955_v20, %v3951_v25  ;;  %v3971_v45 = vld [vmem:[%s9604_s4 + $0x248] sm:$0xff] }
 0x58d   :  { %v3412_v46 = vrot.slane %v3405_v26, %v6479_v35  ;;  %5882 = vmatprep.subr.bf16.mxu0 %v8896_v32  ;;  %5914 = vmatprep.subr.bf16.mxu1 %v8907_v10  ;;  %v3969_v26 = vld [vmem:[%s9604_s4 + $0x218] sm:$0xff]  ;;  %v3983_v25 = vld [vmem:[%s9604_s4 + $0x308] sm:$0xff] }
 0x58e   :  { %5884 = vmatpush1.bf16.msra.mxu0 %v8909_v39  ;;  %5916 = vmatpush1.bf16.msra.mxu1 %v8918_v36  ;;  %v3987_v20 = vld [vmem:[%s9604_s4 + $0x348] sm:$0xff] }
 0x58f   :  { %v3414_v54 = vadd.f32 %v3412_v46, %v3402_v16  ;;  %v3417_v55 = vmax.f32 %v3416_v41, %v3412_v46  ;;  %5886 = vmatprep.subr.bf16.mxu0 %v8932_v23  ;;  %5918 = vmatprep.subr.bf16.mxu1 %v8943_v31  ;;  %v9040_v46 = vpack.c.bf16 %v3971_v45, %v3967_v57  ;;  %v3973_v16 = vld [vmem:[%s9604_s4 + $0x258] sm:$0xff]  ;;  %v3966_v41 = vld [vmem:[%s9604_s4 + $0x200] sm:$0xff] }
 0x590   :  { %v9112_v48 = vpack.c.bf16 %v3987_v20, %v3983_v25  ;;  %v3997_v57 = vld [vmem:[%s9604_s4 + $0x3d8] sm:$0xff]  ;;  %v3990_v45 = vld [vmem:[%s9604_s4 + $0x380] sm:$0xff] }
 0x591   :  { %3415 = vst [vmem:[#allocation6] sm:$0xf] %v3414_v54  ;;  %3418 = vst [vmem:[#allocation7] sm:$0xf] %v3417_v55  ;;  %v3970_v54 = vld [vmem:[%s9604_s4 + $0x240] sm:$0xff]  ;;  %v9051_v55 = vpack.c.bf16 %v3973_v16, %v3969_v26  ;;  %v9159_v16 = vpack.c.bf16 %v3997_v57, %v3993_v5 }
 0x592   :  { %5888 = vmatpush1.bf16.msra.mxu0 %v8945_v58  ;;  %5920 = vmatpush1.bf16.msra.mxu1 %v8954_v33  ;;  %v9053_v43 = vpack.c.bf16 %v3970_v54, %v3966_v41  ;;  %v3994_v26 = vld [vmem:[%s9604_s4 + $0x3c0] sm:$0xff]  ;;  %v3992_v54 = vld [vmem:[%s9604_s4 + $0x390] sm:$0xff] }
 0x593   :  { %5890 = vmatprep.subr.bf16.mxu0 %v8968_v1  ;;  %5922 = vmatprep.subr.bf16.mxu1 %v8979_v19  ;;  %v9161_v41 = vpack.c.bf16 %v3994_v26, %v3990_v45  ;;  %v9170_v7 = vpack.c.bf16 %v3996_v42, %v3992_v54 }
 0x596   :  { %5892 = vmatpush1.bf16.msra.mxu0 %v8981_v61  ;;  %5924 = vmatpush1.bf16.msra.mxu1 %v8990_v50 }
 0x597   :  { %5894 = vmatprep.subr.bf16.mxu0 %v9004_v44  ;;  %5926 = vmatprep.subr.bf16.mxu1 %v9015_v12 }
 0x59a   :  { %5896 = vmatpush1.bf16.msra.mxu0 %v9017_v11  ;;  %5928 = vmatpush1.bf16.msra.mxu1 %v9026_v38 }
 0x59b   :  { %5898 = vmatprep.subr.bf16.mxu0 %v9040_v46  ;;  %5930 = vmatprep.subr.bf16.mxu1 %v9051_v55 }
 0x59e   :  { %5900 = vmatpush1.bf16.msra.mxu0 %v9053_v43  ;;  %5932 = vmatpush1.bf16.msra.mxu1 %v9062_v15 }
 0x59f   :  { %5902 = vmatprep.subr.bf16.mxu0 %v9076_v18  ;;  %5934 = vmatprep.subr.bf16.mxu1 %v9087_v49 }
 0x5a2   :  { %5904 = vmatpush1.bf16.msra.mxu0 %v9089_v51  ;;  %5936 = vmatpush1.bf16.msra.mxu1 %v9098_v24 }
 0x5a3   :  { %5906 = vmatprep.subr.bf16.mxu0 %v9112_v48  ;;  %5938 = vmatprep.subr.bf16.mxu1 %v9123_v21 }
 0x5a6   :  { %5908 = vmatpush1.bf16.msra.mxu0 %v9125_v8  ;;  %5940 = vmatpush1.bf16.msra.mxu1 %v9134_v62 }
 0x5a7   :  { %5910 = vmatprep.subr.bf16.mxu0 %v9148_v22  ;;  %5942 = vmatprep.subr.bf16.mxu1 %v9159_v16 }
 0x5aa   :  { %5912 = vmatpush1.bf16.msra.mxu0 %v9161_v41  ;;  %5944 = vmatpush1.bf16.msra.mxu1 %v9170_v7 }
 0x5ab   :  { %5946 = vmatprep.subr.bf16.mxu0 %v9184_v14  ;;  %5978 = vmatprep.subr.bf16.mxu1 %v9189_v53 }
 0x63e   :  { %v3549_v9 = vpop.f32.mrb[28].mxu0  ;;  %v3620_v59 = vpop.f32.mrb[28].mxu1 }
 0x63f   :  { %v3551_v25 = vpop.f32.mrb[29].mxu0  ;;  %v3622_v20 = vpop.f32.mrb[29].mxu1 }
 0x640   :  { %v3837_v3 = vcombine.low %v3549_v9, %v3551_v25  ;;  %v3838_v27 = vcombine.low %v3620_v59, %v3622_v20 }
 0x642   :  { %v3845_v28 = vrot.slane %v3837_v3, %v6479_v35  ;;  %v3852_v63 = vrot.slane %v3838_v27, %v6479_v35 }
 0x644   :  { %v3853_v40 = vcombine.low %v3845_v28, %v3852_v63  ;;  %v4144_v28 = vld [vmem:[%s9604_s4 + $0x460] sm:$0xff]  ;;  %v9788_v63 = vcombine.low %v9770_v6, %v9771_v52  ;;  %v4151_v6 = vld [vmem:[%s9604_s4 + $0x4b8] sm:$0xff] }
 0x645   :  { %v4155_v52 = vld [vmem:[%s9604_s4 + $0x4f8] sm:$0xff] }
 0x646   :  { %v3855_v60 = vadd.f32 %v3853_v40, %v9787_v4  ;;  %v4142_v4 = vld [vmem:[%s9604_s4 + $0x430] sm:$0xff] }
 0x648   :  { %v3856_v37 = vmul.f32 0.5, %v3855_v60  ;;  %v3861_v5 = vrot.slane %v3855_v60, 6  ;;  %v4146_v60 = vld [vmem:[%s9604_s4 + $0x470] sm:$0xff] }
 0x64a   :  { %6200 = vtanh.f32 %v3856_v37  ;;  %v4149_v37 = vld [vmem:[%s9604_s4 + $0x4a8] sm:$0xff] }
 0x64b   :  { %6202 = vtanh.f32 %v3861_v5  ;;  %v4153_v5 = vld [vmem:[%s9604_s4 + $0x4e8] sm:$0xff] }
 0x654   :  { %v6201_v57 = vpop.eup %6200 }
 0x655   :  { %v3858_v45 = vmul.f32 0.5, %v6201_v57  ;;  %v6203_v42 = vpop.eup %6202 }
 0x657   :  { %v3859_v26 = vadd.f32 0.5, %v3858_v45 }
 0x659   :  { %v3865_v54 = vrot.slane %v3859_v26, 2  ;;  %v3868_v13 = vmul.f32 %v6203_v42, %v3859_v26  ;;  %v3871_v45 = vrot.slane %v3859_v26, 4  ;;  %v4150_v26 = vld [vmem:[%s9604_s4 + $0x4b0] sm:$0xff] }
 0x65b   :  { %v3867_v29 = vmul.f32 %v3865_v54, %v8840_v56  ;;  %v4140_v56 = vld [vmem:[%s9604_s4 + $0x420] sm:$0xff] }
 0x65c   :  { %v9231_v42 = vpack.c.bf16 %v4144_v28, %v4140_v56 }
 0x65d   :  { %v9199_v17 = vadd.f32 %v3868_v13, %v3867_v29  ;;  %v9233_v29 = vpack.c.bf16 %v4146_v60, %v4142_v4  ;;  %v4148_v13 = vld [vmem:[%s9604_s4 + $0x4a0] sm:$0xff] }
 0x65e   :  { %v3755_v0 = vpop.f32.mrb[30].mxu0  ;;  %v3826_v9 = vpop.f32.mrb[30].mxu1  ;;  %v4156_v4 = vld [vmem:[%s9604_s4 + $0x520] sm:$0xff] }
 0x65f   :  { %v3757_v59 = vpop.f32.mrb[31].mxu0  ;;  %v3828_v25 = vpop.f32.mrb[31].mxu1  ;;  %6204 = vtanh.f32 %v9199_v17 }
 0x660   :  { %v3880_v34 = vcombine.low %v3755_v0, %v3757_v59  ;;  %v3881_v30 = vcombine.low %v3826_v9, %v3828_v25  ;;  %v4152_v0 = vld [vmem:[%s9604_s4 + $0x4e0] sm:$0xff]  ;;  %v9243_v59 = vpack.c.bf16 %v4153_v5, %v4149_v37  ;;  %v9245_v25 = vpack.c.bf16 %v4155_v52, %v4151_v6  ;;  %v4158_v5 = vld [vmem:[%s9604_s4 + $0x530] sm:$0xff]  ;;  %v4165_v52 = vld [vmem:[%s9604_s4 + $0x5a8] sm:$0xff] }
 0x661   :  { %v9269_v28 = vpack.c.bf16 %v4152_v0, %v4148_v13  ;;  %v4162_v6 = vld [vmem:[%s9604_s4 + $0x570] sm:$0xff] }
 0x662   :  { %v3888_v20 = vrot.slane %v3880_v34, %v6479_v35  ;;  %v3895_v3 = vrot.slane %v3881_v30, %v6479_v35  ;;  %v4154_v34 = vld [vmem:[%s9604_s4 + $0x4f0] sm:$0xff]  ;;  %v4157_v30 = vld [vmem:[%s9604_s4 + $0x528] sm:$0xff]  ;;  %v9309_v0 = vpack.c.bf16 %v4162_v6, %v4158_v5  ;;  %v4179_v5 = vld [vmem:[%s9604_s4 + $0x678] sm:$0xff] }
 0x664   :  { %v3896_v27 = vcombine.low %v3888_v20, %v3895_v3  ;;  %v4161_v20 = vld [vmem:[%s9604_s4 + $0x568] sm:$0xff]  ;;  %v4159_v3 = vld [vmem:[%s9604_s4 + $0x538] sm:$0xff]  ;;  %9792 = vst [vmem:[#allocation33_spill] sm:$0xff] %v9309_v0 }
 0x665   :  { %v9281_v60 = vpack.c.bf16 %v4161_v20, %v4157_v30 }
 0x666   :  { %v3898_v40 = vadd.f32 %v3896_v27, %v9788_v63  ;;  %v4163_v27 = vld [vmem:[%s9604_s4 + $0x578] sm:$0xff]  ;;  %v9271_v63 = vpack.c.bf16 %v4154_v34, %v4150_v26  ;;  %v4164_v26 = vld [vmem:[%s9604_s4 + $0x5a0] sm:$0xff] }
 0x667   :  { %9789 = vst [vmem:[#allocation30_spill] sm:$0xff] %v9281_v60  ;;  %v9283_v37 = vpack.c.bf16 %v4163_v27, %v4159_v3  ;;  %v4168_v34 = vld [vmem:[%s9604_s4 + $0x5e0] sm:$0xff]  ;;  %v4166_v3 = vld [vmem:[%s9604_s4 + $0x5b0] sm:$0xff] }
 0x668   :  { %v3899_v57 = vmul.f32 0.5, %v3898_v40  ;;  %v3904_v56 = vrot.slane %v3898_v40, 6  ;;  %v4160_v40 = vld [vmem:[%s9604_s4 + $0x560] sm:$0xff]  ;;  %v4170_v27 = vld [vmem:[%s9604_s4 + $0x5f0] sm:$0xff] }
 0x669   :  { %v6205_v54 = vpop.eup %6204  ;;  %9790 = vst [vmem:[#allocation31_spill] sm:$0xff] %v9283_v37  ;;  %v9307_v13 = vpack.c.bf16 %v4160_v40, %v4156_v4  ;;  %v4177_v4 = vld [vmem:[%s9604_s4 + $0x668] sm:$0xff]  ;;  %v4175_v40 = vld [vmem:[%s9604_s4 + $0x638] sm:$0xff] }
 0x66a   :  { %6206 = vtanh.f32 %v3899_v57  ;;  %v9241_v9 = vmul.f32 %v6205_v54, %v3871_v45  ;;  %v4169_v57 = vld [vmem:[%s9604_s4 + $0x5e8] sm:$0xff]  ;;  %v4167_v45 = vld [vmem:[%s9604_s4 + $0x5b8] sm:$0xff] }
 0x66b   :  { %v4171_v54 = vld [vmem:[%s9604_s4 + $0x5f8] sm:$0xff]  ;;  %6208 = vtanh.f32 %v3904_v56  ;;  %9791 = vst [vmem:[#allocation32_spill] sm:$0xff] %v9307_v13  ;;  %v9319_v30 = vpack.c.bf16 %v4169_v57, %v4165_v52  ;;  %v4173_v56 = vld [vmem:[%s9604_s4 + $0x628] sm:$0xff]  ;;  %v9343_v57 = vpack.c.bf16 %v4168_v34, %v4164_v26  ;;  %v4174_v26 = vld [vmem:[%s9604_s4 + $0x630] sm:$0xff] }
 0x66c   :  { %4063 = vmatmul.mubr.f32.vlgmr.msra.gmra.mrb[32].mxu0 %v9241_v9  ;;  %4134 = vmatmul.mubr.f32.vlgmr.msra.gmra.mrb[32].mxu1 %v9241_v9  ;;  %v9321_v20 = vpack.c.bf16 %v4171_v54, %v4167_v45  ;;  %v9345_v45 = vpack.c.bf16 %v4170_v27, %v4166_v3  ;;  %v4172_v54 = vld [vmem:[%s9604_s4 + $0x620] sm:$0xff]  ;;  %v4178_v34 = vld [vmem:[%s9604_s4 + $0x670] sm:$0xff]  ;;  %v4181_v3 = vld [vmem:[%s9604_s4 + $0x6a8] sm:$0xff] }
 0x66d   :  { %5948 = vmatpush1.bf16.msra.mxu0 %v9231_v42  ;;  %5980 = vmatpush1.bf16.msra.mxu1 %v9233_v29  ;;  %9793 = vst [vmem:[#allocation18_spill] sm:$0xff] %v9319_v30  ;;  %9795 = vst [vmem:[#allocation23_spill] sm:$0xff] %v9343_v57 }
 0x66e   :  { %5950 = vmatprep.subr.bf16.mxu0 %v9243_v59  ;;  %5982 = vmatprep.subr.bf16.mxu1 %v9245_v25  ;;  %9794 = vst [vmem:[#allocation20_spill] sm:$0xff] %v9321_v20  ;;  %9796 = vst [vmem:[#allocation25_spill] sm:$0xff] %v9345_v45 }
 0x66f   :  { %4268 = vmatprep.mubr.f32.mxu0 %v9692_v2  ;;  %4339 = vmatprep.mubr.f32.mxu1 %v9692_v2 }
 0x671   :  { %5952 = vmatpush1.bf16.msra.mxu0 %v9269_v28  ;;  %5984 = vmatpush1.bf16.msra.mxu1 %v9271_v63 }
 0x672   :  { %5954 = vmatprep.subr.bf16.mxu0 %v9281_v60  ;;  %5986 = vmatprep.subr.bf16.mxu1 %v9283_v37  ;;  %v4176_v37 = vld [vmem:[%s9604_s4 + $0x660] sm:$0xff] }
 0x674   :  { %v6207_v6 = vpop.eup %6206 }
 0x675   :  { %v3901_v52 = vmul.f32 0.5, %v6207_v6  ;;  %5956 = vmatpush1.bf16.msra.mxu0 %v9307_v13  ;;  %5988 = vmatpush1.bf16.msra.mxu1 %v9309_v0  ;;  %v9355_v6 = vpack.c.bf16 %v4177_v4, %v4173_v56  ;;  %v9357_v13 = vpack.c.bf16 %v4179_v5, %v4175_v40  ;;  %v4185_v56 = vld [vmem:[%s9604_s4 + $0x6e8] sm:$0xff]  ;;  %v4183_v4 = vld [vmem:[%s9604_s4 + $0x6b8] sm:$0xff]  ;;  %v4184_v0 = vld [vmem:[%s9604_s4 + $0x6e0] sm:$0xff]  ;;  %v6209_v60 = vpop.eup %6208 }
 0x676   :  { %5958 = vmatprep.subr.bf16.mxu0 %v9319_v30  ;;  %5990 = vmatprep.subr.bf16.mxu1 %v9321_v20  ;;  %v4187_v40 = vld [vmem:[%s9604_s4 + $0x6f8] sm:$0xff]  ;;  %v9384_v20 = vpack.c.bf16 %v4178_v34, %v4174_v26  ;;  %v4180_v30 = vld [vmem:[%s9604_s4 + $0x6a0] sm:$0xff]  ;;  %v4189_v26 = vld [vmem:[%s9604_s4 + $0x728] sm:$0xff] }
 0x677   :  { %9797 = vst [vmem:[#allocation8_spill] sm:$0xff] %v9355_v6  ;;  %9798 = vst [vmem:[#allocation9_spill] sm:$0xff] %v9357_v13  ;;  %v9368_v27 = vadd.f32 0.5, %v3901_v52  ;;  %v9382_v52 = vpack.c.bf16 %v4176_v37, %v4172_v54  ;;  %v4182_v37 = vld [vmem:[%s9604_s4 + $0x6b0] sm:$0xff] }
 0x678   :  { %9799 = vst [vmem:[#allocation10_spill] sm:$0xff] %v9384_v20  ;;  %v4186_v54 = vld [vmem:[%s9604_s4 + $0x6f0] sm:$0xff] }
 0x679   :  { %v3908_v5 = vrot.slane %v9368_v27, 2  ;;  %5960 = vmatpush1.bf16.msra.mxu0 %v9343_v57  ;;  %5992 = vmatpush1.bf16.msra.mxu1 %v9345_v45  ;;  %v9394_v57 = vpack.c.bf16 %v4185_v56, %v4181_v3  ;;  %v9396_v45 = vpack.c.bf16 %v4187_v40, %v4183_v4  ;;  %v4193_v3 = vld [vmem:[%s9604_s4 + $0x768] sm:$0xff]  ;;  %v4191_v56 = vld [vmem:[%s9604_s4 + $0x738] sm:$0xff] }
 0x67a   :  { %5962 = vmatprep.subr.bf16.mxu0 %v9355_v6  ;;  %5994 = vmatprep.subr.bf16.mxu1 %v9357_v13  ;;  %v3911_v13 = vmul.f32 %v6209_v60, %v9368_v27  ;;  %v4195_v4 = vld [vmem:[%s9604_s4 + $0x778] sm:$0xff]  ;;  %v9424_v60 = vpack.c.bf16 %v4186_v54, %v4182_v37  ;;  %v4192_v6 = vld [vmem:[%s9604_s4 + $0x760] sm:$0xff]  ;;  %v4197_v37 = vld [vmem:[%s9604_s4 + $0x7a8] sm:$0xff] }
 0x67b   :  { %9800 = vst [vmem:[#allocation11_spill] sm:$0xff] %v9394_v57  ;;  %9801 = vst [vmem:[#allocation12_spill] sm:$0xff] %v9396_v45  ;;  %v3910_v34 = vmul.f32 %v3908_v5, %v8867_v47  ;;  %v9422_v47 = vpack.c.bf16 %v4184_v0, %v4180_v30  ;;  %v4188_v5 = vld [vmem:[%s9604_s4 + $0x720] sm:$0xff]  ;;  %v4190_v0 = vld [vmem:[%s9604_s4 + $0x730] sm:$0xff] }
 0x67c   :  { %9802 = vst [vmem:[#allocation13_spill] sm:$0xff] %v9424_v60  ;;  %v4194_v30 = vld [vmem:[%s9604_s4 + $0x770] sm:$0xff]  ;;  %v4201_v54 = vld [vmem:[%s9604_s4 + $0x7e8] sm:$0xff] }
 0x67d   :  { %v9418_v40 = vadd.f32 %v3911_v13, %v3910_v34  ;;  %5964 = vmatpush1.bf16.msra.mxu0 %v9382_v52  ;;  %5996 = vmatpush1.bf16.msra.mxu1 %v9384_v20  ;;  %v9434_v13 = vpack.c.bf16 %v4193_v3, %v4189_v26  ;;  %v9436_v34 = vpack.c.bf16 %v4195_v4, %v4191_v56  ;;  %v4199_v26 = vld [vmem:[%s9604_s4 + $0x7b8] sm:$0xff] }
 0x67e   :  { %5966 = vmatprep.subr.bf16.mxu0 %v9394_v57  ;;  %5998 = vmatprep.subr.bf16.mxu1 %v9396_v45  ;;  %v4203_v3 = vld [vmem:[%s9604_s4 + $0x7f8] sm:$0xff]  ;;  %v9459_v56 = vpack.c.bf16 %v4192_v6, %v4188_v5  ;;  %v9461_v4 = vpack.c.bf16 %v4194_v30, %v4190_v0  ;;  %v4196_v45 = vld [vmem:[%s9604_s4 + $0x7a0] sm:$0xff]  ;;  %v9468_v57 = vpack.c.bf16 %v4201_v54, %v4197_v37  ;;  %v4198_v6 = vld [vmem:[%s9604_s4 + $0x7b0] sm:$0xff]  ;;  %v3914_v37 = vrot.slane %v9368_v27, 4 }
 0x67f   :  { %6210 = vtanh.f32 %v9418_v40  ;;  %v9470_v20 = vpack.c.bf16 %v4203_v3, %v4199_v26  ;;  %v4202_v5 = vld [vmem:[%s9604_s4 + $0x7f0] sm:$0xff]  ;;  %v3931_v3 = vld [vmem:[#allocation7] sm:$0xf] }
 0x680   :  { %v9485_v30 = vpack.c.bf16 %v4202_v5, %v4198_v6  ;;  %v9807_v6 = vld [vmem:[#allocation24_spill] sm:$0xff] }
 0x681   :  { %5968 = vmatpush1.bf16.msra.mxu0 %v9422_v47  ;;  %6000 = vmatpush1.bf16.msra.mxu1 %v9424_v60  ;;  %v4200_v60 = vld [vmem:[%s9604_s4 + $0x7e0] sm:$0xff] }
 0x682   :  { %5970 = vmatprep.subr.bf16.mxu0 %v9434_v13  ;;  %6002 = vmatprep.subr.bf16.mxu1 %v9436_v34  ;;  %v9483_v0 = vpack.c.bf16 %v4200_v60, %v4196_v45  ;;  %v3917_v60 = vld [vmem:[#allocation6] sm:$0xf] }
 0x685   :  { %5972 = vmatpush1.bf16.msra.mxu0 %v9459_v56  ;;  %6004 = vmatpush1.bf16.msra.mxu1 %v9461_v4 }
 0x686   :  { %5974 = vmatprep.subr.bf16.mxu0 %v9468_v57  ;;  %6006 = vmatprep.subr.bf16.mxu1 %v9470_v20 }
 0x689   :  { %v6211_v54 = vpop.eup %6210  ;;  %5976 = vmatpush1.bf16.msra.mxu0 %v9483_v0  ;;  %6008 = vmatpush1.bf16.msra.mxu1 %v9485_v30 }
 0x68a   :  { %v3916_v26 = vmul.f32 %v6211_v54, %v3914_v37  ;;  %6010 = vmatprep.subr.bf16.mxu0 %v8896_v32  ;;  %6042 = vmatprep.subr.bf16.mxu1 %v8907_v10 }
 0x68c   :  { %v3920_v45 = vcombine.low %v9241_v9, %v3916_v26  ;;  %4269 = vmatmul.mubr.f32.vlgmr.msra.gmra.mrb[34].mxu0 %v3916_v26  ;;  %4340 = vmatmul.mubr.f32.vlgmr.msra.gmra.mrb[34].mxu1 %v3916_v26  ;;  %v9806_v9 = vld [vmem:[#allocation22_spill] sm:$0xff] }
 0x68d   :  { %6012 = vmatpush1.bf16.msra.mxu0 %v8909_v39  ;;  %6044 = vmatpush1.bf16.msra.mxu1 %v8918_v36  ;;  %v9808_v5 = vcombine.high %v9806_v9, %v9807_v6 }
 0x68e   :  { %v3927_v27 = vrot.slane %v3920_v45, %v6479_v35  ;;  %6014 = vmatprep.subr.bf16.mxu0 %v8932_v23  ;;  %6046 = vmatprep.subr.bf16.mxu1 %v8943_v31 }
 0x68f   :  { %4577 = vmatprep.mubr.f32.mxu0 %v9692_v2  ;;  %4648 = vmatprep.mubr.f32.mxu1 %v9692_v2 }
 0x690   :  { %v3929_v32 = vadd.f32 %v3927_v27, %v3917_v60  ;;  %v3932_v10 = vmax.f32 %v3931_v3, %v3927_v27  ;;  %v9809_v60 = vld [vmem:[#allocation30_spill] sm:$0xff]  ;;  %v9810_v3 = vld [vmem:[#allocation31_spill] sm:$0xff] }
 0x691   :  { %6016 = vmatpush1.bf16.msra.mxu0 %v8945_v58  ;;  %6048 = vmatpush1.bf16.msra.mxu1 %v8954_v33 }
 0x692   :  { %3930 = vst [vmem:[#allocation6] sm:$0xf] %v3929_v32  ;;  %3933 = vst [vmem:[#allocation7] sm:$0xf] %v3932_v10  ;;  %6018 = vmatprep.subr.bf16.mxu0 %v8968_v1  ;;  %6050 = vmatprep.subr.bf16.mxu1 %v8979_v19  ;;  %v9814_v10 = vld [vmem:[#allocation20_spill] sm:$0xff] }
 0x695   :  { %6020 = vmatpush1.bf16.msra.mxu0 %v8981_v61  ;;  %6052 = vmatpush1.bf16.msra.mxu1 %v8990_v50  ;;  %v9803_v50 = vld [vmem:[#allocation19_spill] sm:$0xff] }
 0x696   :  { %6022 = vmatprep.subr.bf16.mxu0 %v9004_v44  ;;  %6054 = vmatprep.subr.bf16.mxu1 %v9015_v12  ;;  %v9804_v44 = vld [vmem:[#allocation21_spill] sm:$0xff] }
 0x697   :  { %v9805_v12 = vcombine.low %v9803_v50, %v9804_v44 }
 0x699   :  { %6024 = vmatpush1.bf16.msra.mxu0 %v9017_v11  ;;  %6056 = vmatpush1.bf16.msra.mxu1 %v9026_v38 }
 0x69a   :  { %6026 = vmatprep.subr.bf16.mxu0 %v9040_v46  ;;  %6058 = vmatprep.subr.bf16.mxu1 %v9051_v55 }
 0x69d   :  { %6028 = vmatpush1.bf16.msra.mxu0 %v9053_v43  ;;  %6060 = vmatpush1.bf16.msra.mxu1 %v9062_v15 }
 0x69e   :  { %6030 = vmatprep.subr.bf16.mxu0 %v9076_v18  ;;  %6062 = vmatprep.subr.bf16.mxu1 %v9087_v49 }
 0x6a1   :  { %6032 = vmatpush1.bf16.msra.mxu0 %v9089_v51  ;;  %6064 = vmatpush1.bf16.msra.mxu1 %v9098_v24 }
 0x6a2   :  { %6034 = vmatprep.subr.bf16.mxu0 %v9112_v48  ;;  %6066 = vmatprep.subr.bf16.mxu1 %v9123_v21 }
 0x6a5   :  { %6036 = vmatpush1.bf16.msra.mxu0 %v9125_v8  ;;  %6068 = vmatpush1.bf16.msra.mxu1 %v9134_v62 }
 0x6a6   :  { %6038 = vmatprep.subr.bf16.mxu0 %v9148_v22  ;;  %6070 = vmatprep.subr.bf16.mxu1 %v9159_v16 }
 0x6a9   :  { %6040 = vmatpush1.bf16.msra.mxu0 %v9161_v41  ;;  %6072 = vmatpush1.bf16.msra.mxu1 %v9170_v7 }
 0x6aa   :  { %6074 = vmatprep.subr.bf16.mxu0 %v9184_v14  ;;  %6106 = vmatprep.subr.bf16.mxu1 %v9189_v53 }
 0x73f   :  { %v4064_v39 = vpop.f32.mrb[32].mxu0  ;;  %v4135_v36 = vpop.f32.mrb[32].mxu1 }
 0x740   :  { %v4066_v23 = vpop.f32.mrb[33].mxu0  ;;  %v4137_v31 = vpop.f32.mrb[33].mxu1 }
 0x741   :  { %v4352_v58 = vcombine.low %v4064_v39, %v4066_v23  ;;  %v4353_v33 = vcombine.low %v4135_v36, %v4137_v31  ;;  %v9815_v36 = vld [vmem:[#allocation23_spill] sm:$0xff]  ;;  %v9817_v23 = vld [vmem:[#allocation8_spill] sm:$0xff]  ;;  %v9818_v31 = vld [vmem:[#allocation9_spill] sm:$0xff] }
 0x743   :  { %v4360_v1 = vrot.slane %v4352_v58, %v6479_v35  ;;  %v4367_v19 = vrot.slane %v4353_v33, %v6479_v35 }
 0x745   :  { %v4368_v61 = vcombine.low %v4360_v1, %v4367_v19  ;;  %v9819_v19 = vld [vmem:[#allocation10_spill] sm:$0xff] }
 0x747   :  { %v4370_v11 = vadd.f32 %v4368_v61, %v9805_v12  ;;  %v9820_v61 = vld [vmem:[#allocation11_spill] sm:$0xff]  ;;  %v9821_v12 = vld [vmem:[#allocation12_spill] sm:$0xff] }
 0x749   :  { %v4371_v38 = vmul.f32 0.5, %v4370_v11  ;;  %v4376_v46 = vrot.slane %v4370_v11, 6  ;;  %v9822_v11 = vld [vmem:[#allocation13_spill] sm:$0xff] }
 0x74b   :  { %6212 = vtanh.f32 %v4371_v38 }
 0x74c   :  { %6214 = vtanh.f32 %v4376_v46 }
 0x755   :  { %v6213_v55 = vpop.eup %6212 }
 0x756   :  { %v4373_v43 = vmul.f32 0.5, %v6213_v55  ;;  %v6215_v49 = vpop.eup %6214 }
 0x758   :  { %v4374_v15 = vadd.f32 0.5, %v4373_v43 }
 0x75a   :  { %v4380_v18 = vrot.slane %v4374_v15, 2  ;;  %v4383_v24 = vmul.f32 %v6215_v49, %v4374_v15  ;;  %v4386_v54 = vrot.slane %v4374_v15, 4 }
 0x75c   :  { %v4382_v51 = vmul.f32 %v4380_v18, %v9199_v17 }
 0x75e   :  { %v9536_v48 = vadd.f32 %v4383_v24, %v4382_v51  ;;  %v9823_v51 = vcombine.high %v9803_v50, %v9804_v44 }
 0x75f   :  { %v4270_v21 = vpop.f32.mrb[34].mxu0  ;;  %v4341_v8 = vpop.f32.mrb[34].mxu1 }
 0x760   :  { %v4272_v62 = vpop.f32.mrb[35].mxu0  ;;  %v4343_v22 = vpop.f32.mrb[35].mxu1  ;;  %6216 = vtanh.f32 %v9536_v48 }
 0x761   :  { %v4395_v16 = vcombine.low %v4270_v21, %v4272_v62  ;;  %v4396_v41 = vcombine.low %v4341_v8, %v4343_v22 }
 0x763   :  { %v4403_v7 = vrot.slane %v4395_v16, %v6479_v35  ;;  %v4410_v14 = vrot.slane %v4396_v41, %v6479_v35 }
 0x765   :  { %v4411_v53 = vcombine.low %v4403_v7, %v4410_v14 }
 0x767   :  { %v4413_v17 = vadd.f32 %v4411_v53, %v9808_v5 }
 0x769   :  { %v4414_v37 = vmul.f32 0.5, %v4413_v17  ;;  %v4419_v27 = vrot.slane %v4413_v17, 6 }
 0x76a   :  { %v6217_v26 = vpop.eup %6216 }
 0x76b   :  { %6218 = vtanh.f32 %v4414_v37  ;;  %v4388_v45 = vmul.f32 %v6217_v26, %v4386_v54 }
 0x76c   :  { %6220 = vtanh.f32 %v4419_v27 }
 0x76d   :  { %4578 = vmatmul.mubr.f32.vlgmr.msra.gmra.mrb[36].mxu0 %v4388_v45  ;;  %4649 = vmatmul.mubr.f32.vlgmr.msra.gmra.mrb[36].mxu1 %v4388_v45 }
 0x76e   :  { %6076 = vmatpush1.bf16.msra.mxu0 %v9231_v42  ;;  %6108 = vmatpush1.bf16.msra.mxu1 %v9233_v29  ;;  %v9811_v29 = vld [vmem:[#allocation32_spill] sm:$0xff] }
 0x76f   :  { %6078 = vmatprep.subr.bf16.mxu0 %v9243_v59  ;;  %6110 = vmatprep.subr.bf16.mxu1 %v9245_v25  ;;  %v9812_v59 = vld [vmem:[#allocation33_spill] sm:$0xff]  ;;  %v9813_v25 = vld [vmem:[#allocation18_spill] sm:$0xff] }
 0x770   :  { %4783 = vmatprep.mubr.f32.mxu0 %v9692_v2  ;;  %4854 = vmatprep.mubr.f32.mxu1 %v9692_v2 }
 0x772   :  { %6080 = vmatpush1.bf16.msra.mxu0 %v9269_v28  ;;  %6112 = vmatpush1.bf16.msra.mxu1 %v9271_v63  ;;  %v9816_v28 = vld [vmem:[#allocation25_spill] sm:$0xff] }
 0x773   :  { %6082 = vmatprep.subr.bf16.mxu0 %v9809_v60  ;;  %6114 = vmatprep.subr.bf16.mxu1 %v9810_v3  ;;  %v9824_v3 = vcombine.low %v9806_v9, %v9807_v6 }
 0x775   :  { %v6219_v42 = vpop.eup %6218 }
 0x776   :  { %v4416_v32 = vmul.f32 0.5, %v6219_v42  ;;  %6084 = vmatpush1.bf16.msra.mxu0 %v9811_v29  ;;  %6116 = vmatpush1.bf16.msra.mxu1 %v9812_v59  ;;  %v6221_v63 = vpop.eup %6220 }
 0x777   :  { %6086 = vmatprep.subr.bf16.mxu0 %v9813_v25  ;;  %6118 = vmatprep.subr.bf16.mxu1 %v9814_v10 }
 0x778   :  { %v4417_v2 = vadd.f32 0.5, %v4416_v32 }
 0x77a   :  { %v4423_v39 = vrot.slane %v4417_v2, 2  ;;  %6088 = vmatpush1.bf16.msra.mxu0 %v9815_v36  ;;  %6120 = vmatpush1.bf16.msra.mxu1 %v9816_v28  ;;  %v4426_v33 = vmul.f32 %v6221_v63, %v4417_v2 }
 0x77b   :  { %6090 = vmatprep.subr.bf16.mxu0 %v9817_v23  ;;  %6122 = vmatprep.subr.bf16.mxu1 %v9818_v31 }
 0x77c   :  { %v4425_v58 = vmul.f32 %v4423_v39, %v9418_v40 }
 0x77e   :  { %v9563_v1 = vadd.f32 %v4426_v33, %v4425_v58  ;;  %6092 = vmatpush1.bf16.msra.mxu0 %v9382_v52  ;;  %6124 = vmatpush1.bf16.msra.mxu1 %v9819_v19  ;;  %v4429_v52 = vrot.slane %v4417_v2, 4 }
 0x77f   :  { %6094 = vmatprep.subr.bf16.mxu0 %v9820_v61  ;;  %6126 = vmatprep.subr.bf16.mxu1 %v9821_v12 }
 0x780   :  { %6222 = vtanh.f32 %v9563_v1 }
 0x782   :  { %6096 = vmatpush1.bf16.msra.mxu0 %v9422_v47  ;;  %6128 = vmatpush1.bf16.msra.mxu1 %v9822_v11 }
 0x783   :  { %6098 = vmatprep.subr.bf16.mxu0 %v9434_v13  ;;  %6130 = vmatprep.subr.bf16.mxu1 %v9436_v34  ;;  %v4432_v34 = vld [vmem:[#allocation6] sm:$0xf] }
 0x786   :  { %6100 = vmatpush1.bf16.msra.mxu0 %v9459_v56  ;;  %6132 = vmatpush1.bf16.msra.mxu1 %v9461_v4  ;;  %v4446_v56 = vld [vmem:[#allocation7] sm:$0xf] }
 0x787   :  { %6102 = vmatprep.subr.bf16.mxu0 %v9468_v57  ;;  %6134 = vmatprep.subr.bf16.mxu1 %v9470_v20 }
 0x78a   :  { %v6223_v40 = vpop.eup %6222  ;;  %6104 = vmatpush1.bf16.msra.mxu0 %v9483_v0  ;;  %6136 = vmatpush1.bf16.msra.mxu1 %v9485_v30 }
 0x78b   :  { %v4431_v47 = vmul.f32 %v6223_v40, %v4429_v52 }
 0x78d   :  { %v4435_v38 = vcombine.low %v4388_v45, %v4431_v47  ;;  %4784 = vmatmul.mubr.f32.vlgmr.msra.gmra.mrb[38].mxu0 %v4431_v47  ;;  %4855 = vmatmul.mubr.f32.vlgmr.msra.gmra.mrb[38].mxu1 %v4431_v47 }
 0x78f   :  { %v4442_v13 = vrot.slane %v4435_v38, %v6479_v35 }
 0x791   :  { %v4444_v46 = vadd.f32 %v4442_v13, %v4432_v34  ;;  %v4447_v4 = vmax.f32 %v4446_v56, %v4442_v13 }
 0x793   :  { %4445 = vst [vmem:[#allocation6] sm:$0xf] %v4444_v46  ;;  %4448 = vst [vmem:[#allocation7] sm:$0xf] %v4447_v4 }
 0x79a   :  { %v4946_v61 = vld [vmem:[#allocation6] sm:$0xf]  ;;  %v4960_v12 = vld [vmem:[#allocation7] sm:$0xf] }
 0x840   :  { %v4579_v57 = vpop.f32.mrb[36].mxu0  ;;  %v4650_v20 = vpop.f32.mrb[36].mxu1 }
 0x841   :  { %v4581_v55 = vpop.f32.mrb[37].mxu0  ;;  %v4652_v43 = vpop.f32.mrb[37].mxu1 }
 0x842   :  { %v4867_v15 = vcombine.low %v4579_v57, %v4581_v55  ;;  %v4868_v0 = vcombine.low %v4650_v20, %v4652_v43 }
 0x844   :  { %v4875_v30 = vrot.slane %v4867_v15, %v6479_v35  ;;  %v4882_v18 = vrot.slane %v4868_v0, %v6479_v35 }
 0x846   :  { %v4883_v49 = vcombine.low %v4875_v30, %v4882_v18 }
 0x848   :  { %v4885_v24 = vadd.f32 %v4883_v49, %v9823_v51 }
 0x84a   :  { %v4886_v21 = vmul.f32 0.5, %v4885_v24  ;;  %v4891_v8 = vrot.slane %v4885_v24, 6 }
 0x84c   :  { %6224 = vtanh.f32 %v4886_v21 }
 0x84d   :  { %6226 = vtanh.f32 %v4891_v8 }
 0x856   :  { %v6225_v62 = vpop.eup %6224 }
 0x857   :  { %v4888_v22 = vmul.f32 0.5, %v6225_v62  ;;  %v6227_v7 = vpop.eup %6226 }
 0x859   :  { %v4889_v16 = vadd.f32 0.5, %v4888_v22 }
 0x85b   :  { %v4895_v41 = vrot.slane %v4889_v16, 2  ;;  %v4898_v53 = vmul.f32 %v6227_v7, %v4889_v16  ;;  %v4901_v23 = vrot.slane %v4889_v16, 4 }
 0x85d   :  { %v4897_v14 = vmul.f32 %v4895_v41, %v9536_v48 }
 0x85f   :  { %v4899_v5 = vadd.f32 %v4898_v53, %v4897_v14 }
 0x860   :  { %v4785_v17 = vpop.f32.mrb[38].mxu0  ;;  %v4856_v37 = vpop.f32.mrb[38].mxu1 }
 0x861   :  { %4964 = vst [vmem:[#allocation5] sm:$0x3] %v4899_v5  ;;  %v4787_v54 = vpop.f32.mrb[39].mxu0  ;;  %v4858_v26 = vpop.f32.mrb[39].mxu1 }
 0x862   :  { %v4909_v50 = vcombine.low %v4785_v17, %v4787_v54  ;;  %v4910_v44 = vcombine.low %v4856_v37, %v4858_v26 }
 0x864   :  { %v4917_v45 = vrot.slane %v4909_v50, %v6479_v35  ;;  %v4924_v27 = vrot.slane %v4910_v44, %v6479_v35 }
 0x866   :  { %v4925_v60 = vcombine.low %v4917_v45, %v4924_v27 }
 0x868   :  { %v4927_v42 = vadd.f32 %v4925_v60, %v9824_v3 }
 0x86a   :  { %v4928_v32 = vmul.f32 0.5, %v4927_v42  ;;  %v4933_v48 = vrot.slane %v4927_v42, 6 }
 0x86c   :  { %6228 = vtanh.f32 %v4928_v32 }
 0x86d   :  { %6230 = vtanh.f32 %v4933_v48 }
 0x86e   :  { %6232 = vtanh.f32 %v4899_v5 }
 0x876   :  { %v6229_v29 = vpop.eup %6228 }
 0x877   :  { %v4930_v59 = vmul.f32 0.5, %v6229_v29  ;;  %v6231_v2 = vpop.eup %6230 }
 0x878   :  { %v6233_v63 = vpop.eup %6232 }
 0x879   :  { %v4931_v25 = vadd.f32 0.5, %v4930_v59  ;;  %v4903_v31 = vmul.f32 %v6233_v63, %v4901_v23 }
 0x87b   :  { %v4937_v10 = vrot.slane %v4931_v25, 2  ;;  %v4940_v36 = vmul.f32 %v6231_v2, %v4931_v25  ;;  %v4943_v9 = vrot.slane %v4931_v25, 4 }
 0x87d   :  { %v4939_v39 = vmul.f32 %v4937_v10, %v9563_v1 }
 0x87f   :  { %v4941_v28 = vadd.f32 %v4940_v36, %v4939_v39 }
 0x881   :  { %6234 = vtanh.f32 %v4941_v28  ;;  %4965 = vst [vmem:[#allocation5 + $0x2] sm:$0x3] %v4941_v28 }
 0x88b   :  { %v6235_v6 = vpop.eup %6234 }
 0x88c   :  { %v4945_v58 = vmul.f32 %v6235_v6, %v4943_v9 }
 0x88e   :  { %v4949_v33 = vcombine.low %v4903_v31, %v4945_v58 }
 0x890   :  { %v4956_v19 = vrot.slane %v4949_v33, %v6479_v35  ;;  %4984 = vst.sshfl [vmem:[#allocation4] sm:$0x33 pattern:$0x76325410] %v4949_v33 }
 0x892   :  { %v4958_v11 = vadd.f32 %v4956_v19, %v4946_v61  ;;  %v4961_v52 = vmax.f32 %v4960_v12, %v4956_v19 }
 0x894   :  { %4959 = vst [vmem:[#allocation6] sm:$0xf] %v4958_v11  ;;  %4962 = vst [vmem:[#allocation7] sm:$0xf] %v4961_v52 }
 0x89b   :  { %v4969_v1 = vld [vmem:[#allocation6] sm:$0xf]  ;;  %v4972_v40 = vld [vmem:[#allocation7] sm:$0xf] }
 0x89c   :  { %v4970_v47 = vmul.f32 0.125, %v4969_v1  ;;  %4973 = vst [vmem:[%s9607_s7 + $0x4] sm:$0xf] %v4972_v40 }
 0x89e   :  { %4971 = vst [vmem:[%s9607_s7] sm:$0xf] %v4970_v47 }

// kernel: _lstm_pooler_impl.1
= control target key start
LH: loop header
LB: loop body
LE: loop exit
PB: predicated region body
PF: predicated region fallthrough
CT: control target
= control target key end

     0   :  { %v9608_v3 = vmov 0.0   ;;  %v130_v63 = vlaneseq  ;;  %s9600_s2 = inlined_call_operand.vmem [shape: f32[128,512], index: 2, kind: input, shape index: {}]   ;;  %s9601_s0 = inlined_call_operand.vmem [shape: f32[8,2,128], index: 0, kind: input, shape index: {}, may-alias: {0,1}]   ;;  %s9602_s3 = inlined_call_operand.vmem [shape: f32[128,512], index: 3, kind: input, shape index: {}]   ;;  %s9603_s1 = inlined_call_operand.vmem [shape: f32[8,2,128], index: 1, kind: input, shape index: {}, may-alias: {0,1}]   ;;  %s9604_s4 = inlined_call_operand.vmem [shape: f32[256,1024], index: 4, kind: input, shape index: {}]   ;;  %s9605_s5 = inlined_call_operand.vmem [shape: f32[1,512], index: 5, kind: input, shape index: {}]   ;;  %s9606_s6 = inlined_call_operand.vmem [shape: f32[1,512], index: 6, kind: input, shape index: {}]   ;;  %s9607_s7 = inlined_call_operand.vmem [shape: f32[2,512], index: 7, kind: output, shape index: {}]  }
   0x1   :  { %v65_v0 = vld [vmem:[%s9600_s2 + $0x8] sm:$0xff]  ;;  %v67_v2 = vld [vmem:[%s9600_s2 + $0x18] sm:$0xff]  ;;  %258 = vmatprep.mubr.f32.mxu0 %v9608_v3  ;;  %52 = vst [vmem:[#allocation4] sm:$0xf] %v9608_v3  ;;  %53 = vst [vmem:[#allocation5] sm:$0xf] %v9608_v3  ;;  %335 = vmatprep.mubr.f32.mxu1 %v9608_v3 }
   0x2   :  { %v69_v1 = vld [vmem:[%s9600_s2 + $0x28] sm:$0xff]  ;;  %54 = vst [vmem:[#allocation6] sm:$0xf] %v9608_v3  ;;  %v71_v5 = vld [vmem:[%s9600_s2 + $0x38] sm:$0xff]  ;;  %v64_v6 = vld [vmem:[%s9600_s2] sm:$0xff] }
   0x3   :  { %v4985_v4 = vpack.c.bf16 %v69_v1, %v65_v0  ;;  %v68_v7 = vld [vmem:[%s9600_s2 + $0x20] sm:$0xff]  ;;  %v5017_v8 = vpack.c.bf16 %v71_v5, %v67_v2  ;;  %v66_v10 = vld [vmem:[%s9600_s2 + $0x10] sm:$0xff]  ;;  %v73_v12 = vld [vmem:[%s9600_s2 + $0x48] sm:$0xff]  ;;  %v6237_v0 = vmov 1983009808  }
   0x4   :  { %v4987_v9 = vpack.c.bf16 %v68_v7, %v64_v6  ;;  %v70_v11 = vld [vmem:[%s9600_s2 + $0x30] sm:$0xff]  ;;  %v77_v14 = vld [vmem:[%s9600_s2 + $0x68] sm:$0xff]  ;;  %v75_v15 = vld [vmem:[%s9600_s2 + $0x58] sm:$0xff]  ;;  %v161_v1 = vunpack.c.l.s4 %v6237_v0 }
   0x5   :  { %4986 = vmatprep.subr.bf16.mxu0 %v4985_v4  ;;  %v5019_v13 = vpack.c.bf16 %v70_v11, %v66_v10  ;;  %v79_v16 = vld [vmem:[%s9600_s2 + $0x78] sm:$0xff]  ;;  %5018 = vmatprep.subr.bf16.mxu1 %v5017_v8  ;;  %v4989_v17 = vpack.c.bf16 %v77_v14, %v73_v12  ;;  %v72_v19 = vld [vmem:[%s9600_s2 + $0x40] sm:$0xff]  ;;  %v74_v21 = vld [vmem:[%s9600_s2 + $0x50] sm:$0xff] }
   0x6   :  { %4988 = vmatpush1.bf16.msra.mxu0 %v4987_v9  ;;  %v5021_v18 = vpack.c.bf16 %v79_v16, %v75_v15  ;;  %v76_v20 = vld [vmem:[%s9600_s2 + $0x60] sm:$0xff]  ;;  %v78_v23 = vld [vmem:[%s9600_s2 + $0x70] sm:$0xff]  ;;  %v81_v24 = vld [vmem:[%s9600_s2 + $0x88] sm:$0xff]  ;;  %v6443_v16 = vshrl.u32 %v130_v63, 7 }
   0x7   :  { %5020 = vmatpush1.bf16.msra.mxu1 %v5019_v13  ;;  %v4991_v22 = vpack.c.bf16 %v76_v20, %v72_v19  ;;  %v85_v25 = vld [vmem:[%s9600_s2 + $0xa8] sm:$0xff]  ;;  %4990 = vmatprep.subr.bf16.mxu0 %v4989_v17  ;;  %v5023_v26 = vpack.c.bf16 %v78_v23, %v74_v21  ;;  %v83_v28 = vld [vmem:[%s9600_s2 + $0x98] sm:$0xff]  ;;  %v80_v30 = vld [vmem:[%s9600_s2 + $0x80] sm:$0xff]  ;;  %v162_v17 = vunpack.c.0.s8 %v161_v1 }
   0x8   :  { %5022 = vmatprep.subr.bf16.mxu1 %v5021_v18  ;;  %v4993_v27 = vpack.c.bf16 %v85_v25, %v81_v24  ;;  %v87_v29 = vld [vmem:[%s9600_s2 + $0xb8] sm:$0xff]  ;;  %v84_v32 = vld [vmem:[%s9600_s2 + $0xa0] sm:$0xff]  ;;  %v82_v33 = vld [vmem:[%s9600_s2 + $0x90] sm:$0xff] }
   0x9   :  { %v5025_v31 = vpack.c.bf16 %v87_v29, %v83_v28  ;;  %v86_v34 = vld [vmem:[%s9600_s2 + $0xb0] sm:$0xff]  ;;  %v4995_v35 = vpack.c.bf16 %v84_v32, %v80_v30  ;;  %v89_v36 = vld [vmem:[%s9600_s2 + $0xc8] sm:$0xff]  ;;  %v91_v38 = vld [vmem:[%s9600_s2 + $0xd8] sm:$0xff] }
   0xa   :  { %4992 = vmatpush1.bf16.msra.mxu0 %v4991_v22  ;;  %v93_v37 = vld [vmem:[%s9600_s2 + $0xe8] sm:$0xff]  ;;  %v5027_v39 = vpack.c.bf16 %v86_v34, %v82_v33  ;;  %v95_v41 = vld [vmem:[%s9600_s2 + $0xf8] sm:$0xff]  ;;  %v88_v42 = vld [vmem:[%s9600_s2 + $0xc0] sm:$0xff] }
   0xb   :  { %5024 = vmatpush1.bf16.msra.mxu1 %v5023_v26  ;;  %4994 = vmatprep.subr.bf16.mxu0 %v4993_v27  ;;  %v4997_v40 = vpack.c.bf16 %v93_v37, %v89_v36  ;;  %v92_v43 = vld [vmem:[%s9600_s2 + $0xe0] sm:$0xff]  ;;  %v5029_v44 = vpack.c.bf16 %v95_v41, %v91_v38  ;;  %v90_v45 = vld [vmem:[%s9600_s2 + $0xd0] sm:$0xff]  ;;  %v97_v47 = vld [vmem:[%s9600_s2 + $0x108] sm:$0xff] }
   0xc   :  { %5026 = vmatprep.subr.bf16.mxu1 %v5025_v31  ;;  %v94_v46 = vld [vmem:[%s9600_s2 + $0xf0] sm:$0xff]  ;;  %v101_v48 = vld [vmem:[%s9600_s2 + $0x128] sm:$0xff]  ;;  %v99_v49 = vld [vmem:[%s9600_s2 + $0x118] sm:$0xff]  ;;  %v4999_v51 = vpack.c.bf16 %v92_v43, %v88_v42 }
   0xd   :  { %v103_v50 = vld [vmem:[%s9600_s2 + $0x138] sm:$0xff]  ;;  %v5031_v52 = vpack.c.bf16 %v94_v46, %v90_v45  ;;  %v5001_v53 = vpack.c.bf16 %v101_v48, %v97_v47  ;;  %v96_v54 = vld [vmem:[%s9600_s2 + $0x100] sm:$0xff]  ;;  %v98_v56 = vld [vmem:[%s9600_s2 + $0x110] sm:$0xff] }
   0xe   :  { %4996 = vmatpush1.bf16.msra.mxu0 %v4995_v35  ;;  %v100_v55 = vld [vmem:[%s9600_s2 + $0x120] sm:$0xff]  ;;  %v5033_v57 = vpack.c.bf16 %v103_v50, %v99_v49  ;;  %v102_v58 = vld [vmem:[%s9600_s2 + $0x130] sm:$0xff]  ;;  %v105_v59 = vld [vmem:[%s9600_s2 + $0x148] sm:$0xff]  ;;  %v6479_v35 = vsub.s32 %v162_v17, %v6443_v16 }
   0xf   :  { %5028 = vmatpush1.bf16.msra.mxu1 %v5027_v39  ;;  %4998 = vmatprep.subr.bf16.mxu0 %v4997_v40  ;;  %v109_v60 = vld [vmem:[%s9600_s2 + $0x168] sm:$0xff]  ;;  %v107_v61 = vld [vmem:[%s9600_s2 + $0x158] sm:$0xff]  ;;  %v5003_v2 = vpack.c.bf16 %v100_v55, %v96_v54  ;;  %v5035_v4 = vpack.c.bf16 %v102_v58, %v98_v56  ;;  %v104_v6 = vld [vmem:[%s9600_s2 + $0x140] sm:$0xff] }
  0x10   :  { %5030 = vmatprep.subr.bf16.mxu1 %v5029_v44  ;;  %v111_v62 = vld [vmem:[%s9600_s2 + $0x178] sm:$0xff]  ;;  %v5005_v5 = vpack.c.bf16 %v109_v60, %v105_v59  ;;  %v108_v7 = vld [vmem:[%s9600_s2 + $0x160] sm:$0xff]  ;;  %v106_v8 = vld [vmem:[%s9600_s2 + $0x150] sm:$0xff] }
  0x11   :  { %v5037_v9 = vpack.c.bf16 %v111_v62, %v107_v61  ;;  %v110_v10 = vld [vmem:[%s9600_s2 + $0x170] sm:$0xff]  ;;  %v113_v11 = vld [vmem:[%s9600_s2 + $0x188] sm:$0xff]  ;;  %v115_v13 = vld [vmem:[%s9600_s2 + $0x198] sm:$0xff]  ;;  %v5007_v18 = vpack.c.bf16 %v108_v7, %v104_v6 }
  0x12   :  { %5000 = vmatpush1.bf16.msra.mxu0 %v4999_v51  ;;  %v117_v12 = vld [vmem:[%s9600_s2 + $0x1a8] sm:$0xff]  ;;  %v119_v14 = vld [vmem:[%s9600_s2 + $0x1b8] sm:$0xff]  ;;  %v112_v15 = vld [vmem:[%s9600_s2 + $0x180] sm:$0xff]  ;;  %v5039_v22 = vpack.c.bf16 %v110_v10, %v106_v8 }
  0x13   :  { %5032 = vmatpush1.bf16.msra.mxu1 %v5031_v52  ;;  %5002 = vmatprep.subr.bf16.mxu0 %v5001_v53  ;;  %v116_v19 = vld [vmem:[%s9600_s2 + $0x1a0] sm:$0xff]  ;;  %v114_v20 = vld [vmem:[%s9600_s2 + $0x190] sm:$0xff]  ;;  %v5009_v23 = vpack.c.bf16 %v117_v12, %v113_v11  ;;  %v121_v24 = vld [vmem:[%s9600_s2 + $0x1c8] sm:$0xff]  ;;  %v5041_v27 = vpack.c.bf16 %v119_v14, %v115_v13 }
  0x14   :  { %5034 = vmatprep.subr.bf16.mxu1 %v5033_v57  ;;  %v118_v21 = vld [vmem:[%s9600_s2 + $0x1b0] sm:$0xff]  ;;  %v56_v25 = vld [vmem:[%s9601_s0] sm:$0x3]  ;;  %v57_v26 = vld [vmem:[%s9601_s0 + $0x2] sm:$0x3]  ;;  %v5011_v36 = vpack.c.bf16 %v116_v19, %v112_v15 }
  0x15   :  { %v125_v28 = vld [vmem:[%s9600_s2 + $0x1e8] sm:$0xff]  ;;  %v58_v29 = vld [vmem:[%s9601_s0 + $0x4] sm:$0x3]  ;;  %v59_v30 = vld [vmem:[%s9601_s0 + $0x6] sm:$0x3]  ;;  %v158_v33 = vcombine.low %v56_v25, %v57_v26  ;;  %v5043_v37 = vpack.c.bf16 %v118_v21, %v114_v20 }
  0x16   :  { %5004 = vmatpush1.bf16.msra.mxu0 %v5003_v2  ;;  %v123_v31 = vld [vmem:[%s9600_s2 + $0x1d8] sm:$0xff]  ;;  %v159_v34 = vcombine.low %v58_v29, %v59_v30  ;;  %v5013_v38 = vpack.c.bf16 %v125_v28, %v121_v24  ;;  %v120_v39 = vld [vmem:[%s9600_s2 + $0x1c0] sm:$0xff]  ;;  %v122_v41 = vld [vmem:[%s9600_s2 + $0x1d0] sm:$0xff] }
  0x17   :  { %5036 = vmatpush1.bf16.msra.mxu1 %v5035_v4  ;;  %5006 = vmatprep.subr.bf16.mxu0 %v5005_v5  ;;  %v127_v32 = vld [vmem:[%s9600_s2 + $0x1f8] sm:$0xff]  ;;  %v124_v40 = vld [vmem:[%s9600_s2 + $0x1e0] sm:$0xff]  ;;  %v126_v43 = vld [vmem:[%s9600_s2 + $0x1f0] sm:$0xff]  ;;  %v166_v46 = vrot.slane %v158_v33, %v6479_v35 }
  0x18   :  { %5038 = vmatprep.subr.bf16.mxu1 %v5037_v9  ;;  %v5045_v42 = vpack.c.bf16 %v127_v32, %v123_v31  ;;  %v453_v44 = vld [vmem:[%s9602_s3 + $0x8] sm:$0xff]  ;;  %v173_v47 = vrot.slane %v159_v34, %v6479_v35  ;;  %v455_v48 = vld [vmem:[%s9602_s3 + $0x18] sm:$0xff]  ;;  %v5015_v50 = vpack.c.bf16 %v124_v40, %v120_v39  ;;  %v5047_v51 = vpack.c.bf16 %v126_v43, %v122_v41  ;;  %v452_v53 = vld [vmem:[%s9602_s3] sm:$0xff] }
  0x19   :  { %v457_v45 = vld [vmem:[%s9602_s3 + $0x28] sm:$0xff]  ;;  %v459_v49 = vld [vmem:[%s9602_s3 + $0x38] sm:$0xff]  ;;  %v456_v54 = vld [vmem:[%s9602_s3 + $0x20] sm:$0xff] }
  0x1a   :  { %5008 = vmatpush1.bf16.msra.mxu0 %v5007_v18  ;;  %v5049_v52 = vpack.c.bf16 %v457_v45, %v453_v44  ;;  %v454_v55 = vld [vmem:[%s9602_s3 + $0x10] sm:$0xff]  ;;  %v5081_v56 = vpack.c.bf16 %v459_v49, %v455_v48  ;;  %v461_v58 = vld [vmem:[%s9602_s3 + $0x48] sm:$0xff]  ;;  %v174_v60 = vcombine.low %v166_v46, %v173_v47  ;;  %v463_v61 = vld [vmem:[%s9602_s3 + $0x58] sm:$0xff]  ;;  %v5051_v63 = vpack.c.bf16 %v456_v54, %v452_v53 }
  0x1b   :  { %5040 = vmatpush1.bf16.msra.mxu1 %v5039_v22  ;;  %5010 = vmatprep.subr.bf16.mxu0 %v5009_v23  ;;  %v458_v57 = vld [vmem:[%s9602_s3 + $0x30] sm:$0xff]  ;;  %v465_v59 = vld [vmem:[%s9602_s3 + $0x68] sm:$0xff]  ;;  %v467_v62 = vld [vmem:[%s9602_s3 + $0x78] sm:$0xff] }
  0x1c   :  { %5042 = vmatprep.subr.bf16.mxu1 %v5041_v27  ;;  %v5083_v0 = vpack.c.bf16 %v458_v57, %v454_v55  ;;  %v5053_v1 = vpack.c.bf16 %v465_v59, %v461_v58  ;;  %v460_v2 = vld [vmem:[%s9602_s3 + $0x40] sm:$0xff]  ;;  %v462_v5 = vld [vmem:[%s9602_s3 + $0x50] sm:$0xff]  ;;  %v5085_v6 = vpack.c.bf16 %v467_v62, %v463_v61  ;;  %v469_v8 = vld [vmem:[%s9602_s3 + $0x88] sm:$0xff] }
  0x1d   :  { %v464_v4 = vld [vmem:[%s9602_s3 + $0x60] sm:$0xff]  ;;  %v466_v7 = vld [vmem:[%s9602_s3 + $0x70] sm:$0xff]  ;;  %v473_v9 = vld [vmem:[%s9602_s3 + $0xa8] sm:$0xff] }
  0x1e   :  { %5012 = vmatpush1.bf16.msra.mxu0 %v5011_v36  ;;  %v471_v10 = vld [vmem:[%s9602_s3 + $0x98] sm:$0xff]  ;;  %v5055_v12 = vpack.c.bf16 %v464_v4, %v460_v2  ;;  %v5087_v13 = vpack.c.bf16 %v466_v7, %v462_v5  ;;  %v5057_v14 = vpack.c.bf16 %v473_v9, %v469_v8  ;;  %v468_v15 = vld [vmem:[%s9602_s3 + $0x80] sm:$0xff]  ;;  %v470_v18 = vld [vmem:[%s9602_s3 + $0x90] sm:$0xff] }
  0x1f   :  { %5044 = vmatpush1.bf16.msra.mxu1 %v5043_v37  ;;  %5014 = vmatprep.subr.bf16.mxu0 %v5013_v38  ;;  %v475_v11 = vld [vmem:[%s9602_s3 + $0xb8] sm:$0xff]  ;;  %v472_v17 = vld [vmem:[%s9602_s3 + $0xa0] sm:$0xff]  ;;  %v474_v20 = vld [vmem:[%s9602_s3 + $0xb0] sm:$0xff] }
  0x20   :  { %5046 = vmatprep.subr.bf16.mxu1 %v5045_v42  ;;  %v5089_v19 = vpack.c.bf16 %v475_v11, %v471_v10  ;;  %v477_v21 = vld [vmem:[%s9602_s3 + $0xc8] sm:$0xff]  ;;  %v479_v23 = vld [vmem:[%s9602_s3 + $0xd8] sm:$0xff]  ;;  %v476_v25 = vld [vmem:[%s9602_s3 + $0xc0] sm:$0xff]  ;;  %v5059_v26 = vpack.c.bf16 %v472_v17, %v468_v15  ;;  %v5091_v30 = vpack.c.bf16 %v474_v20, %v470_v18 }
  0x21   :  { %v481_v22 = vld [vmem:[%s9602_s3 + $0xe8] sm:$0xff]  ;;  %v483_v24 = vld [vmem:[%s9602_s3 + $0xf8] sm:$0xff]  ;;  %v480_v27 = vld [vmem:[%s9602_s3 + $0xe0] sm:$0xff] }
  0x22   :  { %5016 = vmatpush1.bf16.msra.mxu0 %v5015_v50  ;;  %v478_v28 = vld [vmem:[%s9602_s3 + $0xd0] sm:$0xff]  ;;  %v5061_v31 = vpack.c.bf16 %v481_v22, %v477_v21  ;;  %v485_v32 = vld [vmem:[%s9602_s3 + $0x108] sm:$0xff]  ;;  %v5093_v36 = vpack.c.bf16 %v483_v24, %v479_v23  ;;  %v487_v41 = vld [vmem:[%s9602_s3 + $0x118] sm:$0xff]  ;;  %v5063_v44 = vpack.c.bf16 %v480_v27, %v476_v25 }
  0x23   :  { %5048 = vmatpush1.bf16.msra.mxu1 %v5047_v51  ;;  %5050 = vmatprep.subr.bf16.mxu0 %v5049_v52  ;;  %v482_v29 = vld [vmem:[%s9602_s3 + $0xf0] sm:$0xff]  ;;  %v60_v33 = vld [vmem:[%s9601_s0 + $0x8] sm:$0x3]  ;;  %v61_v34 = vld [vmem:[%s9601_s0 + $0xa] sm:$0x3] }
  0x24   :  { %5082 = vmatprep.subr.bf16.mxu1 %v5081_v56  ;;  %v489_v37 = vld [vmem:[%s9602_s3 + $0x128] sm:$0xff]  ;;  %v175_v40 = vcombine.low %v60_v33, %v61_v34  ;;  %v491_v42 = vld [vmem:[%s9602_s3 + $0x138] sm:$0xff]  ;;  %v5095_v46 = vpack.c.bf16 %v482_v29, %v478_v28  ;;  %v484_v48 = vld [vmem:[%s9602_s3 + $0x100] sm:$0xff] }
  0x25   :  { %259 = vmatmul.mubr.f32.vlgmr.msra.gmra.mrb[0].mxu0 %v174_v60  ;;  %v62_v38 = vld [vmem:[%s9601_s0 + $0xc] sm:$0x3]  ;;  %v63_v39 = vld [vmem:[%s9601_s0 + $0xe] sm:$0x3]  ;;  %v5065_v47 = vpack.c.bf16 %v489_v37, %v485_v32  ;;  %v488_v49 = vld [vmem:[%s9602_s3 + $0x120] sm:$0xff]  ;;  %v5097_v52 = vpack.c.bf16 %v491_v42, %v487_v41 }
  0x26   :  { %336 = vmatmul.mubr.f32.vlgmr.msra.gmra.mrb[0].mxu1 %v174_v60  ;;  %5052 = vmatpush1.bf16.msra.mxu0 %v5051_v63  ;;  %v176_v43 = vcombine.low %v62_v38, %v63_v39  ;;  %v183_v45 = vrot.slane %v175_v40, %v6479_v35  ;;  %v486_v50 = vld [vmem:[%s9602_s3 + $0x110] sm:$0xff]  ;;  %v493_v54 = vld [vmem:[%s9602_s3 + $0x148] sm:$0xff]  ;;  %v495_v56 = vld [vmem:[%s9602_s3 + $0x158] sm:$0xff]  ;;  %v5067_v59 = vpack.c.bf16 %v488_v49, %v484_v48 }
  0x27   :  { %5084 = vmatpush1.bf16.msra.mxu1 %v5083_v0  ;;  %5054 = vmatprep.subr.bf16.mxu0 %v5053_v1  ;;  %v490_v53 = vld [vmem:[%s9602_s3 + $0x130] sm:$0xff]  ;;  %v497_v55 = vld [vmem:[%s9602_s3 + $0x168] sm:$0xff]  ;;  %v499_v57 = vld [vmem:[%s9602_s3 + $0x178] sm:$0xff] }
  0x28   :  { %5086 = vmatprep.subr.bf16.mxu1 %v5085_v6  ;;  %264 = vmatprep.mubr.f32.mxu0 %v9608_v3  ;;  %v190_v51 = vrot.slane %v176_v43, %v6479_v35  ;;  %v5099_v60 = vpack.c.bf16 %v490_v53, %v486_v50  ;;  %v5069_v61 = vpack.c.bf16 %v497_v55, %v493_v54  ;;  %v492_v62 = vld [vmem:[%s9602_s3 + $0x140] sm:$0xff]  ;;  %v494_v0 = vld [vmem:[%s9602_s3 + $0x150] sm:$0xff]  ;;  %v501_v4 = vld [vmem:[%s9602_s3 + $0x188] sm:$0xff] }
  0x29   :  { %341 = vmatprep.mubr.f32.mxu1 %v9608_v3  ;;  %v496_v63 = vld [vmem:[%s9602_s3 + $0x160] sm:$0xff]  ;;  %v5101_v1 = vpack.c.bf16 %v499_v57, %v495_v56  ;;  %v498_v2 = vld [vmem:[%s9602_s3 + $0x170] sm:$0xff]  ;;  %v505_v5 = vld [vmem:[%s9602_s3 + $0x1a8] sm:$0xff] }
  0x2a   :  { %5056 = vmatpush1.bf16.msra.mxu0 %v5055_v12  ;;  %v191_v58 = vcombine.low %v183_v45, %v190_v51  ;;  %v503_v6 = vld [vmem:[%s9602_s3 + $0x198] sm:$0xff]  ;;  %v444_v8 = vld [vmem:[%s9603_s1] sm:$0x3]  ;;  %v5071_v9 = vpack.c.bf16 %v496_v63, %v492_v62  ;;  %v445_v10 = vld [vmem:[%s9603_s1 + $0x2] sm:$0x3] }
  0x2b   :  { %5088 = vmatpush1.bf16.msra.mxu1 %v5087_v13  ;;  %5058 = vmatprep.subr.bf16.mxu0 %v5057_v14  ;;  %v507_v7 = vld [vmem:[%s9602_s3 + $0x1b8] sm:$0xff]  ;;  %v446_v11 = vld [vmem:[%s9603_s1 + $0x4] sm:$0x3]  ;;  %v447_v12 = vld [vmem:[%s9603_s1 + $0x6] sm:$0x3]  ;;  %v5103_v13 = vpack.c.bf16 %v498_v2, %v494_v0  ;;  %v5073_v14 = vpack.c.bf16 %v505_v5, %v501_v4  ;;  %v546_v25 = vcombine.low %v444_v8, %v445_v10 }
  0x2c   :  { %5090 = vmatprep.subr.bf16.mxu1 %v5089_v19  ;;  %265 = vmatmul.mubr.f32.gmra.mrb[2].mxu0 %v191_v58  ;;  %v500_v15 = vld [vmem:[%s9602_s3 + $0x180] sm:$0xff]  ;;  %v502_v18 = vld [vmem:[%s9602_s3 + $0x190] sm:$0xff]  ;;  %v5105_v19 = vpack.c.bf16 %v507_v7, %v503_v6  ;;  %v509_v21 = vld [vmem:[%s9602_s3 + $0x1c8] sm:$0xff] }
  0x2d   :  { %342 = vmatmul.mubr.f32.gmra.mrb[2].mxu1 %v191_v58  ;;  %646 = vmatprep.mubr.f32.mxu0 %v9608_v3  ;;  %v504_v17 = vld [vmem:[%s9602_s3 + $0x1a0] sm:$0xff]  ;;  %v506_v20 = vld [vmem:[%s9602_s3 + $0x1b0] sm:$0xff]  ;;  %v513_v22 = vld [vmem:[%s9602_s3 + $0x1e8] sm:$0xff]  ;;  %v554_v38 = vrot.slane %v546_v25, %v6479_v35 }
  0x2e   :  { %5060 = vmatpush1.bf16.msra.mxu0 %v5059_v26  ;;  %723 = vmatprep.mubr.f32.mxu1 %v9608_v3  ;;  %v511_v23 = vld [vmem:[%s9602_s3 + $0x1d8] sm:$0xff]  ;;  %v547_v26 = vcombine.low %v446_v11, %v447_v12  ;;  %v5075_v27 = vpack.c.bf16 %v504_v17, %v500_v15  ;;  %v5107_v28 = vpack.c.bf16 %v506_v20, %v502_v18  ;;  %v510_v32 = vld [vmem:[%s9602_s3 + $0x1d0] sm:$0xff]  ;;  %v840_v37 = vld [vmem:[%s9604_s4 + $0x48] sm:$0xff] }
  0x2f   :  { %5092 = vmatpush1.bf16.msra.mxu1 %v5091_v30  ;;  %5062 = vmatprep.subr.bf16.mxu0 %v5061_v31  ;;  %v515_v24 = vld [vmem:[%s9602_s3 + $0x1f8] sm:$0xff]  ;;  %v5077_v29 = vpack.c.bf16 %v513_v22, %v509_v21  ;;  %v508_v30 = vld [vmem:[%s9602_s3 + $0x1c0] sm:$0xff]  ;;  %v514_v34 = vld [vmem:[%s9602_s3 + $0x1f0] sm:$0xff] }
  0x30   :  { %5094 = vmatprep.subr.bf16.mxu1 %v5093_v36  ;;  %v512_v31 = vld [vmem:[%s9602_s3 + $0x1e0] sm:$0xff]  ;;  %v5109_v33 = vpack.c.bf16 %v515_v24, %v511_v23  ;;  %v836_v36 = vld [vmem:[%s9604_s4 + $0x8] sm:$0xff]  ;;  %v561_v39 = vrot.slane %v547_v26, %v6479_v35  ;;  %v838_v40 = vld [vmem:[%s9604_s4 + $0x18] sm:$0xff]  ;;  %v5111_v43 = vpack.c.bf16 %v514_v34, %v510_v32 }
  0x31   :  { %v842_v41 = vld [vmem:[%s9604_s4 + $0x58] sm:$0xff]  ;;  %v5079_v42 = vpack.c.bf16 %v512_v31, %v508_v30  ;;  %v835_v45 = vld [vmem:[%s9604_s4] sm:$0xff]  ;;  %v841_v49 = vld [vmem:[%s9604_s4 + $0x50] sm:$0xff] }
  0x32   :  { %5064 = vmatpush1.bf16.msra.mxu0 %v5063_v44  ;;  %v6731_v44 = vpack.c.bf16 %v840_v37, %v836_v36  ;;  %v6742_v48 = vpack.c.bf16 %v842_v41, %v838_v40  ;;  %v844_v50 = vld [vmem:[%s9604_s4 + $0x88] sm:$0xff]  ;;  %v846_v53 = vld [vmem:[%s9604_s4 + $0x98] sm:$0xff]  ;;  %v843_v55 = vld [vmem:[%s9604_s4 + $0x80] sm:$0xff] }
  0x33   :  { %5096 = vmatpush1.bf16.msra.mxu1 %v5095_v46  ;;  %5066 = vmatprep.subr.bf16.mxu0 %v5065_v47  ;;  %v839_v46 = vld [vmem:[%s9604_s4 + $0x40] sm:$0xff]  ;;  %v837_v47 = vld [vmem:[%s9604_s4 + $0x10] sm:$0xff]  ;;  %v848_v51 = vld [vmem:[%s9604_s4 + $0xc8] sm:$0xff] }
  0x34   :  { %5098 = vmatprep.subr.bf16.mxu1 %v5097_v52  ;;  %v562_v52 = vcombine.low %v554_v38, %v561_v39  ;;  %v850_v54 = vld [vmem:[%s9604_s4 + $0xd8] sm:$0xff]  ;;  %v6762_v56 = vpack.c.bf16 %v839_v46, %v835_v45  ;;  %v847_v57 = vld [vmem:[%s9604_s4 + $0xc0] sm:$0xff]  ;;  %v845_v58 = vld [vmem:[%s9604_s4 + $0x90] sm:$0xff] }
  0x35   :  { %v852_v62 = vld [vmem:[%s9604_s4 + $0x108] sm:$0xff]  ;;  %v854_v7 = vld [vmem:[%s9604_s4 + $0x118] sm:$0xff]  ;;  %v6806_v10 = vpack.c.bf16 %v847_v57, %v843_v55  ;;  %v855_v15 = vld [vmem:[%s9604_s4 + $0x140] sm:$0xff] }
  0x36   :  { %5068 = vmatpush1.bf16.msra.mxu0 %v5067_v59  ;;  %v849_v59 = vld [vmem:[%s9604_s4 + $0xd0] sm:$0xff]  ;;  %v448_v63 = vld [vmem:[%s9603_s1 + $0x8] sm:$0x3]  ;;  %v449_v0 = vld [vmem:[%s9603_s1 + $0xa] sm:$0x3] }
  0x37   :  { %5100 = vmatpush1.bf16.msra.mxu1 %v5099_v60  ;;  %5070 = vmatprep.subr.bf16.mxu0 %v5069_v61  ;;  %v6774_v60 = vpack.c.bf16 %v841_v49, %v837_v47  ;;  %v6776_v61 = vpack.c.bf16 %v848_v51, %v844_v50  ;;  %v856_v2 = vld [vmem:[%s9604_s4 + $0x148] sm:$0xff]  ;;  %v563_v6 = vcombine.low %v448_v63, %v449_v0  ;;  %v858_v8 = vld [vmem:[%s9604_s4 + $0x158] sm:$0xff]  ;;  %v853_v17 = vld [vmem:[%s9604_s4 + $0x110] sm:$0xff] }
  0x38   :  { %5102 = vmatprep.subr.bf16.mxu1 %v5101_v1  ;;  %v6788_v1 = vpack.c.bf16 %v850_v54, %v846_v53  ;;  %v450_v4 = vld [vmem:[%s9603_s1 + $0xc] sm:$0x3]  ;;  %v451_v5 = vld [vmem:[%s9603_s1 + $0xe] sm:$0x3]  ;;  %v6811_v12 = vpack.c.bf16 %v849_v59, %v845_v58  ;;  %v857_v20 = vld [vmem:[%s9604_s4 + $0x150] sm:$0xff] }
  0x39   :  { %v571_v11 = vrot.slane %v563_v6, %v6479_v35  ;;  %v860_v21 = vld [vmem:[%s9604_s4 + $0x188] sm:$0xff]  ;;  %v862_v23 = vld [vmem:[%s9604_s4 + $0x198] sm:$0xff]  ;;  %v863_v30 = vld [vmem:[%s9604_s4 + $0x1c0] sm:$0xff] }
  0x3a   :  { %5072 = vmatpush1.bf16.msra.mxu0 %v5071_v9  ;;  %v564_v9 = vcombine.low %v450_v4, %v451_v5  ;;  %v864_v22 = vld [vmem:[%s9604_s4 + $0x1c8] sm:$0xff]  ;;  %v866_v24 = vld [vmem:[%s9604_s4 + $0x1d8] sm:$0xff]  ;;  %v861_v31 = vld [vmem:[%s9604_s4 + $0x190] sm:$0xff] }
  0x3b   :  { %5104 = vmatpush1.bf16.msra.mxu1 %v5103_v13  ;;  %5074 = vmatprep.subr.bf16.mxu0 %v5073_v14  ;;  %v6813_v13 = vpack.c.bf16 %v856_v2, %v852_v62  ;;  %v851_v14 = vld [vmem:[%s9604_s4 + $0x100] sm:$0xff]  ;;  %v6864_v32 = vpack.c.bf16 %v866_v24, %v862_v23  ;;  %v868_v34 = vld [vmem:[%s9604_s4 + $0x208] sm:$0xff]  ;;  %v870_v37 = vld [vmem:[%s9604_s4 + $0x218] sm:$0xff] }
  0x3c   :  { %5106 = vmatprep.subr.bf16.mxu1 %v5105_v19  ;;  %v578_v18 = vrot.slane %v564_v9, %v6479_v35  ;;  %v6826_v19 = vpack.c.bf16 %v858_v8, %v854_v7  ;;  %v6846_v26 = vpack.c.bf16 %v855_v15, %v851_v14  ;;  %v872_v36 = vld [vmem:[%s9604_s4 + $0x248] sm:$0xff]  ;;  %v874_v38 = vld [vmem:[%s9604_s4 + $0x258] sm:$0xff]  ;;  %v869_v45 = vld [vmem:[%s9604_s4 + $0x210] sm:$0xff] }
  0x3d   :  { %v6890_v41 = vpack.c.bf16 %v872_v36, %v868_v34  ;;  %v6902_v46 = vpack.c.bf16 %v874_v38, %v870_v37  ;;  %v873_v47 = vld [vmem:[%s9604_s4 + $0x250] sm:$0xff]  ;;  %v876_v49 = vld [vmem:[%s9604_s4 + $0x288] sm:$0xff]  ;;  %v878_v51 = vld [vmem:[%s9604_s4 + $0x298] sm:$0xff] }
  0x3e   :  { %5076 = vmatpush1.bf16.msra.mxu0 %v5075_v27  ;;  %v579_v25 = vcombine.low %v571_v11, %v578_v18  ;;  %v6850_v27 = vpack.c.bf16 %v857_v20, %v853_v17  ;;  %v880_v50 = vld [vmem:[%s9604_s4 + $0x2c8] sm:$0xff]  ;;  %v6924_v54 = vpack.c.bf16 %v873_v47, %v869_v45  ;;  %v875_v57 = vld [vmem:[%s9604_s4 + $0x280] sm:$0xff]  ;;  %v877_v59 = vld [vmem:[%s9604_s4 + $0x290] sm:$0xff] }
  0x3f   :  { %5108 = vmatpush1.bf16.msra.mxu1 %v5107_v28  ;;  %5078 = vmatprep.subr.bf16.mxu0 %v5077_v29  ;;  %v6852_v28 = vpack.c.bf16 %v864_v22, %v860_v21  ;;  %v859_v29 = vld [vmem:[%s9604_s4 + $0x180] sm:$0xff]  ;;  %v6926_v55 = vpack.c.bf16 %v880_v50, %v876_v49  ;;  %v881_v63 = vld [vmem:[%s9604_s4 + $0x2d0] sm:$0xff]  ;;  %v884_v0 = vld [vmem:[%s9604_s4 + $0x308] sm:$0xff] }
  0x40   :  { %5110 = vmatprep.subr.bf16.mxu1 %v5109_v33  ;;  %v865_v33 = vld [vmem:[%s9604_s4 + $0x1d0] sm:$0xff]  ;;  %v6883_v39 = vpack.c.bf16 %v863_v30, %v859_v29  ;;  %v879_v58 = vld [vmem:[%s9604_s4 + $0x2c0] sm:$0xff]  ;;  %v888_v2 = vld [vmem:[%s9604_s4 + $0x348] sm:$0xff]  ;;  %v6960_v7 = vpack.c.bf16 %v881_v63, %v877_v59 }
  0x41   :  { %v6888_v40 = vpack.c.bf16 %v865_v33, %v861_v31  ;;  %v886_v4 = vld [vmem:[%s9604_s4 + $0x318] sm:$0xff]  ;;  %v6956_v6 = vpack.c.bf16 %v879_v58, %v875_v57  ;;  %v6962_v8 = vpack.c.bf16 %v888_v2, %v884_v0  ;;  %v883_v9 = vld [vmem:[%s9604_s4 + $0x300] sm:$0xff]  ;;  %v885_v14 = vld [vmem:[%s9604_s4 + $0x310] sm:$0xff] }
  0x42   :  { %5080 = vmatpush1.bf16.msra.mxu0 %v5079_v42  ;;  %v867_v42 = vld [vmem:[%s9604_s4 + $0x200] sm:$0xff]  ;;  %v890_v5 = vld [vmem:[%s9604_s4 + $0x358] sm:$0xff]  ;;  %v889_v17 = vld [vmem:[%s9604_s4 + $0x350] sm:$0xff] }
  0x43   :  { %5112 = vmatpush1.bf16.msra.mxu1 %v5111_v43  ;;  %5114 = vmatprep.subr.bf16.mxu0 %v6731_v44  ;;  %v871_v43 = vld [vmem:[%s9604_s4 + $0x240] sm:$0xff]  ;;  %v6974_v15 = vpack.c.bf16 %v890_v5, %v886_v4  ;;  %v892_v18 = vld [vmem:[%s9604_s4 + $0x388] sm:$0xff]  ;;  %v894_v21 = vld [vmem:[%s9604_s4 + $0x398] sm:$0xff]  ;;  %v6996_v24 = vpack.c.bf16 %v889_v17, %v885_v14 }
  0x44   :  { %5146 = vmatprep.subr.bf16.mxu1 %v6742_v48  ;;  %v6920_v53 = vpack.c.bf16 %v871_v43, %v867_v42  ;;  %v887_v11 = vld [vmem:[%s9604_s4 + $0x340] sm:$0xff]  ;;  %v896_v20 = vld [vmem:[%s9604_s4 + $0x3c8] sm:$0xff]  ;;  %v898_v22 = vld [vmem:[%s9604_s4 + $0x3d8] sm:$0xff] }
  0x45   :  { %647 = vmatmul.mubr.f32.vlgmr.msra.gmra.mrb[4].mxu0 %v562_v52  ;;  %v6992_v23 = vpack.c.bf16 %v887_v11, %v883_v9  ;;  %v891_v29 = vld [vmem:[%s9604_s4 + $0x380] sm:$0xff]  ;;  %v893_v31 = vld [vmem:[%s9604_s4 + $0x390] sm:$0xff]  ;;  %v7010_v33 = vpack.c.bf16 %v898_v22, %v894_v21  ;;  %v1042_v36 = vld [vmem:[%s9604_s4 + $0x428] sm:$0xff] }
  0x46   :  { %724 = vmatmul.mubr.f32.vlgmr.msra.gmra.mrb[4].mxu1 %v562_v52  ;;  %5116 = vmatpush1.bf16.msra.mxu0 %v6762_v56  ;;  %v882_v52 = vld [vmem:[%s9604_s4 + $0x2d8] sm:$0xff]  ;;  %v895_v30 = vld [vmem:[%s9604_s4 + $0x3c0] sm:$0xff]  ;;  %v897_v34 = vld [vmem:[%s9604_s4 + $0x3d0] sm:$0xff] }
  0x47   :  { %5148 = vmatpush1.bf16.msra.mxu1 %v6774_v60  ;;  %5118 = vmatprep.subr.bf16.mxu0 %v6776_v61  ;;  %v6938_v62 = vpack.c.bf16 %v882_v52, %v878_v51  ;;  %v1046_v37 = vld [vmem:[%s9604_s4 + $0x468] sm:$0xff]  ;;  %v1044_v38 = vld [vmem:[%s9604_s4 + $0x438] sm:$0xff]  ;;  %v7028_v43 = vpack.c.bf16 %v895_v30, %v891_v29  ;;  %v7032_v45 = vpack.c.bf16 %v897_v34, %v893_v31  ;;  %v1041_v49 = vld [vmem:[%s9604_s4 + $0x420] sm:$0xff] }
  0x48   :  { %5150 = vmatprep.subr.bf16.mxu1 %v6788_v1  ;;  %652 = vmatprep.mubr.f32.mxu0 %v9608_v3  ;;  %v1048_v42 = vld [vmem:[%s9604_s4 + $0x478] sm:$0xff]  ;;  %v7034_v47 = vpack.c.bf16 %v1046_v37, %v1042_v36  ;;  %v1045_v50 = vld [vmem:[%s9604_s4 + $0x460] sm:$0xff]  ;;  %v1043_v51 = vld [vmem:[%s9604_s4 + $0x430] sm:$0xff] }
  0x49   :  { %729 = vmatprep.mubr.f32.mxu1 %v9608_v3  ;;  %653 = vmatmul.mubr.f32.gmra.mrb[6].mxu0 %v579_v25  ;;  %v7046_v52 = vpack.c.bf16 %v1048_v42, %v1044_v38  ;;  %v1047_v57 = vld [vmem:[%s9604_s4 + $0x470] sm:$0xff]  ;;  %v1050_v58 = vld [vmem:[%s9604_s4 + $0x4a8] sm:$0xff]  ;;  %v1052_v63 = vld [vmem:[%s9604_s4 + $0x4b8] sm:$0xff]  ;;  %v7066_v4 = vpack.c.bf16 %v1045_v50, %v1041_v49 }
  0x4a   :  { %5120 = vmatpush1.bf16.msra.mxu0 %v6806_v10  ;;  %730 = vmatmul.mubr.f32.gmra.mrb[6].mxu1 %v579_v25  ;;  %v6998_v25 = vpack.c.bf16 %v896_v20, %v892_v18  ;;  %v1054_v59 = vld [vmem:[%s9604_s4 + $0x4e8] sm:$0xff]  ;;  %v1056_v0 = vld [vmem:[%s9604_s4 + $0x4f8] sm:$0xff]  ;;  %v7064_v2 = vld [vmem:[#allocation4] sm:$0xf]  ;;  %v7070_v5 = vpack.c.bf16 %v1047_v57, %v1043_v51 }
  0x4b   :  { %5152 = vmatpush1.bf16.msra.mxu1 %v6811_v12  ;;  %5122 = vmatprep.subr.bf16.mxu0 %v6813_v13  ;;  %v7072_v9 = vpack.c.bf16 %v1054_v59, %v1050_v58  ;;  %v1049_v11 = vld [vmem:[%s9604_s4 + $0x4a0] sm:$0xff]  ;;  %v1051_v17 = vld [vmem:[%s9604_s4 + $0x4b0] sm:$0xff]  ;;  %v7084_v18 = vpack.c.bf16 %v1056_v0, %v1052_v63  ;;  %v1058_v21 = vld [vmem:[%s9604_s4 + $0x528] sm:$0xff] }
  0x4c   :  { %5154 = vmatprep.subr.bf16.mxu1 %v6826_v19  ;;  %963 = vmatprep.mubr.f32.mxu0 %v9608_v3  ;;  %v1053_v14 = vld [vmem:[%s9604_s4 + $0x4e0] sm:$0xff]  ;;  %v1055_v20 = vld [vmem:[%s9604_s4 + $0x4f0] sm:$0xff]  ;;  %v1062_v22 = vld [vmem:[%s9604_s4 + $0x568] sm:$0xff] }
  0x4d   :  { %1034 = vmatprep.mubr.f32.mxu1 %v9608_v3  ;;  %v1060_v29 = vld [vmem:[%s9604_s4 + $0x538] sm:$0xff]  ;;  %v7104_v31 = vpack.c.bf16 %v1053_v14, %v1049_v11  ;;  %v7108_v34 = vpack.c.bf16 %v1055_v20, %v1051_v17  ;;  %v7110_v36 = vpack.c.bf16 %v1062_v22, %v1058_v21  ;;  %v1057_v37 = vld [vmem:[%s9604_s4 + $0x520] sm:$0xff]  ;;  %v1059_v42 = vld [vmem:[%s9604_s4 + $0x530] sm:$0xff] }
  0x4e   :  { %5124 = vmatpush1.bf16.msra.mxu0 %v6846_v26  ;;  %v1064_v30 = vld [vmem:[%s9604_s4 + $0x578] sm:$0xff]  ;;  %v1061_v38 = vld [vmem:[%s9604_s4 + $0x560] sm:$0xff]  ;;  %v1063_v50 = vld [vmem:[%s9604_s4 + $0x570] sm:$0xff] }
  0x4f   :  { %5156 = vmatpush1.bf16.msra.mxu1 %v6850_v27  ;;  %5126 = vmatprep.subr.bf16.mxu0 %v6852_v28  ;;  %v7122_v49 = vpack.c.bf16 %v1064_v30, %v1060_v29  ;;  %v1066_v51 = vld [vmem:[%s9604_s4 + $0x5a8] sm:$0xff]  ;;  %v1068_v58 = vld [vmem:[%s9604_s4 + $0x5b8] sm:$0xff]  ;;  %v7142_v63 = vpack.c.bf16 %v1061_v38, %v1057_v37  ;;  %v7146_v0 = vpack.c.bf16 %v1063_v50, %v1059_v42  ;;  %v1065_v14 = vld [vmem:[%s9604_s4 + $0x5a0] sm:$0xff] }
  0x50   :  { %5158 = vmatprep.subr.bf16.mxu1 %v6864_v32  ;;  %v1070_v57 = vld [vmem:[%s9604_s4 + $0x5e8] sm:$0xff]  ;;  %v1072_v59 = vld [vmem:[%s9604_s4 + $0x5f8] sm:$0xff]  ;;  %v1069_v17 = vld [vmem:[%s9604_s4 + $0x5e0] sm:$0xff] }
  0x51   :  { %v7148_v11 = vpack.c.bf16 %v1070_v57, %v1066_v51  ;;  %v1067_v20 = vld [vmem:[%s9604_s4 + $0x5b0] sm:$0xff]  ;;  %v7160_v21 = vpack.c.bf16 %v1072_v59, %v1068_v58  ;;  %v1074_v29 = vld [vmem:[%s9604_s4 + $0x628] sm:$0xff]  ;;  %v1076_v37 = vld [vmem:[%s9604_s4 + $0x638] sm:$0xff]  ;;  %v7178_v42 = vpack.c.bf16 %v1069_v17, %v1065_v14 }
  0x52   :  { %5128 = vmatpush1.bf16.msra.mxu0 %v6883_v39  ;;  %v1071_v22 = vld [vmem:[%s9604_s4 + $0x5f0] sm:$0xff]  ;;  %v1078_v30 = vld [vmem:[%s9604_s4 + $0x668] sm:$0xff]  ;;  %v1080_v38 = vld [vmem:[%s9604_s4 + $0x678] sm:$0xff] }
  0x53   :  { %5160 = vmatpush1.bf16.msra.mxu1 %v6888_v40  ;;  %5130 = vmatprep.subr.bf16.mxu0 %v6890_v41  ;;  %9682 = vst [vmem:[#allocation8_spill] sm:$0xff] %v7148_v11  ;;  %9683 = vst [vmem:[#allocation9_spill] sm:$0xff] %v7160_v21  ;;  %v7182_v50 = vpack.c.bf16 %v1071_v22, %v1067_v20  ;;  %v7184_v51 = vpack.c.bf16 %v1078_v30, %v1074_v29  ;;  %v1073_v57 = vld [vmem:[%s9604_s4 + $0x620] sm:$0xff]  ;;  %v1075_v59 = vld [vmem:[%s9604_s4 + $0x630] sm:$0xff] }
  0x54   :  { %5162 = vmatprep.subr.bf16.mxu1 %v6902_v46  ;;  %9684 = vst [vmem:[#allocation10_spill] sm:$0xff] %v7178_v42  ;;  %v1077_v58 = vld [vmem:[%s9604_s4 + $0x660] sm:$0xff]  ;;  %v7196_v14 = vpack.c.bf16 %v1080_v38, %v1076_v37  ;;  %v1079_v17 = vld [vmem:[%s9604_s4 + $0x670] sm:$0xff]  ;;  %v1082_v20 = vld [vmem:[%s9604_s4 + $0x6a8] sm:$0xff] }
  0x55   :  { %9685 = vst [vmem:[#allocation11_spill] sm:$0xff] %v7182_v50  ;;  %9686 = vst [vmem:[#allocation12_spill] sm:$0xff] %v7184_v51  ;;  %v1086_v22 = vld [vmem:[%s9604_s4 + $0x6e8] sm:$0xff]  ;;  %v1084_v29 = vld [vmem:[%s9604_s4 + $0x6b8] sm:$0xff]  ;;  %v7214_v37 = vpack.c.bf16 %v1077_v58, %v1073_v57  ;;  %v7218_v38 = vpack.c.bf16 %v1079_v17, %v1075_v59 }
  0x56   :  { %5132 = vmatpush1.bf16.msra.mxu0 %v6920_v53  ;;  %9687 = vst [vmem:[#allocation13_spill] sm:$0xff] %v7196_v14  ;;  %v1088_v30 = vld [vmem:[%s9604_s4 + $0x6f8] sm:$0xff]  ;;  %v1083_v57 = vld [vmem:[%s9604_s4 + $0x6b0] sm:$0xff]  ;;  %v1090_v17 = vld [vmem:[%s9604_s4 + $0x728] sm:$0xff] }
  0x57   :  { %5164 = vmatpush1.bf16.msra.mxu1 %v6924_v54  ;;  %5134 = vmatprep.subr.bf16.mxu0 %v6926_v55  ;;  %9688 = vst [vmem:[#allocation14_spill] sm:$0xff] %v7214_v37  ;;  %9689 = vst [vmem:[#allocation15_spill] sm:$0xff] %v7218_v38  ;;  %v7232_v58 = vpack.c.bf16 %v1088_v30, %v1084_v29  ;;  %v1087_v59 = vld [vmem:[%s9604_s4 + $0x6f0] sm:$0xff]  ;;  %v1096_v29 = vld [vmem:[%s9604_s4 + $0x778] sm:$0xff] }
  0x58   :  { %5166 = vmatprep.subr.bf16.mxu1 %v6938_v62 }
  0x59   :  { %9691 = vst [vmem:[#allocation17_spill] sm:$0xff] %v7232_v58 }
  0x5a   :  { %5136 = vmatpush1.bf16.msra.mxu0 %v6956_v6 }
  0x5b   :  { %5168 = vmatpush1.bf16.msra.mxu1 %v6960_v7  ;;  %5138 = vmatprep.subr.bf16.mxu0 %v6962_v8 }
  0x5c   :  { %5170 = vmatprep.subr.bf16.mxu1 %v6974_v15 }
  0x5e   :  { %5140 = vmatpush1.bf16.msra.mxu0 %v6992_v23 }
  0x5f   :  { %5172 = vmatpush1.bf16.msra.mxu1 %v6996_v24  ;;  %5142 = vmatprep.subr.bf16.mxu0 %v6998_v25 }
  0x60   :  { %5174 = vmatprep.subr.bf16.mxu1 %v7010_v33 }
  0x62   :  { %5144 = vmatpush1.bf16.msra.mxu0 %v7028_v43 }
  0x63   :  { %5176 = vmatpush1.bf16.msra.mxu1 %v7032_v45  ;;  %5178 = vmatprep.subr.bf16.mxu0 %v7034_v47 }
  0x64   :  { %5210 = vmatprep.subr.bf16.mxu1 %v7046_v52 }
  0x65   :  { %964 = vmatmul.mubr.f32.vlgmr.msra.gmra.mrb[8].mxu0 %v7064_v2 }
  0x66   :  { %1035 = vmatmul.mubr.f32.vlgmr.msra.gmra.mrb[8].mxu1 %v7064_v2  ;;  %5180 = vmatpush1.bf16.msra.mxu0 %v7066_v4 }
  0x67   :  { %5212 = vmatpush1.bf16.msra.mxu1 %v7070_v5  ;;  %5182 = vmatprep.subr.bf16.mxu0 %v7072_v9 }
  0x68   :  { %5214 = vmatprep.subr.bf16.mxu1 %v7084_v18  ;;  %1179 = vmatprep.mubr.f32.mxu0 %v9608_v3 }
  0x69   :  { %1250 = vmatprep.mubr.f32.mxu1 %v9608_v3  ;;  %v7220_v3 = vpack.c.bf16 %v1086_v22, %v1082_v20  ;;  %v1094_v20 = vld [vmem:[%s9604_s4 + $0x768] sm:$0xff]  ;;  %v1092_v22 = vld [vmem:[%s9604_s4 + $0x738] sm:$0xff] }
  0x6a   :  { %5184 = vmatpush1.bf16.msra.mxu0 %v7104_v31 }
  0x6b   :  { %5216 = vmatpush1.bf16.msra.mxu1 %v7108_v34  ;;  %5186 = vmatprep.subr.bf16.mxu0 %v7110_v36  ;;  %9690 = vst [vmem:[#allocation16_spill] sm:$0xff] %v7220_v3 }
  0x6c   :  { %5218 = vmatprep.subr.bf16.mxu1 %v7122_v49 }
  0x6e   :  { %5188 = vmatpush1.bf16.msra.mxu0 %v7142_v63 }
  0x6f   :  { %5220 = vmatpush1.bf16.msra.mxu1 %v7146_v0  ;;  %5190 = vmatprep.subr.bf16.mxu0 %v7148_v11  ;;  %v1085_v11 = vld [vmem:[%s9604_s4 + $0x6e0] sm:$0xff] }
  0x70   :  { %5222 = vmatprep.subr.bf16.mxu1 %v7160_v21  ;;  %v1081_v21 = vld [vmem:[%s9604_s4 + $0x6a0] sm:$0xff] }
  0x71   :  { %v7250_v30 = vpack.c.bf16 %v1085_v11, %v1081_v21  ;;  %v1091_v11 = vld [vmem:[%s9604_s4 + $0x730] sm:$0xff]  ;;  %v7268_v21 = vpack.c.bf16 %v1096_v29, %v1092_v22  ;;  %v1104_v22 = vld [vmem:[%s9604_s4 + $0x7f8] sm:$0xff] }
  0x72   :  { %5192 = vmatpush1.bf16.msra.mxu0 %v7178_v42  ;;  %v1093_v42 = vld [vmem:[%s9604_s4 + $0x760] sm:$0xff] }
  0x73   :  { %5224 = vmatpush1.bf16.msra.mxu1 %v7182_v50  ;;  %5194 = vmatprep.subr.bf16.mxu0 %v7184_v51  ;;  %v7256_v51 = vpack.c.bf16 %v1094_v20, %v1090_v17  ;;  %v1089_v50 = vld [vmem:[%s9604_s4 + $0x720] sm:$0xff]  ;;  %v1102_v17 = vld [vmem:[%s9604_s4 + $0x7e8] sm:$0xff]  ;;  %v1100_v20 = vld [vmem:[%s9604_s4 + $0x7b8] sm:$0xff] }
  0x74   :  { %5226 = vmatprep.subr.bf16.mxu1 %v7196_v14  ;;  %v7254_v14 = vpack.c.bf16 %v1087_v59, %v1083_v57  ;;  %v1095_v57 = vld [vmem:[%s9604_s4 + $0x770] sm:$0xff]  ;;  %v1098_v59 = vld [vmem:[%s9604_s4 + $0x7a8] sm:$0xff]  ;;  %v7286_v29 = vpack.c.bf16 %v1093_v42, %v1089_v50  ;;  %v7301_v42 = vpack.c.bf16 %v1104_v22, %v1100_v20 }
  0x75   :  { %v1099_v50 = vld [vmem:[%s9604_s4 + $0x7b0] sm:$0xff] }
  0x76   :  { %5196 = vmatpush1.bf16.msra.mxu0 %v7214_v37  ;;  %v1101_v37 = vld [vmem:[%s9604_s4 + $0x7e0] sm:$0xff] }
  0x77   :  { %5228 = vmatpush1.bf16.msra.mxu1 %v7218_v38  ;;  %5198 = vmatprep.subr.bf16.mxu0 %v7220_v3  ;;  %v7292_v3 = vpack.c.bf16 %v1102_v17, %v1098_v59  ;;  %v1097_v38 = vld [vmem:[%s9604_s4 + $0x7a0] sm:$0xff] }
  0x78   :  { %5230 = vmatprep.subr.bf16.mxu1 %v7232_v58  ;;  %v7290_v58 = vpack.c.bf16 %v1095_v57, %v1091_v11  ;;  %v1103_v11 = vld [vmem:[%s9604_s4 + $0x7f0] sm:$0xff]  ;;  %v1112_v57 = vrot.slane %v7064_v2, %v6479_v35  ;;  %v7312_v59 = vpack.c.bf16 %v1101_v37, %v1097_v38  ;;  %v9692_v2 = vmov 0.0  }
  0x79   :  { %v7316_v17 = vpack.c.bf16 %v1103_v11, %v1099_v50 }
  0x7a   :  { %5200 = vmatpush1.bf16.msra.mxu0 %v7250_v30  ;;  %v1113_v20 = vcombine.high %v1112_v57, %v1112_v57 }
  0x7b   :  { %5232 = vmatpush1.bf16.msra.mxu1 %v7254_v14  ;;  %5202 = vmatprep.subr.bf16.mxu0 %v7256_v51 }
  0x7c   :  { %5234 = vmatprep.subr.bf16.mxu1 %v7268_v21 }
  0x7e   :  { %5204 = vmatpush1.bf16.msra.mxu0 %v7286_v29 }
  0x7f   :  { %5236 = vmatpush1.bf16.msra.mxu1 %v7290_v58  ;;  %5206 = vmatprep.subr.bf16.mxu0 %v7292_v3 }
  0x80   :  { %5238 = vmatprep.subr.bf16.mxu1 %v7301_v42 }
  0x82   :  { %5208 = vmatpush1.bf16.msra.mxu0 %v7312_v59 }
  0x83   :  { %5240 = vmatpush1.bf16.msra.mxu1 %v7316_v17  ;;  %5242 = vmatprep.subr.bf16.mxu0 %v6731_v44  ;;  %v132_v44 = vsub.s32 0, %v6443_v16 }
  0x84   :  { %5274 = vmatprep.subr.bf16.mxu1 %v6742_v48  ;;  %v128_v48 = vld [vmem:[%s9605_s5] sm:$0xf] }
  0x85   :  { %1180 = vmatmul.mubr.f32.vlgmr.msra.gmra.mrb[10].mxu0 %v1113_v20 }
  0x86   :  { %1251 = vmatmul.mubr.f32.vlgmr.msra.gmra.mrb[10].mxu1 %v1113_v20  ;;  %5244 = vmatpush1.bf16.msra.mxu0 %v6762_v56  ;;  %v140_v56 = vsub.s32 2, %v6443_v16 }
  0x87   :  { %5276 = vmatpush1.bf16.msra.mxu1 %v6774_v60  ;;  %5246 = vmatprep.subr.bf16.mxu0 %v6776_v61  ;;  %v136_v60 = vsub.s32 1, %v6443_v16  ;;  %v144_v61 = vsub.s32 3, %v6443_v16 }
  0x88   :  { %5278 = vmatprep.subr.bf16.mxu1 %v6788_v1  ;;  %1487 = vmatprep.mubr.f32.mxu0 %v9692_v2  ;;  %v133_v1 = vrot.slane %v128_v48, %v132_v44 }
  0x89   :  { %1558 = vmatprep.mubr.f32.mxu1 %v9692_v2 }
  0x8a   :  { %5248 = vmatpush1.bf16.msra.mxu0 %v6806_v10  ;;  %v141_v10 = vrot.slane %v128_v48, %v140_v56 }
  0x8b   :  { %5280 = vmatpush1.bf16.msra.mxu1 %v6811_v12  ;;  %5250 = vmatprep.subr.bf16.mxu0 %v6813_v13  ;;  %v137_v12 = vrot.slane %v128_v48, %v136_v60  ;;  %v145_v13 = vrot.slane %v128_v48, %v144_v61 }
  0x8c   :  { %5282 = vmatprep.subr.bf16.mxu1 %v6826_v19 }
  0x8e   :  { %5252 = vmatpush1.bf16.msra.mxu0 %v6846_v26 }
  0x8f   :  { %5284 = vmatpush1.bf16.msra.mxu1 %v6850_v27  ;;  %5254 = vmatprep.subr.bf16.mxu0 %v6852_v28 }
  0x90   :  { %5286 = vmatprep.subr.bf16.mxu1 %v6864_v32 }
  0x92   :  { %5256 = vmatpush1.bf16.msra.mxu0 %v6883_v39 }
  0x93   :  { %5288 = vmatpush1.bf16.msra.mxu1 %v6888_v40  ;;  %5258 = vmatprep.subr.bf16.mxu0 %v6890_v41 }
  0x94   :  { %5290 = vmatprep.subr.bf16.mxu1 %v6902_v46 }
  0x96   :  { %5260 = vmatpush1.bf16.msra.mxu0 %v6920_v53 }
  0x97   :  { %5292 = vmatpush1.bf16.msra.mxu1 %v6924_v54  ;;  %5262 = vmatprep.subr.bf16.mxu0 %v6926_v55 }
  0x98   :  { %5294 = vmatprep.subr.bf16.mxu1 %v6938_v62 }
  0x9a   :  { %5264 = vmatpush1.bf16.msra.mxu0 %v6956_v6 }
  0x9b   :  { %5296 = vmatpush1.bf16.msra.mxu1 %v6960_v7  ;;  %5266 = vmatprep.subr.bf16.mxu0 %v6962_v8 }
  0x9c   :  { %5298 = vmatprep.subr.bf16.mxu1 %v6974_v15 }
  0x9e   :  { %5268 = vmatpush1.bf16.msra.mxu0 %v6992_v23 }
  0x9f   :  { %5300 = vmatpush1.bf16.msra.mxu1 %v6996_v24  ;;  %5270 = vmatprep.subr.bf16.mxu0 %v6998_v25  ;;  %v6238_v25 = vmov -inf  }
  0xa0   :  { %5302 = vmatprep.subr.bf16.mxu1 %v7010_v33  ;;  %55 = vst [vmem:[#allocation7] sm:$0xf] %v6238_v25 }
  0xa2   :  { %5272 = vmatpush1.bf16.msra.mxu0 %v7028_v43 }
  0xa3   :  { %5304 = vmatpush1.bf16.msra.mxu1 %v7032_v45  ;;  %5306 = vmatprep.subr.bf16.mxu0 %v7034_v47 }
  0xa4   :  { %5338 = vmatprep.subr.bf16.mxu1 %v7046_v52 }
  0xf8   :  { %v260_v19 = vpop.f32.mrb[0].mxu0 }
  0xf9   :  { %v261_v26 = vadd.f32 %v260_v19, %v133_v1  ;;  %v337_v27 = vpop.f32.mrb[0].mxu1  ;;  %v262_v28 = vpop.f32.mrb[1].mxu0 }
  0xfa   :  { %v338_v32 = vadd.f32 %v337_v27, %v141_v10  ;;  %v263_v39 = vadd.f32 %v262_v28, %v137_v12  ;;  %v339_v40 = vpop.f32.mrb[1].mxu1  ;;  %v516_v28 = vld [vmem:[%s9606_s6] sm:$0xf] }
  0xfb   :  { %v340_v41 = vadd.f32 %v339_v40, %v145_v13  ;;  %v525_v40 = vrot.slane %v516_v28, %v136_v60 }
  0xfc   :  { %v356_v46 = vcombine.low %v261_v26, %v263_v39  ;;  %v357_v53 = vcombine.high %v261_v26, %v263_v39  ;;  %v529_v39 = vrot.slane %v516_v28, %v140_v56 }
  0xfd   :  { %v358_v54 = vcombine.low %v338_v32, %v340_v41  ;;  %v359_v55 = vcombine.high %v338_v32, %v340_v41  ;;  %v521_v32 = vrot.slane %v516_v28, %v132_v44  ;;  %v533_v41 = vrot.slane %v516_v28, %v144_v61 }
  0xfe   :  { %v7365_v62 = vrot.slane %v356_v46, %v6479_v35  ;;  %v7368_v16 = vrot.slane %v357_v53, %v6479_v35 }
  0xff   :  { %v7371_v6 = vrot.slane %v358_v54, %v6479_v35  ;;  %v7374_v7 = vrot.slane %v359_v55, %v6479_v35  ;;  %v266_v33 = vpop.f32.mrb[2].mxu0 }
 0x100   :  { %v267_v43 = vadd.f32 %v266_v33, %v133_v1  ;;  %v343_v45 = vpop.f32.mrb[2].mxu1  ;;  %v268_v47 = vpop.f32.mrb[3].mxu0 }
 0x101   :  { %v388_v8 = vcombine.low %v7365_v62, %v7371_v6  ;;  %v344_v52 = vadd.f32 %v343_v45, %v141_v10  ;;  %v269_v37 = vadd.f32 %v268_v47, %v137_v12  ;;  %v345_v38 = vpop.f32.mrb[3].mxu1  ;;  %v833_v12 = vld [vmem:[#allocation5] sm:$0x3] }
 0x102   :  { %v346_v22 = vadd.f32 %v345_v38, %v145_v13 }
 0x103   :  { %v392_v50 = vcombine.low %v267_v43, %v269_v37  ;;  %v393_v11 = vcombine.high %v267_v43, %v269_v37 }
 0x104   :  { %v394_v57 = vcombine.low %v344_v52, %v346_v22  ;;  %v395_v20 = vcombine.high %v344_v52, %v346_v22 }
 0x105   :  { %v7385_v48 = vrot.slane %v392_v50, %v6479_v35  ;;  %v7388_v19 = vrot.slane %v393_v11, %v6479_v35 }
 0x106   :  { %v7391_v26 = vrot.slane %v394_v57, %v6479_v35  ;;  %v7394_v1 = vrot.slane %v395_v20, %v6479_v35 }
 0x107   :  { %9693 = vst [vmem:[#allocation18_spill] sm:$0xff] %v7385_v48  ;;  %9694 = vst [vmem:[#allocation19_spill] sm:$0xff] %v7388_v19 }
 0x108   :  { %9695 = vst [vmem:[#allocation20_spill] sm:$0xff] %v7391_v26  ;;  %9696 = vst [vmem:[#allocation21_spill] sm:$0xff] %v7394_v1 }
 0x118   :  { %v648_v46 = vpop.f32.mrb[4].mxu0 }
 0x119   :  { %v649_v53 = vadd.f32 %v648_v46, %v521_v32  ;;  %v725_v54 = vpop.f32.mrb[4].mxu1  ;;  %v650_v55 = vpop.f32.mrb[5].mxu0 }
 0x11a   :  { %v726_v25 = vadd.f32 %v725_v54, %v529_v39  ;;  %v651_v33 = vadd.f32 %v650_v55, %v525_v40  ;;  %v727_v43 = vpop.f32.mrb[5].mxu1 }
 0x11b   :  { %v728_v45 = vadd.f32 %v727_v43, %v533_v41 }
 0x11c   :  { %v744_v47 = vcombine.low %v649_v53, %v651_v33  ;;  %v745_v52 = vcombine.high %v649_v53, %v651_v33  ;;  %v654_v61 = vpop.f32.mrb[6].mxu0 }
 0x11d   :  { %v746_v37 = vcombine.low %v726_v25, %v728_v45  ;;  %v747_v38 = vcombine.high %v726_v25, %v728_v45  ;;  %v655_v50 = vadd.f32 %v654_v61, %v521_v32  ;;  %v731_v11 = vpop.f32.mrb[6].mxu1  ;;  %v656_v57 = vpop.f32.mrb[7].mxu0 }
 0x11e   :  { %v7408_v22 = vrot.slane %v744_v47, %v6479_v35  ;;  %v7411_v44 = vrot.slane %v745_v52, %v6479_v35  ;;  %v733_v54 = vpop.f32.mrb[7].mxu1  ;;  %v732_v55 = vadd.f32 %v731_v11, %v529_v39  ;;  %v657_v25 = vadd.f32 %v656_v57, %v525_v40 }
 0x11f   :  { %v7414_v56 = vrot.slane %v746_v37, %v6479_v35  ;;  %v7417_v60 = vrot.slane %v747_v38, %v6479_v35  ;;  %v734_v33 = vadd.f32 %v733_v54, %v533_v41 }
 0x120   :  { %9697 = vst [vmem:[#allocation22_spill] sm:$0xff] %v7408_v22  ;;  %9698 = vst [vmem:[#allocation23_spill] sm:$0xff] %v7411_v44  ;;  %v780_v43 = vcombine.low %v655_v50, %v657_v25  ;;  %v781_v32 = vcombine.high %v655_v50, %v657_v25  ;;  %v9711_v22 = vcombine.high %v7365_v62, %v7371_v6 }
 0x121   :  { %9699 = vst [vmem:[#allocation24_spill] sm:$0xff] %v7414_v56  ;;  %9700 = vst [vmem:[#allocation25_spill] sm:$0xff] %v7417_v60  ;;  %v782_v45 = vcombine.low %v732_v55, %v734_v33  ;;  %v783_v47 = vcombine.high %v732_v55, %v734_v33 }
 0x122   :  { %v7428_v52 = vrot.slane %v780_v43, %v6479_v35  ;;  %v7431_v37 = vrot.slane %v781_v32, %v6479_v35 }
 0x123   :  { %v7434_v38 = vrot.slane %v782_v45, %v6479_v35  ;;  %v7437_v61 = vrot.slane %v783_v47, %v6479_v35 }
 0x125   :  { %v815_v50 = vcombine.high %v7431_v37, %v7437_v61 }
 0x138   :  { %v965_v11 = vpop.f32.mrb[8].mxu0 }
 0x139   :  { %v1036_v57 = vpop.f32.mrb[8].mxu1  ;;  %v967_v54 = vpop.f32.mrb[9].mxu0 }
 0x13a   :  { %v1262_v55 = vcombine.low %v965_v11, %v967_v54  ;;  %v1038_v25 = vpop.f32.mrb[9].mxu1 }
 0x13b   :  { %v1263_v33 = vcombine.low %v1036_v57, %v1038_v25 }
 0x13c   :  { %v1270_v43 = vrot.slane %v1262_v55, %v6479_v35 }
 0x13d   :  { %v1277_v32 = vrot.slane %v1263_v33, %v6479_v35 }
 0x13f   :  { %v1278_v45 = vcombine.low %v1270_v43, %v1277_v32 }
 0x141   :  { %v1280_v47 = vadd.f32 %v1278_v45, %v388_v8 }
 0x143   :  { %v1281_v20 = vmul.f32 0.5, %v1280_v47  ;;  %v1286_v27 = vrot.slane %v1280_v47, 6 }
 0x145   :  { %6140 = vtanh.f32 %v1281_v20 }
 0x146   :  { %6142 = vtanh.f32 %v1286_v27 }
 0x14f   :  { %v6141_v28 = vpop.eup %6140 }
 0x150   :  { %v1283_v13 = vmul.f32 0.5, %v6141_v28  ;;  %v6143_v54 = vpop.eup %6142 }
 0x152   :  { %v1284_v46 = vadd.f32 0.5, %v1283_v13 }
 0x154   :  { %v1290_v11 = vrot.slane %v1284_v46, 2  ;;  %v1293_v25 = vmul.f32 %v6143_v54, %v1284_v46  ;;  %v1296_v47 = vrot.slane %v1284_v46, 4  ;;  %v834_v46 = vld [vmem:[#allocation5 + $0x2] sm:$0x3] }
 0x156   :  { %v1292_v57 = vmul.f32 %v1290_v11, %v833_v12 }
 0x158   :  { %v7452_v55 = vadd.f32 %v1293_v25, %v1292_v57  ;;  %v1181_v33 = vpop.f32.mrb[10].mxu0 }
 0x159   :  { %v1252_v43 = vpop.f32.mrb[10].mxu1  ;;  %v1183_v32 = vpop.f32.mrb[11].mxu0 }
 0x15a   :  { %v1305_v53 = vcombine.low %v1181_v33, %v1183_v32  ;;  %v1254_v10 = vpop.f32.mrb[11].mxu1  ;;  %6144 = vtanh.f32 %v7452_v55  ;;  %v9708_v33 = vld [vmem:[#allocation15_spill] sm:$0xff]  ;;  %v9710_v32 = vld [vmem:[#allocation17_spill] sm:$0xff] }
 0x15b   :  { %v1306_v8 = vcombine.low %v1252_v43, %v1254_v10  ;;  %v9709_v43 = vld [vmem:[#allocation16_spill] sm:$0xff] }
 0x15c   :  { %v1313_v27 = vrot.slane %v1305_v53, %v6479_v35 }
 0x15d   :  { %v1320_v20 = vrot.slane %v1306_v8, %v6479_v35 }
 0x15f   :  { %v1321_v13 = vcombine.low %v1313_v27, %v1320_v20 }
 0x161   :  { %v1323_v28 = vadd.f32 %v1321_v13, %v815_v50  ;;  %v9705_v50 = vld [vmem:[#allocation12_spill] sm:$0xff]  ;;  %v1881_v13 = vld [vmem:[%s9604_s4 + $0x58] sm:$0xff] }
 0x163   :  { %v1324_v45 = vmul.f32 0.5, %v1323_v28  ;;  %v1329_v54 = vrot.slane %v1323_v28, 6  ;;  %v1874_v28 = vld [vmem:[%s9604_s4] sm:$0xff] }
 0x164   :  { %v6145_v12 = vpop.eup %6144 }
 0x165   :  { %6146 = vtanh.f32 %v1324_v45  ;;  %v1298_v11 = vmul.f32 %v6145_v12, %v1296_v47  ;;  %v1878_v45 = vld [vmem:[%s9604_s4 + $0x40] sm:$0xff] }
 0x166   :  { %6148 = vtanh.f32 %v1329_v54  ;;  %v7517_v12 = vpack.c.bf16 %v1878_v45, %v1874_v28  ;;  %v1880_v54 = vld [vmem:[%s9604_s4 + $0x50] sm:$0xff]  ;;  %v1902_v28 = vld [vmem:[%s9604_s4 + $0x1c0] sm:$0xff] }
 0x167   :  { %1488 = vmatmul.mubr.f32.vlgmr.msra.gmra.mrb[12].mxu0 %v1298_v11  ;;  %1559 = vmatmul.mubr.f32.vlgmr.msra.gmra.mrb[12].mxu1 %v1298_v11 }
 0x168   :  { %5308 = vmatpush1.bf16.msra.mxu0 %v7066_v4  ;;  %5340 = vmatpush1.bf16.msra.mxu1 %v7070_v5  ;;  %v9701_v5 = vld [vmem:[#allocation8_spill] sm:$0xff] }
 0x169   :  { %5310 = vmatprep.subr.bf16.mxu0 %v7072_v9  ;;  %5342 = vmatprep.subr.bf16.mxu1 %v7084_v18  ;;  %v9702_v9 = vld [vmem:[#allocation9_spill] sm:$0xff] }
 0x16a   :  { %1693 = vmatprep.mubr.f32.mxu0 %v9692_v2  ;;  %1764 = vmatprep.mubr.f32.mxu1 %v9692_v2 }
 0x16c   :  { %5312 = vmatpush1.bf16.msra.mxu0 %v7104_v31  ;;  %5344 = vmatpush1.bf16.msra.mxu1 %v7108_v34  ;;  %v9703_v31 = vld [vmem:[#allocation10_spill] sm:$0xff]  ;;  %v9704_v34 = vld [vmem:[#allocation11_spill] sm:$0xff] }
 0x16d   :  { %5314 = vmatprep.subr.bf16.mxu0 %v7110_v36  ;;  %5346 = vmatprep.subr.bf16.mxu1 %v7122_v49  ;;  %v9706_v49 = vld [vmem:[#allocation13_spill] sm:$0xff] }
 0x16f   :  { %v6147_v4 = vpop.eup %6146 }
 0x170   :  { %v1326_v10 = vmul.f32 0.5, %v6147_v4  ;;  %5316 = vmatpush1.bf16.msra.mxu0 %v7142_v63  ;;  %5348 = vmatpush1.bf16.msra.mxu1 %v7146_v0  ;;  %v6149_v36 = vpop.eup %6148  ;;  %v9707_v0 = vld [vmem:[#allocation14_spill] sm:$0xff] }
 0x171   :  { %5318 = vmatprep.subr.bf16.mxu0 %v9701_v5  ;;  %5350 = vmatprep.subr.bf16.mxu1 %v9702_v9  ;;  %v1887_v5 = vld [vmem:[%s9604_s4 + $0xc8] sm:$0xff]  ;;  %v1885_v9 = vld [vmem:[%s9604_s4 + $0x98] sm:$0xff] }
 0x172   :  { %v1327_v18 = vadd.f32 0.5, %v1326_v10  ;;  %v1883_v10 = vld [vmem:[%s9604_s4 + $0x88] sm:$0xff] }
 0x174   :  { %v1333_v53 = vrot.slane %v1327_v18, 2  ;;  %5320 = vmatpush1.bf16.msra.mxu0 %v9703_v31  ;;  %5352 = vmatpush1.bf16.msra.mxu1 %v9704_v34  ;;  %v1336_v63 = vmul.f32 %v6149_v36, %v1327_v18  ;;  %v1339_v8 = vrot.slane %v1327_v18, 4  ;;  %v7540_v18 = vpack.c.bf16 %v1887_v5, %v1883_v10  ;;  %v1886_v31 = vld [vmem:[%s9604_s4 + $0xc0] sm:$0xff]  ;;  %v1904_v10 = vld [vmem:[%s9604_s4 + $0x1d0] sm:$0xff] }
 0x175   :  { %5322 = vmatprep.subr.bf16.mxu0 %v9705_v50  ;;  %5354 = vmatprep.subr.bf16.mxu1 %v9706_v49  ;;  %v1884_v50 = vld [vmem:[%s9604_s4 + $0x90] sm:$0xff] }
 0x176   :  { %v1335_v57 = vmul.f32 %v1333_v53, %v834_v46  ;;  %v1889_v46 = vld [vmem:[%s9604_s4 + $0xd8] sm:$0xff]  ;;  %v1882_v53 = vld [vmem:[%s9604_s4 + $0x80] sm:$0xff]  ;;  %v1888_v49 = vld [vmem:[%s9604_s4 + $0xd0] sm:$0xff] }
 0x177   :  { %v7551_v34 = vpack.c.bf16 %v1889_v46, %v1885_v9  ;;  %v7553_v36 = vpack.c.bf16 %v1886_v31, %v1882_v53  ;;  %v1907_v9 = vld [vmem:[%s9604_s4 + $0x208] sm:$0xff]  ;;  %v1909_v53 = vld [vmem:[%s9604_s4 + $0x218] sm:$0xff] }
 0x178   :  { %v7475_v25 = vadd.f32 %v1336_v63, %v1335_v57  ;;  %5324 = vmatpush1.bf16.msra.mxu0 %v9707_v0  ;;  %5356 = vmatpush1.bf16.msra.mxu1 %v9708_v33  ;;  %v7562_v57 = vpack.c.bf16 %v1888_v49, %v1884_v50  ;;  %v1891_v63 = vld [vmem:[%s9604_s4 + $0x108] sm:$0xff]  ;;  %v1893_v33 = vld [vmem:[%s9604_s4 + $0x118] sm:$0xff]  ;;  %v1906_v49 = vld [vmem:[%s9604_s4 + $0x200] sm:$0xff] }
 0x179   :  { %5326 = vmatprep.subr.bf16.mxu0 %v9709_v43  ;;  %5358 = vmatprep.subr.bf16.mxu1 %v9710_v32  ;;  %v1895_v0 = vld [vmem:[%s9604_s4 + $0x148] sm:$0xff]  ;;  %v1897_v32 = vld [vmem:[%s9604_s4 + $0x158] sm:$0xff] }
 0x17a   :  { %6150 = vtanh.f32 %v7475_v25  ;;  %v7576_v43 = vpack.c.bf16 %v1895_v0, %v1891_v63  ;;  %v1911_v46 = vld [vmem:[%s9604_s4 + $0x248] sm:$0xff]  ;;  %v1913_v50 = vld [vmem:[%s9604_s4 + $0x258] sm:$0xff]  ;;  %v1910_v63 = vld [vmem:[%s9604_s4 + $0x240] sm:$0xff] }
 0x17b   :  { %v7648_v31 = vpack.c.bf16 %v1911_v46, %v1907_v9  ;;  %v7659_v0 = vpack.c.bf16 %v1913_v50, %v1909_v53  ;;  %v1920_v9 = vld [vmem:[%s9604_s4 + $0x2d0] sm:$0xff]  ;;  %v1923_v53 = vld [vmem:[%s9604_s4 + $0x308] sm:$0xff] }
 0x17c   :  { %5328 = vmatpush1.bf16.msra.mxu0 %v7250_v30  ;;  %5360 = vmatpush1.bf16.msra.mxu1 %v7254_v14  ;;  %v1927_v50 = vld [vmem:[%s9604_s4 + $0x348] sm:$0xff] }
 0x17d   :  { %5330 = vmatprep.subr.bf16.mxu0 %v7256_v51  ;;  %5362 = vmatprep.subr.bf16.mxu1 %v7268_v21  ;;  %v1342_v51 = vld [vmem:[#allocation6] sm:$0xf]  ;;  %v1356_v21 = vld [vmem:[#allocation7] sm:$0xf] }
 0x180   :  { %5332 = vmatpush1.bf16.msra.mxu0 %v7286_v29  ;;  %5364 = vmatpush1.bf16.msra.mxu1 %v7290_v58 }
 0x181   :  { %5334 = vmatprep.subr.bf16.mxu0 %v7292_v3  ;;  %5366 = vmatprep.subr.bf16.mxu1 %v7301_v42  ;;  %v1875_v42 = vld [vmem:[%s9604_s4 + $0x8] sm:$0xff] }
 0x184   :  { %v6151_v27 = vpop.eup %6150  ;;  %5336 = vmatpush1.bf16.msra.mxu0 %v7312_v59  ;;  %5368 = vmatpush1.bf16.msra.mxu1 %v7316_v17  ;;  %v1879_v59 = vld [vmem:[%s9604_s4 + $0x48] sm:$0xff]  ;;  %v1877_v17 = vld [vmem:[%s9604_s4 + $0x18] sm:$0xff] }
 0x185   :  { %v1341_v30 = vmul.f32 %v6151_v27, %v1339_v8  ;;  %v7504_v20 = vpack.c.bf16 %v1879_v59, %v1875_v42  ;;  %v7515_v47 = vpack.c.bf16 %v1881_v13, %v1877_v17  ;;  %v1890_v8 = vld [vmem:[%s9604_s4 + $0x100] sm:$0xff]  ;;  %v1901_v42 = vld [vmem:[%s9604_s4 + $0x198] sm:$0xff] }
 0x186   :  { %v1894_v27 = vld [vmem:[%s9604_s4 + $0x140] sm:$0xff]  ;;  %v1905_v17 = vld [vmem:[%s9604_s4 + $0x1d8] sm:$0xff] }
 0x187   :  { %v1345_v14 = vcombine.low %v1298_v11, %v1341_v30  ;;  %1694 = vmatmul.mubr.f32.vlgmr.msra.gmra.mrb[14].mxu0 %v1341_v30  ;;  %1765 = vmatmul.mubr.f32.vlgmr.msra.gmra.mrb[14].mxu1 %v1341_v30  ;;  %v1876_v11 = vld [vmem:[%s9604_s4 + $0x10] sm:$0xff]  ;;  %v7587_v30 = vpack.c.bf16 %v1897_v32, %v1893_v33  ;;  %v1898_v13 = vld [vmem:[%s9604_s4 + $0x180] sm:$0xff]  ;;  %v7623_v45 = vpack.c.bf16 %v1905_v17, %v1901_v42  ;;  %v1921_v42 = vld [vmem:[%s9604_s4 + $0x2d8] sm:$0xff] }
 0x188   :  { %2002 = vmatprep.mubr.f32.mxu0 %v9692_v2  ;;  %2073 = vmatprep.mubr.f32.mxu1 %v9692_v2  ;;  %v7526_v4 = vpack.c.bf16 %v1880_v54, %v1876_v11  ;;  %v7625_v11 = vpack.c.bf16 %v1902_v28, %v1898_v13  ;;  %v1900_v54 = vld [vmem:[%s9604_s4 + $0x190] sm:$0xff]  ;;  %v7661_v33 = vpack.c.bf16 %v1910_v63, %v1906_v49  ;;  %v1914_v17 = vld [vmem:[%s9604_s4 + $0x280] sm:$0xff]  ;;  %v1925_v49 = vld [vmem:[%s9604_s4 + $0x318] sm:$0xff] }
 0x189   :  { %v1352_v3 = vrot.slane %v1345_v14, %v6479_v35  ;;  %5370 = vmatprep.subr.bf16.mxu0 %v7504_v20  ;;  %5402 = vmatprep.subr.bf16.mxu1 %v7515_v47  ;;  %v7589_v14 = vpack.c.bf16 %v1894_v27, %v1890_v8  ;;  %v7634_v5 = vpack.c.bf16 %v1904_v10, %v1900_v54  ;;  %v1908_v32 = vld [vmem:[%s9604_s4 + $0x210] sm:$0xff]  ;;  %v1918_v13 = vld [vmem:[%s9604_s4 + $0x2c0] sm:$0xff] }
 0x18a   :  { %5372 = vmatpush1.bf16.msra.mxu0 %v7517_v12  ;;  %5404 = vmatpush1.bf16.msra.mxu1 %v7526_v4  ;;  %v1912_v8 = vld [vmem:[%s9604_s4 + $0x250] sm:$0xff]  ;;  %v7697_v54 = vpack.c.bf16 %v1918_v13, %v1914_v17  ;;  %v7720_v63 = vpack.c.bf16 %v1927_v50, %v1923_v53  ;;  %v1933_v53 = vld [vmem:[%s9604_s4 + $0x398] sm:$0xff] }
 0x18b   :  { %v1354_v58 = vadd.f32 %v1352_v3, %v1342_v51  ;;  %v1357_v29 = vmax.f32 %v1356_v21, %v1352_v3  ;;  %5374 = vmatprep.subr.bf16.mxu0 %v7540_v18  ;;  %5406 = vmatprep.subr.bf16.mxu1 %v7551_v34  ;;  %v1892_v51 = vld [vmem:[%s9604_s4 + $0x110] sm:$0xff]  ;;  %v7670_v27 = vpack.c.bf16 %v1912_v8, %v1908_v32  ;;  %v1929_v32 = vld [vmem:[%s9604_s4 + $0x358] sm:$0xff]  ;;  %v1922_v8 = vld [vmem:[%s9604_s4 + $0x300] sm:$0xff] }
 0x18c   :  { %v1896_v21 = vld [vmem:[%s9604_s4 + $0x150] sm:$0xff] }
 0x18d   :  { %1355 = vst [vmem:[#allocation6] sm:$0xf] %v1354_v58  ;;  %1358 = vst [vmem:[#allocation7] sm:$0xf] %v1357_v29  ;;  %v7598_v3 = vpack.c.bf16 %v1896_v21, %v1892_v51  ;;  %v1899_v58 = vld [vmem:[%s9604_s4 + $0x188] sm:$0xff]  ;;  %v1916_v10 = vld [vmem:[%s9604_s4 + $0x290] sm:$0xff] }
 0x18e   :  { %5376 = vmatpush1.bf16.msra.mxu0 %v7553_v36  ;;  %5408 = vmatpush1.bf16.msra.mxu1 %v7562_v57  ;;  %v1903_v29 = vld [vmem:[%s9604_s4 + $0x1c8] sm:$0xff]  ;;  %v7706_v46 = vpack.c.bf16 %v1920_v9, %v1916_v10  ;;  %v1928_v17 = vld [vmem:[%s9604_s4 + $0x350] sm:$0xff] }
 0x18f   :  { %5378 = vmatprep.subr.bf16.mxu0 %v7576_v43  ;;  %5410 = vmatprep.subr.bf16.mxu1 %v7587_v30  ;;  %v7612_v59 = vpack.c.bf16 %v1903_v29, %v1899_v58  ;;  %v1915_v51 = vld [vmem:[%s9604_s4 + $0x288] sm:$0xff]  ;;  %v1917_v58 = vld [vmem:[%s9604_s4 + $0x298] sm:$0xff] }
 0x190   :  { %v1919_v21 = vld [vmem:[%s9604_s4 + $0x2c8] sm:$0xff]  ;;  %v7695_v28 = vpack.c.bf16 %v1921_v42, %v1917_v58  ;;  %v1924_v42 = vld [vmem:[%s9604_s4 + $0x310] sm:$0xff] }
 0x191   :  { %v7684_v29 = vpack.c.bf16 %v1919_v21, %v1915_v51  ;;  %v1926_v51 = vld [vmem:[%s9604_s4 + $0x340] sm:$0xff]  ;;  %v7731_v21 = vpack.c.bf16 %v1929_v32, %v1925_v49  ;;  %v7742_v13 = vpack.c.bf16 %v1928_v17, %v1924_v42  ;;  %v1931_v10 = vld [vmem:[%s9604_s4 + $0x388] sm:$0xff]  ;;  %v1937_v49 = vld [vmem:[%s9604_s4 + $0x3d8] sm:$0xff] }
 0x192   :  { %5380 = vmatpush1.bf16.msra.mxu0 %v7589_v14  ;;  %5412 = vmatpush1.bf16.msra.mxu1 %v7598_v3  ;;  %v7733_v58 = vpack.c.bf16 %v1926_v51, %v1922_v8  ;;  %v1935_v9 = vld [vmem:[%s9604_s4 + $0x3c8] sm:$0xff]  ;;  %v1930_v32 = vld [vmem:[%s9604_s4 + $0x380] sm:$0xff]  ;;  %v7767_v51 = vpack.c.bf16 %v1937_v49, %v1933_v53  ;;  %v1932_v17 = vld [vmem:[%s9604_s4 + $0x390] sm:$0xff] }
 0x193   :  { %5382 = vmatprep.subr.bf16.mxu0 %v7612_v59  ;;  %5414 = vmatprep.subr.bf16.mxu1 %v7623_v45  ;;  %v7756_v50 = vpack.c.bf16 %v1935_v9, %v1931_v10  ;;  %v1934_v8 = vld [vmem:[%s9604_s4 + $0x3c0] sm:$0xff]  ;;  %v1936_v10 = vld [vmem:[%s9604_s4 + $0x3d0] sm:$0xff]  ;;  %v2081_v53 = vld [vmem:[%s9604_s4 + $0x428] sm:$0xff] }
 0x194   :  { %v7769_v42 = vpack.c.bf16 %v1934_v8, %v1930_v32  ;;  %v7778_v9 = vpack.c.bf16 %v1936_v10, %v1932_v17  ;;  %v2085_v49 = vld [vmem:[%s9604_s4 + $0x468] sm:$0xff]  ;;  %v2083_v32 = vld [vmem:[%s9604_s4 + $0x438] sm:$0xff] }
 0x195   :  { %v7792_v8 = vpack.c.bf16 %v2085_v49, %v2081_v53  ;;  %v2087_v17 = vld [vmem:[%s9604_s4 + $0x478] sm:$0xff] }
 0x196   :  { %5384 = vmatpush1.bf16.msra.mxu0 %v7625_v11  ;;  %5416 = vmatpush1.bf16.msra.mxu1 %v7634_v5  ;;  %v7797_v10 = vpack.c.bf16 %v2087_v17, %v2083_v32 }
 0x197   :  { %5386 = vmatprep.subr.bf16.mxu0 %v7648_v31  ;;  %5418 = vmatprep.subr.bf16.mxu1 %v7659_v0 }
 0x19a   :  { %5388 = vmatpush1.bf16.msra.mxu0 %v7661_v33  ;;  %5420 = vmatpush1.bf16.msra.mxu1 %v7670_v27 }
 0x19b   :  { %5390 = vmatprep.subr.bf16.mxu0 %v7684_v29  ;;  %5422 = vmatprep.subr.bf16.mxu1 %v7695_v28 }
 0x19e   :  { %5392 = vmatpush1.bf16.msra.mxu0 %v7697_v54  ;;  %5424 = vmatpush1.bf16.msra.mxu1 %v7706_v46 }
 0x19f   :  { %5394 = vmatprep.subr.bf16.mxu0 %v7720_v63  ;;  %5426 = vmatprep.subr.bf16.mxu1 %v7731_v21 }
 0x1a2   :  { %5396 = vmatpush1.bf16.msra.mxu0 %v7733_v58  ;;  %5428 = vmatpush1.bf16.msra.mxu1 %v7742_v13 }
 0x1a3   :  { %5398 = vmatprep.subr.bf16.mxu0 %v7756_v50  ;;  %5430 = vmatprep.subr.bf16.mxu1 %v7767_v51 }
 0x1a6   :  { %5400 = vmatpush1.bf16.msra.mxu0 %v7769_v42  ;;  %5432 = vmatpush1.bf16.msra.mxu1 %v7778_v9 }
 0x1a7   :  { %5434 = vmatprep.subr.bf16.mxu0 %v7792_v8  ;;  %5466 = vmatprep.subr.bf16.mxu1 %v7797_v10 }
 0x23a   :  { %v1489_v39 = vpop.f32.mrb[12].mxu0  ;;  %v1560_v24 = vpop.f32.mrb[12].mxu1 }
 0x23b   :  { %v1491_v40 = vpop.f32.mrb[13].mxu0  ;;  %v1562_v23 = vpop.f32.mrb[13].mxu1 }
 0x23c   :  { %v1777_v41 = vcombine.low %v1489_v39, %v1491_v40  ;;  %v1778_v15 = vcombine.low %v1560_v24, %v1562_v23 }
 0x23e   :  { %v1785_v56 = vrot.slane %v1777_v41, %v6479_v35  ;;  %v1792_v53 = vrot.slane %v1778_v15, %v6479_v35 }
 0x240   :  { %v1793_v49 = vcombine.low %v1785_v56, %v1792_v53  ;;  %v2082_v53 = vld [vmem:[%s9604_s4 + $0x430] sm:$0xff] }
 0x242   :  { %v1795_v32 = vadd.f32 %v1793_v49, %v9711_v22  ;;  %v2086_v49 = vld [vmem:[%s9604_s4 + $0x470] sm:$0xff] }
 0x244   :  { %v1796_v17 = vmul.f32 0.5, %v1795_v32  ;;  %v1801_v1 = vrot.slane %v1795_v32, 6  ;;  %v2089_v32 = vld [vmem:[%s9604_s4 + $0x4a8] sm:$0xff] }
 0x246   :  { %6152 = vtanh.f32 %v1796_v17  ;;  %v2093_v17 = vld [vmem:[%s9604_s4 + $0x4e8] sm:$0xff] }
 0x247   :  { %6154 = vtanh.f32 %v1801_v1 }
 0x250   :  { %v6153_v19 = vpop.eup %6152 }
 0x251   :  { %v1798_v60 = vmul.f32 0.5, %v6153_v19  ;;  %v6155_v48 = vpop.eup %6154 }
 0x253   :  { %v1799_v44 = vadd.f32 0.5, %v1798_v60  ;;  %v9712_v60 = vcombine.low %v7431_v37, %v7437_v61  ;;  %v2091_v37 = vld [vmem:[%s9604_s4 + $0x4b8] sm:$0xff] }
 0x254   :  { %v2095_v61 = vld [vmem:[%s9604_s4 + $0x4f8] sm:$0xff] }
 0x255   :  { %v1805_v26 = vrot.slane %v1799_v44, 2  ;;  %v1808_v24 = vmul.f32 %v6155_v48, %v1799_v44  ;;  %v2084_v48 = vld [vmem:[%s9604_s4 + $0x460] sm:$0xff] }
 0x257   :  { %v1807_v23 = vmul.f32 %v1805_v26, %v7452_v55  ;;  %v2080_v26 = vld [vmem:[%s9604_s4 + $0x420] sm:$0xff] }
 0x259   :  { %v7807_v39 = vadd.f32 %v1808_v24, %v1807_v23  ;;  %v1811_v24 = vrot.slane %v1799_v44, 4  ;;  %v2090_v44 = vld [vmem:[%s9604_s4 + $0x4b0] sm:$0xff] }
 0x25a   :  { %v1695_v15 = vpop.f32.mrb[14].mxu0  ;;  %v1766_v56 = vpop.f32.mrb[14].mxu1 }
 0x25b   :  { %v1697_v40 = vpop.f32.mrb[15].mxu0  ;;  %v1768_v41 = vpop.f32.mrb[15].mxu1  ;;  %6156 = vtanh.f32 %v7807_v39 }
 0x25c   :  { %v1820_v62 = vcombine.low %v1695_v15, %v1697_v40  ;;  %v1821_v6 = vcombine.low %v1766_v56, %v1768_v41  ;;  %v7839_v56 = vpack.c.bf16 %v2084_v48, %v2080_v26  ;;  %v7841_v40 = vpack.c.bf16 %v2086_v49, %v2082_v53  ;;  %v2088_v41 = vld [vmem:[%s9604_s4 + $0x4a0] sm:$0xff]  ;;  %v2097_v26 = vld [vmem:[%s9604_s4 + $0x528] sm:$0xff]  ;;  %v2103_v53 = vld [vmem:[%s9604_s4 + $0x578] sm:$0xff] }
 0x25d   :  { %v2101_v48 = vld [vmem:[%s9604_s4 + $0x568] sm:$0xff] }
 0x25e   :  { %v1828_v1 = vrot.slane %v1820_v62, %v6479_v35  ;;  %v1835_v19 = vrot.slane %v1821_v6, %v6479_v35  ;;  %v2092_v62 = vld [vmem:[%s9604_s4 + $0x4e0] sm:$0xff] }
 0x260   :  { %v1836_v22 = vcombine.low %v1828_v1, %v1835_v19  ;;  %v7851_v1 = vpack.c.bf16 %v2093_v17, %v2089_v32  ;;  %v7853_v19 = vpack.c.bf16 %v2095_v61, %v2091_v37  ;;  %v7877_v32 = vpack.c.bf16 %v2092_v62, %v2088_v41  ;;  %v2096_v37 = vld [vmem:[%s9604_s4 + $0x520] sm:$0xff]  ;;  %v2105_v41 = vld [vmem:[%s9604_s4 + $0x5a8] sm:$0xff] }
 0x261   :  { %v7889_v61 = vpack.c.bf16 %v2101_v48, %v2097_v26  ;;  %v2109_v62 = vld [vmem:[%s9604_s4 + $0x5e8] sm:$0xff] }
 0x262   :  { %v1838_v55 = vadd.f32 %v1836_v22, %v9712_v60  ;;  %9713 = vst [vmem:[#allocation8_spill] sm:$0xff] %v7851_v1  ;;  %9714 = vst [vmem:[#allocation9_spill] sm:$0xff] %v7853_v19  ;;  %v2094_v22 = vld [vmem:[%s9604_s4 + $0x4f0] sm:$0xff]  ;;  %v2099_v60 = vld [vmem:[%s9604_s4 + $0x538] sm:$0xff] }
 0x263   :  { %9715 = vst [vmem:[#allocation10_spill] sm:$0xff] %v7877_v32  ;;  %v7879_v17 = vpack.c.bf16 %v2094_v22, %v2090_v44  ;;  %9717 = vst [vmem:[#allocation12_spill] sm:$0xff] %v7889_v61  ;;  %v2107_v44 = vld [vmem:[%s9604_s4 + $0x5b8] sm:$0xff] }
 0x264   :  { %v1839_v23 = vmul.f32 0.5, %v1838_v55  ;;  %v1844_v49 = vrot.slane %v1838_v55, 6  ;;  %v2100_v55 = vld [vmem:[%s9604_s4 + $0x560] sm:$0xff]  ;;  %v2111_v22 = vld [vmem:[%s9604_s4 + $0x5f8] sm:$0xff] }
 0x265   :  { %v6157_v15 = vpop.eup %6156  ;;  %9716 = vst [vmem:[#allocation11_spill] sm:$0xff] %v7879_v17  ;;  %v7915_v26 = vpack.c.bf16 %v2100_v55, %v2096_v37  ;;  %v2106_v37 = vld [vmem:[%s9604_s4 + $0x5b0] sm:$0xff] }
 0x266   :  { %6158 = vtanh.f32 %v1839_v23  ;;  %v7849_v6 = vmul.f32 %v6157_v15, %v1811_v24  ;;  %v7891_v23 = vpack.c.bf16 %v2103_v53, %v2099_v60  ;;  %v2098_v24 = vld [vmem:[%s9604_s4 + $0x530] sm:$0xff]  ;;  %v2104_v60 = vld [vmem:[%s9604_s4 + $0x5a0] sm:$0xff] }
 0x267   :  { %v2102_v15 = vld [vmem:[%s9604_s4 + $0x570] sm:$0xff]  ;;  %6160 = vtanh.f32 %v1844_v49  ;;  %9719 = vst [vmem:[#allocation14_spill] sm:$0xff] %v7915_v26  ;;  %v2108_v53 = vld [vmem:[%s9604_s4 + $0x5e0] sm:$0xff]  ;;  %v7927_v49 = vpack.c.bf16 %v2109_v62, %v2105_v41  ;;  %v2115_v41 = vld [vmem:[%s9604_s4 + $0x638] sm:$0xff] }
 0x268   :  { %2003 = vmatmul.mubr.f32.vlgmr.msra.gmra.mrb[16].mxu0 %v7849_v6  ;;  %2074 = vmatmul.mubr.f32.vlgmr.msra.gmra.mrb[16].mxu1 %v7849_v6  ;;  %9718 = vst [vmem:[#allocation13_spill] sm:$0xff] %v7891_v23  ;;  %v7917_v48 = vpack.c.bf16 %v2102_v15, %v2098_v24  ;;  %v2110_v55 = vld [vmem:[%s9604_s4 + $0x5f0] sm:$0xff]  ;;  %v2113_v24 = vld [vmem:[%s9604_s4 + $0x628] sm:$0xff]  ;;  %v2119_v62 = vld [vmem:[%s9604_s4 + $0x678] sm:$0xff] }
 0x269   :  { %5436 = vmatpush1.bf16.msra.mxu0 %v7839_v56  ;;  %5468 = vmatpush1.bf16.msra.mxu1 %v7841_v40  ;;  %9721 = vst [vmem:[#allocation16_spill] sm:$0xff] %v7927_v49  ;;  %v2117_v15 = vld [vmem:[%s9604_s4 + $0x668] sm:$0xff] }
 0x26a   :  { %5438 = vmatprep.subr.bf16.mxu0 %v7851_v1  ;;  %5470 = vmatprep.subr.bf16.mxu1 %v7853_v19  ;;  %9720 = vst [vmem:[#allocation15_spill] sm:$0xff] %v7917_v48  ;;  %v2116_v19 = vld [vmem:[%s9604_s4 + $0x660] sm:$0xff] }
 0x26b   :  { %2208 = vmatprep.mubr.f32.mxu0 %v9692_v2  ;;  %2279 = vmatprep.mubr.f32.mxu1 %v9692_v2 }
 0x26d   :  { %5440 = vmatpush1.bf16.msra.mxu0 %v7877_v32  ;;  %5472 = vmatpush1.bf16.msra.mxu1 %v7879_v17  ;;  %v7929_v32 = vpack.c.bf16 %v2111_v22, %v2107_v44  ;;  %v2112_v17 = vld [vmem:[%s9604_s4 + $0x620] sm:$0xff] }
 0x26e   :  { %5442 = vmatprep.subr.bf16.mxu0 %v7889_v61  ;;  %5474 = vmatprep.subr.bf16.mxu1 %v7891_v23  ;;  %v7951_v23 = vpack.c.bf16 %v2108_v53, %v2104_v60  ;;  %v7953_v61 = vpack.c.bf16 %v2110_v55, %v2106_v37  ;;  %v2114_v60 = vld [vmem:[%s9604_s4 + $0x630] sm:$0xff]  ;;  %v2121_v37 = vld [vmem:[%s9604_s4 + $0x6a8] sm:$0xff] }
 0x26f   :  { %9722 = vst [vmem:[#allocation17_spill] sm:$0xff] %v7929_v32  ;;  %v2118_v53 = vld [vmem:[%s9604_s4 + $0x670] sm:$0xff] }
 0x270   :  { %v6159_v44 = vpop.eup %6158  ;;  %9723 = vst [vmem:[#allocation26_spill] sm:$0xff] %v7951_v23  ;;  %9724 = vst [vmem:[#allocation27_spill] sm:$0xff] %v7953_v61 }
 0x271   :  { %v1841_v22 = vmul.f32 0.5, %v6159_v44  ;;  %5444 = vmatpush1.bf16.msra.mxu0 %v7915_v26  ;;  %5476 = vmatpush1.bf16.msra.mxu1 %v7917_v48  ;;  %v7963_v44 = vpack.c.bf16 %v2117_v15, %v2113_v24  ;;  %v7965_v26 = vpack.c.bf16 %v2119_v62, %v2115_v41  ;;  %v2125_v24 = vld [vmem:[%s9604_s4 + $0x6e8] sm:$0xff]  ;;  %v2123_v15 = vld [vmem:[%s9604_s4 + $0x6b8] sm:$0xff]  ;;  %v2124_v48 = vld [vmem:[%s9604_s4 + $0x6e0] sm:$0xff]  ;;  %v6161_v1 = vpop.eup %6160 }
 0x272   :  { %5446 = vmatprep.subr.bf16.mxu0 %v7927_v49  ;;  %5478 = vmatprep.subr.bf16.mxu1 %v7929_v32  ;;  %v2127_v41 = vld [vmem:[%s9604_s4 + $0x6f8] sm:$0xff]  ;;  %v7992_v32 = vpack.c.bf16 %v2118_v53, %v2114_v60  ;;  %v2120_v49 = vld [vmem:[%s9604_s4 + $0x6a0] sm:$0xff]  ;;  %v2129_v60 = vld [vmem:[%s9604_s4 + $0x728] sm:$0xff] }
 0x273   :  { %9725 = vst [vmem:[#allocation28_spill] sm:$0xff] %v7963_v44  ;;  %9726 = vst [vmem:[#allocation29_spill] sm:$0xff] %v7965_v26  ;;  %v7976_v55 = vadd.f32 0.5, %v1841_v22  ;;  %v7990_v22 = vpack.c.bf16 %v2116_v19, %v2112_v17  ;;  %v2122_v19 = vld [vmem:[%s9604_s4 + $0x6b0] sm:$0xff] }
 0x274   :  { %9727 = vst [vmem:[#allocation30_spill] sm:$0xff] %v7992_v32  ;;  %v2126_v17 = vld [vmem:[%s9604_s4 + $0x6f0] sm:$0xff] }
 0x275   :  { %v1848_v62 = vrot.slane %v7976_v55, 2  ;;  %5448 = vmatpush1.bf16.msra.mxu0 %v7951_v23  ;;  %5480 = vmatpush1.bf16.msra.mxu1 %v7953_v61  ;;  %v8002_v23 = vpack.c.bf16 %v2125_v24, %v2121_v37  ;;  %v8004_v61 = vpack.c.bf16 %v2127_v41, %v2123_v15  ;;  %v2133_v37 = vld [vmem:[%s9604_s4 + $0x768] sm:$0xff]  ;;  %v2131_v24 = vld [vmem:[%s9604_s4 + $0x738] sm:$0xff] }
 0x276   :  { %5450 = vmatprep.subr.bf16.mxu0 %v7963_v44  ;;  %5482 = vmatprep.subr.bf16.mxu1 %v7965_v26  ;;  %v1851_v26 = vmul.f32 %v6161_v1, %v7976_v55  ;;  %v2135_v15 = vld [vmem:[%s9604_s4 + $0x778] sm:$0xff]  ;;  %v8032_v1 = vpack.c.bf16 %v2126_v17, %v2122_v19  ;;  %v2132_v44 = vld [vmem:[%s9604_s4 + $0x760] sm:$0xff]  ;;  %v2137_v19 = vld [vmem:[%s9604_s4 + $0x7a8] sm:$0xff] }
 0x277   :  { %9728 = vst [vmem:[#allocation31_spill] sm:$0xff] %v8002_v23  ;;  %9729 = vst [vmem:[#allocation32_spill] sm:$0xff] %v8004_v61  ;;  %v1850_v53 = vmul.f32 %v1848_v62, %v7475_v25  ;;  %v8030_v25 = vpack.c.bf16 %v2124_v48, %v2120_v49  ;;  %v2128_v62 = vld [vmem:[%s9604_s4 + $0x720] sm:$0xff]  ;;  %v2130_v48 = vld [vmem:[%s9604_s4 + $0x730] sm:$0xff] }
 0x278   :  { %9730 = vst [vmem:[#allocation33_spill] sm:$0xff] %v8032_v1  ;;  %v2134_v49 = vld [vmem:[%s9604_s4 + $0x770] sm:$0xff]  ;;  %v2141_v17 = vld [vmem:[%s9604_s4 + $0x7e8] sm:$0xff] }
 0x279   :  { %v8026_v41 = vadd.f32 %v1851_v26, %v1850_v53  ;;  %5452 = vmatpush1.bf16.msra.mxu0 %v7990_v22  ;;  %5484 = vmatpush1.bf16.msra.mxu1 %v7992_v32  ;;  %v8042_v26 = vpack.c.bf16 %v2133_v37, %v2129_v60  ;;  %v8044_v53 = vpack.c.bf16 %v2135_v15, %v2131_v24  ;;  %v2139_v60 = vld [vmem:[%s9604_s4 + $0x7b8] sm:$0xff] }
 0x27a   :  { %5454 = vmatprep.subr.bf16.mxu0 %v8002_v23  ;;  %5486 = vmatprep.subr.bf16.mxu1 %v8004_v61  ;;  %v2143_v37 = vld [vmem:[%s9604_s4 + $0x7f8] sm:$0xff]  ;;  %v8067_v24 = vpack.c.bf16 %v2132_v44, %v2128_v62  ;;  %v8069_v15 = vpack.c.bf16 %v2134_v49, %v2130_v48  ;;  %v2136_v61 = vld [vmem:[%s9604_s4 + $0x7a0] sm:$0xff]  ;;  %v8076_v23 = vpack.c.bf16 %v2141_v17, %v2137_v19  ;;  %v2138_v44 = vld [vmem:[%s9604_s4 + $0x7b0] sm:$0xff]  ;;  %v1854_v19 = vrot.slane %v7976_v55, 4 }
 0x27b   :  { %6162 = vtanh.f32 %v8026_v41  ;;  %v8078_v32 = vpack.c.bf16 %v2143_v37, %v2139_v60  ;;  %v2142_v62 = vld [vmem:[%s9604_s4 + $0x7f0] sm:$0xff]  ;;  %v1871_v37 = vld [vmem:[#allocation7] sm:$0xf] }
 0x27c   :  { %v8093_v49 = vpack.c.bf16 %v2142_v62, %v2138_v44 }
 0x27d   :  { %5456 = vmatpush1.bf16.msra.mxu0 %v8030_v25  ;;  %5488 = vmatpush1.bf16.msra.mxu1 %v8032_v1  ;;  %v2140_v1 = vld [vmem:[%s9604_s4 + $0x7e0] sm:$0xff] }
 0x27e   :  { %5458 = vmatprep.subr.bf16.mxu0 %v8042_v26  ;;  %5490 = vmatprep.subr.bf16.mxu1 %v8044_v53  ;;  %v8091_v48 = vpack.c.bf16 %v2140_v1, %v2136_v61  ;;  %v1857_v1 = vld [vmem:[#allocation6] sm:$0xf] }
 0x281   :  { %5460 = vmatpush1.bf16.msra.mxu0 %v8067_v24  ;;  %5492 = vmatpush1.bf16.msra.mxu1 %v8069_v15 }
 0x282   :  { %5462 = vmatprep.subr.bf16.mxu0 %v8076_v23  ;;  %5494 = vmatprep.subr.bf16.mxu1 %v8078_v32 }
 0x285   :  { %v6163_v17 = vpop.eup %6162  ;;  %5464 = vmatpush1.bf16.msra.mxu0 %v8091_v48  ;;  %5496 = vmatpush1.bf16.msra.mxu1 %v8093_v49 }
 0x286   :  { %v1856_v60 = vmul.f32 %v6163_v17, %v1854_v19  ;;  %5498 = vmatprep.subr.bf16.mxu0 %v7504_v20  ;;  %5530 = vmatprep.subr.bf16.mxu1 %v7515_v47  ;;  %v9733_v17 = vld [vmem:[#allocation8_spill] sm:$0xff] }
 0x288   :  { %v1860_v61 = vcombine.low %v7849_v6, %v1856_v60  ;;  %2209 = vmatmul.mubr.f32.vlgmr.msra.gmra.mrb[18].mxu0 %v1856_v60  ;;  %2280 = vmatmul.mubr.f32.vlgmr.msra.gmra.mrb[18].mxu1 %v1856_v60  ;;  %v9734_v60 = vld [vmem:[#allocation9_spill] sm:$0xff] }
 0x289   :  { %5500 = vmatpush1.bf16.msra.mxu0 %v7517_v12  ;;  %5532 = vmatpush1.bf16.msra.mxu1 %v7526_v4 }
 0x28a   :  { %v1867_v55 = vrot.slane %v1860_v61, %v6479_v35  ;;  %5502 = vmatprep.subr.bf16.mxu0 %v7540_v18  ;;  %5534 = vmatprep.subr.bf16.mxu1 %v7551_v34  ;;  %v9735_v61 = vld [vmem:[#allocation10_spill] sm:$0xff] }
 0x28b   :  { %2517 = vmatprep.mubr.f32.mxu0 %v9692_v2  ;;  %2588 = vmatprep.mubr.f32.mxu1 %v9692_v2 }
 0x28c   :  { %v1869_v20 = vadd.f32 %v1867_v55, %v1857_v1  ;;  %v1872_v47 = vmax.f32 %v1871_v37, %v1867_v55  ;;  %v9736_v55 = vld [vmem:[#allocation11_spill] sm:$0xff]  ;;  %v9737_v1 = vld [vmem:[#allocation12_spill] sm:$0xff]  ;;  %v9738_v37 = vld [vmem:[#allocation13_spill] sm:$0xff] }
 0x28d   :  { %5504 = vmatpush1.bf16.msra.mxu0 %v7553_v36  ;;  %5536 = vmatpush1.bf16.msra.mxu1 %v7562_v57 }
 0x28e   :  { %1870 = vst [vmem:[#allocation6] sm:$0xf] %v1869_v20  ;;  %1873 = vst [vmem:[#allocation7] sm:$0xf] %v1872_v47  ;;  %5506 = vmatprep.subr.bf16.mxu0 %v7576_v43  ;;  %5538 = vmatprep.subr.bf16.mxu1 %v7587_v30  ;;  %v9740_v47 = vld [vmem:[#allocation15_spill] sm:$0xff] }
 0x291   :  { %5508 = vmatpush1.bf16.msra.mxu0 %v7589_v14  ;;  %5540 = vmatpush1.bf16.msra.mxu1 %v7598_v3  ;;  %v9731_v3 = vcombine.low %v7368_v16, %v7374_v7 }
 0x292   :  { %5510 = vmatprep.subr.bf16.mxu0 %v7612_v59  ;;  %5542 = vmatprep.subr.bf16.mxu1 %v7623_v45 }
 0x295   :  { %5512 = vmatpush1.bf16.msra.mxu0 %v7625_v11  ;;  %5544 = vmatpush1.bf16.msra.mxu1 %v7634_v5 }
 0x296   :  { %5514 = vmatprep.subr.bf16.mxu0 %v7648_v31  ;;  %5546 = vmatprep.subr.bf16.mxu1 %v7659_v0 }
 0x299   :  { %5516 = vmatpush1.bf16.msra.mxu0 %v7661_v33  ;;  %5548 = vmatpush1.bf16.msra.mxu1 %v7670_v27 }
 0x29a   :  { %5518 = vmatprep.subr.bf16.mxu0 %v7684_v29  ;;  %5550 = vmatprep.subr.bf16.mxu1 %v7695_v28 }
 0x29d   :  { %5520 = vmatpush1.bf16.msra.mxu0 %v7697_v54  ;;  %5552 = vmatpush1.bf16.msra.mxu1 %v7706_v46 }
 0x29e   :  { %5522 = vmatprep.subr.bf16.mxu0 %v7720_v63  ;;  %5554 = vmatprep.subr.bf16.mxu1 %v7731_v21 }
 0x2a1   :  { %5524 = vmatpush1.bf16.msra.mxu0 %v7733_v58  ;;  %5556 = vmatpush1.bf16.msra.mxu1 %v7742_v13 }
 0x2a2   :  { %5526 = vmatprep.subr.bf16.mxu0 %v7756_v50  ;;  %5558 = vmatprep.subr.bf16.mxu1 %v7767_v51 }
 0x2a5   :  { %5528 = vmatpush1.bf16.msra.mxu0 %v7769_v42  ;;  %5560 = vmatpush1.bf16.msra.mxu1 %v7778_v9 }
 0x2a6   :  { %5562 = vmatprep.subr.bf16.mxu0 %v7792_v8  ;;  %5594 = vmatprep.subr.bf16.mxu1 %v7797_v10  ;;  %v9732_v8 = vcombine.high %v7428_v52, %v7434_v38 }
 0x33b   :  { %v2004_v12 = vpop.f32.mrb[16].mxu0  ;;  %v2075_v4 = vpop.f32.mrb[16].mxu1 }
 0x33c   :  { %v2006_v18 = vpop.f32.mrb[17].mxu0  ;;  %v2077_v34 = vpop.f32.mrb[17].mxu1 }
 0x33d   :  { %v2292_v36 = vcombine.low %v2004_v12, %v2006_v18  ;;  %v2293_v57 = vcombine.low %v2075_v4, %v2077_v34  ;;  %v9741_v12 = vld [vmem:[#allocation16_spill] sm:$0xff]  ;;  %v9742_v4 = vld [vmem:[#allocation17_spill] sm:$0xff] }
 0x33f   :  { %v2300_v43 = vrot.slane %v2292_v36, %v6479_v35  ;;  %v2307_v30 = vrot.slane %v2293_v57, %v6479_v35  ;;  %v9743_v36 = vld [vmem:[#allocation26_spill] sm:$0xff]  ;;  %v9744_v57 = vld [vmem:[#allocation27_spill] sm:$0xff] }
 0x341   :  { %v2308_v14 = vcombine.low %v2300_v43, %v2307_v30  ;;  %v9745_v30 = vld [vmem:[#allocation28_spill] sm:$0xff] }
 0x343   :  { %v2310_v59 = vadd.f32 %v2308_v14, %v9731_v3  ;;  %v9746_v14 = vld [vmem:[#allocation29_spill] sm:$0xff] }
 0x345   :  { %v2311_v45 = vmul.f32 0.5, %v2310_v59  ;;  %v2316_v11 = vrot.slane %v2310_v59, 6 }
 0x347   :  { %6164 = vtanh.f32 %v2311_v45 }
 0x348   :  { %6166 = vtanh.f32 %v2316_v11  ;;  %v9747_v11 = vld [vmem:[#allocation30_spill] sm:$0xff] }
 0x351   :  { %v6165_v5 = vpop.eup %6164 }
 0x352   :  { %v2313_v31 = vmul.f32 0.5, %v6165_v5  ;;  %v6167_v27 = vpop.eup %6166  ;;  %v9748_v5 = vld [vmem:[#allocation31_spill] sm:$0xff] }
 0x354   :  { %v2314_v0 = vadd.f32 0.5, %v2313_v31  ;;  %v9749_v31 = vld [vmem:[#allocation32_spill] sm:$0xff] }
 0x356   :  { %v2320_v33 = vrot.slane %v2314_v0, 2  ;;  %v2323_v28 = vmul.f32 %v6167_v27, %v2314_v0  ;;  %v2326_v6 = vrot.slane %v2314_v0, 4  ;;  %v9750_v0 = vld [vmem:[#allocation33_spill] sm:$0xff] }
 0x358   :  { %v2322_v29 = vmul.f32 %v2320_v33, %v7807_v39 }
 0x35a   :  { %v8144_v54 = vadd.f32 %v2323_v28, %v2322_v29  ;;  %v2911_v29 = vld [vmem:[%s9604_s4 + $0x58] sm:$0xff]  ;;  %v2904_v28 = vld [vmem:[%s9604_s4] sm:$0xff] }
 0x35b   :  { %v2210_v46 = vpop.f32.mrb[18].mxu0  ;;  %v2281_v63 = vpop.f32.mrb[18].mxu1 }
 0x35c   :  { %v2212_v21 = vpop.f32.mrb[19].mxu0  ;;  %v2283_v58 = vpop.f32.mrb[19].mxu1  ;;  %6168 = vtanh.f32 %v8144_v54 }
 0x35d   :  { %v2335_v13 = vcombine.low %v2210_v46, %v2212_v21  ;;  %v2336_v50 = vcombine.low %v2281_v63, %v2283_v58  ;;  %v2908_v46 = vld [vmem:[%s9604_s4 + $0x40] sm:$0xff]  ;;  %v2906_v58 = vld [vmem:[%s9604_s4 + $0x10] sm:$0xff] }
 0x35e   :  { %v8213_v21 = vpack.c.bf16 %v2908_v46, %v2904_v28  ;;  %v2945_v28 = vld [vmem:[%s9604_s4 + $0x288] sm:$0xff] }
 0x35f   :  { %v2343_v51 = vrot.slane %v2335_v13, %v6479_v35  ;;  %v2350_v42 = vrot.slane %v2336_v50, %v6479_v35  ;;  %v2910_v13 = vld [vmem:[%s9604_s4 + $0x50] sm:$0xff]  ;;  %v2949_v46 = vld [vmem:[%s9604_s4 + $0x2c8] sm:$0xff] }
 0x360   :  { %v8222_v50 = vpack.c.bf16 %v2910_v13, %v2906_v58  ;;  %v2947_v58 = vld [vmem:[%s9604_s4 + $0x298] sm:$0xff]  ;;  %v8380_v13 = vpack.c.bf16 %v2949_v46, %v2945_v28  ;;  %v3111_v28 = vld [vmem:[%s9604_s4 + $0x428] sm:$0xff] }
 0x361   :  { %v2351_v9 = vcombine.low %v2343_v51, %v2350_v42  ;;  %v2913_v51 = vld [vmem:[%s9604_s4 + $0x88] sm:$0xff] }
 0x362   :  { %v2917_v42 = vld [vmem:[%s9604_s4 + $0xc8] sm:$0xff] }
 0x363   :  { %v2353_v10 = vadd.f32 %v2351_v9, %v9732_v8  ;;  %v2915_v9 = vld [vmem:[%s9604_s4 + $0x98] sm:$0xff]  ;;  %v8236_v8 = vpack.c.bf16 %v2917_v42, %v2913_v51  ;;  %v2944_v42 = vld [vmem:[%s9604_s4 + $0x280] sm:$0xff]  ;;  %v3115_v46 = vld [vmem:[%s9604_s4 + $0x468] sm:$0xff] }
 0x364   :  { %v2951_v51 = vld [vmem:[%s9604_s4 + $0x2d8] sm:$0xff] }
 0x365   :  { %v2354_v39 = vmul.f32 0.5, %v2353_v10  ;;  %v2359_v19 = vrot.slane %v2353_v10, 6  ;;  %v2919_v10 = vld [vmem:[%s9604_s4 + $0xd8] sm:$0xff] }
 0x366   :  { %v6169_v44 = vpop.eup %6168 }
 0x367   :  { %6170 = vtanh.f32 %v2354_v39  ;;  %v2328_v62 = vmul.f32 %v6169_v44, %v2326_v6  ;;  %v2912_v39 = vld [vmem:[%s9604_s4 + $0x80] sm:$0xff]  ;;  %v8247_v44 = vpack.c.bf16 %v2919_v10, %v2915_v9  ;;  %v8391_v10 = vpack.c.bf16 %v2951_v51, %v2947_v58  ;;  %v3113_v58 = vld [vmem:[%s9604_s4 + $0x438] sm:$0xff] }
 0x368   :  { %6172 = vtanh.f32 %v2359_v19  ;;  %v2916_v6 = vld [vmem:[%s9604_s4 + $0xc0] sm:$0xff]  ;;  %v2914_v19 = vld [vmem:[%s9604_s4 + $0x90] sm:$0xff]  ;;  %v8488_v51 = vpack.c.bf16 %v3115_v46, %v3111_v28 }
 0x369   :  { %2518 = vmatmul.mubr.f32.vlgmr.msra.gmra.mrb[20].mxu0 %v2328_v62  ;;  %2589 = vmatmul.mubr.f32.vlgmr.msra.gmra.mrb[20].mxu1 %v2328_v62  ;;  %v2948_v9 = vld [vmem:[%s9604_s4 + $0x2c0] sm:$0xff] }
 0x36a   :  { %5564 = vmatpush1.bf16.msra.mxu0 %v7839_v56  ;;  %5596 = vmatpush1.bf16.msra.mxu1 %v7841_v40  ;;  %v9739_v40 = vld [vmem:[#allocation14_spill] sm:$0xff] }
 0x36b   :  { %5566 = vmatprep.subr.bf16.mxu0 %v9733_v17  ;;  %5598 = vmatprep.subr.bf16.mxu1 %v9734_v60  ;;  %v2918_v17 = vld [vmem:[%s9604_s4 + $0xd0] sm:$0xff] }
 0x36c   :  { %2723 = vmatprep.mubr.f32.mxu0 %v9692_v2  ;;  %2794 = vmatprep.mubr.f32.mxu1 %v9692_v2  ;;  %v8258_v60 = vpack.c.bf16 %v2918_v17, %v2914_v19  ;;  %v2950_v19 = vld [vmem:[%s9604_s4 + $0x2d0] sm:$0xff] }
 0x36e   :  { %5568 = vmatpush1.bf16.msra.mxu0 %v9735_v61  ;;  %5600 = vmatpush1.bf16.msra.mxu1 %v9736_v55  ;;  %v2921_v61 = vld [vmem:[%s9604_s4 + $0x108] sm:$0xff] }
 0x36f   :  { %5570 = vmatprep.subr.bf16.mxu0 %v9737_v1  ;;  %5602 = vmatprep.subr.bf16.mxu1 %v9738_v37  ;;  %v2925_v55 = vld [vmem:[%s9604_s4 + $0x148] sm:$0xff]  ;;  %v2923_v1 = vld [vmem:[%s9604_s4 + $0x118] sm:$0xff] }
 0x370   :  { %v8272_v37 = vpack.c.bf16 %v2925_v55, %v2921_v61  ;;  %v2953_v61 = vld [vmem:[%s9604_s4 + $0x308] sm:$0xff] }
 0x371   :  { %v6171_v56 = vpop.eup %6170  ;;  %v2957_v55 = vld [vmem:[%s9604_s4 + $0x348] sm:$0xff] }
 0x372   :  { %v2356_v20 = vmul.f32 0.5, %v6171_v56  ;;  %5572 = vmatpush1.bf16.msra.mxu0 %v9739_v40  ;;  %5604 = vmatpush1.bf16.msra.mxu1 %v9740_v47  ;;  %v6173_v43 = vpop.eup %6172  ;;  %v2927_v56 = vld [vmem:[%s9604_s4 + $0x158] sm:$0xff]  ;;  %v2924_v40 = vld [vmem:[%s9604_s4 + $0x140] sm:$0xff] }
 0x373   :  { %5574 = vmatprep.subr.bf16.mxu0 %v9741_v12  ;;  %5606 = vmatprep.subr.bf16.mxu1 %v9742_v4  ;;  %v8283_v47 = vpack.c.bf16 %v2927_v56, %v2923_v1  ;;  %v2922_v4 = vld [vmem:[%s9604_s4 + $0x110] sm:$0xff]  ;;  %v2955_v1 = vld [vmem:[%s9604_s4 + $0x318] sm:$0xff]  ;;  %v8416_v56 = vpack.c.bf16 %v2957_v55, %v2953_v61 }
 0x374   :  { %v2357_v18 = vadd.f32 0.5, %v2356_v20  ;;  %v2920_v20 = vld [vmem:[%s9604_s4 + $0x100] sm:$0xff] }
 0x375   :  { %v8285_v12 = vpack.c.bf16 %v2924_v40, %v2920_v20  ;;  %v2959_v20 = vld [vmem:[%s9604_s4 + $0x358] sm:$0xff]  ;;  %v2952_v40 = vld [vmem:[%s9604_s4 + $0x300] sm:$0xff] }
 0x376   :  { %v2363_v34 = vrot.slane %v2357_v18, 2  ;;  %5576 = vmatpush1.bf16.msra.mxu0 %v9743_v36  ;;  %5608 = vmatpush1.bf16.msra.mxu1 %v9744_v57  ;;  %v2366_v59 = vmul.f32 %v6173_v43, %v2357_v18  ;;  %v2929_v36 = vld [vmem:[%s9604_s4 + $0x188] sm:$0xff]  ;;  %v2931_v43 = vld [vmem:[%s9604_s4 + $0x198] sm:$0xff] }
 0x377   :  { %5578 = vmatprep.subr.bf16.mxu0 %v9745_v30  ;;  %5610 = vmatprep.subr.bf16.mxu1 %v9746_v14  ;;  %v2933_v57 = vld [vmem:[%s9604_s4 + $0x1c8] sm:$0xff]  ;;  %v2935_v14 = vld [vmem:[%s9604_s4 + $0x1d8] sm:$0xff] }
 0x378   :  { %v2365_v3 = vmul.f32 %v2363_v34, %v8026_v41  ;;  %v8308_v30 = vpack.c.bf16 %v2933_v57, %v2929_v36  ;;  %v2954_v57 = vld [vmem:[%s9604_s4 + $0x310] sm:$0xff] }
 0x37a   :  { %v8171_v45 = vadd.f32 %v2366_v59, %v2365_v3  ;;  %5580 = vmatpush1.bf16.msra.mxu0 %v7990_v22  ;;  %5612 = vmatpush1.bf16.msra.mxu1 %v9747_v11  ;;  %v2369_v22 = vrot.slane %v2357_v18, 4  ;;  %v2926_v18 = vld [vmem:[%s9604_s4 + $0x150] sm:$0xff]  ;;  %v2928_v3 = vld [vmem:[%s9604_s4 + $0x180] sm:$0xff]  ;;  %v8319_v11 = vpack.c.bf16 %v2935_v14, %v2931_v43 }
 0x37b   :  { %5582 = vmatprep.subr.bf16.mxu0 %v9748_v5  ;;  %5614 = vmatprep.subr.bf16.mxu1 %v9749_v31  ;;  %v8294_v34 = vpack.c.bf16 %v2926_v18, %v2922_v4  ;;  %v2932_v59 = vld [vmem:[%s9604_s4 + $0x1c0] sm:$0xff]  ;;  %v2930_v31 = vld [vmem:[%s9604_s4 + $0x190] sm:$0xff]  ;;  %v8427_v18 = vpack.c.bf16 %v2959_v20, %v2955_v1 }
 0x37c   :  { %6174 = vtanh.f32 %v8171_v45  ;;  %v8321_v5 = vpack.c.bf16 %v2932_v59, %v2928_v3  ;;  %v2956_v4 = vld [vmem:[%s9604_s4 + $0x340] sm:$0xff]  ;;  %v2958_v43 = vld [vmem:[%s9604_s4 + $0x350] sm:$0xff]  ;;  %v2961_v3 = vld [vmem:[%s9604_s4 + $0x388] sm:$0xff] }
 0x37d   :  { %v8429_v36 = vpack.c.bf16 %v2956_v4, %v2952_v40  ;;  %v8438_v14 = vpack.c.bf16 %v2958_v43, %v2954_v57  ;;  %v2965_v59 = vld [vmem:[%s9604_s4 + $0x3c8] sm:$0xff]  ;;  %v9751_v43 = vcombine.high %v7368_v16, %v7374_v7 }
 0x37e   :  { %5584 = vmatpush1.bf16.msra.mxu0 %v8030_v25  ;;  %5616 = vmatpush1.bf16.msra.mxu1 %v9750_v0  ;;  %v2934_v0 = vld [vmem:[%s9604_s4 + $0x1d0] sm:$0xff] }
 0x37f   :  { %5586 = vmatprep.subr.bf16.mxu0 %v8042_v26  ;;  %5618 = vmatprep.subr.bf16.mxu1 %v8044_v53  ;;  %v2372_v53 = vld [vmem:[#allocation6] sm:$0xf] }
 0x382   :  { %5588 = vmatpush1.bf16.msra.mxu0 %v8067_v24  ;;  %5620 = vmatpush1.bf16.msra.mxu1 %v8069_v15  ;;  %v2905_v15 = vld [vmem:[%s9604_s4 + $0x8] sm:$0xff] }
 0x383   :  { %5590 = vmatprep.subr.bf16.mxu0 %v8076_v23  ;;  %5622 = vmatprep.subr.bf16.mxu1 %v8078_v32  ;;  %v2386_v23 = vld [vmem:[#allocation7] sm:$0xf] }
 0x386   :  { %v6175_v41 = vpop.eup %6174  ;;  %5592 = vmatpush1.bf16.msra.mxu0 %v8091_v48  ;;  %5624 = vmatpush1.bf16.msra.mxu1 %v8093_v49  ;;  %v2909_v48 = vld [vmem:[%s9604_s4 + $0x48] sm:$0xff]  ;;  %v2907_v49 = vld [vmem:[%s9604_s4 + $0x18] sm:$0xff] }
 0x387   :  { %v2371_v25 = vmul.f32 %v6175_v41, %v2369_v22  ;;  %v8200_v27 = vpack.c.bf16 %v2909_v48, %v2905_v15  ;;  %v8211_v63 = vpack.c.bf16 %v2911_v29, %v2907_v49  ;;  %v8330_v22 = vpack.c.bf16 %v2934_v0, %v2930_v31  ;;  %v2937_v41 = vld [vmem:[%s9604_s4 + $0x208] sm:$0xff]  ;;  %v2938_v48 = vld [vmem:[%s9604_s4 + $0x210] sm:$0xff]  ;;  %v2963_v31 = vld [vmem:[%s9604_s4 + $0x398] sm:$0xff] }
 0x388   :  { %v2942_v49 = vld [vmem:[%s9604_s4 + $0x250] sm:$0xff]  ;;  %v8452_v0 = vpack.c.bf16 %v2965_v59, %v2961_v3 }
 0x389   :  { %v2375_v33 = vcombine.low %v2328_v62, %v2371_v25  ;;  %2724 = vmatmul.mubr.f32.vlgmr.msra.gmra.mrb[22].mxu0 %v2371_v25  ;;  %2795 = vmatmul.mubr.f32.vlgmr.msra.gmra.mrb[22].mxu1 %v2371_v25  ;;  %v8249_v62 = vpack.c.bf16 %v2916_v6, %v2912_v39  ;;  %v2941_v25 = vld [vmem:[%s9604_s4 + $0x248] sm:$0xff]  ;;  %v8366_v29 = vpack.c.bf16 %v2942_v49, %v2938_v48  ;;  %v2946_v6 = vld [vmem:[%s9604_s4 + $0x290] sm:$0xff] }
 0x38a   :  { %3032 = vmatprep.mubr.f32.mxu0 %v9692_v2  ;;  %3103 = vmatprep.mubr.f32.mxu1 %v9692_v2  ;;  %v8393_v39 = vpack.c.bf16 %v2948_v9, %v2944_v42  ;;  %v8402_v17 = vpack.c.bf16 %v2950_v19, %v2946_v6  ;;  %v2966_v48 = vld [vmem:[%s9604_s4 + $0x3d0] sm:$0xff]  ;;  %v3117_v42 = vld [vmem:[%s9604_s4 + $0x478] sm:$0xff] }
 0x38b   :  { %v2382_v26 = vrot.slane %v2375_v33, %v6479_v35  ;;  %5626 = vmatprep.subr.bf16.mxu0 %v8200_v27  ;;  %5658 = vmatprep.subr.bf16.mxu1 %v8211_v63  ;;  %v2939_v33 = vld [vmem:[%s9604_s4 + $0x218] sm:$0xff]  ;;  %v8493_v9 = vpack.c.bf16 %v3117_v42, %v3113_v58 }
 0x38c   :  { %5628 = vmatpush1.bf16.msra.mxu0 %v8213_v21  ;;  %5660 = vmatpush1.bf16.msra.mxu1 %v8222_v50 }
 0x38d   :  { %v2384_v24 = vadd.f32 %v2382_v26, %v2372_v53  ;;  %v2387_v32 = vmax.f32 %v2386_v23, %v2382_v26  ;;  %5630 = vmatprep.subr.bf16.mxu0 %v8236_v8  ;;  %5662 = vmatprep.subr.bf16.mxu1 %v8247_v44  ;;  %v8344_v26 = vpack.c.bf16 %v2941_v25, %v2937_v41  ;;  %v2943_v53 = vld [vmem:[%s9604_s4 + $0x258] sm:$0xff]  ;;  %v2936_v23 = vld [vmem:[%s9604_s4 + $0x200] sm:$0xff] }
 0x38e   :  { %v2967_v41 = vld [vmem:[%s9604_s4 + $0x3d8] sm:$0xff]  ;;  %v2960_v25 = vld [vmem:[%s9604_s4 + $0x380] sm:$0xff] }
 0x38f   :  { %2385 = vst [vmem:[#allocation6] sm:$0xf] %v2384_v24  ;;  %2388 = vst [vmem:[#allocation7] sm:$0xf] %v2387_v32  ;;  %v2940_v24 = vld [vmem:[%s9604_s4 + $0x240] sm:$0xff]  ;;  %v8355_v32 = vpack.c.bf16 %v2943_v53, %v2939_v33  ;;  %v8463_v53 = vpack.c.bf16 %v2967_v41, %v2963_v31 }
 0x390   :  { %5632 = vmatpush1.bf16.msra.mxu0 %v8249_v62  ;;  %5664 = vmatpush1.bf16.msra.mxu1 %v8258_v60  ;;  %v8357_v15 = vpack.c.bf16 %v2940_v24, %v2936_v23  ;;  %v2964_v33 = vld [vmem:[%s9604_s4 + $0x3c0] sm:$0xff]  ;;  %v2962_v24 = vld [vmem:[%s9604_s4 + $0x390] sm:$0xff] }
 0x391   :  { %5634 = vmatprep.subr.bf16.mxu0 %v8272_v37  ;;  %5666 = vmatprep.subr.bf16.mxu1 %v8283_v47  ;;  %v8465_v23 = vpack.c.bf16 %v2964_v33, %v2960_v25  ;;  %v8474_v49 = vpack.c.bf16 %v2966_v48, %v2962_v24 }
 0x394   :  { %5636 = vmatpush1.bf16.msra.mxu0 %v8285_v12  ;;  %5668 = vmatpush1.bf16.msra.mxu1 %v8294_v34 }
 0x395   :  { %5638 = vmatprep.subr.bf16.mxu0 %v8308_v30  ;;  %5670 = vmatprep.subr.bf16.mxu1 %v8319_v11 }
 0x398   :  { %5640 = vmatpush1.bf16.msra.mxu0 %v8321_v5  ;;  %5672 = vmatpush1.bf16.msra.mxu1 %v8330_v22 }
 0x399   :  { %5642 = vmatprep.subr.bf16.mxu0 %v8344_v26  ;;  %5674 = vmatprep.subr.bf16.mxu1 %v8355_v32 }
 0x39c   :  { %5644 = vmatpush1.bf16.msra.mxu0 %v8357_v15  ;;  %5676 = vmatpush1.bf16.msra.mxu1 %v8366_v29 }
 0x39d   :  { %5646 = vmatprep.subr.bf16.mxu0 %v8380_v13  ;;  %5678 = vmatprep.subr.bf16.mxu1 %v8391_v10 }
 0x3a0   :  { %5648 = vmatpush1.bf16.msra.mxu0 %v8393_v39  ;;  %5680 = vmatpush1.bf16.msra.mxu1 %v8402_v17 }
 0x3a1   :  { %5650 = vmatprep.subr.bf16.mxu0 %v8416_v56  ;;  %5682 = vmatprep.subr.bf16.mxu1 %v8427_v18 }
 0x3a4   :  { %5652 = vmatpush1.bf16.msra.mxu0 %v8429_v36  ;;  %5684 = vmatpush1.bf16.msra.mxu1 %v8438_v14 }
 0x3a5   :  { %5654 = vmatprep.subr.bf16.mxu0 %v8452_v0  ;;  %5686 = vmatprep.subr.bf16.mxu1 %v8463_v53 }
 0x3a8   :  { %5656 = vmatpush1.bf16.msra.mxu0 %v8465_v23  ;;  %5688 = vmatpush1.bf16.msra.mxu1 %v8474_v49 }
 0x3a9   :  { %5690 = vmatprep.subr.bf16.mxu0 %v8488_v51  ;;  %5722 = vmatprep.subr.bf16.mxu1 %v8493_v9 }
 0x43c   :  { %v2519_v6 = vpop.f32.mrb[20].mxu0  ;;  %v2590_v19 = vpop.f32.mrb[20].mxu1 }
 0x43d   :  { %v2521_v61 = vpop.f32.mrb[21].mxu0  ;;  %v2592_v55 = vpop.f32.mrb[21].mxu1 }
 0x43e   :  { %v2807_v1 = vcombine.low %v2519_v6, %v2521_v61  ;;  %v2808_v20 = vcombine.low %v2590_v19, %v2592_v55 }
 0x440   :  { %v2815_v40 = vrot.slane %v2807_v1, %v6479_v35  ;;  %v2822_v4 = vrot.slane %v2808_v20, %v6479_v35 }
 0x442   :  { %v2823_v57 = vcombine.low %v2815_v40, %v2822_v4  ;;  %v3114_v40 = vld [vmem:[%s9604_s4 + $0x460] sm:$0xff]  ;;  %v9752_v4 = vcombine.low %v7428_v52, %v7434_v38  ;;  %v3121_v52 = vld [vmem:[%s9604_s4 + $0x4b8] sm:$0xff] }
 0x443   :  { %v3125_v38 = vld [vmem:[%s9604_s4 + $0x4f8] sm:$0xff] }
 0x444   :  { %v2825_v3 = vadd.f32 %v2823_v57, %v9751_v43  ;;  %v3112_v43 = vld [vmem:[%s9604_s4 + $0x430] sm:$0xff] }
 0x446   :  { %v2826_v59 = vmul.f32 0.5, %v2825_v3  ;;  %v2831_v31 = vrot.slane %v2825_v3, 6  ;;  %v3116_v3 = vld [vmem:[%s9604_s4 + $0x470] sm:$0xff] }
 0x448   :  { %6176 = vtanh.f32 %v2826_v59  ;;  %v3119_v59 = vld [vmem:[%s9604_s4 + $0x4a8] sm:$0xff] }
 0x449   :  { %6178 = vtanh.f32 %v2831_v31  ;;  %v3123_v31 = vld [vmem:[%s9604_s4 + $0x4e8] sm:$0xff] }
 0x452   :  { %v6177_v41 = vpop.eup %6176 }
 0x453   :  { %v2828_v25 = vmul.f32 0.5, %v6177_v41  ;;  %v6179_v48 = vpop.eup %6178 }
 0x455   :  { %v2829_v33 = vadd.f32 0.5, %v2828_v25 }
 0x457   :  { %v2835_v24 = vrot.slane %v2829_v33, 2  ;;  %v2838_v46 = vmul.f32 %v6179_v48, %v2829_v33  ;;  %v2841_v25 = vrot.slane %v2829_v33, 4  ;;  %v3120_v33 = vld [vmem:[%s9604_s4 + $0x4b0] sm:$0xff] }
 0x459   :  { %v2837_v28 = vmul.f32 %v2835_v24, %v8144_v54  ;;  %v3110_v54 = vld [vmem:[%s9604_s4 + $0x420] sm:$0xff] }
 0x45a   :  { %v8535_v48 = vpack.c.bf16 %v3114_v40, %v3110_v54 }
 0x45b   :  { %v8503_v58 = vadd.f32 %v2838_v46, %v2837_v28  ;;  %v8537_v28 = vpack.c.bf16 %v3116_v3, %v3112_v43  ;;  %v3118_v46 = vld [vmem:[%s9604_s4 + $0x4a0] sm:$0xff] }
 0x45c   :  { %v2725_v42 = vpop.f32.mrb[22].mxu0  ;;  %v2796_v6 = vpop.f32.mrb[22].mxu1  ;;  %v3126_v43 = vld [vmem:[%s9604_s4 + $0x520] sm:$0xff] }
 0x45d   :  { %v2727_v19 = vpop.f32.mrb[23].mxu0  ;;  %v2798_v61 = vpop.f32.mrb[23].mxu1  ;;  %6180 = vtanh.f32 %v8503_v58 }
 0x45e   :  { %v2850_v16 = vcombine.low %v2725_v42, %v2727_v19  ;;  %v2851_v7 = vcombine.low %v2796_v6, %v2798_v61  ;;  %v3122_v42 = vld [vmem:[%s9604_s4 + $0x4e0] sm:$0xff]  ;;  %v8547_v19 = vpack.c.bf16 %v3123_v31, %v3119_v59  ;;  %v8549_v61 = vpack.c.bf16 %v3125_v38, %v3121_v52  ;;  %v3128_v31 = vld [vmem:[%s9604_s4 + $0x530] sm:$0xff]  ;;  %v3135_v38 = vld [vmem:[%s9604_s4 + $0x5a8] sm:$0xff] }
 0x45f   :  { %v8573_v40 = vpack.c.bf16 %v3122_v42, %v3118_v46  ;;  %v3132_v52 = vld [vmem:[%s9604_s4 + $0x570] sm:$0xff] }
 0x460   :  { %v2858_v55 = vrot.slane %v2850_v16, %v6479_v35  ;;  %v2865_v1 = vrot.slane %v2851_v7, %v6479_v35  ;;  %v3124_v16 = vld [vmem:[%s9604_s4 + $0x4f0] sm:$0xff]  ;;  %v3127_v7 = vld [vmem:[%s9604_s4 + $0x528] sm:$0xff]  ;;  %v8613_v42 = vpack.c.bf16 %v3132_v52, %v3128_v31  ;;  %v3149_v31 = vld [vmem:[%s9604_s4 + $0x678] sm:$0xff] }
 0x462   :  { %v2866_v20 = vcombine.low %v2858_v55, %v2865_v1  ;;  %v3131_v55 = vld [vmem:[%s9604_s4 + $0x568] sm:$0xff]  ;;  %v3129_v1 = vld [vmem:[%s9604_s4 + $0x538] sm:$0xff]  ;;  %9756 = vst [vmem:[#allocation11_spill] sm:$0xff] %v8613_v42 }
 0x463   :  { %v8585_v3 = vpack.c.bf16 %v3131_v55, %v3127_v7 }
 0x464   :  { %v2868_v57 = vadd.f32 %v2866_v20, %v9752_v4  ;;  %v3133_v20 = vld [vmem:[%s9604_s4 + $0x578] sm:$0xff]  ;;  %v8575_v4 = vpack.c.bf16 %v3124_v16, %v3120_v33  ;;  %v3134_v33 = vld [vmem:[%s9604_s4 + $0x5a0] sm:$0xff] }
 0x465   :  { %9753 = vst [vmem:[#allocation8_spill] sm:$0xff] %v8585_v3  ;;  %v8587_v59 = vpack.c.bf16 %v3133_v20, %v3129_v1  ;;  %v3138_v16 = vld [vmem:[%s9604_s4 + $0x5e0] sm:$0xff]  ;;  %v3136_v1 = vld [vmem:[%s9604_s4 + $0x5b0] sm:$0xff] }
 0x466   :  { %v2869_v41 = vmul.f32 0.5, %v2868_v57  ;;  %v2874_v54 = vrot.slane %v2868_v57, 6  ;;  %v3130_v57 = vld [vmem:[%s9604_s4 + $0x560] sm:$0xff]  ;;  %v3140_v20 = vld [vmem:[%s9604_s4 + $0x5f0] sm:$0xff] }
 0x467   :  { %v6181_v24 = vpop.eup %6180  ;;  %9754 = vst [vmem:[#allocation9_spill] sm:$0xff] %v8587_v59  ;;  %v8611_v46 = vpack.c.bf16 %v3130_v57, %v3126_v43  ;;  %v3147_v43 = vld [vmem:[%s9604_s4 + $0x668] sm:$0xff]  ;;  %v3145_v57 = vld [vmem:[%s9604_s4 + $0x638] sm:$0xff] }
 0x468   :  { %6182 = vtanh.f32 %v2869_v41  ;;  %v8545_v6 = vmul.f32 %v6181_v24, %v2841_v25  ;;  %v3139_v41 = vld [vmem:[%s9604_s4 + $0x5e8] sm:$0xff]  ;;  %v3137_v25 = vld [vmem:[%s9604_s4 + $0x5b8] sm:$0xff] }
 0x469   :  { %v3141_v24 = vld [vmem:[%s9604_s4 + $0x5f8] sm:$0xff]  ;;  %6184 = vtanh.f32 %v2874_v54  ;;  %9755 = vst [vmem:[#allocation10_spill] sm:$0xff] %v8611_v46  ;;  %v8623_v7 = vpack.c.bf16 %v3139_v41, %v3135_v38  ;;  %v3143_v54 = vld [vmem:[%s9604_s4 + $0x628] sm:$0xff]  ;;  %v8647_v41 = vpack.c.bf16 %v3138_v16, %v3134_v33  ;;  %v3144_v33 = vld [vmem:[%s9604_s4 + $0x630] sm:$0xff] }
 0x46a   :  { %3033 = vmatmul.mubr.f32.vlgmr.msra.gmra.mrb[24].mxu0 %v8545_v6  ;;  %3104 = vmatmul.mubr.f32.vlgmr.msra.gmra.mrb[24].mxu1 %v8545_v6  ;;  %v8625_v55 = vpack.c.bf16 %v3141_v24, %v3137_v25  ;;  %v8649_v25 = vpack.c.bf16 %v3140_v20, %v3136_v1  ;;  %v3142_v24 = vld [vmem:[%s9604_s4 + $0x620] sm:$0xff]  ;;  %v3148_v16 = vld [vmem:[%s9604_s4 + $0x670] sm:$0xff]  ;;  %v3151_v1 = vld [vmem:[%s9604_s4 + $0x6a8] sm:$0xff] }
 0x46b   :  { %5692 = vmatpush1.bf16.msra.mxu0 %v8535_v48  ;;  %5724 = vmatpush1.bf16.msra.mxu1 %v8537_v28  ;;  %9757 = vst [vmem:[#allocation12_spill] sm:$0xff] %v8623_v7  ;;  %9759 = vst [vmem:[#allocation14_spill] sm:$0xff] %v8647_v41 }
 0x46c   :  { %5694 = vmatprep.subr.bf16.mxu0 %v8547_v19  ;;  %5726 = vmatprep.subr.bf16.mxu1 %v8549_v61  ;;  %9758 = vst [vmem:[#allocation13_spill] sm:$0xff] %v8625_v55  ;;  %9760 = vst [vmem:[#allocation15_spill] sm:$0xff] %v8649_v25 }
 0x46d   :  { %3238 = vmatprep.mubr.f32.mxu0 %v9692_v2  ;;  %3309 = vmatprep.mubr.f32.mxu1 %v9692_v2 }
 0x46f   :  { %5696 = vmatpush1.bf16.msra.mxu0 %v8573_v40  ;;  %5728 = vmatpush1.bf16.msra.mxu1 %v8575_v4 }
 0x470   :  { %5698 = vmatprep.subr.bf16.mxu0 %v8585_v3  ;;  %5730 = vmatprep.subr.bf16.mxu1 %v8587_v59  ;;  %v3146_v59 = vld [vmem:[%s9604_s4 + $0x660] sm:$0xff] }
 0x472   :  { %v6183_v52 = vpop.eup %6182 }
 0x473   :  { %v2871_v38 = vmul.f32 0.5, %v6183_v52  ;;  %5700 = vmatpush1.bf16.msra.mxu0 %v8611_v46  ;;  %5732 = vmatpush1.bf16.msra.mxu1 %v8613_v42  ;;  %v8659_v52 = vpack.c.bf16 %v3147_v43, %v3143_v54  ;;  %v8661_v46 = vpack.c.bf16 %v3149_v31, %v3145_v57  ;;  %v3155_v54 = vld [vmem:[%s9604_s4 + $0x6e8] sm:$0xff]  ;;  %v3153_v43 = vld [vmem:[%s9604_s4 + $0x6b8] sm:$0xff]  ;;  %v3154_v42 = vld [vmem:[%s9604_s4 + $0x6e0] sm:$0xff]  ;;  %v6185_v3 = vpop.eup %6184 }
 0x474   :  { %5702 = vmatprep.subr.bf16.mxu0 %v8623_v7  ;;  %5734 = vmatprep.subr.bf16.mxu1 %v8625_v55  ;;  %v3157_v57 = vld [vmem:[%s9604_s4 + $0x6f8] sm:$0xff]  ;;  %v8688_v55 = vpack.c.bf16 %v3148_v16, %v3144_v33  ;;  %v3150_v7 = vld [vmem:[%s9604_s4 + $0x6a0] sm:$0xff]  ;;  %v3159_v33 = vld [vmem:[%s9604_s4 + $0x728] sm:$0xff] }
 0x475   :  { %9761 = vst [vmem:[#allocation16_spill] sm:$0xff] %v8659_v52  ;;  %9762 = vst [vmem:[#allocation17_spill] sm:$0xff] %v8661_v46  ;;  %v8672_v20 = vadd.f32 0.5, %v2871_v38  ;;  %v8686_v38 = vpack.c.bf16 %v3146_v59, %v3142_v24  ;;  %v3152_v59 = vld [vmem:[%s9604_s4 + $0x6b0] sm:$0xff] }
 0x476   :  { %9763 = vst [vmem:[#allocation26_spill] sm:$0xff] %v8688_v55  ;;  %v3156_v24 = vld [vmem:[%s9604_s4 + $0x6f0] sm:$0xff] }
 0x477   :  { %v2878_v31 = vrot.slane %v8672_v20, 2  ;;  %5704 = vmatpush1.bf16.msra.mxu0 %v8647_v41  ;;  %5736 = vmatpush1.bf16.msra.mxu1 %v8649_v25  ;;  %v8698_v41 = vpack.c.bf16 %v3155_v54, %v3151_v1  ;;  %v8700_v25 = vpack.c.bf16 %v3157_v57, %v3153_v43  ;;  %v3163_v1 = vld [vmem:[%s9604_s4 + $0x768] sm:$0xff]  ;;  %v3161_v54 = vld [vmem:[%s9604_s4 + $0x738] sm:$0xff] }
 0x478   :  { %5706 = vmatprep.subr.bf16.mxu0 %v8659_v52  ;;  %5738 = vmatprep.subr.bf16.mxu1 %v8661_v46  ;;  %v2881_v46 = vmul.f32 %v6185_v3, %v8672_v20  ;;  %v3165_v43 = vld [vmem:[%s9604_s4 + $0x778] sm:$0xff]  ;;  %v8728_v3 = vpack.c.bf16 %v3156_v24, %v3152_v59  ;;  %v3162_v52 = vld [vmem:[%s9604_s4 + $0x760] sm:$0xff]  ;;  %v3167_v59 = vld [vmem:[%s9604_s4 + $0x7a8] sm:$0xff] }
 0x479   :  { %9764 = vst [vmem:[#allocation27_spill] sm:$0xff] %v8698_v41  ;;  %9765 = vst [vmem:[#allocation28_spill] sm:$0xff] %v8700_v25  ;;  %v2880_v16 = vmul.f32 %v2878_v31, %v8171_v45  ;;  %v8726_v45 = vpack.c.bf16 %v3154_v42, %v3150_v7  ;;  %v3158_v31 = vld [vmem:[%s9604_s4 + $0x720] sm:$0xff]  ;;  %v3160_v42 = vld [vmem:[%s9604_s4 + $0x730] sm:$0xff] }
 0x47a   :  { %9766 = vst [vmem:[#allocation29_spill] sm:$0xff] %v8728_v3  ;;  %v3164_v7 = vld [vmem:[%s9604_s4 + $0x770] sm:$0xff]  ;;  %v3171_v24 = vld [vmem:[%s9604_s4 + $0x7e8] sm:$0xff] }
 0x47b   :  { %v8722_v57 = vadd.f32 %v2881_v46, %v2880_v16  ;;  %5708 = vmatpush1.bf16.msra.mxu0 %v8686_v38  ;;  %5740 = vmatpush1.bf16.msra.mxu1 %v8688_v55  ;;  %v8738_v46 = vpack.c.bf16 %v3163_v1, %v3159_v33  ;;  %v8740_v16 = vpack.c.bf16 %v3165_v43, %v3161_v54  ;;  %v3169_v33 = vld [vmem:[%s9604_s4 + $0x7b8] sm:$0xff] }
 0x47c   :  { %5710 = vmatprep.subr.bf16.mxu0 %v8698_v41  ;;  %5742 = vmatprep.subr.bf16.mxu1 %v8700_v25  ;;  %v3173_v1 = vld [vmem:[%s9604_s4 + $0x7f8] sm:$0xff]  ;;  %v8763_v54 = vpack.c.bf16 %v3162_v52, %v3158_v31  ;;  %v8765_v43 = vpack.c.bf16 %v3164_v7, %v3160_v42  ;;  %v3166_v25 = vld [vmem:[%s9604_s4 + $0x7a0] sm:$0xff]  ;;  %v8772_v41 = vpack.c.bf16 %v3171_v24, %v3167_v59  ;;  %v3168_v52 = vld [vmem:[%s9604_s4 + $0x7b0] sm:$0xff]  ;;  %v2884_v59 = vrot.slane %v8672_v20, 4 }
 0x47d   :  { %6186 = vtanh.f32 %v8722_v57  ;;  %v8774_v55 = vpack.c.bf16 %v3173_v1, %v3169_v33  ;;  %v3172_v31 = vld [vmem:[%s9604_s4 + $0x7f0] sm:$0xff]  ;;  %v2901_v1 = vld [vmem:[#allocation7] sm:$0xf] }
 0x47e   :  { %v8789_v7 = vpack.c.bf16 %v3172_v31, %v3168_v52  ;;  %v9771_v52 = vld [vmem:[#allocation25_spill] sm:$0xff] }
 0x47f   :  { %5712 = vmatpush1.bf16.msra.mxu0 %v8726_v45  ;;  %5744 = vmatpush1.bf16.msra.mxu1 %v8728_v3  ;;  %v3170_v3 = vld [vmem:[%s9604_s4 + $0x7e0] sm:$0xff] }
 0x480   :  { %5714 = vmatprep.subr.bf16.mxu0 %v8738_v46  ;;  %5746 = vmatprep.subr.bf16.mxu1 %v8740_v16  ;;  %v8787_v42 = vpack.c.bf16 %v3170_v3, %v3166_v25  ;;  %v2887_v3 = vld [vmem:[#allocation6] sm:$0xf] }
 0x483   :  { %5716 = vmatpush1.bf16.msra.mxu0 %v8763_v54  ;;  %5748 = vmatpush1.bf16.msra.mxu1 %v8765_v43 }
 0x484   :  { %5718 = vmatprep.subr.bf16.mxu0 %v8772_v41  ;;  %5750 = vmatprep.subr.bf16.mxu1 %v8774_v55 }
 0x487   :  { %v6187_v24 = vpop.eup %6186  ;;  %5720 = vmatpush1.bf16.msra.mxu0 %v8787_v42  ;;  %5752 = vmatpush1.bf16.msra.mxu1 %v8789_v7 }
 0x488   :  { %v2886_v33 = vmul.f32 %v6187_v24, %v2884_v59  ;;  %5754 = vmatprep.subr.bf16.mxu0 %v8200_v27  ;;  %5786 = vmatprep.subr.bf16.mxu1 %v8211_v63 }
 0x48a   :  { %v2890_v25 = vcombine.low %v8545_v6, %v2886_v33  ;;  %3239 = vmatmul.mubr.f32.vlgmr.msra.gmra.mrb[26].mxu0 %v2886_v33  ;;  %3310 = vmatmul.mubr.f32.vlgmr.msra.gmra.mrb[26].mxu1 %v2886_v33  ;;  %v9770_v6 = vld [vmem:[#allocation23_spill] sm:$0xff] }
 0x48b   :  { %5756 = vmatpush1.bf16.msra.mxu0 %v8213_v21  ;;  %5788 = vmatpush1.bf16.msra.mxu1 %v8222_v50  ;;  %v9772_v31 = vcombine.high %v9770_v6, %v9771_v52 }
 0x48c   :  { %v2897_v20 = vrot.slane %v2890_v25, %v6479_v35  ;;  %5758 = vmatprep.subr.bf16.mxu0 %v8236_v8  ;;  %5790 = vmatprep.subr.bf16.mxu1 %v8247_v44 }
 0x48d   :  { %3547 = vmatprep.mubr.f32.mxu0 %v9692_v2  ;;  %3618 = vmatprep.mubr.f32.mxu1 %v9692_v2 }
 0x48e   :  { %v2899_v27 = vadd.f32 %v2897_v20, %v2887_v3  ;;  %v2902_v63 = vmax.f32 %v2901_v1, %v2897_v20  ;;  %v9773_v3 = vld [vmem:[#allocation8_spill] sm:$0xff]  ;;  %v9774_v1 = vld [vmem:[#allocation9_spill] sm:$0xff] }
 0x48f   :  { %5760 = vmatpush1.bf16.msra.mxu0 %v8249_v62  ;;  %5792 = vmatpush1.bf16.msra.mxu1 %v8258_v60 }
 0x490   :  { %2900 = vst [vmem:[#allocation6] sm:$0xf] %v2899_v27  ;;  %2903 = vst [vmem:[#allocation7] sm:$0xf] %v2902_v63  ;;  %5762 = vmatprep.subr.bf16.mxu0 %v8272_v37  ;;  %5794 = vmatprep.subr.bf16.mxu1 %v8283_v47  ;;  %v9778_v63 = vld [vmem:[#allocation13_spill] sm:$0xff] }
 0x493   :  { %5764 = vmatpush1.bf16.msra.mxu0 %v8285_v12  ;;  %5796 = vmatpush1.bf16.msra.mxu1 %v8294_v34  ;;  %v9767_v34 = vld [vmem:[#allocation18_spill] sm:$0xff] }
 0x494   :  { %5766 = vmatprep.subr.bf16.mxu0 %v8308_v30  ;;  %5798 = vmatprep.subr.bf16.mxu1 %v8319_v11  ;;  %v9768_v30 = vld [vmem:[#allocation20_spill] sm:$0xff] }
 0x495   :  { %v9769_v11 = vcombine.low %v9767_v34, %v9768_v30 }
 0x497   :  { %5768 = vmatpush1.bf16.msra.mxu0 %v8321_v5  ;;  %5800 = vmatpush1.bf16.msra.mxu1 %v8330_v22 }
 0x498   :  { %5770 = vmatprep.subr.bf16.mxu0 %v8344_v26  ;;  %5802 = vmatprep.subr.bf16.mxu1 %v8355_v32 }
 0x49b   :  { %5772 = vmatpush1.bf16.msra.mxu0 %v8357_v15  ;;  %5804 = vmatpush1.bf16.msra.mxu1 %v8366_v29 }
 0x49c   :  { %5774 = vmatprep.subr.bf16.mxu0 %v8380_v13  ;;  %5806 = vmatprep.subr.bf16.mxu1 %v8391_v10 }
 0x49f   :  { %5776 = vmatpush1.bf16.msra.mxu0 %v8393_v39  ;;  %5808 = vmatpush1.bf16.msra.mxu1 %v8402_v17 }
 0x4a0   :  { %5778 = vmatprep.subr.bf16.mxu0 %v8416_v56  ;;  %5810 = vmatprep.subr.bf16.mxu1 %v8427_v18 }
 0x4a3   :  { %5780 = vmatpush1.bf16.msra.mxu0 %v8429_v36  ;;  %5812 = vmatpush1.bf16.msra.mxu1 %v8438_v14 }
 0x4a4   :  { %5782 = vmatprep.subr.bf16.mxu0 %v8452_v0  ;;  %5814 = vmatprep.subr.bf16.mxu1 %v8463_v53 }
 0x4a7   :  { %5784 = vmatpush1.bf16.msra.mxu0 %v8465_v23  ;;  %5816 = vmatpush1.bf16.msra.mxu1 %v8474_v49 }
 0x4a8   :  { %5818 = vmatprep.subr.bf16.mxu0 %v8488_v51  ;;  %5850 = vmatprep.subr.bf16.mxu1 %v8493_v9 }
 0x53d   :  { %v3034_v21 = vpop.f32.mrb[24].mxu0  ;;  %v3105_v50 = vpop.f32.mrb[24].mxu1 }
 0x53e   :  { %v3036_v8 = vpop.f32.mrb[25].mxu0  ;;  %v3107_v44 = vpop.f32.mrb[25].mxu1 }
 0x53f   :  { %v3322_v62 = vcombine.low %v3034_v21, %v3036_v8  ;;  %v3323_v60 = vcombine.low %v3105_v50, %v3107_v44  ;;  %v9779_v8 = vld [vmem:[#allocation14_spill] sm:$0xff]  ;;  %v9781_v44 = vld [vmem:[#allocation16_spill] sm:$0xff] }
 0x541   :  { %v3330_v37 = vrot.slane %v3322_v62, %v6479_v35  ;;  %v3337_v47 = vrot.slane %v3323_v60, %v6479_v35  ;;  %v9782_v62 = vld [vmem:[#allocation17_spill] sm:$0xff] }
 0x543   :  { %v3338_v12 = vcombine.low %v3330_v37, %v3337_v47 }
 0x545   :  { %v3340_v5 = vadd.f32 %v3338_v12, %v9769_v11  ;;  %v9783_v12 = vld [vmem:[#allocation26_spill] sm:$0xff]  ;;  %v9784_v11 = vld [vmem:[#allocation27_spill] sm:$0xff] }
 0x547   :  { %v3341_v22 = vmul.f32 0.5, %v3340_v5  ;;  %v3346_v26 = vrot.slane %v3340_v5, 6  ;;  %v9785_v5 = vld [vmem:[#allocation28_spill] sm:$0xff] }
 0x549   :  { %6188 = vtanh.f32 %v3341_v22  ;;  %v9786_v22 = vld [vmem:[#allocation29_spill] sm:$0xff] }
 0x54a   :  { %6190 = vtanh.f32 %v3346_v26 }
 0x553   :  { %v6189_v32 = vpop.eup %6188 }
 0x554   :  { %v3343_v15 = vmul.f32 0.5, %v6189_v32  ;;  %v6191_v10 = vpop.eup %6190 }
 0x556   :  { %v3344_v29 = vadd.f32 0.5, %v3343_v15  ;;  %v3941_v15 = vld [vmem:[%s9604_s4 + $0x58] sm:$0xff] }
 0x558   :  { %v3350_v13 = vrot.slane %v3344_v29, 2  ;;  %v3353_v17 = vmul.f32 %v6191_v10, %v3344_v29  ;;  %v3356_v24 = vrot.slane %v3344_v29, 4  ;;  %v3934_v29 = vld [vmem:[%s9604_s4] sm:$0xff] }
 0x55a   :  { %v3352_v39 = vmul.f32 %v3350_v13, %v8503_v58  ;;  %v3938_v13 = vld [vmem:[%s9604_s4 + $0x40] sm:$0xff] }
 0x55c   :  { %v8840_v56 = vadd.f32 %v3353_v17, %v3352_v39  ;;  %v8909_v39 = vpack.c.bf16 %v3938_v13, %v3934_v29  ;;  %v3936_v17 = vld [vmem:[%s9604_s4 + $0x10] sm:$0xff]  ;;  %v3975_v29 = vld [vmem:[%s9604_s4 + $0x288] sm:$0xff] }
 0x55d   :  { %v3240_v18 = vpop.f32.mrb[26].mxu0  ;;  %v3311_v36 = vpop.f32.mrb[26].mxu1  ;;  %v3979_v13 = vld [vmem:[%s9604_s4 + $0x2c8] sm:$0xff] }
 0x55e   :  { %v3242_v14 = vpop.f32.mrb[27].mxu0  ;;  %v3313_v0 = vpop.f32.mrb[27].mxu1  ;;  %6192 = vtanh.f32 %v8840_v56 }
 0x55f   :  { %v3365_v53 = vcombine.low %v3240_v18, %v3242_v14  ;;  %v3366_v23 = vcombine.low %v3311_v36, %v3313_v0  ;;  %v3940_v18 = vld [vmem:[%s9604_s4 + $0x50] sm:$0xff]  ;;  %v3943_v14 = vld [vmem:[%s9604_s4 + $0x88] sm:$0xff] }
 0x560   :  { %v8918_v36 = vpack.c.bf16 %v3940_v18, %v3936_v17  ;;  %v3947_v0 = vld [vmem:[%s9604_s4 + $0xc8] sm:$0xff]  ;;  %v3977_v17 = vld [vmem:[%s9604_s4 + $0x298] sm:$0xff]  ;;  %v9076_v18 = vpack.c.bf16 %v3979_v13, %v3975_v29 }
 0x561   :  { %v3373_v49 = vrot.slane %v3365_v53, %v6479_v35  ;;  %v3380_v51 = vrot.slane %v3366_v23, %v6479_v35  ;;  %v3945_v53 = vld [vmem:[%s9604_s4 + $0x98] sm:$0xff]  ;;  %v8932_v23 = vpack.c.bf16 %v3947_v0, %v3943_v14  ;;  %v3974_v0 = vld [vmem:[%s9604_s4 + $0x280] sm:$0xff]  ;;  %v4141_v29 = vld [vmem:[%s9604_s4 + $0x428] sm:$0xff] }
 0x562   :  { %v3981_v14 = vld [vmem:[%s9604_s4 + $0x2d8] sm:$0xff]  ;;  %v4145_v13 = vld [vmem:[%s9604_s4 + $0x468] sm:$0xff] }
 0x563   :  { %v3381_v9 = vcombine.low %v3373_v49, %v3380_v51  ;;  %v3949_v49 = vld [vmem:[%s9604_s4 + $0xd8] sm:$0xff]  ;;  %v3942_v51 = vld [vmem:[%s9604_s4 + $0x80] sm:$0xff] }
 0x565   :  { %v3383_v58 = vadd.f32 %v3381_v9, %v9772_v31  ;;  %v3946_v9 = vld [vmem:[%s9604_s4 + $0xc0] sm:$0xff]  ;;  %v8943_v31 = vpack.c.bf16 %v3949_v49, %v3945_v53  ;;  %v9087_v49 = vpack.c.bf16 %v3981_v14, %v3977_v17  ;;  %v4143_v17 = vld [vmem:[%s9604_s4 + $0x438] sm:$0xff]  ;;  %v9184_v14 = vpack.c.bf16 %v4145_v13, %v4141_v29 }
 0x566   :  { %v3978_v53 = vld [vmem:[%s9604_s4 + $0x2c0] sm:$0xff] }
 0x567   :  { %v3384_v59 = vmul.f32 0.5, %v3383_v58  ;;  %v3389_v20 = vrot.slane %v3383_v58, 6  ;;  %v8945_v58 = vpack.c.bf16 %v3946_v9, %v3942_v51  ;;  %v9089_v51 = vpack.c.bf16 %v3978_v53, %v3974_v0  ;;  %v3976_v9 = vld [vmem:[%s9604_s4 + $0x290] sm:$0xff]  ;;  %v4147_v0 = vld [vmem:[%s9604_s4 + $0x478] sm:$0xff] }
 0x568   :  { %v6193_v33 = vpop.eup %6192  ;;  %v9189_v53 = vpack.c.bf16 %v4147_v0, %v4143_v17 }
 0x569   :  { %6194 = vtanh.f32 %v3384_v59  ;;  %v3358_v25 = vmul.f32 %v6193_v33, %v3356_v24  ;;  %v3944_v59 = vld [vmem:[%s9604_s4 + $0x90] sm:$0xff] }
 0x56a   :  { %6196 = vtanh.f32 %v3389_v20  ;;  %v3948_v24 = vld [vmem:[%s9604_s4 + $0xd0] sm:$0xff]  ;;  %v3955_v20 = vld [vmem:[%s9604_s4 + $0x148] sm:$0xff] }
 0x56b   :  { %3548 = vmatmul.mubr.f32.vlgmr.msra.gmra.mrb[28].mxu0 %v3358_v25  ;;  %3619 = vmatmul.mubr.f32.vlgmr.msra.gmra.mrb[28].mxu1 %v3358_v25  ;;  %v8954_v33 = vpack.c.bf16 %v3948_v24, %v3944_v59  ;;  %v3980_v59 = vld [vmem:[%s9604_s4 + $0x2d0] sm:$0xff] }
 0x56c   :  { %5820 = vmatpush1.bf16.msra.mxu0 %v8535_v48  ;;  %5852 = vmatpush1.bf16.msra.mxu1 %v8537_v28  ;;  %v9775_v28 = vld [vmem:[#allocation10_spill] sm:$0xff]  ;;  %v9098_v24 = vpack.c.bf16 %v3980_v59, %v3976_v9 }
 0x56d   :  { %5822 = vmatprep.subr.bf16.mxu0 %v8547_v19  ;;  %5854 = vmatprep.subr.bf16.mxu1 %v8549_v61  ;;  %v9776_v19 = vld [vmem:[#allocation11_spill] sm:$0xff]  ;;  %v9777_v61 = vld [vmem:[#allocation12_spill] sm:$0xff] }
 0x56e   :  { %3753 = vmatprep.mubr.f32.mxu0 %v9692_v2  ;;  %3824 = vmatprep.mubr.f32.mxu1 %v9692_v2 }
 0x570   :  { %5824 = vmatpush1.bf16.msra.mxu0 %v8573_v40  ;;  %5856 = vmatpush1.bf16.msra.mxu1 %v8575_v4  ;;  %v9780_v40 = vld [vmem:[#allocation15_spill] sm:$0xff] }
 0x571   :  { %5826 = vmatprep.subr.bf16.mxu0 %v9773_v3  ;;  %5858 = vmatprep.subr.bf16.mxu1 %v9774_v1  ;;  %v3953_v3 = vld [vmem:[%s9604_s4 + $0x118] sm:$0xff] }
 0x573   :  { %v6195_v48 = vpop.eup %6194 }
 0x574   :  { %v3386_v27 = vmul.f32 0.5, %v6195_v48  ;;  %5828 = vmatpush1.bf16.msra.mxu0 %v9775_v28  ;;  %5860 = vmatpush1.bf16.msra.mxu1 %v9776_v19  ;;  %v6197_v4 = vpop.eup %6196  ;;  %v3957_v48 = vld [vmem:[%s9604_s4 + $0x158] sm:$0xff]  ;;  %v3954_v28 = vld [vmem:[%s9604_s4 + $0x140] sm:$0xff] }
 0x575   :  { %5830 = vmatprep.subr.bf16.mxu0 %v9777_v61  ;;  %5862 = vmatprep.subr.bf16.mxu1 %v9778_v63  ;;  %v8979_v19 = vpack.c.bf16 %v3957_v48, %v3953_v3  ;;  %v3952_v63 = vld [vmem:[%s9604_s4 + $0x110] sm:$0xff]  ;;  %v3985_v3 = vld [vmem:[%s9604_s4 + $0x318] sm:$0xff] }
 0x576   :  { %v3387_v21 = vadd.f32 0.5, %v3386_v27  ;;  %v3950_v27 = vld [vmem:[%s9604_s4 + $0x100] sm:$0xff] }
 0x577   :  { %v8981_v61 = vpack.c.bf16 %v3954_v28, %v3950_v27  ;;  %v3989_v27 = vld [vmem:[%s9604_s4 + $0x358] sm:$0xff]  ;;  %v3982_v28 = vld [vmem:[%s9604_s4 + $0x300] sm:$0xff] }
 0x578   :  { %v3393_v50 = vrot.slane %v3387_v21, 2  ;;  %5832 = vmatpush1.bf16.msra.mxu0 %v9779_v8  ;;  %5864 = vmatpush1.bf16.msra.mxu1 %v9780_v40  ;;  %v3396_v37 = vmul.f32 %v6197_v4, %v3387_v21  ;;  %v3959_v8 = vld [vmem:[%s9604_s4 + $0x188] sm:$0xff]  ;;  %v3961_v4 = vld [vmem:[%s9604_s4 + $0x198] sm:$0xff] }
 0x579   :  { %5834 = vmatprep.subr.bf16.mxu0 %v9781_v44  ;;  %5866 = vmatprep.subr.bf16.mxu1 %v9782_v62  ;;  %v3963_v40 = vld [vmem:[%s9604_s4 + $0x1c8] sm:$0xff]  ;;  %v3965_v62 = vld [vmem:[%s9604_s4 + $0x1d8] sm:$0xff] }
 0x57a   :  { %v3395_v60 = vmul.f32 %v3393_v50, %v8722_v57  ;;  %v9004_v44 = vpack.c.bf16 %v3963_v40, %v3959_v8  ;;  %v3984_v40 = vld [vmem:[%s9604_s4 + $0x310] sm:$0xff] }
 0x57c   :  { %v8867_v47 = vadd.f32 %v3396_v37, %v3395_v60  ;;  %5836 = vmatpush1.bf16.msra.mxu0 %v8686_v38  ;;  %5868 = vmatpush1.bf16.msra.mxu1 %v9783_v12  ;;  %v3399_v38 = vrot.slane %v3387_v21, 4  ;;  %v3956_v21 = vld [vmem:[%s9604_s4 + $0x150] sm:$0xff]  ;;  %v3958_v60 = vld [vmem:[%s9604_s4 + $0x180] sm:$0xff]  ;;  %v9015_v12 = vpack.c.bf16 %v3965_v62, %v3961_v4 }
 0x57d   :  { %5838 = vmatprep.subr.bf16.mxu0 %v9784_v11  ;;  %5870 = vmatprep.subr.bf16.mxu1 %v9785_v5  ;;  %v8990_v50 = vpack.c.bf16 %v3956_v21, %v3952_v63  ;;  %v3962_v37 = vld [vmem:[%s9604_s4 + $0x1c0] sm:$0xff]  ;;  %v3960_v5 = vld [vmem:[%s9604_s4 + $0x190] sm:$0xff]  ;;  %v9123_v21 = vpack.c.bf16 %v3989_v27, %v3985_v3 }
 0x57e   :  { %6198 = vtanh.f32 %v8867_v47  ;;  %v9017_v11 = vpack.c.bf16 %v3962_v37, %v3958_v60  ;;  %v3986_v63 = vld [vmem:[%s9604_s4 + $0x340] sm:$0xff]  ;;  %v3988_v4 = vld [vmem:[%s9604_s4 + $0x350] sm:$0xff]  ;;  %v3991_v60 = vld [vmem:[%s9604_s4 + $0x388] sm:$0xff] }
 0x57f   :  { %v9125_v8 = vpack.c.bf16 %v3986_v63, %v3982_v28  ;;  %v9134_v62 = vpack.c.bf16 %v3988_v4, %v3984_v40  ;;  %v3995_v37 = vld [vmem:[%s9604_s4 + $0x3c8] sm:$0xff]  ;;  %v9787_v4 = vcombine.high %v9767_v34, %v9768_v30 }
 0x580   :  { %5840 = vmatpush1.bf16.msra.mxu0 %v8726_v45  ;;  %5872 = vmatpush1.bf16.msra.mxu1 %v9786_v22  ;;  %v3964_v22 = vld [vmem:[%s9604_s4 + $0x1d0] sm:$0xff] }
 0x581   :  { %5842 = vmatprep.subr.bf16.mxu0 %v8738_v46  ;;  %5874 = vmatprep.subr.bf16.mxu1 %v8740_v16  ;;  %v3402_v16 = vld [vmem:[#allocation6] sm:$0xf] }
 0x584   :  { %5844 = vmatpush1.bf16.msra.mxu0 %v8763_v54  ;;  %5876 = vmatpush1.bf16.msra.mxu1 %v8765_v43  ;;  %v3935_v43 = vld [vmem:[%s9604_s4 + $0x8] sm:$0xff] }
 0x585   :  { %5846 = vmatprep.subr.bf16.mxu0 %v8772_v41  ;;  %5878 = vmatprep.subr.bf16.mxu1 %v8774_v55  ;;  %v3416_v41 = vld [vmem:[#allocation7] sm:$0xf] }
 0x588   :  { %v6199_v57 = vpop.eup %6198  ;;  %5848 = vmatpush1.bf16.msra.mxu0 %v8787_v42  ;;  %5880 = vmatpush1.bf16.msra.mxu1 %v8789_v7  ;;  %v3939_v42 = vld [vmem:[%s9604_s4 + $0x48] sm:$0xff]  ;;  %v3937_v7 = vld [vmem:[%s9604_s4 + $0x18] sm:$0xff] }
 0x589   :  { %v3401_v45 = vmul.f32 %v6199_v57, %v3399_v38  ;;  %v8896_v32 = vpack.c.bf16 %v3939_v42, %v3935_v43  ;;  %v8907_v10 = vpack.c.bf16 %v3941_v15, %v3937_v7  ;;  %v9026_v38 = vpack.c.bf16 %v3964_v22, %v3960_v5  ;;  %v3967_v57 = vld [vmem:[%s9604_s4 + $0x208] sm:$0xff]  ;;  %v3968_v42 = vld [vmem:[%s9604_s4 + $0x210] sm:$0xff]  ;;  %v3993_v5 = vld [vmem:[%s9604_s4 + $0x398] sm:$0xff] }
 0x58a   :  { %v3972_v7 = vld [vmem:[%s9604_s4 + $0x250] sm:$0xff]  ;;  %v9148_v22 = vpack.c.bf16 %v3995_v37, %v3991_v60 }
 0x58b   :  { %v3405_v26 = vcombine.low %v3358_v25, %v3401_v45  ;;  %3754 = vmatmul.mubr.f32.vlgmr.msra.gmra.mrb[30].mxu0 %v3401_v45  ;;  %3825 = vmatmul.mubr.f32.vlgmr.msra.gmra.mrb[30].mxu1 %v3401_v45  ;;  %v3951_v25 = vld [vmem:[%s9604_s4 + $0x108] sm:$0xff]  ;;  %v9062_v15 = vpack.c.bf16 %v3972_v7, %v3968_v42  ;;  %v3996_v42 = vld [vmem:[%s9604_s4 + $0x3d0] sm:$0xff] }
 0x58c   :  { %4062 = vmatprep.mubr.f32.mxu0 %v9692_v2  ;;  %4133 = vmatprep.mubr.f32.mxu1 %v9692_v2  ;;  %v8968_v1 = vpack.c.bf16 %v3955_v20, %v3951_v25  ;;  %v3971_v45 = vld [vmem:[%s9604_s4 + $0x248] sm:$0xff] }
 0x58d   :  { %v3412_v46 = vrot.slane %v3405_v26, %v6479_v35  ;;  %5882 = vmatprep.subr.bf16.mxu0 %v8896_v32  ;;  %5914 = vmatprep.subr.bf16.mxu1 %v8907_v10  ;;  %v3969_v26 = vld [vmem:[%s9604_s4 + $0x218] sm:$0xff]  ;;  %v3983_v25 = vld [vmem:[%s9604_s4 + $0x308] sm:$0xff] }
 0x58e   :  { %5884 = vmatpush1.bf16.msra.mxu0 %v8909_v39  ;;  %5916 = vmatpush1.bf16.msra.mxu1 %v8918_v36  ;;  %v3987_v20 = vld [vmem:[%s9604_s4 + $0x348] sm:$0xff] }
 0x58f   :  { %v3414_v54 = vadd.f32 %v3412_v46, %v3402_v16  ;;  %v3417_v55 = vmax.f32 %v3416_v41, %v3412_v46  ;;  %5886 = vmatprep.subr.bf16.mxu0 %v8932_v23  ;;  %5918 = vmatprep.subr.bf16.mxu1 %v8943_v31  ;;  %v9040_v46 = vpack.c.bf16 %v3971_v45, %v3967_v57  ;;  %v3973_v16 = vld [vmem:[%s9604_s4 + $0x258] sm:$0xff]  ;;  %v3966_v41 = vld [vmem:[%s9604_s4 + $0x200] sm:$0xff] }
 0x590   :  { %v9112_v48 = vpack.c.bf16 %v3987_v20, %v3983_v25  ;;  %v3997_v57 = vld [vmem:[%s9604_s4 + $0x3d8] sm:$0xff]  ;;  %v3990_v45 = vld [vmem:[%s9604_s4 + $0x380] sm:$0xff] }
 0x591   :  { %3415 = vst [vmem:[#allocation6] sm:$0xf] %v3414_v54  ;;  %3418 = vst [vmem:[#allocation7] sm:$0xf] %v3417_v55  ;;  %v3970_v54 = vld [vmem:[%s9604_s4 + $0x240] sm:$0xff]  ;;  %v9051_v55 = vpack.c.bf16 %v3973_v16, %v3969_v26  ;;  %v9159_v16 = vpack.c.bf16 %v3997_v57, %v3993_v5 }
 0x592   :  { %5888 = vmatpush1.bf16.msra.mxu0 %v8945_v58  ;;  %5920 = vmatpush1.bf16.msra.mxu1 %v8954_v33  ;;  %v9053_v43 = vpack.c.bf16 %v3970_v54, %v3966_v41  ;;  %v3994_v26 = vld [vmem:[%s9604_s4 + $0x3c0] sm:$0xff]  ;;  %v3992_v54 = vld [vmem:[%s9604_s4 + $0x390] sm:$0xff] }
 0x593   :  { %5890 = vmatprep.subr.bf16.mxu0 %v8968_v1  ;;  %5922 = vmatprep.subr.bf16.mxu1 %v8979_v19  ;;  %v9161_v41 = vpack.c.bf16 %v3994_v26, %v3990_v45  ;;  %v9170_v7 = vpack.c.bf16 %v3996_v42, %v3992_v54 }
 0x596   :  { %5892 = vmatpush1.bf16.msra.mxu0 %v8981_v61  ;;  %5924 = vmatpush1.bf16.msra.mxu1 %v8990_v50 }
 0x597   :  { %5894 = vmatprep.subr.bf16.mxu0 %v9004_v44  ;;  %5926 = vmatprep.subr.bf16.mxu1 %v9015_v12 }
 0x59a   :  { %5896 = vmatpush1.bf16.msra.mxu0 %v9017_v11  ;;  %5928 = vmatpush1.bf16.msra.mxu1 %v9026_v38 }
 0x59b   :  { %5898 = vmatprep.subr.bf16.mxu0 %v9040_v46  ;;  %5930 = vmatprep.subr.bf16.mxu1 %v9051_v55 }
 0x59e   :  { %5900 = vmatpush1.bf16.msra.mxu0 %v9053_v43  ;;  %5932 = vmatpush1.bf16.msra.mxu1 %v9062_v15 }
 0x59f   :  { %5902 = vmatprep.subr.bf16.mxu0 %v9076_v18  ;;  %5934 = vmatprep.subr.bf16.mxu1 %v9087_v49 }
 0x5a2   :  { %5904 = vmatpush1.bf16.msra.mxu0 %v9089_v51  ;;  %5936 = vmatpush1.bf16.msra.mxu1 %v9098_v24 }
 0x5a3   :  { %5906 = vmatprep.subr.bf16.mxu0 %v9112_v48  ;;  %5938 = vmatprep.subr.bf16.mxu1 %v9123_v21 }
 0x5a6   :  { %5908 = vmatpush1.bf16.msra.mxu0 %v9125_v8  ;;  %5940 = vmatpush1.bf16.msra.mxu1 %v9134_v62 }
 0x5a7   :  { %5910 = vmatprep.subr.bf16.mxu0 %v9148_v22  ;;  %5942 = vmatprep.subr.bf16.mxu1 %v9159_v16 }
 0x5aa   :  { %5912 = vmatpush1.bf16.msra.mxu0 %v9161_v41  ;;  %5944 = vmatpush1.bf16.msra.mxu1 %v9170_v7 }
 0x5ab   :  { %5946 = vmatprep.subr.bf16.mxu0 %v9184_v14  ;;  %5978 = vmatprep.subr.bf16.mxu1 %v9189_v53 }
 0x63e   :  { %v3549_v9 = vpop.f32.mrb[28].mxu0  ;;  %v3620_v59 = vpop.f32.mrb[28].mxu1 }
 0x63f   :  { %v3551_v25 = vpop.f32.mrb[29].mxu0  ;;  %v3622_v20 = vpop.f32.mrb[29].mxu1 }
 0x640   :  { %v3837_v3 = vcombine.low %v3549_v9, %v3551_v25  ;;  %v3838_v27 = vcombine.low %v3620_v59, %v3622_v20 }
 0x642   :  { %v3845_v28 = vrot.slane %v3837_v3, %v6479_v35  ;;  %v3852_v63 = vrot.slane %v3838_v27, %v6479_v35 }
 0x644   :  { %v3853_v40 = vcombine.low %v3845_v28, %v3852_v63  ;;  %v4144_v28 = vld [vmem:[%s9604_s4 + $0x460] sm:$0xff]  ;;  %v9788_v63 = vcombine.low %v9770_v6, %v9771_v52  ;;  %v4151_v6 = vld [vmem:[%s9604_s4 + $0x4b8] sm:$0xff] }
 0x645   :  { %v4155_v52 = vld [vmem:[%s9604_s4 + $0x4f8] sm:$0xff] }
 0x646   :  { %v3855_v60 = vadd.f32 %v3853_v40, %v9787_v4  ;;  %v4142_v4 = vld [vmem:[%s9604_s4 + $0x430] sm:$0xff] }
 0x648   :  { %v3856_v37 = vmul.f32 0.5, %v3855_v60  ;;  %v3861_v5 = vrot.slane %v3855_v60, 6  ;;  %v4146_v60 = vld [vmem:[%s9604_s4 + $0x470] sm:$0xff] }
 0x64a   :  { %6200 = vtanh.f32 %v3856_v37  ;;  %v4149_v37 = vld [vmem:[%s9604_s4 + $0x4a8] sm:$0xff] }
 0x64b   :  { %6202 = vtanh.f32 %v3861_v5  ;;  %v4153_v5 = vld [vmem:[%s9604_s4 + $0x4e8] sm:$0xff] }
 0x654   :  { %v6201_v57 = vpop.eup %6200 }
 0x655   :  { %v3858_v45 = vmul.f32 0.5, %v6201_v57  ;;  %v6203_v42 = vpop.eup %6202 }
 0x657   :  { %v3859_v26 = vadd.f32 0.5, %v3858_v45 }
 0x659   :  { %v3865_v54 = vrot.slane %v3859_v26, 2  ;;  %v3868_v13 = vmul.f32 %v6203_v42, %v3859_v26  ;;  %v3871_v45 = vrot.slane %v3859_v26, 4  ;;  %v4150_v26 = vld [vmem:[%s9604_s4 + $0x4b0] sm:$0xff] }
 0x65b   :  { %v3867_v29 = vmul.f32 %v3865_v54, %v8840_v56  ;;  %v4140_v56 = vld [vmem:[%s9604_s4 + $0x420] sm:$0xff] }
 0x65c   :  { %v9231_v42 = vpack.c.bf16 %v4144_v28, %v4140_v56 }
 0x65d   :  { %v9199_v17 = vadd.f32 %v3868_v13, %v3867_v29  ;;  %v9233_v29 = vpack.c.bf16 %v4146_v60, %v4142_v4  ;;  %v4148_v13 = vld [vmem:[%s9604_s4 + $0x4a0] sm:$0xff] }
 0x65e   :  { %v3755_v0 = vpop.f32.mrb[30].mxu0  ;;  %v3826_v9 = vpop.f32.mrb[30].mxu1  ;;  %v4156_v4 = vld [vmem:[%s9604_s4 + $0x520] sm:$0xff] }
 0x65f   :  { %v3757_v59 = vpop.f32.mrb[31].mxu0  ;;  %v3828_v25 = vpop.f32.mrb[31].mxu1  ;;  %6204 = vtanh.f32 %v9199_v17 }
 0x660   :  { %v3880_v34 = vcombine.low %v3755_v0, %v3757_v59  ;;  %v3881_v30 = vcombine.low %v3826_v9, %v3828_v25  ;;  %v4152_v0 = vld [vmem:[%s9604_s4 + $0x4e0] sm:$0xff]  ;;  %v9243_v59 = vpack.c.bf16 %v4153_v5, %v4149_v37  ;;  %v9245_v25 = vpack.c.bf16 %v4155_v52, %v4151_v6  ;;  %v4158_v5 = vld [vmem:[%s9604_s4 + $0x530] sm:$0xff]  ;;  %v4165_v52 = vld [vmem:[%s9604_s4 + $0x5a8] sm:$0xff] }
 0x661   :  { %v9269_v28 = vpack.c.bf16 %v4152_v0, %v4148_v13  ;;  %v4162_v6 = vld [vmem:[%s9604_s4 + $0x570] sm:$0xff] }
 0x662   :  { %v3888_v20 = vrot.slane %v3880_v34, %v6479_v35  ;;  %v3895_v3 = vrot.slane %v3881_v30, %v6479_v35  ;;  %v4154_v34 = vld [vmem:[%s9604_s4 + $0x4f0] sm:$0xff]  ;;  %v4157_v30 = vld [vmem:[%s9604_s4 + $0x528] sm:$0xff]  ;;  %v9309_v0 = vpack.c.bf16 %v4162_v6, %v4158_v5  ;;  %v4179_v5 = vld [vmem:[%s9604_s4 + $0x678] sm:$0xff] }
 0x664   :  { %v3896_v27 = vcombine.low %v3888_v20, %v3895_v3  ;;  %v4161_v20 = vld [vmem:[%s9604_s4 + $0x568] sm:$0xff]  ;;  %v4159_v3 = vld [vmem:[%s9604_s4 + $0x538] sm:$0xff]  ;;  %9792 = vst [vmem:[#allocation33_spill] sm:$0xff] %v9309_v0 }
 0x665   :  { %v9281_v60 = vpack.c.bf16 %v4161_v20, %v4157_v30 }
 0x666   :  { %v3898_v40 = vadd.f32 %v3896_v27, %v9788_v63  ;;  %v4163_v27 = vld [vmem:[%s9604_s4 + $0x578] sm:$0xff]  ;;  %v9271_v63 = vpack.c.bf16 %v4154_v34, %v4150_v26  ;;  %v4164_v26 = vld [vmem:[%s9604_s4 + $0x5a0] sm:$0xff] }
 0x667   :  { %9789 = vst [vmem:[#allocation30_spill] sm:$0xff] %v9281_v60  ;;  %v9283_v37 = vpack.c.bf16 %v4163_v27, %v4159_v3  ;;  %v4168_v34 = vld [vmem:[%s9604_s4 + $0x5e0] sm:$0xff]  ;;  %v4166_v3 = vld [vmem:[%s9604_s4 + $0x5b0] sm:$0xff] }
 0x668   :  { %v3899_v57 = vmul.f32 0.5, %v3898_v40  ;;  %v3904_v56 = vrot.slane %v3898_v40, 6  ;;  %v4160_v40 = vld [vmem:[%s9604_s4 + $0x560] sm:$0xff]  ;;  %v4170_v27 = vld [vmem:[%s9604_s4 + $0x5f0] sm:$0xff] }
 0x669   :  { %v6205_v54 = vpop.eup %6204  ;;  %9790 = vst [vmem:[#allocation31_spill] sm:$0xff] %v9283_v37  ;;  %v9307_v13 = vpack.c.bf16 %v4160_v40, %v4156_v4  ;;  %v4177_v4 = vld [vmem:[%s9604_s4 + $0x668] sm:$0xff]  ;;  %v4175_v40 = vld [vmem:[%s9604_s4 + $0x638] sm:$0xff] }
 0x66a   :  { %6206 = vtanh.f32 %v3899_v57  ;;  %v9241_v9 = vmul.f32 %v6205_v54, %v3871_v45  ;;  %v4169_v57 = vld [vmem:[%s9604_s4 + $0x5e8] sm:$0xff]  ;;  %v4167_v45 = vld [vmem:[%s9604_s4 + $0x5b8] sm:$0xff] }
 0x66b   :  { %v4171_v54 = vld [vmem:[%s9604_s4 + $0x5f8] sm:$0xff]  ;;  %6208 = vtanh.f32 %v3904_v56  ;;  %9791 = vst [vmem:[#allocation32_spill] sm:$0xff] %v9307_v13  ;;  %v9319_v30 = vpack.c.bf16 %v4169_v57, %v4165_v52  ;;  %v4173_v56 = vld [vmem:[%s9604_s4 + $0x628] sm:$0xff]  ;;  %v9343_v57 = vpack.c.bf16 %v4168_v34, %v4164_v26  ;;  %v4174_v26 = vld [vmem:[%s9604_s4 + $0x630] sm:$0xff] }
 0x66c   :  { %4063 = vmatmul.mubr.f32.vlgmr.msra.gmra.mrb[32].mxu0 %v9241_v9  ;;  %4134 = vmatmul.mubr.f32.vlgmr.msra.gmra.mrb[32].mxu1 %v9241_v9  ;;  %v9321_v20 = vpack.c.bf16 %v4171_v54, %v4167_v45  ;;  %v9345_v45 = vpack.c.bf16 %v4170_v27, %v4166_v3  ;;  %v4172_v54 = vld [vmem:[%s9604_s4 + $0x620] sm:$0xff]  ;;  %v4178_v34 = vld [vmem:[%s9604_s4 + $0x670] sm:$0xff]  ;;  %v4181_v3 = vld [vmem:[%s9604_s4 + $0x6a8] sm:$0xff] }
 0x66d   :  { %5948 = vmatpush1.bf16.msra.mxu0 %v9231_v42  ;;  %5980 = vmatpush1.bf16.msra.mxu1 %v9233_v29  ;;  %9793 = vst [vmem:[#allocation18_spill] sm:$0xff] %v9319_v30  ;;  %9795 = vst [vmem:[#allocation23_spill] sm:$0xff] %v9343_v57 }
 0x66e   :  { %5950 = vmatprep.subr.bf16.mxu0 %v9243_v59  ;;  %5982 = vmatprep.subr.bf16.mxu1 %v9245_v25  ;;  %9794 = vst [vmem:[#allocation20_spill] sm:$0xff] %v9321_v20  ;;  %9796 = vst [vmem:[#allocation25_spill] sm:$0xff] %v9345_v45 }
 0x66f   :  { %4268 = vmatprep.mubr.f32.mxu0 %v9692_v2  ;;  %4339 = vmatprep.mubr.f32.mxu1 %v9692_v2 }
 0x671   :  { %5952 = vmatpush1.bf16.msra.mxu0 %v9269_v28  ;;  %5984 = vmatpush1.bf16.msra.mxu1 %v9271_v63 }
 0x672   :  { %5954 = vmatprep.subr.bf16.mxu0 %v9281_v60  ;;  %5986 = vmatprep.subr.bf16.mxu1 %v9283_v37  ;;  %v4176_v37 = vld [vmem:[%s9604_s4 + $0x660] sm:$0xff] }
 0x674   :  { %v6207_v6 = vpop.eup %6206 }
 0x675   :  { %v3901_v52 = vmul.f32 0.5, %v6207_v6  ;;  %5956 = vmatpush1.bf16.msra.mxu0 %v9307_v13  ;;  %5988 = vmatpush1.bf16.msra.mxu1 %v9309_v0  ;;  %v9355_v6 = vpack.c.bf16 %v4177_v4, %v4173_v56  ;;  %v9357_v13 = vpack.c.bf16 %v4179_v5, %v4175_v40  ;;  %v4185_v56 = vld [vmem:[%s9604_s4 + $0x6e8] sm:$0xff]  ;;  %v4183_v4 = vld [vmem:[%s9604_s4 + $0x6b8] sm:$0xff]  ;;  %v4184_v0 = vld [vmem:[%s9604_s4 + $0x6e0] sm:$0xff]  ;;  %v6209_v60 = vpop.eup %6208 }
 0x676   :  { %5958 = vmatprep.subr.bf16.mxu0 %v9319_v30  ;;  %5990 = vmatprep.subr.bf16.mxu1 %v9321_v20  ;;  %v4187_v40 = vld [vmem:[%s9604_s4 + $0x6f8] sm:$0xff]  ;;  %v9384_v20 = vpack.c.bf16 %v4178_v34, %v4174_v26  ;;  %v4180_v30 = vld [vmem:[%s9604_s4 + $0x6a0] sm:$0xff]  ;;  %v4189_v26 = vld [vmem:[%s9604_s4 + $0x728] sm:$0xff] }
 0x677   :  { %9797 = vst [vmem:[#allocation8_spill] sm:$0xff] %v9355_v6  ;;  %9798 = vst [vmem:[#allocation9_spill] sm:$0xff] %v9357_v13  ;;  %v9368_v27 = vadd.f32 0.5, %v3901_v52  ;;  %v9382_v52 = vpack.c.bf16 %v4176_v37, %v4172_v54  ;;  %v4182_v37 = vld [vmem:[%s9604_s4 + $0x6b0] sm:$0xff] }
 0x678   :  { %9799 = vst [vmem:[#allocation10_spill] sm:$0xff] %v9384_v20  ;;  %v4186_v54 = vld [vmem:[%s9604_s4 + $0x6f0] sm:$0xff] }
 0x679   :  { %v3908_v5 = vrot.slane %v9368_v27, 2  ;;  %5960 = vmatpush1.bf16.msra.mxu0 %v9343_v57  ;;  %5992 = vmatpush1.bf16.msra.mxu1 %v9345_v45  ;;  %v9394_v57 = vpack.c.bf16 %v4185_v56, %v4181_v3  ;;  %v9396_v45 = vpack.c.bf16 %v4187_v40, %v4183_v4  ;;  %v4193_v3 = vld [vmem:[%s9604_s4 + $0x768] sm:$0xff]  ;;  %v4191_v56 = vld [vmem:[%s9604_s4 + $0x738] sm:$0xff] }
 0x67a   :  { %5962 = vmatprep.subr.bf16.mxu0 %v9355_v6  ;;  %5994 = vmatprep.subr.bf16.mxu1 %v9357_v13  ;;  %v3911_v13 = vmul.f32 %v6209_v60, %v9368_v27  ;;  %v4195_v4 = vld [vmem:[%s9604_s4 + $0x778] sm:$0xff]  ;;  %v9424_v60 = vpack.c.bf16 %v4186_v54, %v4182_v37  ;;  %v4192_v6 = vld [vmem:[%s9604_s4 + $0x760] sm:$0xff]  ;;  %v4197_v37 = vld [vmem:[%s9604_s4 + $0x7a8] sm:$0xff] }
 0x67b   :  { %9800 = vst [vmem:[#allocation11_spill] sm:$0xff] %v9394_v57  ;;  %9801 = vst [vmem:[#allocation12_spill] sm:$0xff] %v9396_v45  ;;  %v3910_v34 = vmul.f32 %v3908_v5, %v8867_v47  ;;  %v9422_v47 = vpack.c.bf16 %v4184_v0, %v4180_v30  ;;  %v4188_v5 = vld [vmem:[%s9604_s4 + $0x720] sm:$0xff]  ;;  %v4190_v0 = vld [vmem:[%s9604_s4 + $0x730] sm:$0xff] }
 0x67c   :  { %9802 = vst [vmem:[#allocation13_spill] sm:$0xff] %v9424_v60  ;;  %v4194_v30 = vld [vmem:[%s9604_s4 + $0x770] sm:$0xff]  ;;  %v4201_v54 = vld [vmem:[%s9604_s4 + $0x7e8] sm:$0xff] }
 0x67d   :  { %v9418_v40 = vadd.f32 %v3911_v13, %v3910_v34  ;;  %5964 = vmatpush1.bf16.msra.mxu0 %v9382_v52  ;;  %5996 = vmatpush1.bf16.msra.mxu1 %v9384_v20  ;;  %v9434_v13 = vpack.c.bf16 %v4193_v3, %v4189_v26  ;;  %v9436_v34 = vpack.c.bf16 %v4195_v4, %v4191_v56  ;;  %v4199_v26 = vld [vmem:[%s9604_s4 + $0x7b8] sm:$0xff] }
 0x67e   :  { %5966 = vmatprep.subr.bf16.mxu0 %v9394_v57  ;;  %5998 = vmatprep.subr.bf16.mxu1 %v9396_v45  ;;  %v4203_v3 = vld [vmem:[%s9604_s4 + $0x7f8] sm:$0xff]  ;;  %v9459_v56 = vpack.c.bf16 %v4192_v6, %v4188_v5  ;;  %v9461_v4 = vpack.c.bf16 %v4194_v30, %v4190_v0  ;;  %v4196_v45 = vld [vmem:[%s9604_s4 + $0x7a0] sm:$0xff]  ;;  %v9468_v57 = vpack.c.bf16 %v4201_v54, %v4197_v37  ;;  %v4198_v6 = vld [vmem:[%s9604_s4 + $0x7b0] sm:$0xff]  ;;  %v3914_v37 = vrot.slane %v9368_v27, 4 }
 0x67f   :  { %6210 = vtanh.f32 %v9418_v40  ;;  %v9470_v20 = vpack.c.bf16 %v4203_v3, %v4199_v26  ;;  %v4202_v5 = vld [vmem:[%s9604_s4 + $0x7f0] sm:$0xff]  ;;  %v3931_v3 = vld [vmem:[#allocation7] sm:$0xf] }
 0x680   :  { %v9485_v30 = vpack.c.bf16 %v4202_v5, %v4198_v6  ;;  %v9807_v6 = vld [vmem:[#allocation24_spill] sm:$0xff] }
 0x681   :  { %5968 = vmatpush1.bf16.msra.mxu0 %v9422_v47  ;;  %6000 = vmatpush1.bf16.msra.mxu1 %v9424_v60  ;;  %v4200_v60 = vld [vmem:[%s9604_s4 + $0x7e0] sm:$0xff] }
 0x682   :  { %5970 = vmatprep.subr.bf16.mxu0 %v9434_v13  ;;  %6002 = vmatprep.subr.bf16.mxu1 %v9436_v34  ;;  %v9483_v0 = vpack.c.bf16 %v4200_v60, %v4196_v45  ;;  %v3917_v60 = vld [vmem:[#allocation6] sm:$0xf] }
 0x685   :  { %5972 = vmatpush1.bf16.msra.mxu0 %v9459_v56  ;;  %6004 = vmatpush1.bf16.msra.mxu1 %v9461_v4 }
 0x686   :  { %5974 = vmatprep.subr.bf16.mxu0 %v9468_v57  ;;  %6006 = vmatprep.subr.bf16.mxu1 %v9470_v20 }
 0x689   :  { %v6211_v54 = vpop.eup %6210  ;;  %5976 = vmatpush1.bf16.msra.mxu0 %v9483_v0  ;;  %6008 = vmatpush1.bf16.msra.mxu1 %v9485_v30 }
 0x68a   :  { %v3916_v26 = vmul.f32 %v6211_v54, %v3914_v37  ;;  %6010 = vmatprep.subr.bf16.mxu0 %v8896_v32  ;;  %6042 = vmatprep.subr.bf16.mxu1 %v8907_v10 }
 0x68c   :  { %v3920_v45 = vcombine.low %v9241_v9, %v3916_v26  ;;  %4269 = vmatmul.mubr.f32.vlgmr.msra.gmra.mrb[34].mxu0 %v3916_v26  ;;  %4340 = vmatmul.mubr.f32.vlgmr.msra.gmra.mrb[34].mxu1 %v3916_v26  ;;  %v9806_v9 = vld [vmem:[#allocation22_spill] sm:$0xff] }
 0x68d   :  { %6012 = vmatpush1.bf16.msra.mxu0 %v8909_v39  ;;  %6044 = vmatpush1.bf16.msra.mxu1 %v8918_v36  ;;  %v9808_v5 = vcombine.high %v9806_v9, %v9807_v6 }
 0x68e   :  { %v3927_v27 = vrot.slane %v3920_v45, %v6479_v35  ;;  %6014 = vmatprep.subr.bf16.mxu0 %v8932_v23  ;;  %6046 = vmatprep.subr.bf16.mxu1 %v8943_v31 }
 0x68f   :  { %4577 = vmatprep.mubr.f32.mxu0 %v9692_v2  ;;  %4648 = vmatprep.mubr.f32.mxu1 %v9692_v2 }
 0x690   :  { %v3929_v32 = vadd.f32 %v3927_v27, %v3917_v60  ;;  %v3932_v10 = vmax.f32 %v3931_v3, %v3927_v27  ;;  %v9809_v60 = vld [vmem:[#allocation30_spill] sm:$0xff]  ;;  %v9810_v3 = vld [vmem:[#allocation31_spill] sm:$0xff] }
 0x691   :  { %6016 = vmatpush1.bf16.msra.mxu0 %v8945_v58  ;;  %6048 = vmatpush1.bf16.msra.mxu1 %v8954_v33 }
 0x692   :  { %3930 = vst [vmem:[#allocation6] sm:$0xf] %v3929_v32  ;;  %3933 = vst [vmem:[#allocation7] sm:$0xf] %v3932_v10  ;;  %6018 = vmatprep.subr.bf16.mxu0 %v8968_v1  ;;  %6050 = vmatprep.subr.bf16.mxu1 %v8979_v19  ;;  %v9814_v10 = vld [vmem:[#allocation20_spill] sm:$0xff] }
 0x695   :  { %6020 = vmatpush1.bf16.msra.mxu0 %v8981_v61  ;;  %6052 = vmatpush1.bf16.msra.mxu1 %v8990_v50  ;;  %v9803_v50 = vld [vmem:[#allocation19_spill] sm:$0xff] }
 0x696   :  { %6022 = vmatprep.subr.bf16.mxu0 %v9004_v44  ;;  %6054 = vmatprep.subr.bf16.mxu1 %v9015_v12  ;;  %v9804_v44 = vld [vmem:[#allocation21_spill] sm:$0xff] }
 0x697   :  { %v9805_v12 = vcombine.low %v9803_v50, %v9804_v44 }
 0x699   :  { %6024 = vmatpush1.bf16.msra.mxu0 %v9017_v11  ;;  %6056 = vmatpush1.bf16.msra.mxu1 %v9026_v38 }
 0x69a   :  { %6026 = vmatprep.subr.bf16.mxu0 %v9040_v46  ;;  %6058 = vmatprep.subr.bf16.mxu1 %v9051_v55 }
 0x69d   :  { %6028 = vmatpush1.bf16.msra.mxu0 %v9053_v43  ;;  %6060 = vmatpush1.bf16.msra.mxu1 %v9062_v15 }
 0x69e   :  { %6030 = vmatprep.subr.bf16.mxu0 %v9076_v18  ;;  %6062 = vmatprep.subr.bf16.mxu1 %v9087_v49 }
 0x6a1   :  { %6032 = vmatpush1.bf16.msra.mxu0 %v9089_v51  ;;  %6064 = vmatpush1.bf16.msra.mxu1 %v9098_v24 }
 0x6a2   :  { %6034 = vmatprep.subr.bf16.mxu0 %v9112_v48  ;;  %6066 = vmatprep.subr.bf16.mxu1 %v9123_v21 }
 0x6a5   :  { %6036 = vmatpush1.bf16.msra.mxu0 %v9125_v8  ;;  %6068 = vmatpush1.bf16.msra.mxu1 %v9134_v62 }
 0x6a6   :  { %6038 = vmatprep.subr.bf16.mxu0 %v9148_v22  ;;  %6070 = vmatprep.subr.bf16.mxu1 %v9159_v16 }
 0x6a9   :  { %6040 = vmatpush1.bf16.msra.mxu0 %v9161_v41  ;;  %6072 = vmatpush1.bf16.msra.mxu1 %v9170_v7 }
 0x6aa   :  { %6074 = vmatprep.subr.bf16.mxu0 %v9184_v14  ;;  %6106 = vmatprep.subr.bf16.mxu1 %v9189_v53 }
 0x73f   :  { %v4064_v39 = vpop.f32.mrb[32].mxu0  ;;  %v4135_v36 = vpop.f32.mrb[32].mxu1 }
 0x740   :  { %v4066_v23 = vpop.f32.mrb[33].mxu0  ;;  %v4137_v31 = vpop.f32.mrb[33].mxu1 }
 0x741   :  { %v4352_v58 = vcombine.low %v4064_v39, %v4066_v23  ;;  %v4353_v33 = vcombine.low %v4135_v36, %v4137_v31  ;;  %v9815_v36 = vld [vmem:[#allocation23_spill] sm:$0xff]  ;;  %v9817_v23 = vld [vmem:[#allocation8_spill] sm:$0xff]  ;;  %v9818_v31 = vld [vmem:[#allocation9_spill] sm:$0xff] }
 0x743   :  { %v4360_v1 = vrot.slane %v4352_v58, %v6479_v35  ;;  %v4367_v19 = vrot.slane %v4353_v33, %v6479_v35 }
 0x745   :  { %v4368_v61 = vcombine.low %v4360_v1, %v4367_v19  ;;  %v9819_v19 = vld [vmem:[#allocation10_spill] sm:$0xff] }
 0x747   :  { %v4370_v11 = vadd.f32 %v4368_v61, %v9805_v12  ;;  %v9820_v61 = vld [vmem:[#allocation11_spill] sm:$0xff]  ;;  %v9821_v12 = vld [vmem:[#allocation12_spill] sm:$0xff] }
 0x749   :  { %v4371_v38 = vmul.f32 0.5, %v4370_v11  ;;  %v4376_v46 = vrot.slane %v4370_v11, 6  ;;  %v9822_v11 = vld [vmem:[#allocation13_spill] sm:$0xff] }
 0x74b   :  { %6212 = vtanh.f32 %v4371_v38 }
 0x74c   :  { %6214 = vtanh.f32 %v4376_v46 }
 0x755   :  { %v6213_v55 = vpop.eup %6212 }
 0x756   :  { %v4373_v43 = vmul.f32 0.5, %v6213_v55  ;;  %v6215_v49 = vpop.eup %6214 }
 0x758   :  { %v4374_v15 = vadd.f32 0.5, %v4373_v43 }
 0x75a   :  { %v4380_v18 = vrot.slane %v4374_v15, 2  ;;  %v4383_v24 = vmul.f32 %v6215_v49, %v4374_v15  ;;  %v4386_v54 = vrot.slane %v4374_v15, 4 }
 0x75c   :  { %v4382_v51 = vmul.f32 %v4380_v18, %v9199_v17 }
 0x75e   :  { %v9536_v48 = vadd.f32 %v4383_v24, %v4382_v51  ;;  %v9823_v51 = vcombine.high %v9803_v50, %v9804_v44 }
 0x75f   :  { %v4270_v21 = vpop.f32.mrb[34].mxu0  ;;  %v4341_v8 = vpop.f32.mrb[34].mxu1 }
 0x760   :  { %v4272_v62 = vpop.f32.mrb[35].mxu0  ;;  %v4343_v22 = vpop.f32.mrb[35].mxu1  ;;  %6216 = vtanh.f32 %v9536_v48 }
 0x761   :  { %v4395_v16 = vcombine.low %v4270_v21, %v4272_v62  ;;  %v4396_v41 = vcombine.low %v4341_v8, %v4343_v22 }
 0x763   :  { %v4403_v7 = vrot.slane %v4395_v16, %v6479_v35  ;;  %v4410_v14 = vrot.slane %v4396_v41, %v6479_v35 }
 0x765   :  { %v4411_v53 = vcombine.low %v4403_v7, %v4410_v14 }
 0x767   :  { %v4413_v17 = vadd.f32 %v4411_v53, %v9808_v5 }
 0x769   :  { %v4414_v37 = vmul.f32 0.5, %v4413_v17  ;;  %v4419_v27 = vrot.slane %v4413_v17, 6 }
 0x76a   :  { %v6217_v26 = vpop.eup %6216 }
 0x76b   :  { %6218 = vtanh.f32 %v4414_v37  ;;  %v4388_v45 = vmul.f32 %v6217_v26, %v4386_v54 }
 0x76c   :  { %6220 = vtanh.f32 %v4419_v27 }
 0x76d   :  { %4578 = vmatmul.mubr.f32.vlgmr.msra.gmra.mrb[36].mxu0 %v4388_v45  ;;  %4649 = vmatmul.mubr.f32.vlgmr.msra.gmra.mrb[36].mxu1 %v4388_v45 }
 0x76e   :  { %6076 = vmatpush1.bf16.msra.mxu0 %v9231_v42  ;;  %6108 = vmatpush1.bf16.msra.mxu1 %v9233_v29  ;;  %v9811_v29 = vld [vmem:[#allocation32_spill] sm:$0xff] }
 0x76f   :  { %6078 = vmatprep.subr.bf16.mxu0 %v9243_v59  ;;  %6110 = vmatprep.subr.bf16.mxu1 %v9245_v25  ;;  %v9812_v59 = vld [vmem:[#allocation33_spill] sm:$0xff]  ;;  %v9813_v25 = vld [vmem:[#allocation18_spill] sm:$0xff] }
 0x770   :  { %4783 = vmatprep.mubr.f32.mxu0 %v9692_v2  ;;  %4854 = vmatprep.mubr.f32.mxu1 %v9692_v2 }
 0x772   :  { %6080 = vmatpush1.bf16.msra.mxu0 %v9269_v28  ;;  %6112 = vmatpush1.bf16.msra.mxu1 %v9271_v63  ;;  %v9816_v28 = vld [vmem:[#allocation25_spill] sm:$0xff] }
 0x773   :  { %6082 = vmatprep.subr.bf16.mxu0 %v9809_v60  ;;  %6114 = vmatprep.subr.bf16.mxu1 %v9810_v3  ;;  %v9824_v3 = vcombine.low %v9806_v9, %v9807_v6 }
 0x775   :  { %v6219_v42 = vpop.eup %6218 }
 0x776   :  { %v4416_v32 = vmul.f32 0.5, %v6219_v42  ;;  %6084 = vmatpush1.bf16.msra.mxu0 %v9811_v29  ;;  %6116 = vmatpush1.bf16.msra.mxu1 %v9812_v59  ;;  %v6221_v63 = vpop.eup %6220 }
 0x777   :  { %6086 = vmatprep.subr.bf16.mxu0 %v9813_v25  ;;  %6118 = vmatprep.subr.bf16.mxu1 %v9814_v10 }
 0x778   :  { %v4417_v2 = vadd.f32 0.5, %v4416_v32 }
 0x77a   :  { %v4423_v39 = vrot.slane %v4417_v2, 2  ;;  %6088 = vmatpush1.bf16.msra.mxu0 %v9815_v36  ;;  %6120 = vmatpush1.bf16.msra.mxu1 %v9816_v28  ;;  %v4426_v33 = vmul.f32 %v6221_v63, %v4417_v2 }
 0x77b   :  { %6090 = vmatprep.subr.bf16.mxu0 %v9817_v23  ;;  %6122 = vmatprep.subr.bf16.mxu1 %v9818_v31 }
 0x77c   :  { %v4425_v58 = vmul.f32 %v4423_v39, %v9418_v40 }
 0x77e   :  { %v9563_v1 = vadd.f32 %v4426_v33, %v4425_v58  ;;  %6092 = vmatpush1.bf16.msra.mxu0 %v9382_v52  ;;  %6124 = vmatpush1.bf16.msra.mxu1 %v9819_v19  ;;  %v4429_v52 = vrot.slane %v4417_v2, 4 }
 0x77f   :  { %6094 = vmatprep.subr.bf16.mxu0 %v9820_v61  ;;  %6126 = vmatprep.subr.bf16.mxu1 %v9821_v12 }
 0x780   :  { %6222 = vtanh.f32 %v9563_v1 }
 0x782   :  { %6096 = vmatpush1.bf16.msra.mxu0 %v9422_v47  ;;  %6128 = vmatpush1.bf16.msra.mxu1 %v9822_v11 }
 0x783   :  { %6098 = vmatprep.subr.bf16.mxu0 %v9434_v13  ;;  %6130 = vmatprep.subr.bf16.mxu1 %v9436_v34  ;;  %v4432_v34 = vld [vmem:[#allocation6] sm:$0xf] }
 0x786   :  { %6100 = vmatpush1.bf16.msra.mxu0 %v9459_v56  ;;  %6132 = vmatpush1.bf16.msra.mxu1 %v9461_v4  ;;  %v4446_v56 = vld [vmem:[#allocation7] sm:$0xf] }
 0x787   :  { %6102 = vmatprep.subr.bf16.mxu0 %v9468_v57  ;;  %6134 = vmatprep.subr.bf16.mxu1 %v9470_v20 }
 0x78a   :  { %v6223_v40 = vpop.eup %6222  ;;  %6104 = vmatpush1.bf16.msra.mxu0 %v9483_v0  ;;  %6136 = vmatpush1.bf16.msra.mxu1 %v9485_v30 }
 0x78b   :  { %v4431_v47 = vmul.f32 %v6223_v40, %v4429_v52 }
 0x78d   :  { %v4435_v38 = vcombine.low %v4388_v45, %v4431_v47  ;;  %4784 = vmatmul.mubr.f32.vlgmr.msra.gmra.mrb[38].mxu0 %v4431_v47  ;;  %4855 = vmatmul.mubr.f32.vlgmr.msra.gmra.mrb[38].mxu1 %v4431_v47 }
 0x78f   :  { %v4442_v13 = vrot.slane %v4435_v38, %v6479_v35 }
 0x791   :  { %v4444_v46 = vadd.f32 %v4442_v13, %v4432_v34  ;;  %v4447_v4 = vmax.f32 %v4446_v56, %v4442_v13 }
 0x793   :  { %4445 = vst [vmem:[#allocation6] sm:$0xf] %v4444_v46  ;;  %4448 = vst [vmem:[#allocation7] sm:$0xf] %v4447_v4 }
 0x79a   :  { %v4946_v61 = vld [vmem:[#allocation6] sm:$0xf]  ;;  %v4960_v12 = vld [vmem:[#allocation7] sm:$0xf] }
 0x840   :  { %v4579_v57 = vpop.f32.mrb[36].mxu0  ;;  %v4650_v20 = vpop.f32.mrb[36].mxu1 }
 0x841   :  { %v4581_v55 = vpop.f32.mrb[37].mxu0  ;;  %v4652_v43 = vpop.f32.mrb[37].mxu1 }
 0x842   :  { %v4867_v15 = vcombine.low %v4579_v57, %v4581_v55  ;;  %v4868_v0 = vcombine.low %v4650_v20, %v4652_v43 }
 0x844   :  { %v4875_v30 = vrot.slane %v4867_v15, %v6479_v35  ;;  %v4882_v18 = vrot.slane %v4868_v0, %v6479_v35 }
 0x846   :  { %v4883_v49 = vcombine.low %v4875_v30, %v4882_v18 }
 0x848   :  { %v4885_v24 = vadd.f32 %v4883_v49, %v9823_v51 }
 0x84a   :  { %v4886_v21 = vmul.f32 0.5, %v4885_v24  ;;  %v4891_v8 = vrot.slane %v4885_v24, 6 }
 0x84c   :  { %6224 = vtanh.f32 %v4886_v21 }
 0x84d   :  { %6226 = vtanh.f32 %v4891_v8 }
 0x856   :  { %v6225_v62 = vpop.eup %6224 }
 0x857   :  { %v4888_v22 = vmul.f32 0.5, %v6225_v62  ;;  %v6227_v7 = vpop.eup %6226 }
 0x859   :  { %v4889_v16 = vadd.f32 0.5, %v4888_v22 }
 0x85b   :  { %v4895_v41 = vrot.slane %v4889_v16, 2  ;;  %v4898_v53 = vmul.f32 %v6227_v7, %v4889_v16  ;;  %v4901_v23 = vrot.slane %v4889_v16, 4 }
 0x85d   :  { %v4897_v14 = vmul.f32 %v4895_v41, %v9536_v48 }
 0x85f   :  { %v4899_v5 = vadd.f32 %v4898_v53, %v4897_v14 }
 0x860   :  { %v4785_v17 = vpop.f32.mrb[38].mxu0  ;;  %v4856_v37 = vpop.f32.mrb[38].mxu1 }
 0x861   :  { %4964 = vst [vmem:[#allocation5] sm:$0x3] %v4899_v5  ;;  %v4787_v54 = vpop.f32.mrb[39].mxu0  ;;  %v4858_v26 = vpop.f32.mrb[39].mxu1 }
 0x862   :  { %v4909_v50 = vcombine.low %v4785_v17, %v4787_v54  ;;  %v4910_v44 = vcombine.low %v4856_v37, %v4858_v26 }
 0x864   :  { %v4917_v45 = vrot.slane %v4909_v50, %v6479_v35  ;;  %v4924_v27 = vrot.slane %v4910_v44, %v6479_v35 }
 0x866   :  { %v4925_v60 = vcombine.low %v4917_v45, %v4924_v27 }
 0x868   :  { %v4927_v42 = vadd.f32 %v4925_v60, %v9824_v3 }
 0x86a   :  { %v4928_v32 = vmul.f32 0.5, %v4927_v42  ;;  %v4933_v48 = vrot.slane %v4927_v42, 6 }
 0x86c   :  { %6228 = vtanh.f32 %v4928_v32 }
 0x86d   :  { %6230 = vtanh.f32 %v4933_v48 }
 0x86e   :  { %6232 = vtanh.f32 %v4899_v5 }
 0x876   :  { %v6229_v29 = vpop.eup %6228 }
 0x877   :  { %v4930_v59 = vmul.f32 0.5, %v6229_v29  ;;  %v6231_v2 = vpop.eup %6230 }
 0x878   :  { %v6233_v63 = vpop.eup %6232 }
 0x879   :  { %v4931_v25 = vadd.f32 0.5, %v4930_v59  ;;  %v4903_v31 = vmul.f32 %v6233_v63, %v4901_v23 }
 0x87b   :  { %v4937_v10 = vrot.slane %v4931_v25, 2  ;;  %v4940_v36 = vmul.f32 %v6231_v2, %v4931_v25  ;;  %v4943_v9 = vrot.slane %v4931_v25, 4 }
 0x87d   :  { %v4939_v39 = vmul.f32 %v4937_v10, %v9563_v1 }
 0x87f   :  { %v4941_v28 = vadd.f32 %v4940_v36, %v4939_v39 }
 0x881   :  { %6234 = vtanh.f32 %v4941_v28  ;;  %4965 = vst [vmem:[#allocation5 + $0x2] sm:$0x3] %v4941_v28 }
 0x88b   :  { %v6235_v6 = vpop.eup %6234 }
 0x88c   :  { %v4945_v58 = vmul.f32 %v6235_v6, %v4943_v9 }
 0x88e   :  { %v4949_v33 = vcombine.low %v4903_v31, %v4945_v58 }
 0x890   :  { %v4956_v19 = vrot.slane %v4949_v33, %v6479_v35  ;;  %4984 = vst.sshfl [vmem:[#allocation4] sm:$0x33 pattern:$0x76325410] %v4949_v33 }
 0x892   :  { %v4958_v11 = vadd.f32 %v4956_v19, %v4946_v61  ;;  %v4961_v52 = vmax.f32 %v4960_v12, %v4956_v19 }
 0x894   :  { %4959 = vst [vmem:[#allocation6] sm:$0xf] %v4958_v11  ;;  %4962 = vst [vmem:[#allocation7] sm:$0xf] %v4961_v52 }
 0x89b   :  { %v4969_v1 = vld [vmem:[#allocation6] sm:$0xf]  ;;  %v4972_v40 = vld [vmem:[#allocation7] sm:$0xf] }
 0x89c   :  { %v4970_v47 = vmul.f32 0.125, %v4969_v1  ;;  %4973 = vst [vmem:[%s9607_s7 + $0x4] sm:$0xf] %v4972_v40 }
 0x89e   :  { %4971 = vst [vmem:[%s9607_s7] sm:$0xf] %v4970_v47 }

</bundles_post_ra>
